<compile_context>
chip_gen: v7x
topology: tpu7x:2x2x1
jax: 0.10.0
libtpu: 0.0.40
codegen_flags: <defaults>
</compile_context>

<pallas_src>
import math
import functools

import jax
import jax.numpy as jnp
from jax.experimental import pallas as pl
from jax.experimental.pallas import tpu as pltpu


def _vmem_limit_bytes() -> int:
    """~75% of per-core VMEM: ~48 MiB on v7x (64 MiB), ~96 MiB on v5e/v6e."""
    try:
        cap = pltpu.get_tpu_info().vmem_capacity_bytes
    except Exception:  # hardware query unavailable -> conservative default
        cap = 64 * 1024 * 1024
    return int(cap * 3 // 4)


def _kv_proj_kernel(k_ref, v_ref, wk_t_ref, wv_t_ref, kp_ref, vp_ref, *,
                    n_heads: int, d_k: int):
    """Grid = (batch,). Projects K and V once per batch element, head-major.

    k_ref / v_ref   : (1, S, D)      bf16
    wk_t / wv_t     : (D, D)         bf16, (out, in) layout
    kp_ref / vp_ref : (1, H, d_k, S) bf16  (K^T / V^T per head, lane-dense on S)
    """
    S = k_ref.shape[1]
    # (D_out, S) = W @ x^T via A@B^T (both operands contract their minor dim):
    # no transpose of the projection result anywhere; head split is a free
    # sublane-axis reshape (d_k = 32 is a multiple of the sublane tile).
    kp = jax.lax.dot_general(wk_t_ref[...], k_ref[0],
                             dimension_numbers=(((1,), (1,)), ((), ())),
                             preferred_element_type=jnp.float32)
    vp = jax.lax.dot_general(wv_t_ref[...], v_ref[0],
                             dimension_numbers=(((1,), (1,)), ((), ())),
                             preferred_element_type=jnp.float32)
    kp_ref[0] = kp.astype(jnp.bfloat16).reshape(n_heads, d_k, S)
    vp_ref[0] = vp.astype(jnp.bfloat16).reshape(n_heads, d_k, S)


def _attn_kernel(q_ref, kp_ref, vp_ref, wq_ref, wo_h_ref, bo_ref, o_ref, *,
                 n_heads: int, d_k: int):
    """Grid = (batch, num_q_tiles); both axes parallel (no carried state).

    q_ref           : (1, tq, D)      bf16
    kp_ref / vp_ref : (1, H, d_k, S)  bf16  projected K^T / V^T (from stage 1)
    wq_ref          : (D, D)          bf16  pre-scaled by 1/sqrt(d_k), x@W form
    wo_h_ref        : (H, d_k, D)     bf16  output weight split per head
    bo_ref          : (1, D)          f32
    o_ref           : (1, tq, D)
    """
    H = n_heads
    tq = q_ref.shape[1]
    D = H * d_k

    # Q projection (scale already folded into the weight on the host).
    Qp = jnp.dot(q_ref[0], wq_ref[...],
                 preferred_element_type=jnp.float32)              # (tq, D)
    # Head split — the single remaining small cross-lane relayout per tile.
    Qh = jnp.transpose(Qp.astype(jnp.bfloat16).reshape(tq, H, d_k),
                       (1, 0, 2))                                  # (H, tq, d_k)

    kp = kp_ref[0]                                                 # (H, d_k, S)
    vp = vp_ref[0]                                                 # (H, d_k, S)

    # Scores: batched over heads, RHS lane-dense on S, f32 accumulation.
    scores = jnp.einsum('hqd,hdk->hqk', Qh, kp,
                        preferred_element_type=jnp.float32)        # (H, tq, S)

    # Numerically-stable softmax in f32; approx reciprocal -> EUP slot.
    m = jnp.max(scores, axis=-1, keepdims=True)
    p = jnp.exp(scores - m)
    attn = (p * pl.reciprocal(jnp.sum(p, axis=-1, keepdims=True),
                              approx=True)).astype(jnp.bfloat16)

    # Context: contract S (minor dim of both operands).
    ctx = jnp.einsum('hqk,hdk->hqd', attn, vp,
                     preferred_element_type=jnp.float32)           # (H, tq, d_k)

    # Output projection accumulated per head: avoids a (tq, D) relayout of ctx.
    out = jnp.broadcast_to(bo_ref[...], (tq, D))
    for h in range(H):
        out = out + jnp.dot(ctx[h].astype(jnp.bfloat16), wo_h_ref[h],
                            preferred_element_type=jnp.float32)
    o_ref[0] = out.astype(o_ref.dtype)


def multi_head_attention(query, key, value, wq, wk, wv, wo, bo, *,
                         n_heads: int, q_tile: int = 256):
    """query/key/value: (B, S, D). wq/wk/wv/wo: (D, D) in x@W form. bo: (D,)."""
    B, S, D = query.shape
    assert D % n_heads == 0
    d_k = D // n_heads
    H = n_heads

    # Query-row tile (must divide S; otherwise fall back to a single tile).
    tq = q_tile if S % q_tile == 0 else S
    nq = S // tq

    vmem_limit = _vmem_limit_bytes()
    bf16 = jnp.bfloat16

    q_b, k_b, v_b = query.astype(bf16), key.astype(bf16), value.astype(bf16)
    # 1/sqrt(d_k) folded into the Q weight (scaled in f32, then cast).
    wq_b = (wq * (1.0 / math.sqrt(d_k))).astype(bf16)
    # K/V weights in (out, in) layout for the transposed (A@B^T) projection.
    wk_t = wk.T.astype(bf16)
    wv_t = wv.T.astype(bf16)
    # Output weight split per head for the accumulated output projection.
    wo_h = wo.reshape(H, d_k, D).astype(bf16)
    bo2 = bo.reshape(1, D).astype(jnp.float32)

    # Constant-index blocks never change: single VMEM buffer, stay resident.
    const = dict(pipeline_mode=pl.Buffered(1))

    # ---- Stage 1: K/V projections, hoisted out of the attention kernel ----
    kv_kernel = functools.partial(_kv_proj_kernel, n_heads=H, d_k=d_k)
    kp, vp = pl.pallas_call(
        kv_kernel,
        out_shape=(jax.ShapeDtypeStruct((B, H, d_k, S), bf16),
                   jax.ShapeDtypeStruct((B, H, d_k, S), bf16)),
        grid_spec=pltpu.PrefetchScalarGridSpec(
            num_scalar_prefetch=0,
            grid=(B,),
            in_specs=[pl.BlockSpec((1, S, D), lambda b: (b, 0, 0)),
                      pl.BlockSpec((1, S, D), lambda b: (b, 0, 0)),
                      pl.BlockSpec((D, D), lambda b: (0, 0), **const),
                      pl.BlockSpec((D, D), lambda b: (0, 0), **const)],
            out_specs=[pl.BlockSpec((1, H, d_k, S), lambda b: (b, 0, 0, 0)),
                       pl.BlockSpec((1, H, d_k, S), lambda b: (b, 0, 0, 0))],
        ),
        compiler_params=pltpu.CompilerParams(
            dimension_semantics=("parallel",),
            vmem_limit_bytes=vmem_limit),
    )(k_b, v_b, wk_t, wv_t)

    # ---- Stage 2: attention + output projection over (batch, q-tiles) ----
    attn_kernel = functools.partial(_attn_kernel, n_heads=H, d_k=d_k)
    return pl.pallas_call(
        attn_kernel,
        out_shape=jax.ShapeDtypeStruct((B, S, D), query.dtype),
        grid_spec=pltpu.PrefetchScalarGridSpec(
            num_scalar_prefetch=0,
            grid=(B, nq),
            in_specs=[pl.BlockSpec((1, tq, D), lambda b, i: (b, i, 0)),
                      pl.BlockSpec((1, H, d_k, S), lambda b, i: (b, 0, 0, 0)),
                      pl.BlockSpec((1, H, d_k, S), lambda b, i: (b, 0, 0, 0)),
                      pl.BlockSpec((D, D), lambda b, i: (0, 0), **const),
                      pl.BlockSpec((H, d_k, D), lambda b, i: (0, 0, 0), **const),
                      pl.BlockSpec((1, D), lambda b, i: (0, 0), **const)],
            out_specs=pl.BlockSpec((1, tq, D), lambda b, i: (b, i, 0)),
        ),
        compiler_params=pltpu.CompilerParams(
            dimension_semantics=("parallel", "parallel"),
            vmem_limit_bytes=vmem_limit),
    )(q_b, kp, vp, wq_b, wo_h, bo2)


def _reference_mha(query, key, value, wq, wk, wv, wo, bo, *, n_heads):
    """Plain-JAX fp32 reference reproducing the PyTorch forward (eval mode)."""
    B, S, D = query.shape
    d_k = D // n_heads
    Q = (query @ wq).reshape(B, S, n_heads, d_k).transpose(0, 2, 1, 3)
    K = (key @ wk).reshape(B, S, n_heads, d_k).transpose(0, 2, 1, 3)
    V = (value @ wv).reshape(B, S, n_heads, d_k).transpose(0, 2, 1, 3)
    scores = jnp.einsum('bhqd,bhkd->bhqk', Q, K) / math.sqrt(d_k)
    attn = jax.nn.softmax(scores, axis=-1)
    ctx = jnp.einsum('bhqk,bhkd->bhqd', attn, V)
    ctx = ctx.transpose(0, 2, 1, 3).reshape(B, S, D)
    return ctx @ wo + bo


if __name__ == "__main__":
    # Small, lane-dense shapes: batch=2, seq=256, d_model=128, 4 heads (d_k=32).
    B, S, D, H = 2, 256, 128, 4

    key0 = jax.random.PRNGKey(0)
    k_q, k_k, k_v, k_wq, k_wk, k_wv, k_wo, k_bo = jax.random.split(key0, 8)

    query = jax.random.normal(k_q, (B, S, D), dtype=jnp.float32)
    keyx = jax.random.normal(k_k, (B, S, D), dtype=jnp.float32)
    value = jax.random.normal(k_v, (B, S, D), dtype=jnp.float32)

    # Parameters stored pre-transposed so x @ W matches PyTorch's x @ W.T.
    scale = 1.0 / math.sqrt(D)
    wq = jax.random.uniform(k_wq, (D, D), jnp.float32, -scale, scale)
    wk = jax.random.uniform(k_wk, (D, D), jnp.float32, -scale, scale)
    wv = jax.random.uniform(k_wv, (D, D), jnp.float32, -scale, scale)
    wo = jax.random.uniform(k_wo, (D, D), jnp.float32, -scale, scale)
    bo = jax.random.uniform(k_bo, (D,), jnp.float32, -scale, scale)

    mha = jax.jit(functools.partial(multi_head_attention, n_heads=H))
    out = jax.block_until_ready(mha(query, keyx, value, wq, wk, wv, wo, bo))

    ref = _reference_mha(query, keyx, value, wq, wk, wv, wo, bo, n_heads=H)
    assert out.shape == (B, S, D)
    max_err = jnp.max(jnp.abs(out - ref))
    # bf16 MXU operands + approx softmax reciprocal vs. fp32 reference.
    assert jnp.allclose(out, ref, rtol=2e-2, atol=2e-2), \
        f"max abs diff {max_err}"

    print("KERNEL_OK")
</pallas_src>

<mosaic_0001>
module attributes {stable_mosaic.version = 11 : i64} {
  func.func @_kv_proj_kernel(%arg0: i32, %arg1: memref<1x256x128xbf16, #tpu.memory_space<vmem>>, %arg2: memref<1x256x128xbf16, #tpu.memory_space<vmem>>, %arg3: memref<128x128xbf16, #tpu.memory_space<vmem>>, %arg4: memref<128x128xbf16, #tpu.memory_space<vmem>>, %arg5: memref<1x4x32x256xbf16, #tpu.memory_space<vmem>>, %arg6: memref<1x4x32x256xbf16, #tpu.memory_space<vmem>>) attributes {dimension_semantics = [#tpu.dimension_semantics<parallel>], iteration_bounds = array<i64: 2>, scalar_prefetch = 0 : i64, scratch_operands = 0 : i64, tpu.core_type = #tpu.core_type<tc>, window_params = [{transform_indices = @transform_0, window_bounds = array<i64: 1, 256, 128>}, {transform_indices = @transform_1, window_bounds = array<i64: 1, 256, 128>}, {pipeline_mode = #tpu.pipeline_mode<synchronous>, transform_indices = @transform_2, window_bounds = array<i64: 128, 128>}, {pipeline_mode = #tpu.pipeline_mode<synchronous>, transform_indices = @transform_3, window_bounds = array<i64: 128, 128>}, {transform_indices = @transform_4, window_bounds = array<i64: 1, 4, 32, 256>}, {transform_indices = @transform_5, window_bounds = array<i64: 1, 4, 32, 256>}]} {
    %c0 = arith.constant 0 : index
    %c0_0 = arith.constant 0 : index
    %0 = vector.load %arg3[%c0, %c0_0] : memref<128x128xbf16, #tpu.memory_space<vmem>>, vector<128x128xbf16>
    %c0_1 = arith.constant 0 : index
    %c0_2 = arith.constant 0 : index
    %c0_3 = arith.constant 0 : index
    %1 = vector.load %arg1[%c0_1, %c0_2, %c0_3] : memref<1x256x128xbf16, #tpu.memory_space<vmem>>, vector<1x256x128xbf16>
    %2 = vector.shape_cast %1 : vector<1x256x128xbf16> to vector<256x128xbf16>
    %cst = arith.constant dense<0.000000e+00> : vector<128x256xf32>
    %3 = tpu.matmul %0, %2, %cst {dimension_numbers = #tpu.dot_dimension_numbers<[1], [1], [0], [0], [0, 0, 1, 0], [], []>} : vector<128x128xbf16>, vector<256x128xbf16>, vector<128x256xf32> -> vector<128x256xf32>
    %c0_4 = arith.constant 0 : index
    %c0_5 = arith.constant 0 : index
    %4 = vector.load %arg4[%c0_4, %c0_5] : memref<128x128xbf16, #tpu.memory_space<vmem>>, vector<128x128xbf16>
    %c0_6 = arith.constant 0 : index
    %c0_7 = arith.constant 0 : index
    %c0_8 = arith.constant 0 : index
    %5 = vector.load %arg2[%c0_6, %c0_7, %c0_8] : memref<1x256x128xbf16, #tpu.memory_space<vmem>>, vector<1x256x128xbf16>
    %6 = vector.shape_cast %5 : vector<1x256x128xbf16> to vector<256x128xbf16>
    %cst_9 = arith.constant dense<0.000000e+00> : vector<128x256xf32>
    %7 = tpu.matmul %4, %6, %cst_9 {dimension_numbers = #tpu.dot_dimension_numbers<[1], [1], [0], [0], [0, 0, 1, 0], [], []>} : vector<128x128xbf16>, vector<256x128xbf16>, vector<128x256xf32> -> vector<128x256xf32>
    %8 = arith.truncf %3 : vector<128x256xf32> to vector<128x256xbf16>
    %9 = vector.shape_cast %8 : vector<128x256xbf16> to vector<4x32x256xbf16>
    %c0_10 = arith.constant 0 : index
    %c0_11 = arith.constant 0 : index
    %c0_12 = arith.constant 0 : index
    %c0_13 = arith.constant 0 : index
    %10 = vector.load %arg5[%c0_10, %c0_11, %c0_12, %c0_13] : memref<1x4x32x256xbf16, #tpu.memory_space<vmem>>, vector<1x4x32x256xbf16>
    %11 = vector.shape_cast %10 : vector<1x4x32x256xbf16> to vector<4x32x256xbf16>
    %12 = vector.shape_cast %9 : vector<4x32x256xbf16> to vector<1x4x32x256xbf16>
    tpu.vector_store %arg5[%c0_10, %c0_11, %c0_12, %c0_13], %12 {strides = array<i32>} : memref<1x4x32x256xbf16, #tpu.memory_space<vmem>>, vector<1x4x32x256xbf16>,
    %13 = arith.truncf %7 : vector<128x256xf32> to vector<128x256xbf16>
    %14 = vector.shape_cast %13 : vector<128x256xbf16> to vector<4x32x256xbf16>
    %c0_14 = arith.constant 0 : index
    %c0_15 = arith.constant 0 : index
    %c0_16 = arith.constant 0 : index
    %c0_17 = arith.constant 0 : index
    %15 = vector.load %arg6[%c0_14, %c0_15, %c0_16, %c0_17] : memref<1x4x32x256xbf16, #tpu.memory_space<vmem>>, vector<1x4x32x256xbf16>
    %16 = vector.shape_cast %15 : vector<1x4x32x256xbf16> to vector<4x32x256xbf16>
    %17 = vector.shape_cast %14 : vector<4x32x256xbf16> to vector<1x4x32x256xbf16>
    tpu.vector_store %arg6[%c0_14, %c0_15, %c0_16, %c0_17], %17 {strides = array<i32>} : memref<1x4x32x256xbf16, #tpu.memory_space<vmem>>, vector<1x4x32x256xbf16>,
    return
  }
  func.func @transform_0(%arg0: i32) -> (i32, i32, i32) {
    %c0_i32 = arith.constant 0 : i32
    %c0_i32_0 = arith.constant 0 : i32
    %c0_i32_1 = arith.constant 0 : i32
    return %arg0, %c0_i32, %c0_i32_0 : i32, i32, i32
  }
  func.func @transform_1(%arg0: i32) -> (i32, i32, i32) {
    %c0_i32 = arith.constant 0 : i32
    %c0_i32_0 = arith.constant 0 : i32
    %c0_i32_1 = arith.constant 0 : i32
    return %arg0, %c0_i32, %c0_i32_0 : i32, i32, i32
  }
  func.func @transform_2(%arg0: i32) -> (i32, i32) {
    %c0_i32 = arith.constant 0 : i32
    %c0_i32_0 = arith.constant 0 : i32
    %c0_i32_1 = arith.constant 0 : i32
    return %c0_i32, %c0_i32_0 : i32, i32
  }
  func.func @transform_3(%arg0: i32) -> (i32, i32) {
    %c0_i32 = arith.constant 0 : i32
    %c0_i32_0 = arith.constant 0 : i32
    %c0_i32_1 = arith.constant 0 : i32
    return %c0_i32, %c0_i32_0 : i32, i32
  }
  func.func @transform_4(%arg0: i32) -> (i32, i32, i32, i32) {
    %c0_i32 = arith.constant 0 : i32
    %c0_i32_0 = arith.constant 0 : i32
    %c0_i32_1 = arith.constant 0 : i32
    %c0_i32_2 = arith.constant 0 : i32
    return %arg0, %c0_i32, %c0_i32_0, %c0_i32_1 : i32, i32, i32, i32
  }
  func.func @transform_5(%arg0: i32) -> (i32, i32, i32, i32) {
    %c0_i32 = arith.constant 0 : i32
    %c0_i32_0 = arith.constant 0 : i32
    %c0_i32_1 = arith.constant 0 : i32
    %c0_i32_2 = arith.constant 0 : i32
    return %arg0, %c0_i32, %c0_i32_0, %c0_i32_1 : i32, i32, i32, i32
  }
}

module attributes {stable_mosaic.version = 11 : i64} {
  func.func @_attn_kernel(%arg0: i32, %arg1: i32, %arg2: memref<1x256x128xbf16, #tpu.memory_space<vmem>>, %arg3: memref<1x4x32x256xbf16, #tpu.memory_space<vmem>>, %arg4: memref<1x4x32x256xbf16, #tpu.memory_space<vmem>>, %arg5: memref<128x128xbf16, #tpu.memory_space<vmem>>, %arg6: memref<4x32x128xbf16, #tpu.memory_space<vmem>>, %arg7: memref<1x128xf32, #tpu.memory_space<vmem>>, %arg8: memref<1x256x128xf32, #tpu.memory_space<vmem>>) attributes {dimension_semantics = [#tpu.dimension_semantics<parallel>, #tpu.dimension_semantics<parallel>], iteration_bounds = array<i64: 2, 1>, scalar_prefetch = 0 : i64, scratch_operands = 0 : i64, tpu.core_type = #tpu.core_type<tc>, window_params = [{transform_indices = @transform_0, window_bounds = array<i64: 1, 256, 128>}, {transform_indices = @transform_1, window_bounds = array<i64: 1, 4, 32, 256>}, {transform_indices = @transform_2, window_bounds = array<i64: 1, 4, 32, 256>}, {pipeline_mode = #tpu.pipeline_mode<synchronous>, transform_indices = @transform_3, window_bounds = array<i64: 128, 128>}, {pipeline_mode = #tpu.pipeline_mode<synchronous>, transform_indices = @transform_4, window_bounds = array<i64: 4, 32, 128>}, {pipeline_mode = #tpu.pipeline_mode<synchronous>, transform_indices = @transform_5, window_bounds = array<i64: 1, 128>}, {transform_indices = @transform_6, window_bounds = array<i64: 1, 256, 128>}]} {
    %c0 = arith.constant 0 : index
    %c0_0 = arith.constant 0 : index
    %c0_1 = arith.constant 0 : index
    %0 = vector.load %arg2[%c0, %c0_0, %c0_1] : memref<1x256x128xbf16, #tpu.memory_space<vmem>>, vector<1x256x128xbf16>
    %1 = vector.shape_cast %0 : vector<1x256x128xbf16> to vector<256x128xbf16>
    %c0_2 = arith.constant 0 : index
    %c0_3 = arith.constant 0 : index
    %2 = vector.load %arg5[%c0_2, %c0_3] : memref<128x128xbf16, #tpu.memory_space<vmem>>, vector<128x128xbf16>
    %cst = arith.constant dense<0.000000e+00> : vector<256x128xf32>
    %3 = tpu.matmul %1, %2, %cst {dimension_numbers = #tpu.dot_dimension_numbers<[1], [0], [0], [1], [0, 0, 1, 1], [], []>} : vector<256x128xbf16>, vector<128x128xbf16>, vector<256x128xf32> -> vector<256x128xf32>
    %4 = arith.truncf %3 : vector<256x128xf32> to vector<256x128xbf16>
    %5 = vector.shape_cast %4 : vector<256x128xbf16> to vector<256x4x32xbf16>
    %6 = tpu.transpose %5, [1, 0, 2] : vector<256x4x32xbf16> -> vector<4x256x32xbf16>
    %c0_4 = arith.constant 0 : index
    %c0_5 = arith.constant 0 : index
    %c0_6 = arith.constant 0 : index
    %c0_7 = arith.constant 0 : index
    %7 = vector.load %arg3[%c0_4, %c0_5, %c0_6, %c0_7] : memref<1x4x32x256xbf16, #tpu.memory_space<vmem>>, vector<1x4x32x256xbf16>
    %8 = vector.shape_cast %7 : vector<1x4x32x256xbf16> to vector<4x32x256xbf16>
    %c0_8 = arith.constant 0 : index
    %c0_9 = arith.constant 0 : index
    %c0_10 = arith.constant 0 : index
    %c0_11 = arith.constant 0 : index
    %9 = vector.load %arg4[%c0_8, %c0_9, %c0_10, %c0_11] : memref<1x4x32x256xbf16, #tpu.memory_space<vmem>>, vector<1x4x32x256xbf16>
    %10 = vector.shape_cast %9 : vector<1x4x32x256xbf16> to vector<4x32x256xbf16>
    "tpu.trace_start"() <{level = 10 : i32, message = "hqd,hdk->hqk"}> : () -> ()
    %cst_12 = arith.constant dense<0.000000e+00> : vector<4x256x256xf32>
    %11 = tpu.matmul %6, %8, %cst_12 {dimension_numbers = #tpu.dot_dimension_numbers<[2], [1], [1], [2], [0, 0, 0, 1, 1, 2], [0], [0]>} : vector<4x256x32xbf16>, vector<4x32x256xbf16>, vector<4x256x256xf32> -> vector<4x256x256xf32>
    "tpu.trace_stop"() : () -> ()
    %cst_13 = arith.constant dense<0xFF800000> : vector<4x256xf32>
    %12 = vector.multi_reduction <maximumf>, %11, %cst_13 [2] : vector<4x256x256xf32> to vector<4x256xf32>
    %13 = vector.shape_cast %12 : vector<4x256xf32> to vector<4x256x1xf32>
    %14 = vector.broadcast %13 : vector<4x256x1xf32> to vector<4x256x256xf32>
    %15 = arith.subf %11, %14 : vector<4x256x256xf32>
    %16 = math.exp %15 : vector<4x256x256xf32>
    %cst_14 = arith.constant dense<0.000000e+00> : vector<4x256xf32>
    %17 = vector.multi_reduction <add>, %16, %cst_14 [2] : vector<4x256x256xf32> to vector<4x256xf32>
    %18 = vector.shape_cast %17 : vector<4x256xf32> to vector<4x256x1xf32>
    %19 = tpu.reciprocal %18 {approx = true} : vector<4x256x1xf32> -> vector<4x256x1xf32>
    %20 = vector.broadcast %19 : vector<4x256x1xf32> to vector<4x256x256xf32>
    %21 = arith.mulf %16, %20 : vector<4x256x256xf32>
    %22 = arith.truncf %21 : vector<4x256x256xf32> to vector<4x256x256xbf16>
    "tpu.trace_start"() <{level = 10 : i32, message = "hqk,hdk->hqd"}> : () -> ()
    %cst_15 = arith.constant dense<0.000000e+00> : vector<4x256x32xf32>
    %23 = tpu.matmul %22, %10, %cst_15 {dimension_numbers = #tpu.dot_dimension_numbers<[2], [2], [1], [1], [0, 0, 0, 1, 1, 1], [0], [0]>} : vector<4x256x256xbf16>, vector<4x32x256xbf16>, vector<4x256x32xf32> -> vector<4x256x32xf32>
    "tpu.trace_stop"() : () -> ()
    %c0_16 = arith.constant 0 : index
    %c0_17 = arith.constant 0 : index
    %24 = vector.load %arg7[%c0_16, %c0_17] : memref<1x128xf32, #tpu.memory_space<vmem>>, vector<1x128xf32>
    %25 = vector.shape_cast %24 : vector<1x128xf32> to vector<1x128xf32>
    %26 = vector.broadcast %25 : vector<1x128xf32> to vector<256x128xf32>
    %27 = vector.extract_strided_slice %23 {offsets = [0, 0, 0], sizes = [1, 256, 32], strides = [1, 1, 1]} : vector<4x256x32xf32> to vector<1x256x32xf32>
    %28 = vector.shape_cast %27 : vector<1x256x32xf32> to vector<256x32xf32>
    %29 = arith.truncf %28 : vector<256x32xf32> to vector<256x32xbf16>
    %c0_18 = arith.constant 0 : index
    %c0_19 = arith.constant 0 : index
    %c0_20 = arith.constant 0 : index
    %30 = vector.load %arg6[%c0_18, %c0_19, %c0_20] : memref<4x32x128xbf16, #tpu.memory_space<vmem>>, vector<1x32x128xbf16>
    %31 = vector.shape_cast %30 : vector<1x32x128xbf16> to vector<32x128xbf16>
    %cst_21 = arith.constant dense<0.000000e+00> : vector<256x128xf32>
    %32 = tpu.matmul %29, %31, %cst_21 {dimension_numbers = #tpu.dot_dimension_numbers<[1], [0], [0], [1], [0, 0, 1, 1], [], []>} : vector<256x32xbf16>, vector<32x128xbf16>, vector<256x128xf32> -> vector<256x128xf32>
    %33 = arith.addf %26, %32 : vector<256x128xf32>
    %34 = vector.extract_strided_slice %23 {offsets = [1, 0, 0], sizes = [1, 256, 32], strides = [1, 1, 1]} : vector<4x256x32xf32> to vector<1x256x32xf32>
    %35 = vector.shape_cast %34 : vector<1x256x32xf32> to vector<256x32xf32>
    %36 = arith.truncf %35 : vector<256x32xf32> to vector<256x32xbf16>
    %c1 = arith.constant 1 : index
    %c0_22 = arith.constant 0 : index
    %c0_23 = arith.constant 0 : index
    %37 = vector.load %arg6[%c1, %c0_22, %c0_23] : memref<4x32x128xbf16, #tpu.memory_space<vmem>>, vector<1x32x128xbf16>
    %38 = vector.shape_cast %37 : vector<1x32x128xbf16> to vector<32x128xbf16>
    %cst_24 = arith.constant dense<0.000000e+00> : vector<256x128xf32>
    %39 = tpu.matmul %36, %38, %cst_24 {dimension_numbers = #tpu.dot_dimension_numbers<[1], [0], [0], [1], [0, 0, 1, 1], [], []>} : vector<256x32xbf16>, vector<32x128xbf16>, vector<256x128xf32> -> vector<256x128xf32>
    %40 = arith.addf %33, %39 : vector<256x128xf32>
    %41 = vector.extract_strided_slice %23 {offsets = [2, 0, 0], sizes = [1, 256, 32], strides = [1, 1, 1]} : vector<4x256x32xf32> to vector<1x256x32xf32>
    %42 = vector.shape_cast %41 : vector<1x256x32xf32> to vector<256x32xf32>
    %43 = arith.truncf %42 : vector<256x32xf32> to vector<256x32xbf16>
    %c2 = arith.constant 2 : index
    %c0_25 = arith.constant 0 : index
    %c0_26 = arith.constant 0 : index
    %44 = vector.load %arg6[%c2, %c0_25, %c0_26] : memref<4x32x128xbf16, #tpu.memory_space<vmem>>, vector<1x32x128xbf16>
    %45 = vector.shape_cast %44 : vector<1x32x128xbf16> to vector<32x128xbf16>
    %cst_27 = arith.constant dense<0.000000e+00> : vector<256x128xf32>
    %46 = tpu.matmul %43, %45, %cst_27 {dimension_numbers = #tpu.dot_dimension_numbers<[1], [0], [0], [1], [0, 0, 1, 1], [], []>} : vector<256x32xbf16>, vector<32x128xbf16>, vector<256x128xf32> -> vector<256x128xf32>
    %47 = arith.addf %40, %46 : vector<256x128xf32>
    %48 = vector.extract_strided_slice %23 {offsets = [3, 0, 0], sizes = [1, 256, 32], strides = [1, 1, 1]} : vector<4x256x32xf32> to vector<1x256x32xf32>
    %49 = vector.shape_cast %48 : vector<1x256x32xf32> to vector<256x32xf32>
    %50 = arith.truncf %49 : vector<256x32xf32> to vector<256x32xbf16>
    %c3 = arith.constant 3 : index
    %c0_28 = arith.constant 0 : index
    %c0_29 = arith.constant 0 : index
    %51 = vector.load %arg6[%c3, %c0_28, %c0_29] : memref<4x32x128xbf16, #tpu.memory_space<vmem>>, vector<1x32x128xbf16>
    %52 = vector.shape_cast %51 : vector<1x32x128xbf16> to vector<32x128xbf16>
    %cst_30 = arith.constant dense<0.000000e+00> : vector<256x128xf32>
    %53 = tpu.matmul %50, %52, %cst_30 {dimension_numbers = #tpu.dot_dimension_numbers<[1], [0], [0], [1], [0, 0, 1, 1], [], []>} : vector<256x32xbf16>, vector<32x128xbf16>, vector<256x128xf32> -> vector<256x128xf32>
    %54 = arith.addf %47, %53 : vector<256x128xf32>
    %c0_31 = arith.constant 0 : index
    %c0_32 = arith.constant 0 : index
    %c0_33 = arith.constant 0 : index
    %55 = vector.load %arg8[%c0_31, %c0_32, %c0_33] : memref<1x256x128xf32, #tpu.memory_space<vmem>>, vector<1x256x128xf32>
    %56 = vector.shape_cast %55 : vector<1x256x128xf32> to vector<256x128xf32>
    %57 = vector.shape_cast %54 : vector<256x128xf32> to vector<1x256x128xf32>
    tpu.vector_store %arg8[%c0_31, %c0_32, %c0_33], %57 {strides = array<i32>} : memref<1x256x128xf32, #tpu.memory_space<vmem>>, vector<1x256x128xf32>,
    return
  }
  func.func @transform_0(%arg0: i32, %arg1: i32) -> (i32, i32, i32) {
    %c0_i32 = arith.constant 0 : i32
    %c0_i32_0 = arith.constant 0 : i32
    return %arg0, %arg1, %c0_i32 : i32, i32, i32
  }
  func.func @transform_1(%arg0: i32, %arg1: i32) -> (i32, i32, i32, i32) {
    %c0_i32 = arith.constant 0 : i32
    %c0_i32_0 = arith.constant 0 : i32
    %c0_i32_1 = arith.constant 0 : i32
    %c0_i32_2 = arith.constant 0 : i32
    return %arg0, %c0_i32, %c0_i32_0, %c0_i32_1 : i32, i32, i32, i32
  }
  func.func @transform_2(%arg0: i32, %arg1: i32) -> (i32, i32, i32, i32) {
    %c0_i32 = arith.constant 0 : i32
    %c0_i32_0 = arith.constant 0 : i32
    %c0_i32_1 = arith.constant 0 : i32
    %c0_i32_2 = arith.constant 0 : i32
    return %arg0, %c0_i32, %c0_i32_0, %c0_i32_1 : i32, i32, i32, i32
  }
  func.func @transform_3(%arg0: i32, %arg1: i32) -> (i32, i32) {
    %c0_i32 = arith.constant 0 : i32
    %c0_i32_0 = arith.constant 0 : i32
    %c0_i32_1 = arith.constant 0 : i32
    return %c0_i32, %c0_i32_0 : i32, i32
  }
  func.func @transform_4(%arg0: i32, %arg1: i32) -> (i32, i32, i32) {
    %c0_i32 = arith.constant 0 : i32
    %c0_i32_0 = arith.constant 0 : i32
    %c0_i32_1 = arith.constant 0 : i32
    %c0_i32_2 = arith.constant 0 : i32
    return %c0_i32, %c0_i32_0, %c0_i32_1 : i32, i32, i32
  }
  func.func @transform_5(%arg0: i32, %arg1: i32) -> (i32, i32) {
    %c0_i32 = arith.constant 0 : i32
    %c0_i32_0 = arith.constant 0 : i32
    %c0_i32_1 = arith.constant 0 : i32
    return %c0_i32, %c0_i32_0 : i32, i32
  }
  func.func @transform_6(%arg0: i32, %arg1: i32) -> (i32, i32, i32) {
    %c0_i32 = arith.constant 0 : i32
    %c0_i32_0 = arith.constant 0 : i32
    return %arg0, %arg1, %c0_i32 : i32, i32, i32
  }
}

</mosaic_0001>

<bundles_post_ra>
// kernel: multi_head_attention.2
= control target key start
LH: loop header
LB: loop body
LE: loop exit
PB: predicated region body
PF: predicated region fallthrough
CT: control target
= control target key end

     0   :  { %s1482_s18 = smov 0   ;;  %s1639_s0 = inlined_call_operand.vmem [shape: bf16[2,256,128], index: 0, kind: input, shape index: {}]   ;;  %s1640_s1 = inlined_call_operand.vmem [shape: bf16[2,256,128], index: 1, kind: input, shape index: {}]   ;;  %s1641_s2 = inlined_call_operand.vmem [shape: bf16[128,128], index: 2, kind: input, shape index: {}]   ;;  %s1642_s3 = inlined_call_operand.vmem [shape: bf16[128,128], index: 3, kind: input, shape index: {}]   ;;  %s1643_s4 = inlined_call_operand.vmem [shape: bf16[2,4,32,256], index: 4, kind: output, shape index: {0}]   ;;  %s1644_s5 = inlined_call_operand.vmem [shape: bf16[2,4,32,256], index: 5, kind: output, shape index: {1}]  }
   0x1 LB: > { %s1193_s19 = sadd.s32 4294967295, %s1450_s18   ;;  %p1197_p0 = scmp.ge.s32.totalorder %s1450_s18, 1  ;;  %s1450_s18 = sphi %s1482_s18, %s16_s18  }
   0x2   : > { %p200_p1 = scmp.lt.s32.totalorder %s1450_s18, 3 }
   0x4   : > { %p201_p2 = pnand %p1197_p0, %p200_p1 }
   0x5   : > { %p238_p3 = scmp.lt.s32.totalorder (!%p201_p2), %s1193_s19, 1  ;;  %v1493_v0 = vld [vmem:[%s1641_s2] sm:$0xff] (!%p201_p2)   ;;  %v1430_v34 = vld [vmem:[%s1641_s2 + $0x8] sm:$0xff] (!%p201_p2)   ;;  %v1432_v36 = vld [vmem:[%s1641_s2 + $0x10] sm:$0xff] (!%p201_p2)  }
   0x6   : > { %204 = sbr.rel (%p201_p2) target bundleno = 357 (0x165), region = 36  ;;  %v1498_v1 = vld [vmem:[%s1642_s3] sm:$0xff] (!%p201_p2)   ;;  %1340 = vmatprep.mubr.bf16.mxu0 (!%p201_p2), %v1493_v0  ;;  %v1431_v35 = vld [vmem:[%s1642_s3 + $0x8] sm:$0xff] (!%p201_p2)   ;;  %v1433_v37 = vld [vmem:[%s1642_s3 + $0x10] sm:$0xff] (!%p201_p2)  }
   0x7   : > { %1372 = vmatprep.mubr.bf16.mxu1 (!%p201_p2), %v1498_v1  ;;  %v1434_v38 = vld [vmem:[%s1641_s2 + $0x18] sm:$0xff] (!%p201_p2)   ;;  %v1436_v40 = vld [vmem:[%s1641_s2 + $0x20] sm:$0xff] (!%p201_p2)   ;;  %v1438_v42 = vld [vmem:[%s1641_s2 + $0x28] sm:$0xff] (!%p201_p2)  }
   0x8   : > { %v1435_v39 = vld [vmem:[%s1642_s3 + $0x18] sm:$0xff] (!%p201_p2)   ;;  %v1437_v41 = vld [vmem:[%s1642_s3 + $0x20] sm:$0xff] (!%p201_p2)   ;;  %v1439_v43 = vld [vmem:[%s1642_s3 + $0x28] sm:$0xff] (!%p201_p2)  }
   0x9   : > { %v1440_v44 = vld [vmem:[%s1641_s2 + $0x30] sm:$0xff] (!%p201_p2)   ;;  %v1442_v46 = vld [vmem:[%s1641_s2 + $0x38] sm:$0xff] (!%p201_p2)  }
   0xa   : > { %v1441_v45 = vld [vmem:[%s1642_s3 + $0x30] sm:$0xff] (!%p201_p2)   ;;  %v1443_v47 = vld [vmem:[%s1642_s3 + $0x38] sm:$0xff] (!%p201_p2)  }
   0xd   : > { %s1646_s19 = smov (!%p238_p3, %s1193_s19), 1 }
   0xe   : > { %s1502_s24 = sshll.u32 %s1646_s19, 7 }
   0xf   : > { %s1508_s27 = scalar_lea.vmem %s1639_s0, %s1502_s24  ;;  %s1514_s30 = scalar_lea.vmem %s1640_s1, %s1502_s24 }
  0x10   : > { %v1396_v2 = vld [vmem:[%s1508_s27 + $0x40] sm:$0xff]   ;;  %v1400_v6 = vld [vmem:[%s1508_s27 + $0x48] sm:$0xff]   ;;  %v1404_v10 = vld [vmem:[%s1508_s27 + $0x50] sm:$0xff]   ;;  %s1596_s13 = scalar_lea.vmem %s1643_s4, %s1502_s24  ;;  %s1602_s16 = scalar_lea.vmem %s1644_s5, %s1502_s24 }
  0x11   : > { %v1397_v3 = vld [vmem:[%s1514_s30 + $0x40] sm:$0xff]   ;;  %1324 = vmatprep.subr.bf16.mxu0 %v1396_v2  ;;  %v1401_v7 = vld [vmem:[%s1514_s30 + $0x48] sm:$0xff]   ;;  %v1405_v11 = vld [vmem:[%s1514_s30 + $0x50] sm:$0xff]  }
  0x12   : > { %v1398_v4 = vld [vmem:[%s1508_s27] sm:$0xff]   ;;  %1356 = vmatprep.subr.bf16.mxu1 %v1397_v3  ;;  %v1402_v8 = vld [vmem:[%s1508_s27 + $0x8] sm:$0xff]   ;;  %v1406_v12 = vld [vmem:[%s1508_s27 + $0x10] sm:$0xff]  }
  0x13   : > { %v1399_v5 = vld [vmem:[%s1514_s30] sm:$0xff]   ;;  %1325 = vmatpush3.bf16.xpose.msra.mxu0 %v1398_v4  ;;  %v1403_v9 = vld [vmem:[%s1514_s30 + $0x8] sm:$0xff]   ;;  %v1407_v13 = vld [vmem:[%s1514_s30 + $0x10] sm:$0xff]  }
  0x14   : > { %1357 = vmatpush3.bf16.xpose.msra.mxu1 %v1399_v5  ;;  %1326 = vmatprep.subr.bf16.mxu0 %v1400_v6  ;;  %v1408_v14 = vld [vmem:[%s1508_s27 + $0x58] sm:$0xff]   ;;  %v1412_v18 = vld [vmem:[%s1508_s27 + $0x60] sm:$0xff]   ;;  %v1416_v22 = vld [vmem:[%s1508_s27 + $0x68] sm:$0xff]  }
  0x15   : > { %1358 = vmatprep.subr.bf16.mxu1 %v1401_v7  ;;  %v1409_v15 = vld [vmem:[%s1514_s30 + $0x58] sm:$0xff]   ;;  %v1413_v19 = vld [vmem:[%s1514_s30 + $0x60] sm:$0xff]   ;;  %v1417_v23 = vld [vmem:[%s1514_s30 + $0x68] sm:$0xff]  }
  0x16   : > { %v1410_v16 = vld [vmem:[%s1508_s27 + $0x18] sm:$0xff]   ;;  %v1414_v20 = vld [vmem:[%s1508_s27 + $0x20] sm:$0xff]   ;;  %v1418_v24 = vld [vmem:[%s1508_s27 + $0x28] sm:$0xff]  }
  0x17   : > { %v1411_v17 = vld [vmem:[%s1514_s30 + $0x18] sm:$0xff]   ;;  %v1415_v21 = vld [vmem:[%s1514_s30 + $0x20] sm:$0xff]   ;;  %v1419_v25 = vld [vmem:[%s1514_s30 + $0x28] sm:$0xff]  }
  0x18   : > { %v1420_v26 = vld [vmem:[%s1508_s27 + $0x70] sm:$0xff]   ;;  %v1424_v30 = vld [vmem:[%s1508_s27 + $0x78] sm:$0xff]  }
  0x19   : > { %v1421_v27 = vld [vmem:[%s1514_s30 + $0x70] sm:$0xff]   ;;  %v1425_v31 = vld [vmem:[%s1514_s30 + $0x78] sm:$0xff]  }
  0x1a   : > { %v1422_v28 = vld [vmem:[%s1508_s27 + $0x30] sm:$0xff]   ;;  %v1426_v32 = vld [vmem:[%s1508_s27 + $0x38] sm:$0xff]  }
  0x1b   : > { %1327 = vmatpush3.bf16.xpose.msra.mxu0 %v1402_v8  ;;  %v1423_v29 = vld [vmem:[%s1514_s30 + $0x30] sm:$0xff]   ;;  %v1427_v33 = vld [vmem:[%s1514_s30 + $0x38] sm:$0xff]  }
  0x1c   : > { %1359 = vmatpush3.bf16.xpose.msra.mxu1 %v1403_v9  ;;  %1328 = vmatprep.subr.bf16.mxu0 %v1404_v10 }
  0x1d   : > { %1360 = vmatprep.subr.bf16.mxu1 %v1405_v11 }
  0x23   : > { %1329 = vmatpush3.bf16.xpose.msra.mxu0 %v1406_v12 }
  0x24   : > { %1361 = vmatpush3.bf16.xpose.msra.mxu1 %v1407_v13  ;;  %1330 = vmatprep.subr.bf16.mxu0 %v1408_v14 }
  0x25   : > { %1362 = vmatprep.subr.bf16.mxu1 %v1409_v15 }
  0x2b   : > { %1331 = vmatpush3.bf16.xpose.msra.mxu0 %v1410_v16 }
  0x2c   : > { %1363 = vmatpush3.bf16.xpose.msra.mxu1 %v1411_v17  ;;  %1332 = vmatprep.subr.bf16.mxu0 %v1412_v18 }
  0x2d   : > { %1364 = vmatprep.subr.bf16.mxu1 %v1413_v19 }
  0x33   : > { %1333 = vmatpush3.bf16.xpose.msra.mxu0 %v1414_v20 }
  0x34   : > { %1365 = vmatpush3.bf16.xpose.msra.mxu1 %v1415_v21  ;;  %1334 = vmatprep.subr.bf16.mxu0 %v1416_v22 }
  0x35   : > { %1366 = vmatprep.subr.bf16.mxu1 %v1417_v23 }
  0x3b   : > { %1335 = vmatpush3.bf16.xpose.msra.mxu0 %v1418_v24 }
  0x3c   : > { %1367 = vmatpush3.bf16.xpose.msra.mxu1 %v1419_v25  ;;  %1336 = vmatprep.subr.bf16.mxu0 %v1420_v26 }
  0x3d   : > { %1368 = vmatprep.subr.bf16.mxu1 %v1421_v27 }
  0x43   : > { %1337 = vmatpush3.bf16.xpose.msra.mxu0 %v1422_v28 }
  0x44   : > { %1369 = vmatpush3.bf16.xpose.msra.mxu1 %v1423_v29  ;;  %1338 = vmatprep.subr.bf16.mxu0 %v1424_v30 }
  0x45   : > { %1370 = vmatprep.subr.bf16.mxu1 %v1425_v31 }
  0x4b   : > { %1339 = vmatpush3.bf16.xpose.msra.mxu0 %v1426_v32 }
  0x4c   : > { %1371 = vmatpush3.bf16.xpose.msra.mxu1 %v1427_v33 }
  0x52   : > { %1341 = vmatmul.mubr.bf16.vlgmr.msra.gmra.mrb[0].mxu0 %v1493_v0 }
  0x53   : > { %1373 = vmatmul.mubr.bf16.vlgmr.msra.gmra.mrb[0].mxu1 %v1498_v1  ;;  %1342 = vmatprep.mubr.bf16.mxu0 %v1430_v34 }
  0x54   : > { %1374 = vmatprep.mubr.bf16.mxu1 %v1431_v35 }
  0x5a   : > { %1343 = vmatmul.mubr.bf16.gmra.mrb[4].mxu0 %v1430_v34 }
  0x5b   : > { %1375 = vmatmul.mubr.bf16.gmra.mrb[4].mxu1 %v1431_v35  ;;  %1344 = vmatprep.mubr.bf16.mxu0 %v1432_v36 }
  0x5c   : > { %1376 = vmatprep.mubr.bf16.mxu1 %v1433_v37 }
  0x62   : > { %1345 = vmatmul.mubr.bf16.gmra.mrb[8].mxu0 %v1432_v36 }
  0x63   : > { %1377 = vmatmul.mubr.bf16.gmra.mrb[8].mxu1 %v1433_v37  ;;  %1346 = vmatprep.mubr.bf16.mxu0 %v1434_v38 }
  0x64   : > { %1378 = vmatprep.mubr.bf16.mxu1 %v1435_v39 }
  0x6a   : > { %1347 = vmatmul.mubr.bf16.gmra.mrb[12].mxu0 %v1434_v38 }
  0x6b   : > { %1379 = vmatmul.mubr.bf16.gmra.mrb[12].mxu1 %v1435_v39  ;;  %1348 = vmatprep.mubr.bf16.mxu0 %v1436_v40 }
  0x6c   : > { %1380 = vmatprep.mubr.bf16.mxu1 %v1437_v41 }
  0x72   : > { %1349 = vmatmul.mubr.bf16.gmra.mrb[16].mxu0 %v1436_v40 }
  0x73   : > { %1381 = vmatmul.mubr.bf16.gmra.mrb[16].mxu1 %v1437_v41  ;;  %1350 = vmatprep.mubr.bf16.mxu0 %v1438_v42 }
  0x74   : > { %1382 = vmatprep.mubr.bf16.mxu1 %v1439_v43 }
  0x7a   : > { %1351 = vmatmul.mubr.bf16.gmra.mrb[20].mxu0 %v1438_v42 }
  0x7b   : > { %1383 = vmatmul.mubr.bf16.gmra.mrb[20].mxu1 %v1439_v43  ;;  %1352 = vmatprep.mubr.bf16.mxu0 %v1440_v44 }
  0x7c   : > { %1384 = vmatprep.mubr.bf16.mxu1 %v1441_v45 }
  0x82   : > { %1353 = vmatmul.mubr.bf16.gmra.mrb[24].mxu0 %v1440_v44 }
  0x83   : > { %1385 = vmatmul.mubr.bf16.gmra.mrb[24].mxu1 %v1441_v45  ;;  %1354 = vmatprep.mubr.bf16.mxu0 %v1442_v46 }
  0x84   : > { %1386 = vmatprep.mubr.bf16.mxu1 %v1443_v47 }
  0x8a   : > { %1355 = vmatmul.mubr.bf16.gmra.mrb[28].mxu0 %v1442_v46 }
  0x8b   : > { %1387 = vmatmul.mubr.bf16.gmra.mrb[28].mxu1 %v1443_v47 }
 0x125   : > { %v485_v48 = vpop.f32.mrb[0].mxu0 }
 0x126   : > { %v790_v49 = vpop.f32.mrb[0].mxu1  ;;  %v487_v50 = vpop.f32.mrb[1].mxu0 }
 0x127   : > { %v1292_v51 = vpack.c.bf16 %v487_v50, %v485_v48  ;;  %v792_v52 = vpop.f32.mrb[1].mxu1  ;;  %v489_v53 = vpop.f32.mrb[2].mxu0 }
 0x128   : > { %v1308_v54 = vpack.c.bf16 %v792_v52, %v790_v49  ;;  %v794_v55 = vpop.f32.mrb[2].mxu1  ;;  %v491_v56 = vpop.f32.mrb[3].mxu0 }
 0x129   : > { %965 = vst [vmem:[%s1596_s13] sm:$0xff] %v1292_v51  ;;  %v1293_v57 = vpack.c.bf16 %v491_v56, %v489_v53  ;;  %v796_v58 = vpop.f32.mrb[3].mxu1 }
 0x12a   : > { %1077 = vst [vmem:[%s1602_s16] sm:$0xff] %v1308_v54  ;;  %v1309_v59 = vpack.c.bf16 %v796_v58, %v794_v55 }
 0x12b   : > { %966 = vst [vmem:[%s1596_s13 + $0x8] sm:$0xff] %v1293_v57 }
 0x12c   : > { %1078 = vst [vmem:[%s1602_s16 + $0x8] sm:$0xff] %v1309_v59 }
 0x12d   : > { %v495_v60 = vpop.f32.mrb[4].mxu0 }
 0x12e   : > { %v800_v61 = vpop.f32.mrb[4].mxu1  ;;  %v497_v62 = vpop.f32.mrb[5].mxu0 }
 0x12f   : > { %v1294_v63 = vpack.c.bf16 %v497_v62, %v495_v60  ;;  %v802_v0 = vpop.f32.mrb[5].mxu1  ;;  %v499_v1 = vpop.f32.mrb[6].mxu0 }
 0x130   : > { %v1310_v2 = vpack.c.bf16 %v802_v0, %v800_v61  ;;  %v804_v3 = vpop.f32.mrb[6].mxu1  ;;  %v501_v4 = vpop.f32.mrb[7].mxu0 }
 0x131   : > { %967 = vst [vmem:[%s1596_s13 + $0x10] sm:$0xff] %v1294_v63  ;;  %v1295_v5 = vpack.c.bf16 %v501_v4, %v499_v1  ;;  %v806_v6 = vpop.f32.mrb[7].mxu1 }
 0x132   : > { %1079 = vst [vmem:[%s1602_s16 + $0x10] sm:$0xff] %v1310_v2  ;;  %v1311_v7 = vpack.c.bf16 %v806_v6, %v804_v3 }
 0x133   : > { %968 = vst [vmem:[%s1596_s13 + $0x18] sm:$0xff] %v1295_v5 }
 0x134   : > { %1080 = vst [vmem:[%s1602_s16 + $0x18] sm:$0xff] %v1311_v7 }
 0x135   : > { %v505_v8 = vpop.f32.mrb[8].mxu0 }
 0x136   : > { %v810_v9 = vpop.f32.mrb[8].mxu1  ;;  %v507_v10 = vpop.f32.mrb[9].mxu0 }
 0x137   : > { %v1296_v11 = vpack.c.bf16 %v507_v10, %v505_v8  ;;  %v812_v12 = vpop.f32.mrb[9].mxu1  ;;  %v509_v13 = vpop.f32.mrb[10].mxu0 }
 0x138   : > { %v1312_v14 = vpack.c.bf16 %v812_v12, %v810_v9  ;;  %v814_v15 = vpop.f32.mrb[10].mxu1  ;;  %v511_v16 = vpop.f32.mrb[11].mxu0 }
 0x139   : > { %969 = vst [vmem:[%s1596_s13 + $0x20] sm:$0xff] %v1296_v11  ;;  %v1297_v17 = vpack.c.bf16 %v511_v16, %v509_v13  ;;  %v816_v18 = vpop.f32.mrb[11].mxu1 }
 0x13a   : > { %1081 = vst [vmem:[%s1602_s16 + $0x20] sm:$0xff] %v1312_v14  ;;  %v1313_v19 = vpack.c.bf16 %v816_v18, %v814_v15 }
 0x13b   : > { %970 = vst [vmem:[%s1596_s13 + $0x28] sm:$0xff] %v1297_v17 }
 0x13c   : > { %1082 = vst [vmem:[%s1602_s16 + $0x28] sm:$0xff] %v1313_v19 }
 0x13d   : > { %v515_v20 = vpop.f32.mrb[12].mxu0 }
 0x13e   : > { %v820_v21 = vpop.f32.mrb[12].mxu1  ;;  %v517_v22 = vpop.f32.mrb[13].mxu0 }
 0x13f   : > { %v1298_v23 = vpack.c.bf16 %v517_v22, %v515_v20  ;;  %v822_v24 = vpop.f32.mrb[13].mxu1  ;;  %v519_v25 = vpop.f32.mrb[14].mxu0 }
 0x140   : > { %v1314_v26 = vpack.c.bf16 %v822_v24, %v820_v21  ;;  %v824_v27 = vpop.f32.mrb[14].mxu1  ;;  %v521_v28 = vpop.f32.mrb[15].mxu0 }
 0x141   : > { %971 = vst [vmem:[%s1596_s13 + $0x30] sm:$0xff] %v1298_v23  ;;  %v1299_v29 = vpack.c.bf16 %v521_v28, %v519_v25  ;;  %v826_v30 = vpop.f32.mrb[15].mxu1 }
 0x142   : > { %1083 = vst [vmem:[%s1602_s16 + $0x30] sm:$0xff] %v1314_v26  ;;  %v1315_v31 = vpack.c.bf16 %v826_v30, %v824_v27 }
 0x143   : > { %972 = vst [vmem:[%s1596_s13 + $0x38] sm:$0xff] %v1299_v29 }
 0x144   : > { %1084 = vst [vmem:[%s1602_s16 + $0x38] sm:$0xff] %v1315_v31 }
 0x145   : > { %v525_v32 = vpop.f32.mrb[16].mxu0 }
 0x146   : > { %v830_v33 = vpop.f32.mrb[16].mxu1  ;;  %v527_v34 = vpop.f32.mrb[17].mxu0 }
 0x147   : > { %v1300_v35 = vpack.c.bf16 %v527_v34, %v525_v32  ;;  %v832_v36 = vpop.f32.mrb[17].mxu1  ;;  %v529_v37 = vpop.f32.mrb[18].mxu0 }
 0x148   : > { %v1316_v38 = vpack.c.bf16 %v832_v36, %v830_v33  ;;  %v834_v39 = vpop.f32.mrb[18].mxu1  ;;  %v531_v40 = vpop.f32.mrb[19].mxu0 }
 0x149   : > { %973 = vst [vmem:[%s1596_s13 + $0x40] sm:$0xff] %v1300_v35  ;;  %v1301_v41 = vpack.c.bf16 %v531_v40, %v529_v37  ;;  %v836_v42 = vpop.f32.mrb[19].mxu1 }
 0x14a   : > { %1085 = vst [vmem:[%s1602_s16 + $0x40] sm:$0xff] %v1316_v38  ;;  %v1317_v43 = vpack.c.bf16 %v836_v42, %v834_v39 }
 0x14b   : > { %974 = vst [vmem:[%s1596_s13 + $0x48] sm:$0xff] %v1301_v41 }
 0x14c   : > { %1086 = vst [vmem:[%s1602_s16 + $0x48] sm:$0xff] %v1317_v43 }
 0x14d   : > { %v535_v44 = vpop.f32.mrb[20].mxu0 }
 0x14e   : > { %v840_v45 = vpop.f32.mrb[20].mxu1  ;;  %v537_v46 = vpop.f32.mrb[21].mxu0 }
 0x14f   : > { %v1302_v47 = vpack.c.bf16 %v537_v46, %v535_v44  ;;  %v842_v48 = vpop.f32.mrb[21].mxu1  ;;  %v539_v49 = vpop.f32.mrb[22].mxu0 }
 0x150   : > { %v1318_v50 = vpack.c.bf16 %v842_v48, %v840_v45  ;;  %v844_v51 = vpop.f32.mrb[22].mxu1  ;;  %v541_v52 = vpop.f32.mrb[23].mxu0 }
 0x151   : > { %975 = vst [vmem:[%s1596_s13 + $0x50] sm:$0xff] %v1302_v47  ;;  %v1303_v53 = vpack.c.bf16 %v541_v52, %v539_v49  ;;  %v846_v54 = vpop.f32.mrb[23].mxu1 }
 0x152   : > { %1087 = vst [vmem:[%s1602_s16 + $0x50] sm:$0xff] %v1318_v50  ;;  %v1319_v55 = vpack.c.bf16 %v846_v54, %v844_v51 }
 0x153   : > { %976 = vst [vmem:[%s1596_s13 + $0x58] sm:$0xff] %v1303_v53 }
 0x154   : > { %1088 = vst [vmem:[%s1602_s16 + $0x58] sm:$0xff] %v1319_v55 }
 0x155   : > { %v545_v56 = vpop.f32.mrb[24].mxu0 }
 0x156   : > { %v850_v57 = vpop.f32.mrb[24].mxu1  ;;  %v547_v58 = vpop.f32.mrb[25].mxu0 }
 0x157   : > { %v1304_v59 = vpack.c.bf16 %v547_v58, %v545_v56  ;;  %v852_v60 = vpop.f32.mrb[25].mxu1  ;;  %v549_v61 = vpop.f32.mrb[26].mxu0 }
 0x158   : > { %v1320_v62 = vpack.c.bf16 %v852_v60, %v850_v57  ;;  %v854_v63 = vpop.f32.mrb[26].mxu1  ;;  %v551_v0 = vpop.f32.mrb[27].mxu0 }
 0x159   : > { %977 = vst [vmem:[%s1596_s13 + $0x60] sm:$0xff] %v1304_v59  ;;  %v1305_v1 = vpack.c.bf16 %v551_v0, %v549_v61  ;;  %v856_v2 = vpop.f32.mrb[27].mxu1 }
 0x15a   : > { %1089 = vst [vmem:[%s1602_s16 + $0x60] sm:$0xff] %v1320_v62  ;;  %v1321_v3 = vpack.c.bf16 %v856_v2, %v854_v63 }
 0x15b   : > { %978 = vst [vmem:[%s1596_s13 + $0x68] sm:$0xff] %v1305_v1 }
 0x15c   : > { %1090 = vst [vmem:[%s1602_s16 + $0x68] sm:$0xff] %v1321_v3 }
 0x15d   : > { %v555_v4 = vpop.f32.mrb[28].mxu0 }
 0x15e   : > { %v860_v5 = vpop.f32.mrb[28].mxu1  ;;  %v557_v6 = vpop.f32.mrb[29].mxu0 }
 0x15f   : > { %v1306_v7 = vpack.c.bf16 %v557_v6, %v555_v4  ;;  %v862_v8 = vpop.f32.mrb[29].mxu1  ;;  %v559_v9 = vpop.f32.mrb[30].mxu0 }
 0x160   : > { %v1322_v10 = vpack.c.bf16 %v862_v8, %v860_v5  ;;  %v864_v11 = vpop.f32.mrb[30].mxu1  ;;  %v561_v12 = vpop.f32.mrb[31].mxu0 }
 0x161   : > { %979 = vst [vmem:[%s1596_s13 + $0x70] sm:$0xff] %v1306_v7  ;;  %v1307_v13 = vpack.c.bf16 %v561_v12, %v559_v9  ;;  %v866_v14 = vpop.f32.mrb[31].mxu1 }
 0x162   : > { %1091 = vst [vmem:[%s1602_s16 + $0x70] sm:$0xff] %v1322_v10  ;;  %v1323_v15 = vpack.c.bf16 %v866_v14, %v864_v11 }
 0x163   : > { %980 = vst [vmem:[%s1596_s13 + $0x78] sm:$0xff] %v1307_v13 }
 0x164   : > { %1092 = vst [vmem:[%s1602_s16 + $0x78] sm:$0xff] %v1323_v15 }
 0x165 PF: > { %s16_s18 = sadd.s32 1, %s1450_s18  }
 0x166   : > { %p13_p4 = scmp.ge.s32.totalorder %s16_s18, 4  }
 0x168   :  { %15 = sbr.rel (!%p13_p4) target bundleno = 1 (0x1), region = 81 }

// kernel: multi_head_attention.3
= control target key start
LH: loop header
LB: loop body
LE: loop exit
PB: predicated region body
PF: predicated region fallthrough
CT: control target
= control target key end

     0   :  { %11 = vsyncpa [#allocation3], 0  ;;  %s17696_s0 = inlined_call_operand.vmem [shape: bf16[2,256,128], index: 0, kind: input, shape index: {}]   ;;  %s17697_s1 = inlined_call_operand.vmem [shape: bf16[2,4,32,256], index: 1, kind: input, shape index: {}]   ;;  %s17698_s2 = inlined_call_operand.vmem [shape: bf16[2,4,32,256], index: 2, kind: input, shape index: {}]   ;;  %s17699_s3 = inlined_call_operand.vmem [shape: bf16[128,128], index: 3, kind: input, shape index: {}]   ;;  %s17700_s4 = inlined_call_operand.vmem [shape: bf16[4,32,128], index: 4, kind: input, shape index: {}]   ;;  %s17701_s5 = inlined_call_operand.vmem [shape: f32[1,128], index: 5, kind: input, shape index: {}]   ;;  %s17702_s6 = inlined_call_operand.hbm [shape: f32[2,256,128], index: 6, kind: output, shape index: {}]  }
   0x1   :  { %13 = vsyncpa [#allocation3 + $0x1], 0  ;;  %s11816_s21 = smov 0   ;;  %s11818_s22 = smov 0  }
   0x2   :  { %s11820_s23 = smov 0   ;;  %s11822_s24 = smov 0  }
   0x3   :  { %s11824_s25 = smov 0   ;;  %s11826_s26 = smov 0  }
   0x4 LB: > { %s10071_s27 = sadd.s32 4294967295, %s11770_s26   ;;  %s10072_s28 = sadd.s32 4294967294, %s11770_s26   ;;  %s11770_s26 = sphi %s11826_s26, %s19_s26   ;;  %s11766_s25 = sphi %s11824_s25, %s19869_s25   ;;  %s11762_s24 = sphi %s11822_s24, %s19868_s24   ;;  %s11758_s23 = sphi %s11820_s23, %s19867_s23   ;;  %s11754_s22 = sphi %s11818_s22, %s19866_s22   ;;  %s11750_s21 = sphi %s11816_s21, %s19865_s21  }
   0x5   : > { %s31_s29 = sadd.s32 1, %s11766_s25  ;;  %s183_s30 = sadd.s32 1, %s11758_s23 }
   0x6   : > { %p33_p0 = scmp.ge.s32.totalorder %s31_s29, 2  ;;  %p193_p1 = scmp.ne.s32.totalorder %s11758_s23, %s11754_s22 }
   0x7   : > { %p194_p2 = scmp.eq.s32.totalorder %s10071_s27, 1  ;;  %p199_p3 = scmp.ne.s32.totalorder %s11754_s22, %s11750_s21 }
   0x8   : > { %s19871_s29 = smov (%p33_p0, %s31_s29), 0  ;;  %p200_p5 = scmp.eq.s32.totalorder %s10072_s28, 1 }
   0x9   : > { %p11856_p4 = por %p194_p2, %p193_p1  ;;  %s178_s8 = ssub.s32 %s11766_s25, %s19871_s29 }
   0xa   : > { %p10075_p6 = scmp.ge.s32.totalorder %s11770_s26, 1  ;;  %p181_p7 = scmp.eq.s32.totalorder %s178_s8, 0 }
   0xb   : > { %p11863_p8 = por %p200_p5, %p199_p3  ;;  %p256_p9 = scmp.lt.s32.totalorder %s11770_s26, 3 }
   0xc   : > { %s11869_s10 = scalar_select %p181_p7, %s11758_s23, %s183_s30  }
   0xd   : > { %p257_p10 = pnand %p10075_p6, %p256_p9 }
   0xf   : > { %260 = sbr.rel (%p257_p10) target bundleno = 2026 (0x7ea), region = 44 }
  0x16   : > { %v10844_v0 = vld [vmem:[%s17699_s3] sm:$0xff]   ;;  %p301_p11 = scmp.lt.s32.totalorder %s11762_s24, 1  ;;  %v10845_v1 = vld [vmem:[%s17699_s3 + $0x8] sm:$0xff]   ;;  %v10846_v2 = vld [vmem:[%s17699_s3 + $0x10] sm:$0xff]   ;;  %v17703_v26 = vmov 0   ;;  %s11774_s30 = smov 96  }
  0x17   : > { %10457 = vmatprep.subr.bf16.mxu0 %v10844_v0  ;;  %v10847_v3 = vld [vmem:[%s17699_s3 + $0x18] sm:$0xff]   ;;  %v10848_v5 = vld [vmem:[%s17699_s3 + $0x20] sm:$0xff]   ;;  %v10849_v6 = vld [vmem:[%s17699_s3 + $0x28] sm:$0xff]   ;;  %5202 = vmatprep.mubr.bf16.mxu1 %v17703_v26  ;;  %s11775_s8 = smov 64   ;;  %vm5021_vm0 = vcmask 261120  }
  0x18   : > { %s302_s15 = scalar_select %p301_p11, %s11762_s24, 1  ;;  %10458 = vmatpush3.bf16.msra.mxu0 %v10844_v0  ;;  %v10850_v7 = vld [vmem:[%s17699_s3 + $0x30] sm:$0xff]   ;;  %v10851_v8 = vld [vmem:[%s17699_s3 + $0x38] sm:$0xff]  }
  0x19   : > { %10459 = vmatprep.subr.bf16.mxu0 %v10845_v1 }
  0x1a   : > { %s11882_s18 = sshll.u32 %s302_s15, 7  ;;  %s297_s15 = sand.u32 1, %s11754_s22  }
  0x1b   : > { %s11888_s27 = scalar_lea.vmem %s17696_s0, %s11882_s18  ;;  %s11925_s28 = scalar_lea.vmem %s17697_s1, %s11882_s18 }
  0x1c   : > { %10460 = vmatpush3.bf16.msra.mxu0 %v10845_v1  ;;  %v10852_v4 = vld [vmem:[%s11888_s27] sm:$0xff]   ;;  %v10853_v9 = vld [vmem:[%s11888_s27 + $0x8] sm:$0xff]   ;;  %v10854_v10 = vld [vmem:[%s11888_s27 + $0x10] sm:$0xff]   ;;  %s14841_s13 = scalar_lea.vmem %s17698_s2, %s11882_s18  ;;  %s10076_s16 = sshll.u32 %s297_s15, 8 }
  0x1d   : > { %10461 = vmatprep.subr.bf16.mxu0 %v10846_v2  ;;  %10473 = vmatprep.mubr.bf16.mxu0 %v10852_v4  ;;  %v10855_v11 = vld [vmem:[%s11888_s27 + $0x18] sm:$0xff]   ;;  %v10856_v12 = vld [vmem:[%s11888_s27 + $0x20] sm:$0xff]   ;;  %v10857_v13 = vld [vmem:[%s11888_s27 + $0x28] sm:$0xff]   ;;  %s17575_s20 = scalar_lea.vmem [#allocation2], %s10076_s16 }
  0x1e   : > { %v10858_v14 = vld [vmem:[%s11888_s27 + $0x30] sm:$0xff]   ;;  %v10859_v15 = vld [vmem:[%s11888_s27 + $0x38] sm:$0xff]   ;;  %v10860_v16 = vld [vmem:[%s11888_s27 + $0x40] sm:$0xff]  }
  0x1f   : > { %v10861_v17 = vld [vmem:[%s11888_s27 + $0x48] sm:$0xff]   ;;  %v10862_v18 = vld [vmem:[%s11888_s27 + $0x50] sm:$0xff]   ;;  %v10863_v19 = vld [vmem:[%s11888_s27 + $0x58] sm:$0xff]  }
  0x20   : > { %10462 = vmatpush3.bf16.msra.mxu0 %v10846_v2  ;;  %v10864_v20 = vld [vmem:[%s11888_s27 + $0x60] sm:$0xff]   ;;  %v10865_v21 = vld [vmem:[%s11888_s27 + $0x68] sm:$0xff]   ;;  %v10866_v22 = vld [vmem:[%s11888_s27 + $0x70] sm:$0xff]  }
  0x21   : > { %10463 = vmatprep.subr.bf16.mxu0 %v10847_v3  ;;  %v10867_v23 = vld [vmem:[%s11888_s27 + $0x78] sm:$0xff]   ;;  %v10868_v24 = vld [vmem:[%s11925_s28] ss:$8 sps:$4 sm:$0xff]   ;;  %v10870_v25 = vld [vmem:[%s11925_s28 + $0x4] ss:$8 sps:$4 sm:$0xff]   ;;  %s11773_s27 = smov 32  }
  0x22   : > { %10649 = vmatprep.subr.bf16.mxu1 %v10870_v25  ;;  %v10871_v46 = vld [vmem:[%s11925_s28 + $0x10] ss:$8 sps:$4 sm:$0xff]   ;;  %v10873_v47 = vld [vmem:[%s11925_s28 + $0x14] ss:$8 sps:$4 sm:$0xff]  }
  0x23   : > { %10651 = vmatpush1.bf16.msra.mxu1 %v10868_v24 }
  0x24   : > { %10464 = vmatpush3.bf16.msra.mxu0 %v10847_v3  ;;  %10650 = vmatprep.subr.bf16.mxu1 %v10873_v47 }
  0x25   : > { %10465 = vmatprep.subr.bf16.mxu0 %v10848_v5 }
  0x27   : > { %10652 = vmatpush1.bf16.msra.mxu1 %v10871_v46 }
  0x28   : > { %10466 = vmatpush3.bf16.msra.mxu0 %v10848_v5 }
  0x29   : > { %10467 = vmatprep.subr.bf16.mxu0 %v10849_v6 }
  0x2c   : > { %10468 = vmatpush3.bf16.msra.mxu0 %v10849_v6 }
  0x2d   : > { %10469 = vmatprep.subr.bf16.mxu0 %v10850_v7 }
  0x30   : > { %10470 = vmatpush3.bf16.msra.mxu0 %v10850_v7 }
  0x31   : > { %10471 = vmatprep.subr.bf16.mxu0 %v10851_v8 }
  0x34   : > { %10472 = vmatpush3.bf16.msra.mxu0 %v10851_v8 }
  0x35   : > { %5070 = vmatprep.subr.bf16.mxu0 %v10870_v25 }
  0x37   : > { %10474 = vmatmul.mubr.bf16.vlgmr.msra.gmra.mrb[0].mxu0 %v10853_v9 }
  0x38   : > { %10477 = vmatprep.mubr.bf16.mxu0 %v10854_v10  ;;  %5071 = vmatpush1.bf16.msra.mxu0 %v10868_v24  ;;  %v12064_v24 = vpack.i.b16 %v17703_v26, %v17703_v26 }
  0x39   : > { %5072 = vmatprep.subr.bf16.mxu0 %v10873_v47 }
  0x3c   : > { %5073 = vmatpush1.bf16.msra.mxu0 %v10871_v46 }
  0x3f   : > { %10478 = vmatmul.mubr.bf16.gmra.mrb[4].mxu0 %v10855_v11 }
  0x40   : > { %10481 = vmatprep.mubr.bf16.mxu0 %v10856_v12 }
  0x47   : > { %10482 = vmatmul.mubr.bf16.gmra.mrb[8].mxu0 %v10857_v13  ;;  %v10876_v13 = vld [vmem:[%s11925_s28 + $0x24] ss:$8 sps:$4 sm:$0xff]  }
  0x48   : > { %10485 = vmatprep.mubr.bf16.mxu0 %v10858_v14  ;;  %5331 = vmatprep.subr.bf16.mxu0 %v10876_v13  ;;  %v11776_v14 = vmov 1983009808  }
  0x4f   : > { %10486 = vmatmul.mubr.bf16.gmra.mrb[12].mxu0 %v10859_v15  ;;  %v1067_v15 = vunpack.c.l.s4 %v11776_v14 }
  0x50   : > { %10489 = vmatprep.mubr.bf16.mxu0 %v10860_v16  ;;  %v1069_v16 = vlaneseq }
  0x57   : > { %10490 = vmatmul.mubr.bf16.gmra.mrb[16].mxu0 %v10861_v17  ;;  %v11777_v17 = vmov 1934713408  }
  0x58   : > { %10493 = vmatprep.mubr.bf16.mxu0 %v10862_v18  ;;  %v1098_v18 = vunpack.c.l.s4 %v11777_v17 }
  0x5f   : > { %10494 = vmatmul.mubr.bf16.gmra.mrb[20].mxu0 %v10863_v19  ;;  %v1068_v19 = vunpack.c.0.s8 %v1067_v15 }
  0x60   : > { %10497 = vmatprep.mubr.bf16.mxu0 %v10864_v20  ;;  %v1070_v20 = vshrl.u32 %v1069_v16, 7 }
  0x67   : > { %10498 = vmatmul.mubr.bf16.gmra.mrb[24].mxu0 %v10865_v21  ;;  %v1099_v21 = vunpack.c.0.s8 %v1098_v18 }
  0x68   : > { %10501 = vmatprep.mubr.bf16.mxu0 %v10866_v22 }
  0x6f   : > { %10502 = vmatmul.mubr.bf16.gmra.mrb[28].mxu0 %v10867_v23 }
  0x70   : > { %5102 = vmatprep.mubr.bf16.mxu0 %v17703_v26 }
 0x10a   : > { %v10475_v27 = vpop.f32.mrb[0].mxu0 }
 0x10b   : > { %v548_v28 = vpop.f32.mrb[1].mxu0 }
 0x10c   : > { %v10476_v29 = vpop.f32.mrb[2].mxu0 }
 0x10d   : > { %v11931_v30 = vpack.c.bf16 %v10476_v29, %v10475_v27  ;;  %v551_v31 = vpop.f32.mrb[3].mxu0  ;;  %v12068_v29 = vsub.s32 %v1068_v19, %v1070_v20 }
 0x10e   : > { %v11933_v32 = vpack.c.bf16 %v551_v31, %v548_v28 }
 0x10f   : > { %v829_v31 = vshrl.u32 %v11931_v30, 16 }
 0x110   : > { %771 = vrot.lane.b32.xlu1 %v11933_v32, %s11773_s27  ;;  %707 = vrot.lane.b32.xlu0 %v11933_v32, %s11774_s30  ;;  %v807_v27 = vshrl.u32 %v11933_v32, 16 }
 0x112   : > { %v10479_v33 = vpop.f32.mrb[4].mxu0 }
 0x113   : > { %v564_v34 = vpop.f32.mrb[5].mxu0 }
 0x114   : > { %709 = vrot.lane.b32.xlu1 %v11931_v30, %s11774_s30  ;;  %739 = vrot.lane.b32.xlu0 %v11933_v32, %s11775_s8  ;;  %v10480_v35 = vpop.f32.mrb[6].mxu0 }
 0x115   : > { %v11943_v36 = vpack.c.bf16 %v10480_v35, %v10479_v33  ;;  %v567_v37 = vpop.f32.mrb[7].mxu0  ;;  %v12071_v33 = vsub.s32 %v1099_v21, %v1070_v20 }
 0x116   : > { %v11945_v38 = vpack.c.bf16 %v567_v37, %v564_v34 }
 0x117   : > { %v861_v37 = vshrl.u32 %v11943_v36, 16 }
 0x118   : > { %773 = vrot.lane.b32.xlu1 %v11931_v30, %s11773_s27  ;;  %741 = vrot.lane.b32.xlu0 %v11931_v30, %s11775_s8  ;;  %v845_v35 = vshrl.u32 %v11945_v38, 16 }
 0x11a   : > { %v10483_v39 = vpop.f32.mrb[8].mxu0 }
 0x11b   : > { %v580_v40 = vpop.f32.mrb[9].mxu0 }
 0x11c   : > { %743 = vrot.lane.b32.xlu1 %v11945_v38, %s11775_s8  ;;  %711 = vrot.lane.b32.xlu0 %v11945_v38, %s11774_s30  ;;  %v10484_v41 = vpop.f32.mrb[10].mxu0 }
 0x11d   : > { %v11955_v42 = vpack.c.bf16 %v10484_v41, %v10483_v39  ;;  %v583_v43 = vpop.f32.mrb[11].mxu0 }
 0x11e   : > { %v11957_v44 = vpack.c.bf16 %v583_v43, %v580_v40 }
 0x11f   : > { %v893_v39 = vshrl.u32 %v11955_v42, 16 }
 0x120   : > { %713 = vrot.lane.b32.xlu1 %v11943_v36, %s11774_s30  ;;  %775 = vrot.lane.b32.xlu0 %v11945_v38, %s11773_s27  ;;  %v877_v43 = vshrl.u32 %v11957_v44, 16 }
 0x122   : > { %v10487_v45 = vpop.f32.mrb[12].mxu0 }
 0x123   : > { %v596_v48 = vpop.f32.mrb[13].mxu0 }
 0x124   : > { %777 = vrot.lane.b32.xlu1 %v11943_v36, %s11773_s27  ;;  %745 = vrot.lane.b32.xlu0 %v11943_v36, %s11775_s8  ;;  %v10488_v49 = vpop.f32.mrb[14].mxu0 }
 0x125   : > { %v11969_v50 = vpack.c.bf16 %v10488_v49, %v10487_v45  ;;  %v599_v51 = vpop.f32.mrb[15].mxu0 }
 0x126   : > { %v11971_v52 = vpack.c.bf16 %v599_v51, %v596_v48 }
 0x128   : > { %747 = vrot.lane.b32.xlu1 %v11957_v44, %s11775_s8  ;;  %715 = vrot.lane.b32.xlu0 %v11957_v44, %s11774_s30 }
 0x12a   : > { %v10491_v53 = vpop.f32.mrb[16].mxu0 }
 0x12b   : > { %v612_v54 = vpop.f32.mrb[17].mxu0 }
 0x12c   : > { %717 = vrot.lane.b32.xlu1 %v11955_v42, %s11774_s30  ;;  %779 = vrot.lane.b32.xlu0 %v11957_v44, %s11773_s27  ;;  %v10492_v55 = vpop.f32.mrb[18].mxu0 }
 0x12d   : > { %v11981_v56 = vpack.c.bf16 %v10492_v55, %v10491_v53  ;;  %v615_v57 = vpop.f32.mrb[19].mxu0 }
 0x12e   : > { %v11983_v58 = vpack.c.bf16 %v615_v57, %v612_v54 }
 0x130   : > { %781 = vrot.lane.b32.xlu1 %v11955_v42, %s11773_s27  ;;  %749 = vrot.lane.b32.xlu0 %v11955_v42, %s11775_s8 }
 0x132   : > { %v10495_v59 = vpop.f32.mrb[20].mxu0 }
 0x133   : > { %v628_v60 = vpop.f32.mrb[21].mxu0 }
 0x134   : > { %751 = vrot.lane.b32.xlu1 %v11971_v52, %s11775_s8  ;;  %719 = vrot.lane.b32.xlu0 %v11971_v52, %s11774_s30  ;;  %v10496_v61 = vpop.f32.mrb[22].mxu0 }
 0x135   : > { %v11993_v62 = vpack.c.bf16 %v10496_v61, %v10495_v59  ;;  %v631_v63 = vpop.f32.mrb[23].mxu0 }
 0x136   : > { %v11995_v0 = vpack.c.bf16 %v631_v63, %v628_v60 }
 0x137   : > { %18420 = vst [vmem:[#allocation5_spill] sm:$0xff] %v11993_v62 }
 0x138   : > { %721 = vrot.lane.b32.xlu1 %v11969_v50, %s11774_s30  ;;  %783 = vrot.lane.b32.xlu0 %v11971_v52, %s11773_s27 }
 0x13a   : > { %v10499_v1 = vpop.f32.mrb[24].mxu0 }
 0x13b   : > { %v644_v2 = vpop.f32.mrb[25].mxu0 }
 0x13c   : > { %785 = vrot.lane.b32.xlu1 %v11969_v50, %s11773_s27  ;;  %753 = vrot.lane.b32.xlu0 %v11969_v50, %s11775_s8  ;;  %v10500_v3 = vpop.f32.mrb[26].mxu0 }
 0x13d   : > { %v12005_v4 = vpack.c.bf16 %v10500_v3, %v10499_v1  ;;  %v647_v5 = vpop.f32.mrb[27].mxu0 }
 0x13e   : > { %v12007_v6 = vpack.c.bf16 %v647_v5, %v644_v2 }
 0x13f   : > { %18421 = vst [vmem:[#allocation6_spill] sm:$0xff] %v12005_v4 }
 0x140   : > { %18422 = vst [vmem:[#allocation7_spill] sm:$0xff] %v12007_v6  ;;  %755 = vrot.lane.b32.xlu1 %v11983_v58, %s11775_s8  ;;  %723 = vrot.lane.b32.xlu0 %v11983_v58, %s11774_s30 }
 0x142   : > { %v10503_v7 = vpop.f32.mrb[28].mxu0 }
 0x143   : > { %v660_v8 = vpop.f32.mrb[29].mxu0 }
 0x144   : > { %725 = vrot.lane.b32.xlu1 %v11981_v56, %s11774_s30  ;;  %787 = vrot.lane.b32.xlu0 %v11983_v58, %s11773_s27  ;;  %v10504_v9 = vpop.f32.mrb[30].mxu0 }
 0x145   : > { %v12017_v10 = vpack.c.bf16 %v10504_v9, %v10503_v7  ;;  %v663_v11 = vpop.f32.mrb[31].mxu0 }
 0x146   : > { %v12019_v12 = vpack.c.bf16 %v663_v11, %v660_v8 }
 0x147   : > { %18423 = vst [vmem:[#allocation8_spill] sm:$0xff] %v12017_v10 }
 0x148   : > { %18424 = vst [vmem:[#allocation9_spill] sm:$0xff] %v12019_v12  ;;  %789 = vrot.lane.b32.xlu1 %v11981_v56, %s11773_s27  ;;  %757 = vrot.lane.b32.xlu0 %v11981_v56, %s11775_s8 }
 0x14c   : > { %759 = vrot.lane.b32.xlu1 %v11995_v0, %s11775_s8  ;;  %727 = vrot.lane.b32.xlu0 %v11995_v0, %s11774_s30 }
 0x150   : > { %729 = vrot.lane.b32.xlu1 %v11993_v62, %s11774_s30  ;;  %791 = vrot.lane.b32.xlu0 %v11995_v0, %s11773_s27 }
 0x154   : > { %793 = vrot.lane.b32.xlu1 %v11993_v62, %s11773_s27  ;;  %761 = vrot.lane.b32.xlu0 %v11993_v62, %s11775_s8 }
 0x158   : > { %763 = vrot.lane.b32.xlu1 %v12007_v6, %s11775_s8  ;;  %731 = vrot.lane.b32.xlu0 %v12007_v6, %s11774_s30 }
 0x15c   : > { %733 = vrot.lane.b32.xlu1 %v12005_v4, %s11774_s30  ;;  %795 = vrot.lane.b32.xlu0 %v12007_v6, %s11773_s27 }
 0x160   : > { %797 = vrot.lane.b32.xlu1 %v12005_v4, %s11773_s27  ;;  %765 = vrot.lane.b32.xlu0 %v12005_v4, %s11775_s8 }
 0x164   : > { %767 = vrot.lane.b32.xlu1 %v12019_v12, %s11775_s8  ;;  %735 = vrot.lane.b32.xlu0 %v12019_v12, %s11774_s30 }
 0x168   : > { %737 = vrot.lane.b32.xlu1 %v12017_v10, %s11774_s30  ;;  %799 = vrot.lane.b32.xlu0 %v12019_v12, %s11773_s27 }
 0x16c   : > { %801 = vrot.lane.b32.xlu1 %v12017_v10, %s11773_s27  ;;  %769 = vrot.lane.b32.xlu0 %v12017_v10, %s11775_s8  ;;  %s9968_s27 = sshll.u32 %s17575_s20, 4  ;;  %s17642_s27 = int_to_ptr.vmem [resolvable:$true] %s9968_s27 }
 0x16d   : > { %s11692_s12 = scalar_lea.vmem %s17642_s27, 4096 }
 0x16e   : > { %p11693_p12 = scmp.ne.s32.totalorder %s17642_s27, %s11692_s12 }
 0x170   : > { %p11694_p13 = pnand %p11693_p12, %p11856_p4 }
 0x172   : > { %p11695_p0 = pneg %p11694_p13 }
 0x182   : > { %v772_v22 = vpop.permute.xlu1 %771  ;;  %v708_v23 = vpop.permute.xlu0 %707 }
 0x183   : > { %v805_v25 = vpack.i.b16 %v708_v23, %v11933_v32  ;;  %v808_v28 = vshrl.u32 %v708_v23, 16  ;;  %v816_v53 = vshrl.u32 %v772_v22, 16 }
 0x185   : > { %v809_v34 = vpack.i.b16 %v808_v28, %v807_v27  ;;  %v1065_v47 = vcombine.high %v805_v25, %v12064_v24  ;;  %v1072_v1 = vrot.slane %v805_v25, %v12068_v29 }
 0x186   : > { %v710_v40 = vpop.permute.xlu1 %709  ;;  %v740_v41 = vpop.permute.xlu0 %739 }
 0x187   : > { %v1131_v48 = vcombine.high %v809_v34, %v12064_v24  ;;  %v12083_v49 = vpack.i.b16 %v710_v40, %v11931_v30  ;;  %v830_v54 = vshrl.u32 %v710_v40, 16  ;;  %v813_v55 = vpack.i.b16 %v772_v22, %v740_v41 }
 0x188   : > { %v815_v57 = vshrl.u32 %v740_v41, 16  ;;  %v1079_v8 = vrot.slane %v1065_v47, %v12068_v29  ;;  %v1138_v9 = vrot.slane %v809_v34, %v12068_v29 }
 0x189   : > { %v1080_v30 = vcombine.high %v813_v55, %v12064_v24  ;;  %v1087_v3 = vrot.slane %v813_v55, %v12068_v29  ;;  %v1145_v11 = vrot.slane %v1131_v48, %v12068_v29  ;;  %v1197_v13 = vcombine.high %v12083_v49, %v12064_v24 }
 0x18a   : > { %v817_v2 = vpack.i.b16 %v816_v53, %v815_v57  ;;  %v774_v5 = vpop.permute.xlu1 %773  ;;  %v742_v7 = vpop.permute.xlu0 %741  ;;  %v831_v14 = vpack.i.b16 %v830_v54, %v829_v31 }
 0x18b   : > { %v1094_v15 = vrot.slane %v1080_v30, %v12068_v29  ;;  %v1095_v16 = vcombine.low %v1072_v1, %v1087_v3  ;;  %v835_v17 = vpack.i.b16 %v774_v5, %v742_v7  ;;  %v1096_v18 = vcombine.high %v1072_v1, %v1087_v3 }
 0x18c   : > { %v1146_v19 = vcombine.high %v817_v2, %v12064_v24  ;;  %v1153_v20 = vrot.slane %v817_v2, %v12068_v29  ;;  %v838_v21 = vshrl.u32 %v774_v5, 16  ;;  %v837_v27 = vshrl.u32 %v742_v7, 16 }
 0x18d   : > { %v1103_v22 = vrot.slane %v1095_v16, %v12071_v33  ;;  %v1111_v23 = vcombine.low %v1079_v8, %v1094_v15  ;;  %v1112_v25 = vcombine.high %v1079_v8, %v1094_v15  ;;  %v1110_v28 = vrot.slane %v1096_v18, %v12071_v33 }
 0x18e   : > { %v1160_v34 = vrot.slane %v1146_v19, %v12068_v29  ;;  %v1161_v31 = vcombine.low %v1138_v9, %v1153_v20  ;;  %v1162_v40 = vcombine.high %v1138_v9, %v1153_v20  ;;  %v1212_v48 = vcombine.high %v835_v17, %v12064_v24 }
 0x18f   : > { %v1119_v41 = vrot.slane %v1111_v23, %v12071_v33  ;;  %v1126_v47 = vrot.slane %v1112_v25, %v12071_v33  ;;  %v1219_v53 = vrot.slane %v835_v17, %v12068_v29  ;;  %v3177_v2 = vcombine.low %v1103_v22, %v1110_v28  ;;  %v12121_v25 = vpop.permute.xlu1 %743 }
 0x190   : > { %v1169_v54 = vrot.slane %v1161_v31, %v12071_v33  ;;  %v1176_v55 = vrot.slane %v1162_v40, %v12071_v33  ;;  %v1177_v57 = vcombine.low %v1145_v11, %v1160_v34  ;;  %v1178_v1 = vcombine.high %v1145_v11, %v1160_v34 }
 0x191   : > { %v10107_v30 = vcombine.high %v1103_v22, %v1110_v28  ;;  %v3193_v3 = vcombine.low %v1119_v41, %v1126_v47  ;;  %v10108_v5 = vcombine.high %v1119_v41, %v1126_v47  ;;  %v1204_v16 = vrot.slane %v12083_v49, %v12068_v29  ;;  %v712_v28 = vpop.permute.xlu0 %711 }
 0x192   : > { %v1185_v7 = vrot.slane %v1177_v57, %v12071_v33  ;;  %v1192_v8 = vrot.slane %v1178_v1, %v12071_v33  ;;  %v3227_v9 = vcombine.low %v1169_v54, %v1176_v55  ;;  %v10109_v15 = vcombine.high %v1169_v54, %v1176_v55 }
 0x193   : > { %v1263_v17 = vcombine.high %v831_v14, %v12064_v24  ;;  %v3184_v18 = vrot.slane %v3177_v2, %v12068_v29  ;;  %v3192_v19 = vrot.slane %v10107_v30, %v12068_v29  ;;  %v3200_v11 = vrot.slane %v3193_v3, %v12068_v29 }
 0x194   : > { %v3208_v20 = vrot.slane %v10108_v5, %v12068_v29  ;;  %v3234_v22 = vrot.slane %v3227_v9, %v12068_v29  ;;  %v3242_v23 = vrot.slane %v10109_v15, %v12068_v29  ;;  %v839_v34 = vpack.i.b16 %v838_v21, %v837_v27 }
 0x195   : > { %v1226_v49 = vrot.slane %v1212_v48, %v12068_v29  ;;  %v1227_v31 = vcombine.low %v1204_v16, %v1219_v53  ;;  %v3209_v41 = vcombine.low %v3184_v18, %v3192_v19  ;;  %v3243_v47 = vcombine.low %v1185_v7, %v1192_v8 }
 0x196   : > { %v10110_v54 = vcombine.high %v1185_v7, %v1192_v8  ;;  %v1228_v55 = vcombine.high %v1204_v16, %v1219_v53  ;;  %v1211_v57 = vrot.slane %v1197_v13, %v12068_v29  ;;  %v1270_v1 = vrot.slane %v831_v14, %v12068_v29  ;;  %v714_v16 = vpop.permute.xlu1 %713 }
 0x197   : > { %v1277_v2 = vrot.slane %v1263_v17, %v12068_v29  ;;  %v3217_v3 = vcombine.low %v3200_v11, %v3208_v20  ;;  %v3259_v5 = vcombine.low %v3234_v22, %v3242_v23  ;;  %v1235_v21 = vrot.slane %v1227_v31, %v12071_v33  ;;  %v776_v17 = vpop.permute.xlu0 %775 }
 0x198   : > { %v1242_v27 = vrot.slane %v1228_v55, %v12071_v33  ;;  %v1243_v48 = vcombine.low %v1211_v57, %v1226_v49  ;;  %v1244_v9 = vcombine.high %v1211_v57, %v1226_v49  ;;  %v1278_v15 = vcombine.high %v839_v34, %v12064_v24 }
 0x199   : > { %v1285_v53 = vrot.slane %v839_v34, %v12068_v29  ;;  %v12134_v13 = vrot.slane %v3209_v41, %v12071_v33  ;;  %v12137_v14 = vrot.slane %v3243_v47, %v12068_v29  ;;  %v12140_v7 = vrot.slane %v10110_v54, %v12068_v29 }
 0x19a   : > { %v843_v8 = vpack.i.b16 %v712_v28, %v11945_v38  ;;  %v1292_v18 = vrot.slane %v1278_v15, %v12068_v29  ;;  %v846_v20 = vshrl.u32 %v712_v28, 16  ;;  %v12145_v22 = vrot.slane %v3217_v3, %v12071_v33 }
 0x19b   : > { %18425 = vst [vmem:[#allocation10_spill] sm:$0xff] %v12134_v13  ;;  %v1293_v19 = vcombine.low %v1270_v1, %v1285_v53  ;;  %v1294_v11 = vcombine.high %v1270_v1, %v1285_v53  ;;  %v12148_v23 = vrot.slane %v3259_v5, %v12071_v33  ;;  %v3277_v34 = vcombine.low %v1235_v21, %v1242_v27  ;;  %v746_v15 = vpop.permute.xlu0 %745 }
 0x19c   : > { %18426 = vst [vmem:[#allocation11_spill] sm:$0xff] %v12145_v22  ;;  %v10111_v49 = vcombine.high %v1235_v21, %v1242_v27  ;;  %v12151_v31 = vrot.slane %v1243_v48, %v12071_v33  ;;  %v12154_v41 = vrot.slane %v1244_v9, %v12071_v33  ;;  %v1309_v47 = vcombine.low %v1277_v2, %v1292_v18 }
 0x19d   : > { %18427 = vst [vmem:[#allocation12_spill] sm:$0xff] %v12148_v23  ;;  %v1310_v54 = vcombine.high %v1277_v2, %v1292_v18  ;;  %v3267_v55 = vcombine.low %v12137_v14, %v12140_v7  ;;  %v12159_v28 = vrot.slane %v1293_v19, %v12071_v33  ;;  %v12162_v57 = vrot.slane %v1294_v11, %v12071_v33 }
 0x19e   : > { %v847_v1 = vpack.i.b16 %v846_v20, %v845_v35  ;;  %v12167_v3 = vrot.slane %v1309_v47, %v12071_v33  ;;  %v853_v2 = vshrl.u32 %v12121_v25, 16  ;;  %v1329_v21 = vcombine.high %v843_v8, %v12064_v24  ;;  %v778_v35 = vpop.permute.xlu1 %777 }
 0x19f   : > { %v12170_v5 = vrot.slane %v1310_v54, %v12071_v33  ;;  %v12175_v27 = vrot.slane %v3277_v34, %v12068_v29  ;;  %v12178_v48 = vrot.slane %v10111_v49, %v12068_v29  ;;  %v859_v9 = vpack.i.b16 %v714_v16, %v11943_v36 }
 0x1a0   : > { %v862_v38 = vshrl.u32 %v714_v16, 16  ;;  %v1336_v19 = vrot.slane %v843_v8, %v12068_v29  ;;  %v1395_v11 = vcombine.high %v847_v1, %v12064_v24  ;;  %v851_v16 = vpack.i.b16 %v776_v17, %v12121_v25 }
 0x1a1   : > { %v854_v49 = vshrl.u32 %v776_v17, 16  ;;  %v1343_v54 = vrot.slane %v1329_v21, %v12068_v29  ;;  %v1402_v30 = vrot.slane %v847_v1, %v12068_v29  ;;  %v867_v40 = vpack.i.b16 %v778_v35, %v746_v15 }
 0x1a2   : > { %v863_v8 = vpack.i.b16 %v862_v38, %v861_v37  ;;  %v1461_v63 = vcombine.high %v859_v9, %v12064_v24  ;;  %v1344_v60 = vcombine.high %v851_v16, %v12064_v24  ;;  %v1409_v59 = vrot.slane %v1395_v11, %v12068_v29 }
 0x1a3   : > { %v855_v61 = vpack.i.b16 %v854_v49, %v853_v2  ;;  %v1468_v25 = vrot.slane %v859_v9, %v12068_v29  ;;  %v1351_v17 = vrot.slane %v851_v16, %v12068_v29  ;;  %v1476_v46 = vcombine.high %v867_v40, %v12064_v24 }
 0x1a4   : > { %v1358_v21 = vrot.slane %v1344_v60, %v12068_v29  ;;  %v1483_v37 = vrot.slane %v867_v40, %v12068_v29  ;;  %v870_v49 = vshrl.u32 %v778_v35, 16  ;;  %v869_v51 = vshrl.u32 %v746_v15, 16 }
 0x1a5   : > { %v1410_v1 = vcombine.high %v855_v61, %v12064_v24  ;;  %v1417_v36 = vrot.slane %v855_v61, %v12068_v29  ;;  %v1359_v38 = vcombine.low %v1336_v19, %v1351_v17  ;;  %v1360_v2 = vcombine.high %v1336_v19, %v1351_v17 }
 0x1a6   : > { %v1527_v11 = vcombine.high %v863_v8, %v12064_v24  ;;  %v1375_v45 = vcombine.low %v1343_v54, %v1358_v21  ;;  %v1376_v9 = vcombine.high %v1343_v54, %v1358_v21  ;;  %v1490_v40 = vrot.slane %v1476_v46, %v12068_v29 }
 0x1a7   : > { %v1424_v16 = vrot.slane %v1410_v1, %v12068_v29  ;;  %v1367_v47 = vrot.slane %v1359_v38, %v12071_v33  ;;  %v1374_v60 = vrot.slane %v1360_v2, %v12071_v33  ;;  %v1425_v34 = vcombine.low %v1402_v30, %v1417_v36  ;;  %v12221_v1 = vpop.permute.xlu1 %747 }
 0x1a8   : > { %v1426_v20 = vcombine.high %v1402_v30, %v1417_v36  ;;  %v1491_v19 = vcombine.low %v1468_v25, %v1483_v37  ;;  %v1492_v35 = vcombine.high %v1468_v25, %v1483_v37  ;;  %v12216_v15 = vrot.slane %v1375_v45, %v12071_v33  ;;  %v716_v37 = vpop.permute.xlu0 %715 }
 0x1a9   : > { %v12219_v54 = vrot.slane %v1376_v9, %v12071_v33  ;;  %v1441_v17 = vcombine.low %v1409_v59, %v1424_v16  ;;  %v871_v21 = vpack.i.b16 %v870_v49, %v869_v51  ;;  %v1475_v38 = vrot.slane %v1461_v63, %v12068_v29 }
 0x1aa   : > { %v1442_v30 = vcombine.high %v1409_v59, %v1424_v16  ;;  %v3377_v36 = vcombine.low %v1367_v47, %v1374_v60  ;;  %v10115_v2 = vcombine.high %v1367_v47, %v1374_v60  ;;  %v1534_v61 = vrot.slane %v863_v8, %v12068_v29 }
 0x1ab   : > { %v1541_v46 = vrot.slane %v1527_v11, %v12068_v29  ;;  %v12227_v25 = vrot.slane %v1425_v34, %v12071_v33  ;;  %v12230_v45 = vrot.slane %v1426_v20, %v12071_v33  ;;  %v1499_v51 = vrot.slane %v1491_v19, %v12071_v33 }
 0x1ac   : > { %v1506_v49 = vrot.slane %v1492_v35, %v12071_v33  ;;  %v1507_v9 = vcombine.low %v1475_v38, %v1490_v40  ;;  %v1508_v63 = vcombine.high %v1475_v38, %v1490_v40  ;;  %v12235_v59 = vrot.slane %v1441_v17, %v12071_v33 }
 0x1ad   : > { %v1542_v8 = vcombine.high %v871_v21, %v12064_v24  ;;  %v1549_v34 = vrot.slane %v871_v21, %v12068_v29  ;;  %v12242_v20 = vrot.slane %v1442_v30, %v12071_v33  ;;  %v12245_v11 = vrot.slane %v3377_v36, %v12068_v29  ;;  %v718_v21 = vpop.permute.xlu1 %717 }
 0x1ae   : > { %v12248_v16 = vrot.slane %v10115_v2, %v12068_v29  ;;  %v12258_v30 = vrot.slane %v1507_v9, %v12071_v33  ;;  %v12261_v36 = vrot.slane %v1508_v63, %v12071_v33  ;;  %v3477_v2 = vcombine.low %v1499_v51, %v1506_v49 }
 0x1af   : > { %v1556_v19 = vrot.slane %v1542_v8, %v12068_v29  ;;  %v1557_v35 = vcombine.low %v1534_v61, %v1549_v34  ;;  %v1558_v17 = vcombine.high %v1534_v61, %v1549_v34  ;;  %v10119_v18 = vcombine.high %v1499_v51, %v1506_v49  ;;  %v780_v8 = vpop.permute.xlu0 %779 }
 0x1b0   : > { %v875_v34 = vpack.i.b16 %v716_v37, %v11957_v44  ;;  %v878_v38 = vshrl.u32 %v716_v37, 16  ;;  %v894_v53 = vshrl.u32 %v718_v21, 16  ;;  %v885_v51 = vshrl.u32 %v12221_v1, 16 }
 0x1b1   : > { %v12264_v60 = vrot.slane %v1557_v35, %v12071_v33  ;;  %v1573_v47 = vcombine.low %v1541_v46, %v1556_v19  ;;  %v1574_v40 = vcombine.high %v1541_v46, %v1556_v19  ;;  %v12267_v61 = vrot.slane %v1558_v17, %v12071_v33  ;;  %v782_v9 = vpop.permute.xlu1 %781 }
 0x1b2   : > { %v879_v49 = vpack.i.b16 %v878_v38, %v877_v43  ;;  %v1593_v37 = vcombine.high %v875_v34, %v12064_v24  ;;  %v891_v19 = vpack.i.b16 %v718_v21, %v11955_v42  ;;  %v12286_v17 = vrot.slane %v3477_v2, %v12068_v29 }
 0x1b3   : > { %v12275_v35 = vrot.slane %v1573_v47, %v12071_v33  ;;  %v12278_v46 = vrot.slane %v1574_v40, %v12071_v33  ;;  %v12289_v63 = vrot.slane %v10119_v18, %v12068_v29  ;;  %v1600_v21 = vrot.slane %v875_v34, %v12068_v29  ;;  %v750_v32 = vpop.permute.xlu0 %749 }
 0x1b4   : > { %v895_v38 = vpack.i.b16 %v894_v53, %v893_v39  ;;  %v883_v47 = vpack.i.b16 %v780_v8, %v12221_v1  ;;  %v886_v40 = vshrl.u32 %v780_v8, 16  ;;  %v1607_v44 = vrot.slane %v1593_v37, %v12068_v29 }
 0x1b5   : > { %v1659_v43 = vcombine.high %v879_v49, %v12064_v24  ;;  %v1725_v34 = vcombine.high %v891_v19, %v12064_v24  ;;  %v12314_v42 = vrot.slane %v3267_v55, %v12071_v33  ;;  %v12320_v8 = vcombine.low %v12134_v13, %v12145_v22 }
 0x1b6   : > { %v887_v39 = vpack.i.b16 %v886_v40, %v885_v51  ;;  %v1608_v53 = vcombine.high %v883_v47, %v12064_v24  ;;  %v1615_v1 = vrot.slane %v883_v47, %v12068_v29  ;;  %v902_v2 = vshrl.u32 %v782_v9, 16 }
 0x1b7   : > { %18428 = vst [vmem:[#allocation13_spill] sm:$0xff] %v12314_v42  ;;  %18429 = vst [vmem:[#allocation14_spill] sm:$0xff] %v12320_v8  ;;  %v12324_v37 = vcombine.low %v12148_v23, %v12314_v42  ;;  %v899_v18 = vpack.i.b16 %v782_v9, %v750_v32  ;;  %v901_v26 = vshrl.u32 %v750_v32, 16  ;;  %v1666_v40 = vrot.slane %v879_v49, %v12068_v29  ;;  %v10874_v23 = vld [vmem:[%s11925_s28 + $0x20] ss:$8 sps:$4 sm:$0xff]   ;;  %v720_v4 = vpop.permute.xlu0 %719 }
 0x1b8   : > { %v1622_v14 = vrot.slane %v1608_v53, %v12068_v29  ;;  %v1623_v7 = vcombine.low %v1600_v21, %v1615_v1  ;;  %v1624_v55 = vcombine.high %v1600_v21, %v1615_v1  ;;  %v1674_v51 = vcombine.high %v887_v39, %v12064_v24 }
 0x1b9   : > { %18430 = vst [vmem:[#allocation15_spill] sm:$0xff] %v12324_v37  ;;  %v1791_v47 = vcombine.high %v895_v38, %v12064_v24  ;;  %v1681_v13 = vrot.slane %v887_v39, %v12068_v29  ;;  %v4779_v22 = vpack.i.b16 %v12324_v37, %v12320_v8  ;;  %v1673_v42 = vrot.slane %v1659_v43, %v12068_v29  ;;  %v12339_v39 = vpop.permute.xlu1 %751 }
 0x1ba   : > { %v1631_v32 = vrot.slane %v1623_v7, %v12071_v33  ;;  %v1638_v9 = vrot.slane %v1624_v55, %v12071_v33  ;;  %v1639_v53 = vcombine.low %v1607_v44, %v1622_v14  ;;  %v1640_v21 = vcombine.high %v1607_v44, %v1622_v14 }
 0x1bb   : > { %v1688_v1 = vrot.slane %v1674_v51, %v12068_v29  ;;  %v1689_v10 = vcombine.low %v1666_v40, %v1681_v13  ;;  %v1690_v49 = vcombine.high %v1666_v40, %v1681_v13  ;;  %10175 = vmatmul.mubr.msk.bf16.vlgmr.msra.gmra.mrb[32].mxu0 %vm5021_vm0, %v4779_v22  ;;  %v1732_v8 = vrot.slane %v891_v19, %v12068_v29  ;;  %v10877_v19 = vld [vmem:[%s11925_s28 + $0x30] ss:$8 sps:$4 sm:$0xff]  }
 0x1bc   : > { %v903_v37 = vpack.i.b16 %v902_v2, %v901_v26  ;;  %v1740_v43 = vcombine.high %v899_v18, %v12064_v24  ;;  %v1747_v7 = vrot.slane %v899_v18, %v12068_v29  ;;  %v18431_v55 = vmov 0   ;;  %5332 = vmatpush1.bf16.msra.mxu0 %v10874_v23  ;;  %v10879_v2 = vld [vmem:[%s11925_s28 + $0x34] ss:$8 sps:$4 sm:$0xff]  }
 0x1bd   : > { %5112 = vmatprep.mubr.bf16.mxu0 %v18431_v55  ;;  %v1739_v44 = vrot.slane %v1725_v34, %v12068_v29  ;;  %v1705_v14 = vcombine.low %v1673_v42, %v1688_v1  ;;  %v3577_v51 = vcombine.low %v1631_v32, %v1638_v9  ;;  %v10123_v13 = vcombine.high %v1631_v32, %v1638_v9 }
 0x1be   : > { %v1798_v22 = vrot.slane %v895_v38, %v12068_v29  ;;  %v1805_v40 = vrot.slane %v1791_v47, %v12068_v29  ;;  %v12349_v12 = vrot.slane %v1639_v53, %v12071_v33  ;;  %v12355_v18 = vrot.slane %v1640_v21, %v12071_v33  ;;  %5333 = vmatprep.subr.bf16.mxu0 %v10879_v2 }
 0x1bf   : > { %v12358_v34 = vrot.slane %v1689_v10, %v12071_v33  ;;  %v12361_v32 = vrot.slane %v1690_v49, %v12071_v33  ;;  %v1706_v23 = vcombine.high %v1673_v42, %v1688_v1  ;;  %v1754_v38 = vrot.slane %v1740_v43, %v12068_v29 }
 0x1c0   : > { %v1755_v47 = vcombine.low %v1732_v8, %v1747_v7  ;;  %v1756_v9 = vcombine.high %v1732_v8, %v1747_v7  ;;  %v1806_v53 = vcombine.high %v903_v37, %v12064_v24  ;;  %v12366_v26 = vrot.slane %v1705_v14, %v12071_v33  ;;  %5334 = vmatpush1.bf16.msra.mxu0 %v10877_v19 }
 0x1c1   : > { %v12369_v21 = vrot.slane %v3577_v51, %v12068_v29  ;;  %v12372_v10 = vrot.slane %v10123_v13, %v12068_v29  ;;  %v1813_v49 = vrot.slane %v903_v37, %v12068_v29  ;;  %v1771_v1 = vcombine.low %v1739_v44, %v1754_v38 }
 0x1c2   : > { %v1763_v42 = vrot.slane %v1755_v47, %v12071_v33  ;;  %v1770_v8 = vrot.slane %v1756_v9, %v12071_v33  ;;  %v1772_v43 = vcombine.high %v1739_v44, %v1754_v38  ;;  %v12378_v7 = vrot.slane %v1706_v23, %v12071_v33  ;;  %v784_v38 = vpop.permute.xlu0 %783 }
 0x1c3   : > { %v1820_v14 = vrot.slane %v1806_v53, %v12068_v29  ;;  %v1821_v51 = vcombine.low %v1798_v22, %v1813_v49  ;;  %v1822_v2 = vcombine.high %v1798_v22, %v1813_v49  ;;  %v910_v62 = vshrl.u32 %v720_v4, 16 }
 0x1c4   : > { %v3677_v6 = vcombine.low %v1763_v42, %v1770_v8  ;;  %v10127_v37 = vcombine.high %v1763_v42, %v1770_v8  ;;  %v12386_v47 = vrot.slane %v1771_v1, %v12071_v33  ;;  %v12389_v44 = vrot.slane %v1772_v43, %v12071_v33 }
 0x1c5   : > { %v1837_v23 = vcombine.low %v1805_v40, %v1820_v14  ;;  %v12394_v22 = vrot.slane %v1821_v51, %v12071_v33  ;;  %v12397_v9 = vrot.slane %v1822_v2, %v12071_v33  ;;  %v1838_v53 = vcombine.high %v1805_v40, %v1820_v14 }
 0x1c6   : > { %v907_v1 = vpack.i.b16 %v720_v4, %v11971_v52  ;;  %v12407_v43 = vrot.slane %v3677_v6, %v12068_v29  ;;  %v12410_v51 = vrot.slane %v10127_v37, %v12068_v29  ;;  %v18435_v2 = vshrl.u32 %v11971_v52, 16 }
 0x1c7   : > { %18432 = vst [vmem:[#allocation16_spill] sm:$0xff] %v12397_v9  ;;  %v18436_v14 = vcombine.low %v12151_v31, %v12154_v41  ;;  %v12419_v42 = vrot.slane %v1837_v23, %v12071_v33  ;;  %v18437_v37 = vcombine.high %v12151_v31, %v12154_v41  ;;  %v12431_v8 = vrot.slane %v1838_v53, %v12071_v33 }
 0x1c8   : > { %18433 = vst [vmem:[#allocation17_spill] sm:$0xff] %v12407_v43  ;;  %18434 = vst [vmem:[#allocation18_spill] sm:$0xff] %v12410_v51  ;;  %v911_v40 = vpack.i.b16 %v910_v62, %v18435_v2  ;;  %v722_v62 = vpop.permute.xlu1 %721  ;;  %v10882_v2 = vld [vmem:[%s11925_s28 + $0x44] ss:$8 sps:$4 sm:$0xff]   ;;  %v18438_v6 = vcombine.low %v12159_v28, %v12162_v57  ;;  %v1857_v31 = vcombine.high %v907_v1, %v12064_v24  ;;  %v918_v43 = vshrl.u32 %v784_v38, 16 }
 0x1c9   : > { %v3300_v49 = vrot.slane %v18436_v14, %v12068_v29  ;;  %v3308_v52 = vrot.slane %v18437_v37, %v12068_v29  ;;  %v18439_v53 = vcombine.high %v12159_v28, %v12162_v57  ;;  %v18440_v23 = vcombine.low %v12167_v3, %v12170_v5  ;;  %5592 = vmatprep.subr.bf16.mxu1 %v10882_v2 }
 0x1ca   : > { %v3334_v4 = vrot.slane %v18438_v6, %v12068_v29  ;;  %v1923_v14 = vcombine.high %v911_v40, %v12064_v24  ;;  %v3309_v6 = vcombine.low %v12175_v27, %v12178_v48  ;;  %v926_v13 = vshrl.u32 %v722_v62, 16 }
 0x1cb   : > { %v3317_v41 = vcombine.low %v3300_v49, %v3308_v52  ;;  %v3342_v37 = vrot.slane %v18439_v53, %v12068_v29  ;;  %v3350_v19 = vrot.slane %v18440_v23, %v12068_v29  ;;  %v18441_v49 = vcombine.high %v12167_v3, %v12170_v5 }
 0x1cc   : > { %v1864_v28 = vrot.slane %v907_v1, %v12068_v29  ;;  %v915_v53 = vpack.i.b16 %v784_v38, %v12339_v39  ;;  %v923_v51 = vpack.i.b16 %v722_v62, %v11969_v50  ;;  %v18443_v27 = vshrl.u32 %v11969_v50, 16 }
 0x1cd   : > { %v3358_v52 = vrot.slane %v18441_v49, %v12068_v29  ;;  %v3359_v57 = vcombine.low %v3334_v4, %v3342_v37  ;;  %v12460_v23 = vrot.slane %v3317_v41, %v12071_v33  ;;  %v1871_v9 = vrot.slane %v1857_v31, %v12068_v29  ;;  %v754_v49 = vpop.permute.xlu0 %753 }
 0x1ce   : > { %v927_v48 = vpack.i.b16 %v926_v13, %v18443_v27  ;;  %v1930_v3 = vrot.slane %v911_v40, %v12068_v29  ;;  %v18444_v5 = vshrl.u32 %v12339_v39, 16  ;;  %v1872_v4 = vcombine.high %v915_v53, %v12064_v24 }
 0x1cf   : > { %18442 = vst [vmem:[#allocation19_spill] sm:$0xff] %v12460_v23  ;;  %v3367_v2 = vcombine.low %v3350_v19, %v3358_v52  ;;  %v1937_v38 = vrot.slane %v1923_v14, %v12068_v29  ;;  %v12472_v41 = vrot.slane %v3309_v6, %v12071_v33  ;;  %v12475_v19 = vrot.slane %v3359_v57, %v12071_v33  ;;  %v786_v6 = vpop.permute.xlu1 %785 }
 0x1d0   : > { %v919_v1 = vpack.i.b16 %v918_v43, %v18444_v5  ;;  %v1879_v13 = vrot.slane %v915_v53, %v12068_v29  ;;  %v1886_v40 = vrot.slane %v1872_v4, %v12068_v29  ;;  %v1989_v31 = vcombine.high %v923_v51, %v12064_v24 }
 0x1d1   : > { %18445 = vst [vmem:[#allocation20_spill] sm:$0xff] %v12472_v41  ;;  %18446 = vst [vmem:[#allocation21_spill] sm:$0xff] %v12475_v19  ;;  %v12478_v50 = vrot.slane %v3367_v2, %v12071_v33  ;;  %v12486_v62 = vcombine.low %v12472_v41, %v12460_v23  ;;  %v2055_v37 = vcombine.high %v927_v48, %v12064_v24 }
 0x1d2   : > { %v1938_v39 = vcombine.high %v919_v1, %v12064_v24  ;;  %v1945_v43 = vrot.slane %v919_v1, %v12068_v29  ;;  %v1887_v52 = vcombine.low %v1864_v28, %v1879_v13  ;;  %v1888_v57 = vcombine.high %v1864_v28, %v1879_v13 }
 0x1d3   : > { %18447 = vst [vmem:[#allocation22_spill] sm:$0xff] %v12478_v50  ;;  %18448 = vst [vmem:[#allocation23_spill] sm:$0xff] %v12486_v62  ;;  %v12490_v14 = vcombine.low %v12475_v19, %v12478_v50  ;;  %v1903_v53 = vcombine.low %v1871_v9, %v1886_v40  ;;  %v1904_v2 = vcombine.high %v1871_v9, %v1886_v40 }
 0x1d4   : > { %v1952_v5 = vrot.slane %v1938_v39, %v12068_v29  ;;  %v1953_v1 = vcombine.low %v1930_v3, %v1945_v43  ;;  %v1954_v4 = vcombine.high %v1930_v3, %v1945_v43  ;;  %v1895_v23 = vrot.slane %v1887_v52, %v12071_v33 }
 0x1d5   : > { %18449 = vst [vmem:[#allocation24_spill] sm:$0xff] %v12490_v14  ;;  %v4791_v27 = vpack.i.b16 %v12490_v14, %v12486_v62  ;;  %v1902_v19 = vrot.slane %v1888_v57, %v12071_v33  ;;  %v931_v50 = vpack.i.b16 %v786_v6, %v754_v49  ;;  %v12505_v9 = vrot.slane %v1903_v53, %v12071_v33 }
 0x1d6   : > { %v12508_v13 = vrot.slane %v1904_v2, %v12071_v33  ;;  %v1969_v3 = vcombine.low %v1937_v38, %v1952_v5  ;;  %v1996_v40 = vrot.slane %v923_v51, %v12068_v29  ;;  %v2003_v39 = vrot.slane %v1989_v31, %v12068_v29 }
 0x1d7   : > { %10176 = vmatmul.mubr.msk.bf16.gmra.mrb[36].mxu0 %vm5021_vm0, %v4791_v27  ;;  %v2062_v43 = vrot.slane %v927_v48, %v12068_v29  ;;  %v934_v52 = vshrl.u32 %v786_v6, 16  ;;  %v2069_v57 = vrot.slane %v2055_v37, %v12068_v29  ;;  %v12516_v27 = vrot.slane %v1953_v1, %v12071_v33 }
 0x1d8   : > { %5122 = vmatprep.mubr.bf16.mxu0 %v18431_v55  ;;  %v12519_v53 = vrot.slane %v1954_v4, %v12071_v33  ;;  %v1970_v2 = vcombine.high %v1937_v38, %v1952_v5  ;;  %v3777_v28 = vcombine.low %v1895_v23, %v1902_v19  ;;  %v10131_v41 = vcombine.high %v1895_v23, %v1902_v19 }
 0x1d9   : > { %v933_v62 = vshrl.u32 %v754_v49, 16  ;;  %v2004_v51 = vcombine.high %v931_v50, %v12064_v24  ;;  %v12523_v31 = vrot.slane %v1969_v3, %v12071_v33  ;;  %v2011_v6 = vrot.slane %v931_v50, %v12068_v29  ;;  %v724_v3 = vpop.permute.xlu0 %723 }
 0x1da   : > { %v18450_v23 = vcombine.low %v12216_v15, %v12219_v54  ;;  %v18451_v19 = vcombine.high %v12216_v15, %v12219_v54  ;;  %v12540_v5 = vrot.slane %v1970_v2, %v12071_v33  ;;  %v3409_v2 = vcombine.low %v12245_v11, %v12248_v16 }
 0x1db   : > { %v935_v1 = vpack.i.b16 %v934_v52, %v933_v62  ;;  %v2018_v4 = vrot.slane %v2004_v51, %v12068_v29  ;;  %v2019_v50 = vcombine.low %v1996_v40, %v2011_v6  ;;  %v2020_v62 = vcombine.high %v1996_v40, %v2011_v6 }
 0x1dc   : > { %v3400_v38 = vrot.slane %v18450_v23, %v12068_v29  ;;  %v3408_v49 = vrot.slane %v18451_v19, %v12068_v29  ;;  %v756_v19 = vpop.permute.xlu1 %755  ;;  %v18453_v11 = vcombine.high %v12227_v25, %v12230_v45 }
 0x1dd   : > { %v2035_v52 = vcombine.low %v2003_v39, %v2018_v4  ;;  %v2036_v51 = vcombine.high %v2003_v39, %v2018_v4  ;;  %v2070_v37 = vcombine.high %v935_v1, %v12064_v24  ;;  %v2077_v48 = vrot.slane %v935_v1, %v12068_v29 }
 0x1de   : > { %v2027_v15 = vrot.slane %v2019_v50, %v12071_v33  ;;  %v2034_v54 = vrot.slane %v2020_v62, %v12071_v33  ;;  %v3417_v39 = vcombine.low %v3400_v38, %v3408_v49  ;;  %v18452_v1 = vcombine.low %v12227_v25, %v12230_v45 }
 0x1df   : > { %v2084_v40 = vrot.slane %v2070_v37, %v12068_v29  ;;  %v2085_v6 = vcombine.low %v2062_v43, %v2077_v48  ;;  %v12558_v23 = vrot.slane %v2035_v52, %v12071_v33  ;;  %v12561_v50 = vrot.slane %v2036_v51, %v12071_v33 }
 0x1e0   : > { %v3434_v4 = vrot.slane %v18452_v1, %v12068_v29  ;;  %v2086_v62 = vcombine.high %v2062_v43, %v2077_v48  ;;  %v3442_v16 = vrot.slane %v18453_v11, %v12068_v29  ;;  %v12568_v37 = vrot.slane %v3777_v28, %v12068_v29 }
 0x1e1   : > { %v12571_v38 = vrot.slane %v10131_v41, %v12068_v29  ;;  %v3877_v49 = vcombine.low %v2027_v15, %v2034_v54  ;;  %v10135_v1 = vcombine.high %v2027_v15, %v2034_v54  ;;  %v2101_v43 = vcombine.low %v2069_v57, %v2084_v40 }
 0x1e2   : > { %v2102_v48 = vcombine.high %v2069_v57, %v2084_v40  ;;  %v12578_v14 = vrot.slane %v2085_v6, %v12071_v33  ;;  %v12581_v25 = vrot.slane %v3409_v2, %v12071_v33  ;;  %v12584_v45 = vrot.slane %v3417_v39, %v12071_v33  ;;  %v726_v6 = vpop.permute.xlu1 %725  ;;  %v788_v39 = vpop.permute.xlu0 %787 }
 0x1e3   : > { %v18456_v41 = vcombine.low %v12235_v59, %v12242_v20  ;;  %v12591_v15 = vrot.slane %v2086_v62, %v12071_v33  ;;  %v18457_v54 = vcombine.high %v12235_v59, %v12242_v20  ;;  %v3459_v40 = vcombine.low %v3434_v4, %v3442_v16 }
 0x1e4   : > { %18454 = vst [vmem:[#allocation25_spill] sm:$0xff] %v12581_v25  ;;  %18455 = vst [vmem:[#allocation26_spill] sm:$0xff] %v12584_v45  ;;  %v12600_v11 = vrot.slane %v3877_v49, %v12068_v29  ;;  %v12603_v51 = vrot.slane %v10135_v1, %v12068_v29  ;;  %v12609_v57 = vrot.slane %v2101_v43, %v12071_v33  ;;  %v942_v4 = vshrl.u32 %v724_v3, 16 }
 0x1e5   : > { %v3450_v28 = vrot.slane %v18456_v41, %v12068_v29  ;;  %v3458_v2 = vrot.slane %v18457_v54, %v12068_v29  ;;  %v939_v41 = vpack.i.b16 %v724_v3, %v11983_v58  ;;  %v12612_v59 = vrot.slane %v2102_v48, %v12071_v33 }
 0x1e6   : > { %18458 = vst [vmem:[#allocation27_spill] sm:$0xff] %v12600_v11  ;;  %18459 = vst [vmem:[#allocation28_spill] sm:$0xff] %v12603_v51  ;;  %v955_v49 = vpack.i.b16 %v726_v6, %v11981_v56  ;;  %v958_v54 = vshrl.u32 %v726_v6, 16  ;;  %v947_v1 = vpack.i.b16 %v788_v39, %v756_v19  ;;  %v12618_v52 = vcombine.low %v12581_v25, %v12584_v45 }
 0x1e7   : > { %18460 = vst [vmem:[#allocation29_spill] sm:$0xff] %v12612_v59  ;;  %v3467_v20 = vcombine.low %v3450_v28, %v3458_v2  ;;  %v2121_v16 = vcombine.high %v939_v41, %v12064_v24  ;;  %v12621_v62 = vrot.slane %v3459_v40, %v12071_v33  ;;  %v18464_v48 = vshrl.u32 %v11983_v58, 16 }
 0x1e8   : > { %18461 = vst [vmem:[#allocation30_spill] sm:$0xff] %v12618_v52  ;;  %v949_v3 = vshrl.u32 %v756_v19, 16  ;;  %v18465_v2 = vshrl.u32 %v11981_v56, 16  ;;  %v950_v51 = vshrl.u32 %v788_v39, 16  ;;  %v2136_v6 = vcombine.high %v947_v1, %v12064_v24 }
 0x1e9   : > { %18462 = vst [vmem:[#allocation31_spill] sm:$0xff] %v12621_v62  ;;  %v12624_v43 = vrot.slane %v3467_v20, %v12071_v33  ;;  %v943_v28 = vpack.i.b16 %v942_v4, %v18464_v48  ;;  %v2128_v20 = vrot.slane %v939_v41, %v12068_v29  ;;  %v2135_v58 = vrot.slane %v2121_v16, %v12068_v29 }
 0x1ea   : > { %v959_v11 = vpack.i.b16 %v958_v54, %v18465_v2  ;;  %v2253_v19 = vcombine.high %v955_v49, %v12064_v24  ;;  %v951_v56 = vpack.i.b16 %v950_v51, %v949_v3  ;;  %v2143_v39 = vrot.slane %v947_v1, %v12068_v29 }
 0x1eb   : > { %18463 = vst [vmem:[#allocation32_spill] sm:$0xff] %v12624_v43  ;;  %v12635_v40 = vcombine.low %v12621_v62, %v12624_v43  ;;  %v2187_v45 = vcombine.high %v943_v28, %v12064_v24  ;;  %v2194_v54 = vrot.slane %v943_v28, %v12068_v29  ;;  %v2150_v2 = vrot.slane %v2136_v6, %v12068_v29 }
 0x1ec   : > { %v2319_v48 = vcombine.high %v959_v11, %v12064_v24  ;;  %v2151_v25 = vcombine.low %v2128_v20, %v2143_v39  ;;  %v2152_v62 = vcombine.high %v2128_v20, %v2143_v39  ;;  %v2202_v16 = vcombine.high %v951_v56, %v12064_v24 }
 0x1ed   : > { %18466 = vst [vmem:[#allocation33_spill] sm:$0xff] %v12635_v40  ;;  %v4803_v4 = vpack.i.b16 %v12635_v40, %v12618_v52  ;;  %v2201_v41 = vrot.slane %v2187_v45, %v12068_v29  ;;  %v2167_v51 = vcombine.low %v2135_v58, %v2150_v2  ;;  %v2168_v3 = vcombine.high %v2135_v58, %v2150_v2  ;;  %v790_v40 = vpop.permute.xlu1 %789 }
 0x1ee   : > { %v2209_v1 = vrot.slane %v951_v56, %v12068_v29  ;;  %v18467_v28 = vcombine.low %v12258_v30, %v12261_v36  ;;  %v2159_v6 = vrot.slane %v2151_v25, %v12071_v33  ;;  %v2166_v45 = vrot.slane %v2152_v62, %v12071_v33 }
 0x1ef   : > { %10177 = vmatmul.mubr.msk.bf16.gmra.mrb[40].mxu0 %vm5021_vm0, %v4803_v4  ;;  %v2216_v20 = vrot.slane %v2202_v16, %v12068_v29  ;;  %v18468_v39 = vcombine.high %v12258_v30, %v12261_v36  ;;  %v758_v4 = vpop.permute.xlu0 %757  ;;  %v12664_v56 = vrot.slane %v2167_v51, %v12071_v33  ;;  %v12667_v2 = vrot.slane %v2168_v3, %v12071_v33 }
 0x1f0   : > { %v3500_v43 = vrot.slane %v18467_v28, %v12068_v29  ;;  %5132 = vmatprep.mubr.bf16.mxu0 %v18431_v55  ;;  %v2217_v28 = vcombine.low %v2194_v54, %v2209_v1  ;;  %v2218_v52 = vcombine.high %v2194_v54, %v2209_v1  ;;  %v2260_v36 = vrot.slane %v955_v49, %v12068_v29 }
 0x1f1   : > { %v3508_v58 = vrot.slane %v18468_v39, %v12068_v29  ;;  %18469 = vst [vmem:[#allocation34_spill] sm:$0xff] %v12664_v56  ;;  %18470 = vst [vmem:[#allocation35_spill] sm:$0xff] %v12667_v2  ;;  %v2233_v30 = vcombine.low %v2201_v41, %v2216_v20  ;;  %v12677_v51 = vrot.slane %v2253_v19, %v12068_v29 }
 0x1f2   : > { %v12680_v3 = vrot.slane %v959_v11, %v12068_v29  ;;  %v12683_v54 = vrot.slane %v2319_v48, %v12068_v29  ;;  %v2234_v1 = vcombine.high %v2201_v41, %v2216_v20  ;;  %v3977_v39 = vcombine.low %v2159_v6, %v2166_v45 }
 0x1f3   : > { %v10139_v25 = vcombine.high %v2159_v6, %v2166_v45  ;;  %v3509_v62 = vcombine.low %v12286_v17, %v12289_v63  ;;  %v12688_v16 = vrot.slane %v2217_v28, %v12071_v33  ;;  %v12691_v49 = vrot.slane %v2218_v52, %v12071_v33  ;;  %v728_v45 = vpop.permute.xlu0 %727 }
 0x1f4   : > { %v3517_v19 = vcombine.low %v3500_v43, %v3508_v58  ;;  %v12696_v48 = vrot.slane %v2233_v30, %v12071_v33  ;;  %v18471_v63 = vcombine.low %v12264_v60, %v12267_v61  ;;  %v18472_v52 = vcombine.high %v12264_v60, %v12267_v61 }
 0x1f5   : > { %v18474_v43 = vcombine.low %v12275_v35, %v12278_v46  ;;  %v18475_v28 = vcombine.high %v12275_v35, %v12278_v46  ;;  %v12720_v41 = vrot.slane %v2234_v1, %v12071_v33  ;;  %v963_v61 = vpack.i.b16 %v790_v40, %v758_v4 }
 0x1f6   : > { %v3534_v17 = vrot.slane %v18471_v63, %v12068_v29  ;;  %v3542_v6 = vrot.slane %v18472_v52, %v12068_v29  ;;  %v12709_v20 = vrot.slane %v3517_v19, %v12071_v33  ;;  %v966_v63 = vshrl.u32 %v790_v40, 16 }
 0x1f7   : > { %v3550_v58 = vrot.slane %v18474_v43, %v12068_v29  ;;  %v3558_v30 = vrot.slane %v18475_v28, %v12068_v29  ;;  %v965_v52 = vshrl.u32 %v758_v4, 16  ;;  %v12723_v19 = vrot.slane %v3509_v62, %v12071_v33 }
 0x1f8   : > { %18473 = vst [vmem:[#allocation36_spill] sm:$0xff] %v12709_v20  ;;  %v3559_v60 = vcombine.low %v3534_v17, %v3542_v6  ;;  %v971_v2 = vpack.i.b16 %v728_v45, %v11995_v0  ;;  %v974_v56 = vshrl.u32 %v728_v45, 16  ;;  %v12727_v43 = vrot.slane %v3977_v39, %v12068_v29 }
 0x1f9   : > { %18476 = vst [vmem:[#allocation37_spill] sm:$0xff] %v12723_v19  ;;  %v3567_v11 = vcombine.low %v3550_v58, %v3558_v30  ;;  %v967_v59 = vpack.i.b16 %v966_v63, %v965_v52  ;;  %v2268_v35 = vcombine.high %v963_v61, %v12064_v24  ;;  %v2275_v46 = vrot.slane %v963_v61, %v12068_v29  ;;  %v760_v52 = vpop.permute.xlu1 %759 }
 0x1fa   : > { %v12732_v1 = vrot.slane %v10139_v25, %v12068_v29  ;;  %v12736_v40 = vcombine.low %v12723_v19, %v12709_v20  ;;  %v12739_v4 = vrot.slane %v3559_v60, %v12071_v33  ;;  %v18481_v28 = vshrl.u32 %v11995_v0, 16 }
 0x1fb   : > { %v12742_v62 = vrot.slane %v3567_v11, %v12071_v33  ;;  %v2282_v39 = vrot.slane %v2268_v35, %v12068_v29  ;;  %v2283_v17 = vcombine.low %v2260_v36, %v2275_v46  ;;  %v2284_v6 = vcombine.high %v2260_v36, %v2275_v46 }
 0x1fc   : > { %18477 = vst [vmem:[#allocation38_spill] sm:$0xff] %v12736_v40  ;;  %18478 = vst [vmem:[#allocation39_spill] sm:$0xff] %v12739_v4  ;;  %v2334_v45 = vcombine.high %v967_v59, %v12064_v24  ;;  %v2341_v58 = vrot.slane %v967_v59, %v12068_v29  ;;  %v975_v30 = vpack.i.b16 %v974_v56, %v18481_v28 }
 0x1fd   : > { %18479 = vst [vmem:[#allocation40_spill] sm:$0xff] %v12742_v62  ;;  %v12748_v25 = vcombine.low %v12739_v4, %v12742_v62  ;;  %v2385_v63 = vcombine.high %v971_v2, %v12064_v24  ;;  %v2291_v11 = vrot.slane %v2283_v17, %v12071_v33  ;;  %v2298_v60 = vrot.slane %v2284_v6, %v12071_v33  ;;  %v730_v4 = vpop.permute.xlu1 %729  ;;  %v792_v62 = vpop.permute.xlu0 %791 }
 0x1fe   : > { %v2299_v61 = vcombine.low %v12677_v51, %v2282_v39  ;;  %v2300_v36 = vcombine.high %v12677_v51, %v2282_v39  ;;  %v2348_v46 = vrot.slane %v2334_v45, %v12068_v29  ;;  %v2349_v59 = vcombine.low %v12680_v3, %v2341_v58 }
 0x1ff   : > { %18480 = vst [vmem:[#allocation41_spill] sm:$0xff] %v12748_v25  ;;  %v4815_v35 = vpack.i.b16 %v12748_v25, %v12736_v40  ;;  %v2350_v0 = vcombine.high %v12680_v3, %v2341_v58  ;;  %v4077_v6 = vcombine.low %v2291_v11, %v2298_v60  ;;  %v10143_v28 = vcombine.high %v2291_v11, %v2298_v60  ;;  %v18498_v40 = vld [vmem:[#allocation5_spill] sm:$0xff] }
 0x200   : > { %v12773_v45 = vrot.slane %v2299_v61, %v12071_v33  ;;  %v12776_v3 = vrot.slane %v2300_v36, %v12071_v33  ;;  %v981_v58 = vshrl.u32 %v760_v52, 16  ;;  %v2392_v17 = vrot.slane %v971_v2, %v12068_v29 }
 0x201   : > { %10178 = vmatmul.mubr.msk.bf16.gmra.mrb[44].mxu0 %vm5021_vm0, %v4815_v35  ;;  %v12781_v11 = vrot.slane %v2385_v63, %v12068_v29  ;;  %v2451_v60 = vcombine.high %v975_v30, %v12064_v24  ;;  %v12785_v39 = vrot.slane %v2349_v59, %v12071_v33  ;;  %v12788_v35 = vrot.slane %v2350_v0, %v12071_v33 }
 0x202   : > { %18482 = vst [vmem:[#allocation42_spill] sm:$0xff] %v12773_v45  ;;  %18483 = vst [vmem:[#allocation43_spill] sm:$0xff] %v12776_v3  ;;  %5142 = vmatprep.mubr.bf16.mxu0 %v18431_v55  ;;  %v2365_v61 = vcombine.low %v12683_v54, %v2348_v46  ;;  %v2366_v36 = vcombine.high %v12683_v54, %v2348_v46  ;;  %v12793_v51 = vrot.slane %v4077_v6, %v12068_v29 }
 0x203   : > { %18484 = vst [vmem:[#allocation44_spill] sm:$0xff] %v12785_v39  ;;  %18485 = vst [vmem:[#allocation45_spill] sm:$0xff] %v12788_v35  ;;  %v12796_v2 = vrot.slane %v10143_v28, %v12068_v29  ;;  %v18488_v63 = vcombine.low %v12349_v12, %v12355_v18  ;;  %v18489_v59 = vcombine.high %v12349_v12, %v12355_v18  ;;  %v982_v20 = vshrl.u32 %v792_v62, 16 }
 0x204   : > { %18486 = vst [vmem:[#allocation46_spill] sm:$0xff] %v12793_v51  ;;  %v3609_v6 = vcombine.low %v12369_v21, %v12372_v10  ;;  %v18490_v28 = vcombine.low %v12358_v34, %v12361_v32  ;;  %v18491_v12 = vcombine.high %v12358_v34, %v12361_v32  ;;  %v18493_v21 = vcombine.high %v12366_v26, %v12378_v7 }
 0x205   : > { %18487 = vst [vmem:[#allocation47_spill] sm:$0xff] %v12796_v2  ;;  %v3600_v56 = vrot.slane %v18488_v63, %v12068_v29  ;;  %v3608_v0 = vrot.slane %v18489_v59, %v12068_v29  ;;  %v18492_v59 = vcombine.low %v12366_v26, %v12378_v7  ;;  %v12829_v46 = vrot.slane %v2365_v61, %v12071_v33 }
 0x206   : > { %v3634_v63 = vrot.slane %v18490_v28, %v12068_v29  ;;  %v3642_v18 = vrot.slane %v18491_v12, %v12068_v29  ;;  %v3658_v10 = vrot.slane %v18493_v21, %v12068_v29  ;;  %v979_v28 = vpack.i.b16 %v792_v62, %v760_v52 }
 0x207   : > { %v3617_v19 = vcombine.low %v3600_v56, %v3608_v0  ;;  %v3650_v54 = vrot.slane %v18492_v59, %v12068_v29  ;;  %18494 = vst [vmem:[#allocation48_spill] sm:$0xff] %v12829_v46  ;;  %v12832_v56 = vrot.slane %v2366_v36, %v12071_v33  ;;  %v990_v0 = vshrl.u32 %v730_v4, 16 }
 0x208   : > { %v3659_v32 = vcombine.low %v3634_v63, %v3642_v18  ;;  %v12838_v59 = vrot.slane %v3609_v6, %v12071_v33  ;;  %v987_v26 = vpack.i.b16 %v730_v4, %v18498_v40  ;;  %v18499_v7 = vshrl.u32 %v18498_v40, 16 }
 0x209   : > { %18495 = vst [vmem:[#allocation49_spill] sm:$0xff] %v12832_v56  ;;  %v12835_v34 = vrot.slane %v3617_v19, %v12071_v33  ;;  %v3667_v12 = vcombine.low %v3650_v54, %v3658_v10  ;;  %v2400_v21 = vcombine.high %v979_v28, %v12064_v24  ;;  %v983_v62 = vpack.i.b16 %v982_v20, %v981_v58 }
 0x20a   : > { %18497 = vst [vmem:[#allocation51_spill] sm:$0xff] %v12838_v59  ;;  %v991_v61 = vpack.i.b16 %v990_v0, %v18499_v7  ;;  %v12847_v52 = vrot.slane %v3659_v32, %v12071_v33  ;;  %v2458_v54 = vrot.slane %v975_v30, %v12068_v29  ;;  %v2465_v6 = vrot.slane %v2451_v60, %v12068_v29 }
 0x20b   : > { %18496 = vst [vmem:[#allocation50_spill] sm:$0xff] %v12835_v34  ;;  %v12850_v19 = vrot.slane %v3667_v12, %v12071_v33  ;;  %v12856_v40 = vcombine.low %v12838_v59, %v12835_v34  ;;  %v2407_v4 = vrot.slane %v979_v28, %v12068_v29  ;;  %v2414_v18 = vrot.slane %v2400_v21, %v12068_v29 }
 0x20c   : > { %18500 = vst [vmem:[#allocation5_spill] sm:$0xff] %v12847_v52  ;;  %v2466_v10 = vcombine.high %v983_v62, %v12064_v24  ;;  %v2473_v20 = vrot.slane %v983_v62, %v12068_v29  ;;  %v2517_v30 = vcombine.high %v987_v26, %v12064_v24  ;;  %v2583_v58 = vcombine.high %v991_v61, %v12064_v24 }
 0x20d   : > { %18501 = vst [vmem:[#allocation52_spill] sm:$0xff] %v12850_v19  ;;  %18502 = vst [vmem:[#allocation53_spill] sm:$0xff] %v12856_v40  ;;  %v12861_v63 = vcombine.low %v12847_v52, %v12850_v19  ;;  %v2415_v60 = vcombine.low %v2392_v17, %v2407_v4  ;;  %v2416_v0 = vcombine.high %v2392_v17, %v2407_v4  ;;  %v794_v19 = vpop.permute.xlu1 %793 }
 0x20e   : > { %v2431_v28 = vcombine.low %v12781_v11, %v2414_v18  ;;  %v2432_v12 = vcombine.high %v12781_v11, %v2414_v18  ;;  %v2480_v7 = vrot.slane %v2466_v10, %v12068_v29  ;;  %v2481_v62 = vcombine.low %v2458_v54, %v2473_v20 }
 0x20f   : > { %18503 = vst [vmem:[#allocation54_spill] sm:$0xff] %v12861_v63  ;;  %v4827_v32 = vpack.i.b16 %v12861_v63, %v12856_v40  ;;  %v2423_v21 = vrot.slane %v2415_v60, %v12071_v33  ;;  %v2430_v36 = vrot.slane %v2416_v0, %v12071_v33  ;;  %v2482_v52 = vcombine.high %v2458_v54, %v2473_v20  ;;  %v762_v20 = vpop.permute.xlu0 %761 }
 0x210   : > { %v2497_v4 = vcombine.low %v2465_v6, %v2480_v7  ;;  %v2498_v34 = vcombine.high %v2465_v6, %v2480_v7  ;;  %v2524_v18 = vrot.slane %v987_v26, %v12068_v29  ;;  %v12884_v10 = vrot.slane %v2431_v28, %v12071_v33 }
 0x211   : > { %10179 = vmatmul.mubr.msk.bf16.gmra.mrb[48].mxu0 %vm5021_vm0, %v4827_v32  ;;  %v12887_v54 = vrot.slane %v2432_v12, %v12071_v33  ;;  %v2531_v60 = vrot.slane %v2517_v30, %v12068_v29  ;;  %v2590_v0 = vrot.slane %v991_v61, %v12068_v29  ;;  %v12893_v6 = vrot.slane %v2583_v58, %v12068_v29  ;;  %v764_v56 = vpop.permute.xlu1 %763 }
 0x212   : > { %5152 = vmatprep.mubr.bf16.mxu0 %v18431_v55  ;;  %v998_v32 = vshrl.u32 %v794_v19, 16  ;;  %v12896_v7 = vrot.slane %v2481_v62, %v12071_v33  ;;  %v12899_v26 = vrot.slane %v2482_v52, %v12071_v33  ;;  %v4177_v28 = vcombine.low %v2423_v21, %v2430_v36 }
 0x213   : > { %v10147_v12 = vcombine.high %v2423_v21, %v2430_v36  ;;  %v12902_v11 = vrot.slane %v2497_v4, %v12071_v33  ;;  %v12905_v17 = vrot.slane %v2498_v34, %v12071_v33  ;;  %v995_v30 = vpack.i.b16 %v794_v19, %v762_v20 }
 0x214   : > { %v997_v61 = vshrl.u32 %v762_v20, 16  ;;  %v18504_v52 = vcombine.low %v12386_v47, %v12389_v44  ;;  %v18505_v36 = vcombine.high %v12386_v47, %v12389_v44  ;;  %v18506_v20 = vld [vmem:[#allocation16_spill] sm:$0xff]  ;;  %v18509_v47 = vcombine.low %v12419_v42, %v12431_v8 }
 0x215   : > { %v2532_v19 = vcombine.high %v995_v30, %v12064_v24  ;;  %v2539_v4 = vrot.slane %v995_v30, %v12068_v29  ;;  %v18507_v58 = vcombine.low %v12394_v22, %v18506_v20  ;;  %v18525_v35 = vcombine.high %v12505_v9, %v12508_v13 }
 0x216   : > { %v3700_v59 = vrot.slane %v18504_v52, %v12068_v29  ;;  %v3708_v21 = vrot.slane %v18505_v36, %v12068_v29  ;;  %v999_v34 = vpack.i.b16 %v998_v32, %v997_v61  ;;  %v18508_v52 = vcombine.high %v12394_v22, %v18506_v20 }
 0x217   : > { %v3734_v62 = vrot.slane %v18507_v58, %v12068_v29  ;;  %v3750_v44 = vrot.slane %v18509_v47, %v12068_v29  ;;  %v18510_v32 = vcombine.high %v12419_v42, %v12431_v8  ;;  %v2546_v61 = vrot.slane %v2532_v19, %v12068_v29  ;;  %v18512_v47 = vld [vmem:[#allocation17_spill] sm:$0xff] }
 0x218   : > { %v3717_v40 = vcombine.low %v3700_v59, %v3708_v21  ;;  %v3742_v63 = vrot.slane %v18508_v52, %v12068_v29  ;;  %v2547_v36 = vcombine.low %v2524_v18, %v2539_v4  ;;  %v2548_v58 = vcombine.high %v2524_v18, %v2539_v4  ;;  %v18511_v52 = vld [vmem:[#allocation18_spill] sm:$0xff]  ;;  %v732_v4 = vpop.permute.xlu0 %731 }
 0x219   : > { %v3758_v30 = vrot.slane %v18510_v32, %v12068_v29  ;;  %v2598_v59 = vcombine.high %v999_v34, %v12064_v24  ;;  %v12940_v21 = vrot.slane %v4177_v28, %v12068_v29  ;;  %v12943_v22 = vrot.slane %v10147_v12, %v12068_v29 }
 0x21a   : > { %v2605_v20 = vrot.slane %v999_v34, %v12068_v29  ;;  %v3709_v25 = vcombine.low %v18512_v47, %v18511_v52  ;;  %v2555_v42 = vrot.slane %v2547_v36, %v12071_v33  ;;  %v2562_v8 = vrot.slane %v2548_v58, %v12071_v33 }
 0x21b   : > { %v2563_v19 = vcombine.low %v2531_v60, %v2546_v61  ;;  %v2564_v18 = vcombine.high %v2531_v60, %v2546_v61  ;;  %v2612_v32 = vrot.slane %v2598_v59, %v12068_v29  ;;  %v12952_v12 = vrot.slane %v3717_v40, %v12071_v33 }
 0x21c   : > { %v2613_v28 = vcombine.low %v2590_v0, %v2605_v20  ;;  %v2614_v46 = vcombine.high %v2590_v0, %v2605_v20  ;;  %v4277_v51 = vcombine.low %v2555_v42, %v2562_v8  ;;  %v3759_v52 = vcombine.low %v3734_v62, %v3742_v63  ;;  %v734_v20 = vpop.permute.xlu1 %733 }
 0x21d   : > { %18513 = vst [vmem:[#allocation16_spill] sm:$0xff] %v12952_v12  ;;  %v3767_v47 = vcombine.low %v3750_v44, %v3758_v30  ;;  %v12957_v36 = vrot.slane %v2563_v19, %v12071_v33  ;;  %v12960_v58 = vrot.slane %v2564_v18, %v12071_v33  ;;  %v10151_v60 = vcombine.high %v2555_v42, %v2562_v8  ;;  %v18518_v18 = vld [vmem:[#allocation7_spill] sm:$0xff] }
 0x21e   : > { %v12963_v61 = vrot.slane %v3709_v25, %v12071_v33  ;;  %v2629_v62 = vcombine.low %v12893_v6, %v2612_v32  ;;  %v12973_v44 = vrot.slane %v2613_v28, %v12071_v33  ;;  %v12976_v30 = vrot.slane %v2614_v46, %v12071_v33  ;;  %v796_v46 = vpop.permute.xlu0 %795 }
 0x21f   : > { %v2630_v25 = vcombine.high %v12893_v6, %v2612_v32  ;;  %v12984_v42 = vrot.slane %v4277_v51, %v12068_v29  ;;  %v12987_v8 = vrot.slane %v3759_v52, %v12071_v33  ;;  %v12990_v19 = vrot.slane %v3767_v47, %v12071_v33  ;;  %v18520_v47 = vld [vmem:[#allocation6_spill] sm:$0xff] }
 0x220   : > { %18514 = vst [vmem:[#allocation18_spill] sm:$0xff] %v12963_v61  ;;  %v12981_v59 = vcombine.low %v12963_v61, %v12952_v12  ;;  %v1003_v28 = vpack.i.b16 %v732_v4, %v18518_v18  ;;  %v12994_v63 = vrot.slane %v10151_v60, %v12068_v29  ;;  %v1006_v51 = vshrl.u32 %v732_v4, 16 }
 0x221   : > { %18516 = vst [vmem:[#allocation55_spill] sm:$0xff] %v12987_v8  ;;  %18517 = vst [vmem:[#allocation56_spill] sm:$0xff] %v12990_v19  ;;  %v13001_v0 = vrot.slane %v2629_v62, %v12071_v33  ;;  %v13005_v52 = vcombine.low %v12987_v8, %v12990_v19  ;;  %v1019_v40 = vpack.i.b16 %v734_v20, %v18520_v47  ;;  %v1022_v34 = vshrl.u32 %v734_v20, 16  ;;  %v10888_v20 = vld [vmem:[%s11925_s28 + $0x64] ss:$8 sps:$4 sm:$0xff]  }
 0x222   : > { %18515 = vst [vmem:[#allocation17_spill] sm:$0xff] %v12981_v59  ;;  %v13009_v60 = vrot.slane %v2630_v25, %v12071_v33  ;;  %v18522_v61 = vshrl.u32 %v18518_v18, 16  ;;  %v2649_v12 = vcombine.high %v1003_v28, %v12064_v24  ;;  %v1011_v32 = vpack.i.b16 %v796_v46, %v764_v56  ;;  %5853 = vmatprep.subr.bf16.mxu0 %v10888_v20  ;;  %v766_v45 = vpop.permute.xlu0 %765 }
 0x223   : > { %18519 = vst [vmem:[#allocation7_spill] sm:$0xff] %v13005_v52  ;;  %v4839_v4 = vpack.i.b16 %v13005_v52, %v12981_v59  ;;  %v1013_v62 = vshrl.u32 %v764_v56, 16  ;;  %v18523_v2 = vshrl.u32 %v18520_v47, 16  ;;  %v1014_v19 = vshrl.u32 %v796_v46, 16 }
 0x224   : > { %18521 = vst [vmem:[#allocation6_spill] sm:$0xff] %v13009_v60  ;;  %v1007_v6 = vpack.i.b16 %v1006_v51, %v18522_v61  ;;  %v2656_v61 = vrot.slane %v1003_v28, %v12068_v29  ;;  %v2664_v18 = vcombine.high %v1011_v32, %v12064_v24  ;;  %v2781_v56 = vcombine.high %v1019_v40, %v12064_v24 }
 0x225   : > { %v1023_v8 = vpack.i.b16 %v1022_v34, %v18523_v2  ;;  %10180 = vmatmul.mubr.msk.bf16.gmra.mrb[52].mxu0 %vm5021_vm0, %v4839_v4  ;;  %v1015_v47 = vpack.i.b16 %v1014_v19, %v1013_v62  ;;  %v2671_v2 = vrot.slane %v1011_v32, %v12068_v29  ;;  %v2663_v34 = vrot.slane %v2649_v12, %v12068_v29 }
 0x226   : > { %v2715_v51 = vcombine.high %v1007_v6, %v12064_v24  ;;  %v2722_v46 = vrot.slane %v1007_v6, %v12068_v29  ;;  %5162 = vmatprep.mubr.bf16.mxu0 %v18431_v55  ;;  %v2678_v28 = vrot.slane %v2664_v18, %v12068_v29  ;;  %v18524_v19 = vcombine.low %v12505_v9, %v12508_v13  ;;  %v798_v9 = vpop.permute.xlu1 %797 }
 0x227   : > { %v2847_v25 = vcombine.high %v1023_v8, %v12064_v24  ;;  %v2679_v52 = vcombine.low %v2656_v61, %v2671_v2  ;;  %v2680_v4 = vcombine.high %v2656_v61, %v2671_v2  ;;  %v2730_v59 = vcombine.high %v1015_v47, %v12064_v24 }
 0x228   : > { %v3800_v32 = vrot.slane %v18524_v19, %v12068_v29  ;;  %v2695_v62 = vcombine.low %v2663_v34, %v2678_v28  ;;  %v2696_v12 = vcombine.high %v2663_v34, %v2678_v28  ;;  %v2737_v6 = vrot.slane %v1015_v47, %v12068_v29 }
 0x229   : > { %v3808_v39 = vrot.slane %v18525_v35, %v12068_v29  ;;  %v2729_v18 = vrot.slane %v2715_v51, %v12068_v29  ;;  %v2687_v61 = vrot.slane %v2679_v52, %v12071_v33  ;;  %v2694_v2 = vrot.slane %v2680_v4, %v12071_v33 }
 0x22a   : > { %v2744_v3 = vrot.slane %v2730_v59, %v12068_v29  ;;  %v13049_v19 = vrot.slane %v2695_v62, %v12071_v33  ;;  %v13052_v47 = vrot.slane %v2696_v12, %v12071_v33  ;;  %v2745_v34 = vcombine.low %v2722_v46, %v2737_v6 }
 0x22b   : > { %v2746_v28 = vcombine.high %v2722_v46, %v2737_v6  ;;  %v2788_v20 = vrot.slane %v1019_v40, %v12068_v29  ;;  %v2795_v59 = vrot.slane %v2781_v56, %v12068_v29  ;;  %v13061_v51 = vrot.slane %v1023_v8, %v12068_v29  ;;  %v18534_v40 = vld [vmem:[#allocation9_spill] sm:$0xff] }
 0x22c   : > { %18526 = vst [vmem:[#allocation57_spill] sm:$0xff] %v13049_v19  ;;  %18527 = vst [vmem:[#allocation58_spill] sm:$0xff] %v13052_v47  ;;  %v2761_v35 = vcombine.low %v2729_v18, %v2744_v3  ;;  %v2762_v52 = vcombine.high %v2729_v18, %v2744_v3  ;;  %v3817_v4 = vcombine.low %v3800_v32, %v3808_v39  ;;  %v736_v18 = vpop.permute.xlu0 %735 }
 0x22d   : > { %v13064_v62 = vrot.slane %v2847_v25, %v12068_v29  ;;  %v4377_v46 = vcombine.low %v2687_v61, %v2694_v2  ;;  %v10155_v12 = vcombine.high %v2687_v61, %v2694_v2  ;;  %v3809_v6 = vcombine.low %v12568_v37, %v12571_v38 }
 0x22e   : > { %v13069_v13 = vrot.slane %v2745_v34, %v12071_v33  ;;  %v13072_v3 = vrot.slane %v2746_v28, %v12071_v33  ;;  %v13079_v8 = vrot.slane %v2761_v35, %v12071_v33  ;;  %v13082_v25 = vrot.slane %v2762_v52, %v12071_v33 }
 0x22f   : > { %v18528_v37 = vcombine.low %v12516_v27, %v12519_v53  ;;  %v18529_v56 = vcombine.high %v12516_v27, %v12519_v53  ;;  %v13093_v61 = vrot.slane %v3817_v4, %v12071_v33  ;;  %v18531_v2 = vcombine.low %v12523_v31, %v12540_v5 }
 0x230   : > { %v18532_v28 = vcombine.high %v12523_v31, %v12540_v5  ;;  %v1030_v52 = vshrl.u32 %v798_v9, 16  ;;  %v1027_v53 = vpack.i.b16 %v798_v9, %v766_v45  ;;  %v13107_v4 = vrot.slane %v3809_v6, %v12071_v33 }
 0x231   : > { %v3834_v38 = vrot.slane %v18528_v37, %v12068_v29  ;;  %v3842_v32 = vrot.slane %v18529_v56, %v12068_v29  ;;  %18530 = vst [vmem:[#allocation59_spill] sm:$0xff] %v13093_v61  ;;  %v3850_v34 = vrot.slane %v18531_v2, %v12068_v29  ;;  %v13104_v37 = vrot.slane %v4377_v46, %v12068_v29 }
 0x232   : > { %v3858_v35 = vrot.slane %v18532_v28, %v12068_v29  ;;  %v1029_v56 = vshrl.u32 %v766_v45, 16  ;;  %18533 = vst [vmem:[#allocation60_spill] sm:$0xff] %v13107_v4  ;;  %v1035_v47 = vpack.i.b16 %v736_v18, %v18534_v40  ;;  %v1038_v19 = vshrl.u32 %v736_v18, 16 }
 0x233   : > { %v3859_v27 = vcombine.low %v3834_v38, %v3842_v32  ;;  %v13111_v2 = vrot.slane %v10155_v12, %v12068_v29  ;;  %v2796_v31 = vcombine.high %v1027_v53, %v12064_v24  ;;  %v2803_v5 = vrot.slane %v1027_v53, %v12068_v29 }
 0x234   : > { %v3867_v39 = vcombine.low %v3850_v34, %v3858_v35  ;;  %v1031_v60 = vpack.i.b16 %v1030_v52, %v1029_v56  ;;  %v13119_v45 = vcombine.low %v13107_v4, %v13093_v61  ;;  %v18539_v35 = vshrl.u32 %v18534_v40, 16 }
 0x235   : > { %v13122_v9 = vrot.slane %v3859_v27, %v12071_v33  ;;  %v2810_v12 = vrot.slane %v2796_v31, %v12068_v29  ;;  %v2811_v38 = vcombine.low %v2788_v20, %v2803_v5  ;;  %v2812_v32 = vcombine.high %v2788_v20, %v2803_v5  ;;  %v768_v20 = vpop.permute.xlu1 %767 }
 0x236   : > { %18535 = vst [vmem:[#allocation9_spill] sm:$0xff] %v13119_v45  ;;  %v13125_v6 = vrot.slane %v3867_v39, %v12071_v33  ;;  %v2862_v18 = vcombine.high %v1031_v60, %v12064_v24  ;;  %v2869_v28 = vrot.slane %v1031_v60, %v12068_v29  ;;  %v1039_v52 = vpack.i.b16 %v1038_v19, %v18539_v35 }
 0x237   : > { %18536 = vst [vmem:[#allocation61_spill] sm:$0xff] %v13122_v9  ;;  %v2913_v27 = vcombine.high %v1035_v47, %v12064_v24  ;;  %v2819_v39 = vrot.slane %v2811_v38, %v12071_v33  ;;  %v2826_v53 = vrot.slane %v2812_v32, %v12071_v33  ;;  %v2827_v56 = vcombine.low %v2795_v59, %v2810_v12 }
 0x238   : > { %18537 = vst [vmem:[#allocation62_spill] sm:$0xff] %v13125_v6  ;;  %v13131_v34 = vcombine.low %v13122_v9, %v13125_v6  ;;  %v2828_v31 = vcombine.high %v2795_v59, %v2810_v12  ;;  %v2876_v46 = vrot.slane %v2862_v18, %v12068_v29  ;;  %v2877_v9 = vcombine.low %v13061_v51, %v2869_v28 }
 0x239   : > { %v2878_v60 = vcombine.high %v13061_v51, %v2869_v28  ;;  %v13145_v19 = vrot.slane %v2827_v56, %v12071_v33  ;;  %v4477_v38 = vcombine.low %v2819_v39, %v2826_v53  ;;  %v10159_v32 = vcombine.high %v2819_v39, %v2826_v53 }
 0x23a   : > { %18538 = vst [vmem:[#allocation63_spill] sm:$0xff] %v13131_v34  ;;  %v4851_v5 = vpack.i.b16 %v13131_v34, %v13119_v45  ;;  %v13148_v40 = vrot.slane %v2828_v31, %v12071_v33  ;;  %v1045_v51 = vshrl.u32 %v768_v20, 16  ;;  %v2893_v28 = vcombine.low %v13064_v62, %v2876_v46  ;;  %v800_v45 = vpop.permute.xlu0 %799  ;;  %v18544_v34 = vld [vmem:[#allocation27_spill] sm:$0xff] }
 0x23b   : > { %v2920_v35 = vrot.slane %v1035_v47, %v12068_v29  ;;  %v13161_v39 = vrot.slane %v2913_v27, %v12068_v29  ;;  %v18540_v53 = vcombine.low %v12558_v23, %v12561_v50  ;;  %v13168_v31 = vrot.slane %v2877_v9, %v12071_v33 }
 0x23c   : > { %10181 = vmatmul.mubr.msk.bf16.gmra.mrb[56].mxu0 %vm5021_vm0, %v4851_v5  ;;  %v13171_v5 = vrot.slane %v2878_v60, %v12071_v33  ;;  %v2894_v18 = vcombine.high %v13064_v62, %v2876_v46  ;;  %v2979_v12 = vcombine.high %v1039_v52, %v12064_v24  ;;  %v13176_v47 = vrot.slane %v4477_v38, %v12068_v29  ;;  %v738_v60 = vpop.permute.xlu1 %737  ;;  %v18543_v46 = vld [vmem:[#allocation28_spill] sm:$0xff] }
 0x23d   : > { %5172 = vmatprep.mubr.bf16.mxu0 %v18431_v55  ;;  %v3900_v56 = vrot.slane %v18540_v53, %v12068_v29  ;;  %v13179_v27 = vrot.slane %v10159_v32, %v12068_v29  ;;  %v18542_v9 = vcombine.high %v12558_v23, %v12561_v50  ;;  %v3909_v38 = vcombine.low %v18544_v34, %v18543_v46 }
 0x23e   : > { %18541 = vst [vmem:[#allocation64_spill] sm:$0xff] %v13176_v47  ;;  %v18545_v32 = vcombine.low %v12578_v14, %v12591_v15  ;;  %v18546_v59 = vcombine.high %v12578_v14, %v12591_v15  ;;  %v13200_v23 = vrot.slane %v2893_v28, %v12071_v33  ;;  %v1054_v14 = vshrl.u32 %v738_v60, 16 }
 0x23f   : > { %v3908_v53 = vrot.slane %v18542_v9, %v12068_v29  ;;  %v18547_v9 = vld [vmem:[#allocation29_spill] sm:$0xff]  ;;  %v1043_v15 = vpack.i.b16 %v800_v45, %v768_v20 }
 0x240   : > { %v3934_v6 = vrot.slane %v18545_v32, %v12068_v29  ;;  %v3942_v4 = vrot.slane %v18546_v59, %v12068_v29  ;;  %v18548_v62 = vcombine.low %v12609_v57, %v18547_v9  ;;  %v18549_v34 = vcombine.high %v12609_v57, %v18547_v9  ;;  %v18552_v9 = vld [vmem:[#allocation8_spill] sm:$0xff] }
 0x241   : > { %v3917_v50 = vcombine.low %v3900_v56, %v3908_v53  ;;  %v13211_v32 = vrot.slane %v2894_v18, %v12071_v33  ;;  %v1046_v53 = vshrl.u32 %v800_v45, 16  ;;  %v13221_v57 = vrot.slane %v3909_v38, %v12071_v33 }
 0x242   : > { %v3950_v61 = vrot.slane %v18548_v62, %v12068_v29  ;;  %v3958_v46 = vrot.slane %v18549_v34, %v12068_v29  ;;  %v3959_v47 = vcombine.low %v3934_v6, %v3942_v4  ;;  %v1051_v18 = vpack.i.b16 %v738_v60, %v18552_v9 }
 0x243   : > { %v13216_v28 = vrot.slane %v3917_v50, %v12071_v33  ;;  %18551 = vst [vmem:[#allocation27_spill] sm:$0xff] %v13221_v57  ;;  %v18553_v4 = vshrl.u32 %v18552_v9, 16  ;;  %v1047_v50 = vpack.i.b16 %v1046_v53, %v1045_v51  ;;  %v2986_v45 = vrot.slane %v1039_v52, %v12068_v29 }
 0x244   : > { %v3967_v56 = vcombine.low %v3950_v61, %v3958_v46  ;;  %v13227_v20 = vrot.slane %v3959_v47, %v12071_v33  ;;  %v2928_v61 = vcombine.high %v1043_v15, %v12064_v24  ;;  %v2993_v46 = vrot.slane %v2979_v12, %v12068_v29 }
 0x245   : > { %18550 = vst [vmem:[#allocation28_spill] sm:$0xff] %v13216_v28  ;;  %v1055_v6 = vpack.i.b16 %v1054_v14, %v18553_v4  ;;  %v13237_v38 = vcombine.low %v13221_v57, %v13216_v28  ;;  %v2935_v60 = vrot.slane %v1043_v15, %v12068_v29  ;;  %v2994_v51 = vcombine.high %v1047_v50, %v12064_v24 }
 0x246   : > { %18554 = vst [vmem:[#allocation29_spill] sm:$0xff] %v13227_v20  ;;  %v13230_v34 = vrot.slane %v3967_v56, %v12071_v33  ;;  %v2942_v14 = vrot.slane %v2928_v61, %v12068_v29  ;;  %v3001_v56 = vrot.slane %v1047_v50, %v12068_v29  ;;  %v3045_v52 = vcombine.high %v1051_v18, %v12064_v24 }
 0x247   : > { %v3111_v12 = vcombine.high %v1055_v6, %v12064_v24  ;;  %v2943_v53 = vcombine.low %v2920_v35, %v2935_v60  ;;  %v2944_v9 = vcombine.high %v2920_v35, %v2935_v60  ;;  %v3008_v59 = vrot.slane %v2994_v51, %v12068_v29 }
 0x248   : > { %18555 = vst [vmem:[#allocation8_spill] sm:$0xff] %v13230_v34  ;;  %v13242_v47 = vcombine.low %v13227_v20, %v13230_v34  ;;  %v2959_v15 = vcombine.low %v13161_v39, %v2942_v14  ;;  %v2960_v62 = vcombine.high %v13161_v39, %v2942_v14  ;;  %v3009_v57 = vcombine.low %v2986_v45, %v3001_v56 }
 0x249   : > { %v13255_v61 = vrot.slane %v2943_v53, %v12071_v33  ;;  %v13258_v50 = vrot.slane %v2944_v9, %v12071_v33  ;;  %v3010_v28 = vcombine.high %v2986_v45, %v3001_v56  ;;  %v3025_v35 = vcombine.low %v2993_v46, %v3008_v59  ;;  %v770_v9 = vpop.permute.xlu0 %769 }
 0x24a   : > { %18556 = vst [vmem:[#allocation65_spill] sm:$0xff] %v13242_v47  ;;  %v4863_v4 = vpack.i.b16 %v13242_v47, %v13237_v38  ;;  %v3026_v60 = vcombine.high %v2993_v46, %v3008_v59  ;;  %v18557_v20 = vcombine.low %v12884_v10, %v12887_v54  ;;  %v18558_v39 = vcombine.high %v12884_v10, %v12887_v54 }
 0x24b   : > { %v3052_v56 = vrot.slane %v1051_v18, %v12068_v29  ;;  %v13275_v59 = vrot.slane %v3045_v52, %v12068_v29  ;;  %v13282_v46 = vrot.slane %v3111_v12, %v12068_v29  ;;  %v13285_v10 = vrot.slane %v2959_v15, %v12071_v33  ;;  %v802_v12 = vpop.permute.xlu1 %801 }
 0x24c   : > { %10182 = vmatmul.mubr.msk.bf16.gmra.mrb[60].mxu0 %vm5021_vm0, %v4863_v4  ;;  %v4200_v34 = vrot.slane %v18557_v20, %v12068_v29  ;;  %v4208_v14 = vrot.slane %v18558_v39, %v12068_v29  ;;  %v13279_v20 = vrot.slane %v1055_v6, %v12068_v29  ;;  %v13288_v54 = vrot.slane %v2960_v62, %v12071_v33 }
 0x24d   : > { %5182 = vmatprep.mubr.bf16.mxu0 %v18431_v55  ;;  %v13291_v53 = vrot.slane %v3009_v57, %v12071_v33  ;;  %v13294_v18 = vrot.slane %v3010_v28, %v12071_v33  ;;  %v4577_v52 = vcombine.low %v13255_v61, %v13258_v50  ;;  %v10163_v6 = vcombine.high %v13255_v61, %v13258_v50 }
 0x24e   : > { %v13301_v4 = vrot.slane %v3025_v35, %v12071_v33  ;;  %v13304_v62 = vrot.slane %v3026_v60, %v12071_v33  ;;  %v4209_v57 = vcombine.low %v12940_v21, %v12943_v22  ;;  %v4217_v15 = vcombine.low %v4200_v34, %v4208_v14 }
 0x24f   : > { %v18559_v28 = vcombine.low %v12896_v7, %v12899_v26  ;;  %v18560_v61 = vcombine.high %v12896_v7, %v12899_v26  ;;  %v18561_v35 = vcombine.low %v12902_v11, %v12905_v17  ;;  %v18562_v21 = vcombine.high %v12902_v11, %v12905_v17 }
 0x250   : > { %v13327_v14 = vrot.slane %v4217_v15, %v12071_v33  ;;  %v1059_v45 = vpack.i.b16 %v802_v12, %v770_v9  ;;  %v13330_v7 = vrot.slane %v4209_v57, %v12071_v33  ;;  %v1061_v51 = vshrl.u32 %v770_v9, 16  ;;  %v18565_v15 = vld [vmem:[#allocation35_spill] sm:$0xff] }
 0x251   : > { %v4234_v39 = vrot.slane %v18559_v28, %v12068_v29  ;;  %v4242_v50 = vrot.slane %v18560_v61, %v12068_v29  ;;  %v4250_v60 = vrot.slane %v18561_v35, %v12068_v29  ;;  %v4258_v22 = vrot.slane %v18562_v21, %v12068_v29  ;;  %v18564_v21 = vld [vmem:[#allocation34_spill] sm:$0xff] }
 0x252   : > { %v1062_v28 = vshrl.u32 %v802_v12, 16  ;;  %18563 = vst [vmem:[#allocation66_spill] sm:$0xff] %v13330_v7  ;;  %v3060_v17 = vcombine.high %v1059_v45, %v12064_v24  ;;  %v3067_v11 = vrot.slane %v1059_v45, %v12068_v29  ;;  %v18566_v34 = vcombine.low %v18564_v21, %v18565_v15 }
 0x253   : > { %v4259_v26 = vcombine.low %v4234_v39, %v4242_v50  ;;  %v4267_v61 = vcombine.low %v4250_v60, %v4258_v22  ;;  %v13342_v12 = vcombine.low %v13330_v7, %v13327_v14  ;;  %v18569_v22 = vcombine.high %v18564_v21, %v18565_v15 }
 0x254   : > { %v4000_v47 = vrot.slane %v18566_v34, %v12068_v29  ;;  %v1063_v39 = vpack.i.b16 %v1062_v28, %v1061_v51  ;;  %v3074_v50 = vrot.slane %v3060_v17, %v12068_v29  ;;  %v3075_v60 = vcombine.low %v3052_v56, %v3067_v11  ;;  %v10880_v28 = vld [vmem:[%s11925_s28 + $0x40] ss:$8 sps:$4 sm:$0xff]  }
 0x255   : > { %v13345_v57 = vrot.slane %v4259_v26, %v12071_v33  ;;  %v13348_v9 = vrot.slane %v4267_v61, %v12071_v33  ;;  %v3076_v45 = vcombine.high %v3052_v56, %v3067_v11  ;;  %v4008_v34 = vrot.slane %v18569_v22, %v12068_v29 }
 0x256   : > { %v3126_v26 = vcombine.high %v1063_v39, %v12064_v24  ;;  %v3133_v61 = vrot.slane %v1063_v39, %v12068_v29  ;;  %v4009_v51 = vcombine.low %v12727_v43, %v12732_v1  ;;  %v3083_v56 = vrot.slane %v3075_v60, %v12071_v33  ;;  %v10885_v60 = vld [vmem:[%s11925_s28 + $0x54] ss:$8 sps:$4 sm:$0xff]  }
 0x257   : > { %18567 = vst [vmem:[#allocation34_spill] sm:$0xff] %v13345_v57  ;;  %18568 = vst [vmem:[#allocation35_spill] sm:$0xff] %v13348_v9  ;;  %v13357_v35 = vcombine.low %v13345_v57, %v13348_v9  ;;  %v3090_v17 = vrot.slane %v3076_v45, %v12071_v33  ;;  %v3091_v11 = vcombine.low %v13275_v59, %v3074_v50  ;;  %v10883_v45 = vld [vmem:[%s11925_s28 + $0x50] ss:$8 sps:$4 sm:$0xff]   ;;  %v18594_v57 = vld [vmem:[#allocation49_spill] sm:$0xff] }
 0x258   : > { %v3092_v21 = vcombine.high %v13275_v59, %v3074_v50  ;;  %v13371_v24 = vrot.slane %v3126_v26, %v12068_v29  ;;  %v3141_v39 = vcombine.low %v13279_v20, %v3133_v61  ;;  %v3142_v22 = vcombine.high %v13279_v20, %v3133_v61  ;;  %v18591_v59 = vld [vmem:[#allocation46_spill] sm:$0xff] }
 0x259   : > { %v4899_v15 = vpack.i.b16 %v13357_v35, %v13342_v12  ;;  %v13376_v43 = vrot.slane %v4577_v52, %v12068_v29  ;;  %v13379_v1 = vrot.slane %v10163_v6, %v12068_v29  ;;  %v4017_v50 = vcombine.low %v4000_v47, %v4008_v34 }
 0x25a   : > { %v4677_v20 = vcombine.low %v3083_v56, %v3090_v17  ;;  %v10167_v61 = vcombine.high %v3083_v56, %v3090_v17  ;;  %v13392_v6 = vrot.slane %v3091_v11, %v12071_v33  ;;  %v13395_v47 = vrot.slane %v3092_v21, %v12071_v33 }
 0x25b   : > { %10185 = vmatmul.mubr.msk.bf16.vlgmr.msra.gmra.mrb[0].mxu1 %vm5021_vm0, %v4899_v15  ;;  %v13398_v34 = vrot.slane %v4009_v51, %v12071_v33  ;;  %v13402_v26 = vrot.slane %v3141_v39, %v12071_v33  ;;  %v13405_v15 = vrot.slane %v3142_v22, %v12071_v33  ;;  %v3157_v56 = vcombine.low %v13282_v46, %v13371_v24 }
 0x25c   : > { %5593 = vmatpush1.bf16.msra.mxu1 %v10880_v28  ;;  %v3158_v28 = vcombine.high %v13282_v46, %v13371_v24  ;;  %5212 = vmatprep.mubr.bf16.mxu1 %v18431_v55  ;;  %v13413_v17 = vrot.slane %v4017_v50, %v12071_v33  ;;  %v18570_v51 = vcombine.low %v12688_v16, %v12691_v49 }
 0x25d   : > { %v18571_v21 = vcombine.high %v12688_v16, %v12691_v49  ;;  %v18572_v22 = vcombine.low %v12696_v48, %v12720_v41  ;;  %5594 = vmatprep.subr.bf16.mxu1 %v10885_v60  ;;  %v13428_v24 = vrot.slane %v4677_v20, %v12068_v29  ;;  %v13431_v50 = vrot.slane %v10167_v61, %v12068_v29 }
 0x25e   : > { %v4034_v11 = vrot.slane %v18570_v51, %v12068_v29  ;;  %v18573_v51 = vcombine.high %v12696_v48, %v12720_v41  ;;  %v18574_v16 = vcombine.low %v12957_v36, %v12960_v58  ;;  %v18575_v20 = vcombine.high %v12957_v36, %v12960_v58 }
 0x25f   : > { %v4042_v39 = vrot.slane %v18571_v21, %v12068_v29  ;;  %v4050_v46 = vrot.slane %v18572_v22, %v12068_v29  ;;  %v4309_v22 = vcombine.low %v12984_v42, %v12994_v63  ;;  %v18576_v41 = vcombine.low %v12973_v44, %v12976_v30 }
 0x260   : > { %v4058_v52 = vrot.slane %v18573_v51, %v12068_v29  ;;  %v4300_v49 = vrot.slane %v18574_v16, %v12068_v29  ;;  %v4308_v61 = vrot.slane %v18575_v20, %v12068_v29  ;;  %5595 = vmatpush1.bf16.msra.mxu1 %v10883_v45  ;;  %v18577_v16 = vcombine.high %v12973_v44, %v12976_v30  ;;  %v18581_v20 = vld [vmem:[#allocation42_spill] sm:$0xff] }
 0x261   : > { %v4059_v60 = vcombine.low %v4034_v11, %v4042_v39  ;;  %v4334_v51 = vrot.slane %v18576_v41, %v12068_v29  ;;  %v18578_v39 = vld [vmem:[#allocation6_spill] sm:$0xff]  ;;  %v13463_v63 = vcombine.low %v13398_v34, %v13413_v17  ;;  %v18582_v41 = vld [vmem:[#allocation43_spill] sm:$0xff] }
 0x262   : > { %v4067_v48 = vcombine.low %v4050_v46, %v4058_v52  ;;  %v4342_v11 = vrot.slane %v18577_v16, %v12068_v29  ;;  %v18579_v36 = vcombine.low %v13001_v0, %v18578_v39  ;;  %v4317_v45 = vcombine.low %v4300_v49, %v4308_v61 }
 0x263   : > { %v13466_v42 = vrot.slane %v4059_v60, %v12071_v33  ;;  %v18580_v52 = vcombine.high %v13001_v0, %v18578_v39  ;;  %v18583_v16 = vcombine.low %v18581_v20, %v18582_v41  ;;  %v18584_v60 = vcombine.high %v18581_v20, %v18582_v41 }
 0x264   : > { %v4350_v58 = vrot.slane %v18579_v36, %v12068_v29  ;;  %v13473_v44 = vrot.slane %v4067_v48, %v12071_v33  ;;  %v4359_v30 = vcombine.low %v4334_v51, %v4342_v11  ;;  %v13484_v49 = vrot.slane %v4309_v22, %v12071_v33  ;;  %v18587_v48 = vld [vmem:[#allocation44_spill] sm:$0xff]  ;;  %v18588_v51 = vld [vmem:[#allocation45_spill] sm:$0xff] }
 0x265   : > { %v4358_v46 = vrot.slane %v18580_v52, %v12068_v29  ;;  %v4100_v36 = vrot.slane %v18583_v16, %v12068_v29  ;;  %v4108_v21 = vrot.slane %v18584_v60, %v12068_v29  ;;  %v13487_v0 = vrot.slane %v4317_v45, %v12071_v33  ;;  %v18590_v16 = vld [vmem:[#allocation47_spill] sm:$0xff] }
 0x266   : > { %18585 = vst [vmem:[#allocation6_spill] sm:$0xff] %v13484_v49  ;;  %v18589_v11 = vcombine.low %v18587_v48, %v18588_v51  ;;  %v13495_v52 = vcombine.low %v13466_v42, %v13473_v44  ;;  %v4109_v20 = vcombine.low %v18591_v59, %v18590_v16  ;;  %v18592_v22 = vcombine.high %v18587_v48, %v18588_v51 }
 0x267   : > { %18586 = vst [vmem:[#allocation42_spill] sm:$0xff] %v13487_v0  ;;  %v4367_v61 = vcombine.low %v4350_v58, %v4358_v46  ;;  %v4117_v41 = vcombine.low %v4100_v36, %v4108_v21  ;;  %v13506_v46 = vrot.slane %v4359_v30, %v12071_v33  ;;  %v13519_v36 = vcombine.low %v13484_v49, %v13487_v0 }
 0x268   : > { %v4134_v39 = vrot.slane %v18589_v11, %v12068_v29  ;;  %v4142_v45 = vrot.slane %v18592_v22, %v12068_v29  ;;  %v18593_v11 = vld [vmem:[#allocation48_spill] sm:$0xff]  ;;  %v4875_v21 = vpack.i.b16 %v13495_v52, %v13463_v63  ;;  %v18598_v22 = vld [vmem:[#allocation58_spill] sm:$0xff] }
 0x269   : > { %v13509_v60 = vrot.slane %v4367_v61, %v12071_v33  ;;  %v18595_v9 = vcombine.low %v18593_v11, %v18594_v57  ;;  %v18596_v30 = vcombine.high %v18593_v11, %v18594_v57  ;;  %v13530_v16 = vrot.slane %v4117_v41, %v12071_v33 }
 0x26a   : > { %v4159_v51 = vcombine.low %v4134_v39, %v4142_v45  ;;  %v13541_v57 = vrot.slane %v3157_v56, %v12071_v33  ;;  %10183 = vmatmul.mubr.msk.bf16.gmra.mrb[64].mxu0 %vm5021_vm0, %v4875_v21  ;;  %v13545_v39 = vrot.slane %v4109_v20, %v12071_v33  ;;  %v18601_v45 = vcombine.low %v13069_v13, %v13072_v3 }
 0x26b   : > { %v4150_v59 = vrot.slane %v18595_v9, %v12068_v29  ;;  %v4158_v48 = vrot.slane %v18596_v30, %v12068_v29  ;;  %v13527_v61 = vcombine.low %v13506_v46, %v13509_v60  ;;  %v18597_v9 = vld [vmem:[#allocation57_spill] sm:$0xff]  ;;  %5192 = vmatprep.mubr.bf16.mxu0 %v18431_v55  ;;  %v4409_v56 = vcombine.low %v13104_v37, %v13111_v2 }
 0x26c   : > { %v18599_v58 = vcombine.low %v18597_v9, %v18598_v22  ;;  %v18600_v49 = vcombine.high %v18597_v9, %v18598_v22  ;;  %v4434_v11 = vrot.slane %v18601_v45, %v12068_v29  ;;  %v18602_v20 = vcombine.high %v13069_v13, %v13072_v3 }
 0x26d   : > { %v4167_v41 = vcombine.low %v4150_v59, %v4158_v48  ;;  %v13561_v59 = vrot.slane %v4159_v51, %v12071_v33  ;;  %v18603_v48 = vcombine.low %v13079_v8, %v13082_v25  ;;  %v18604_v37 = vcombine.high %v13079_v8, %v13082_v25 }
 0x26e   : > { %v4400_v7 = vrot.slane %v18599_v58, %v12068_v29  ;;  %v4408_v0 = vrot.slane %v18600_v49, %v12068_v29  ;;  %v4911_v58 = vpack.i.b16 %v13527_v61, %v13519_v36  ;;  %v4442_v21 = vrot.slane %v18602_v20, %v12068_v29 }
 0x26f   : > { %v13564_v30 = vrot.slane %v4167_v41, %v12071_v33  ;;  %v4450_v9 = vrot.slane %v18603_v48, %v12068_v29  ;;  %v4458_v2 = vrot.slane %v18604_v37, %v12068_v29  ;;  %v13580_v13 = vcombine.low %v13545_v39, %v13530_v16  ;;  %v18608_v48 = vld [vmem:[#allocation15_spill] sm:$0xff] }
 0x270   : > { %v4417_v49 = vcombine.low %v4400_v7, %v4408_v0  ;;  %v13575_v7 = vrot.slane %v3158_v28, %v12071_v33  ;;  %10186 = vmatmul.mubr.msk.bf16.gmra.mrb[4].mxu1 %vm5021_vm0, %v4911_v58  ;;  %v4459_v3 = vcombine.low %v4434_v11, %v4442_v21  ;;  %v18605_v0 = vcombine.low %v13145_v19, %v13148_v40 }
 0x271   : > { %v13588_v22 = vcombine.low %v13561_v59, %v13564_v30  ;;  %5222 = vmatprep.mubr.bf16.mxu1 %v18431_v55  ;;  %v4467_v25 = vcombine.low %v4450_v9, %v4458_v2  ;;  %v18606_v28 = vcombine.high %v13145_v19, %v13148_v40  ;;  %v4727_v45 = vcombine.low %v13402_v26, %v13405_v15 }
 0x272   : > { %v4500_v51 = vrot.slane %v18605_v0, %v12068_v29  ;;  %v13592_v8 = vrot.slane %v4417_v49, %v12071_v33  ;;  %v10169_v11 = vcombine.high %v13402_v26, %v13405_v15  ;;  %v13603_v58 = vrot.slane %v4409_v56, %v12071_v33 }
 0x273   : > { %v4508_v41 = vrot.slane %v18606_v28, %v12068_v29  ;;  %v18607_v49 = vcombine.low %v13168_v31, %v13171_v5  ;;  %v4887_v21 = vpack.i.b16 %v13588_v22, %v13580_v13  ;;  %v13612_v19 = vrot.slane %v4459_v3, %v12071_v33 }
 0x274   : > { %v13615_v40 = vrot.slane %v4467_v25, %v12071_v33  ;;  %v4781_v9 = vshrl.u32 %v18608_v48, 16  ;;  %v18609_v15 = vcombine.high %v13168_v31, %v13171_v5  ;;  %v18610_v37 = vcombine.low %v13200_v23, %v13211_v32  ;;  %v18612_v5 = vld [vmem:[#allocation14_spill] sm:$0xff] }
 0x275   : > { %v4534_v20 = vrot.slane %v18607_v49, %v12068_v29  ;;  %v4517_v26 = vcombine.low %v4500_v51, %v4508_v41  ;;  %v18611_v3 = vcombine.high %v13200_v23, %v13211_v32  ;;  %10184 = vmatmul.mubr.msk.bf16.gmra.mrb[68].mxu0 %vm5021_vm0, %v4887_v21  ;;  %v13633_v51 = vcombine.low %v13603_v58, %v13592_v8  ;;  %v18614_v23 = vld [vmem:[#allocation64_spill] sm:$0xff] }
 0x276   : > { %v4542_v56 = vrot.slane %v18609_v15, %v12068_v29  ;;  %v4550_v2 = vrot.slane %v18610_v37, %v12068_v29  ;;  %v13637_v31 = vcombine.low %v13612_v19, %v13615_v40  ;;  %v4780_v25 = vshrl.u32 %v18612_v5, 16  ;;  %5363 = vmatprep.mubr.bf16.mxu0 %v18431_v55 }
 0x277   : > { %v4558_v0 = vrot.slane %v18611_v3, %v12068_v29  ;;  %v18613_v28 = vcombine.low %v13285_v10, %v13288_v54  ;;  %v4509_v32 = vcombine.low %v18614_v23, %v13179_v27  ;;  %v18615_v48 = vcombine.high %v13285_v10, %v13288_v54 }
 0x278   : > { %v4559_v49 = vcombine.low %v4534_v20, %v4542_v56  ;;  %v4743_v37 = vcombine.low %v13541_v57, %v13575_v7  ;;  %v10170_v3 = vcombine.high %v13541_v57, %v13575_v7  ;;  %v4923_v5 = vpack.i.b16 %v13637_v31, %v13633_v51 }
 0x279   : > { %v4600_v41 = vrot.slane %v18613_v28, %v12068_v29  ;;  %v4567_v21 = vcombine.low %v4550_v2, %v4558_v0  ;;  %v4608_v15 = vrot.slane %v18615_v48, %v12068_v29  ;;  %v18616_v27 = vcombine.low %v13291_v53, %v13294_v18  ;;  %v10886_v48 = vld [vmem:[%s11925_s28 + $0x60] ss:$8 sps:$4 sm:$0xff]  }
 0x27a   : > { %v4782_v56 = vpack.i.b16 %v4781_v9, %v4780_v25  ;;  %v13662_v2 = vrot.slane %v4517_v26, %v12071_v33  ;;  %v13665_v10 = vrot.slane %v4559_v49, %v12071_v33  ;;  %10187 = vmatmul.mubr.msk.bf16.gmra.mrb[8].mxu1 %vm5021_vm0, %v4923_v5  ;;  %v18617_v7 = vcombine.high %v13291_v53, %v13294_v18 }
 0x27b   : > { %v4634_v20 = vrot.slane %v18616_v27, %v12068_v29  ;;  %v13668_v54 = vrot.slane %v4567_v21, %v12071_v33  ;;  %v4617_v57 = vcombine.low %v4600_v41, %v4608_v15  ;;  %v18618_v9 = vcombine.low %v13301_v4, %v13304_v62  ;;  %5232 = vmatprep.mubr.bf16.mxu1 %v18431_v55  ;;  %v18620_v41 = vld [vmem:[#allocation24_spill] sm:$0xff] }
 0x27c   : > { %v4642_v0 = vrot.slane %v18617_v7, %v12068_v29  ;;  %v18619_v25 = vcombine.high %v13301_v4, %v13304_v62  ;;  %v13685_v23 = vrot.slane %v4509_v32, %v12071_v33  ;;  %v4793_v49 = vshrl.u32 %v18620_v41, 16  ;;  %v10891_v27 = vld [vmem:[%s11925_s28 + $0x74] ss:$8 sps:$4 sm:$0xff]  }
 0x27d   : > { %v4650_v26 = vrot.slane %v18618_v9, %v12068_v29  ;;  %v4609_v53 = vcombine.low %v13376_v43, %v13379_v1  ;;  %v18621_v18 = vcombine.low %v13392_v6, %v13395_v47  ;;  %v13697_v4 = vcombine.low %v13665_v10, %v13668_v54  ;;  %v18623_v1 = vld [vmem:[#allocation23_spill] sm:$0xff]  ;;  %10195 = vmatmul.mubr.msk.bf16.vlgmr.msra.gmra.mrb[72].mxu0 %vm5021_vm0, %v4782_v56 }
 0x27e   : > { %v4658_v28 = vrot.slane %v18619_v25, %v12068_v29  ;;  %v4659_v62 = vcombine.low %v4634_v20, %v4642_v0  ;;  %v18622_v32 = vcombine.high %v13392_v6, %v13395_v47  ;;  %v13706_v43 = vcombine.low %v13685_v23, %v13662_v2  ;;  %5373 = vmatprep.mubr.bf16.mxu0 %v18431_v55 }
 0x27f   : > { %v4700_v21 = vrot.slane %v18621_v18, %v12068_v29  ;;  %v4792_v7 = vshrl.u32 %v18623_v1, 16  ;;  %v4734_v9 = vrot.slane %v4727_v45, %v12068_v29  ;;  %v13712_v20 = vrot.slane %v4617_v57, %v12071_v33  ;;  %5854 = vmatpush1.bf16.msra.mxu0 %v10886_v48  ;;  %v10889_v18 = vld [vmem:[%s11925_s28 + $0x70] ss:$8 sps:$4 sm:$0xff]   ;;  %v18625_v48 = vld [vmem:[#allocation30_spill] sm:$0xff]  ;;  %s10360_s28 = sshll.u32 %s11762_s24, 12  ;;  %s17650_s24 = scalar_lea.sflag [#allocation3], %s297_s15 }
 0x280   : > { %v4667_v15 = vcombine.low %v4650_v26, %v4658_v28  ;;  %v4708_v5 = vrot.slane %v18622_v32, %v12068_v29  ;;  %v13715_v0 = vrot.slane %v4659_v62, %v12071_v33  ;;  %v4742_v26 = vrot.slane %v10169_v11, %v12068_v29  ;;  %5855 = vmatprep.subr.bf16.mxu0 %v10891_v27  ;;  %v18627_v62 = vld [vmem:[#allocation41_spill] sm:$0xff]  ;;  %s17640_s11 = scalar_lea.hbm %s17702_s6, %s10360_s28 }
 0x281   : > { %v4750_v25 = vrot.slane %v4743_v37, %v12068_v29  ;;  %v4758_v45 = vrot.slane %v10170_v3, %v12068_v29  ;;  %v4935_v56 = vpack.i.b16 %v13697_v4, %v13706_v43  ;;  %v4794_v57 = vpack.i.b16 %v4793_v49, %v4792_v7  ;;  %v18624_v37 = vld [vmem:[#allocation33_spill] sm:$0xff]  ;;  %v18632_v7 = vld [vmem:[#allocation54_spill] sm:$0xff] }
 0x282   : > { %v13718_v6 = vrot.slane %v4667_v15, %v12071_v33  ;;  %v4717_v47 = vcombine.low %v4700_v21, %v4708_v5  ;;  %v13727_v28 = vrot.slane %v4609_v53, %v12071_v33  ;;  %v4709_v41 = vcombine.low %v13428_v24, %v13431_v50  ;;  %v18628_v24 = vld [vmem:[#allocation13_spill] sm:$0xff]  ;;  %v18629_v50 = vld [vmem:[#allocation12_spill] sm:$0xff] }
 0x283   : > { %v4805_v21 = vshrl.u32 %v18624_v37, 16  ;;  %v4759_v29 = vcombine.low %v4734_v9, %v4742_v26  ;;  %v4767_v3 = vcombine.low %v4750_v25, %v4758_v45  ;;  %10188 = vmatmul.mubr.msk.bf16.gmra.mrb[12].mxu1 %vm5021_vm0, %v4935_v56  ;;  %v4804_v49 = vshrl.u32 %v18625_v48, 16  ;;  %v18634_v26 = vld [vmem:[#allocation38_spill] sm:$0xff]  ;;  %v18635_v45 = vld [vmem:[#allocation11_spill] sm:$0xff]  ;;  %5856 = vmatpush1.bf16.msra.mxu0 %v10889_v18 }
 0x284   : > { %v13734_v11 = vcombine.low %v13715_v0, %v13718_v6  ;;  %v13740_v53 = vrot.slane %v4717_v47, %v12071_v33  ;;  %v4817_v15 = vshrl.u32 %v18627_v62, 16  ;;  %v13745_v32 = vcombine.high %v18629_v50, %v18628_v24  ;;  %5242 = vmatprep.mubr.bf16.mxu1 %v18431_v55  ;;  %v18636_v56 = vld [vmem:[#allocation10_spill] sm:$0xff]  ;;  %v18638_v62 = vld [vmem:[#allocation21_spill] sm:$0xff]  ;;  %v18649_v18 = vld [vmem:[#allocation31_spill] sm:$0xff] }
 0x285   : > { %v13750_v5 = vcombine.low %v13727_v28, %v13712_v20  ;;  %v13753_v27 = vrot.slane %v4759_v29, %v12071_v33  ;;  %v13756_v1 = vrot.slane %v4767_v3, %v12071_v33  ;;  %v4829_v9 = vshrl.u32 %v18632_v7, 16  ;;  %v18637_v48 = vld [vmem:[#allocation22_spill] sm:$0xff]  ;;  %10196 = vmatmul.mubr.msk.bf16.gmra.mrb[76].mxu0 %vm5021_vm0, %v4794_v57 }
 0x286   : > { %18626 = vst [vmem:[#allocation43_spill] sm:$0xff] %v13740_v53  ;;  %v13760_v47 = vrot.slane %v4709_v41, %v12071_v33  ;;  %v4816_v25 = vshrl.u32 %v18634_v26, 16  ;;  %v13765_v37 = vcombine.high %v18636_v56, %v18635_v45  ;;  %v13769_v24 = vcombine.high %v18638_v62, %v18637_v48  ;;  %v18639_v33 = vld [vmem:[#allocation53_spill] sm:$0xff]  ;;  %v18640_v45 = vld [vmem:[#allocation19_spill] sm:$0xff]  ;;  %v18641_v56 = vld [vmem:[#allocation20_spill] sm:$0xff]  ;;  %5383 = vmatprep.mubr.bf16.mxu0 %v18431_v55 }
 0x287   : > { %18630 = vst [vmem:[#allocation44_spill] sm:$0xff] %v13753_v27  ;;  %18631 = vst [vmem:[#allocation45_spill] sm:$0xff] %v13756_v1  ;;  %v4947_v29 = vpack.i.b16 %v13734_v11, %v13750_v5  ;;  %v4806_v3 = vpack.i.b16 %v4805_v21, %v4804_v49  ;;  %v13775_v50 = vcombine.low %v13753_v27, %v13756_v1  ;;  %v4828_v41 = vshrl.u32 %v18639_v33, 16  ;;  %v18645_v27 = vld [vmem:[#allocation26_spill] sm:$0xff]  ;;  %v18646_v1 = vld [vmem:[#allocation25_spill] sm:$0xff] }
 0x288   : > { %18633 = vst [vmem:[#allocation47_spill] sm:$0xff] %v13760_v47  ;;  %v13781_v7 = vcombine.low %v13760_v47, %v13740_v53  ;;  %v13783_v26 = vpack.i.b16 %v4817_v15, %v4816_v25  ;;  %v13789_v21 = vcombine.high %v18641_v56, %v18640_v45  ;;  %v13798_v47 = vcombine.high %v18646_v1, %v18645_v27  ;;  %v18648_v25 = vld [vmem:[#allocation32_spill] sm:$0xff]  ;;  %v18651_v56 = vld [vmem:[#allocation65_spill] sm:$0xff]  ;;  %v18658_v48 = vld [vmem:[#allocation51_spill] sm:$0xff] }
 0x289   : > { %v13792_v49 = vpack.i.b16 %v4829_v9, %v4828_v41  ;;  %v13804_v53 = vcombine.high %v18649_v18, %v18648_v25  ;;  %v4864_v45 = vshrl.u32 %v13237_v38, 16  ;;  %v4865_v9 = vshrl.u32 %v18651_v56, 16  ;;  %v18652_v62 = vld [vmem:[#allocation36_spill] sm:$0xff]  ;;  %v18653_v33 = vld [vmem:[#allocation37_spill] sm:$0xff]  ;;  %v18655_v18 = vld [vmem:[#allocation39_spill] sm:$0xff] }
 0x28a   : > { %18647 = vst [vmem:[#allocation48_spill] sm:$0xff] %v13798_v47  ;;  %v4959_v41 = vpack.i.b16 %v13775_v50, %v13781_v7  ;;  %v13812_v57 = vcombine.high %v18653_v33, %v18652_v62  ;;  %v4876_v27 = vshrl.u32 %v13463_v63, 16  ;;  %v4877_v1 = vshrl.u32 %v13495_v52, 16  ;;  %v18654_v15 = vld [vmem:[#allocation40_spill] sm:$0xff]  ;;  %v18657_v56 = vld [vmem:[#allocation50_spill] sm:$0xff]  ;;  %v18660_v47 = vld [vmem:[#allocation5_spill] sm:$0xff] }
 0x28b   : > { %18642 = vst [vmem:[#allocation46_spill] sm:$0xff] %v13792_v49  ;;  %18650 = vst [vmem:[#allocation49_spill] sm:$0xff] %v13804_v53  ;;  %10189 = vmatmul.mubr.msk.bf16.gmra.mrb[16].mxu1 %vm5021_vm0, %v4947_v29  ;;  %v13819_v25 = vcombine.high %v18655_v18, %v18654_v15  ;;  %v13821_v38 = vpack.i.b16 %v4865_v9, %v4864_v45  ;;  %v13825_v49 = vcombine.high %v18658_v48, %v18657_v56  ;;  %v18659_v53 = vld [vmem:[#allocation52_spill] sm:$0xff]  ;;  %v18663_v29 = vld [vmem:[#allocation18_spill] sm:$0xff] }
 0x28c   : > { %v13829_v62 = vcombine.high %v18660_v47, %v18659_v53  ;;  %5252 = vmatprep.mubr.bf16.mxu1 %v18431_v55  ;;  %v13832_v63 = vpack.i.b16 %v4877_v1, %v4876_v27  ;;  %v18662_v52 = vld [vmem:[#allocation16_spill] sm:$0xff]  ;;  %v4888_v15 = vshrl.u32 %v13580_v13, 16  ;;  %v4889_v45 = vshrl.u32 %v13588_v22, 16  ;;  %v18666_v18 = vld [vmem:[#allocation55_spill] sm:$0xff]  ;;  %v18672_v22 = vld [vmem:[#allocation29_spill] sm:$0xff] }
 0x28d   : > { %18656 = vst [vmem:[#allocation57_spill] sm:$0xff] %v13821_v38  ;;  %v13836_v33 = vcombine.high %v18663_v29, %v18662_v52  ;;  %v18665_v9 = vld [vmem:[#allocation56_spill] sm:$0xff]  ;;  %v18667_v56 = vld [vmem:[#allocation59_spill] sm:$0xff]  ;;  %v4900_v47 = vshrl.u32 %v13342_v12, 16  ;;  %v4901_v27 = vshrl.u32 %v13357_v35, 16  ;;  %v18669_v52 = vld [vmem:[#allocation62_spill] sm:$0xff]  ;;  %10197 = vmatmul.mubr.msk.bf16.gmra.mrb[80].mxu0 %vm5021_vm0, %v4806_v3  ;;  %v13867_v35 = vcombine.high %v13398_v34, %v13413_v17 }
 0x28e   : > { %18661 = vst [vmem:[#allocation58_spill] sm:$0xff] %v13832_v63  ;;  %v13842_v48 = vcombine.high %v18666_v18, %v18665_v9  ;;  %v18668_v38 = vld [vmem:[#allocation60_spill] sm:$0xff]  ;;  %v13850_v1 = vpack.i.b16 %v4889_v45, %v4888_v15  ;;  %v18670_v29 = vld [vmem:[#allocation61_spill] sm:$0xff]  ;;  %v4912_v9 = vshrl.u32 %v13519_v36, 16  ;;  %v4913_v12 = vshrl.u32 %v13527_v61, 16  ;;  %5393 = vmatprep.mubr.bf16.mxu0 %v18431_v55  ;;  %v18674_v18 = vld [vmem:[#allocation27_spill] sm:$0xff] }
 0x28f   : > { %18664 = vst [vmem:[#allocation15_spill] sm:$0xff] %v13836_v33  ;;  %v13846_v53 = vcombine.high %v18668_v38, %v18667_v56  ;;  %v13854_v63 = vcombine.high %v18670_v29, %v18669_v52  ;;  %v18671_v13 = vld [vmem:[#allocation8_spill] sm:$0xff]  ;;  %v13862_v38 = vpack.i.b16 %v4901_v27, %v4900_v47  ;;  %v13871_v15 = vcombine.high %v13466_v42, %v13473_v44  ;;  %v18678_v29 = vld [vmem:[#allocation42_spill] sm:$0xff] }
 0x290   : > { %v13858_v33 = vcombine.high %v18672_v22, %v18671_v13  ;;  %v18673_v45 = vld [vmem:[#allocation28_spill] sm:$0xff]  ;;  %v4924_v36 = vshrl.u32 %v13633_v51, 16  ;;  %v4925_v3 = vshrl.u32 %v13637_v31, 16  ;;  %v13882_v61 = vcombine.high %v13545_v39, %v13530_v16  ;;  %v18675_v31 = vld [vmem:[#allocation66_spill] sm:$0xff]  ;;  %v18676_v16 = vld [vmem:[#allocation35_spill] sm:$0xff] }
 0x291   : > { %v13876_v56 = vcombine.high %v18674_v18, %v18673_v45  ;;  %v13884_v34 = vpack.i.b16 %v4913_v12, %v4912_v9  ;;  %v13890_v42 = vcombine.high %v13561_v59, %v13564_v30  ;;  %v4936_v44 = vshrl.u32 %v13706_v43, 16  ;;  %v18677_v39 = vld [vmem:[#allocation34_spill] sm:$0xff] }
 0x292   : > { %v13893_v47 = vpack.i.b16 %v4925_v3, %v4924_v36  ;;  %v4937_v51 = vshrl.u32 %v13697_v4, 16  ;;  %v13898_v27 = vcombine.high %v18675_v31, %v13327_v14  ;;  %v13902_v52 = vcombine.high %v18677_v39, %v18676_v16  ;;  %v18679_v13 = vld [vmem:[#allocation6_spill] sm:$0xff]  ;;  %v18684_v16 = vld [vmem:[#allocation49_spill] sm:$0xff] }
 0x293   : > { %10190 = vmatmul.mubr.msk.bf16.gmra.mrb[20].mxu1 %vm5021_vm0, %v4959_v41  ;;  %v4948_v30 = vshrl.u32 %v13750_v5, 16  ;;  %v4949_v43 = vshrl.u32 %v13734_v11, 16  ;;  %v13911_v4 = vcombine.high %v18679_v13, %v18678_v29  ;;  %v13920_v41 = vcombine.high %v13506_v46, %v13509_v60  ;;  %v18688_v29 = vld [vmem:[#allocation45_spill] sm:$0xff]  ;;  %v18689_v13 = vld [vmem:[#allocation44_spill] sm:$0xff] }
 0x294   : > { %5624 = vmatprep.mubr.bf16.mxu1 %v18431_v55  ;;  %v13914_v14 = vpack.i.b16 %v4937_v51, %v4936_v44  ;;  %v4960_v9 = vshrl.u32 %v13781_v7, 16  ;;  %v4961_v11 = vshrl.u32 %v13775_v50, 16  ;;  %v13928_v12 = vcombine.high %v13603_v58, %v13592_v8  ;;  %v18683_v51 = vld [vmem:[#allocation48_spill] sm:$0xff]  ;;  %v18692_v58 = vld [vmem:[#allocation46_spill] sm:$0xff] }
 0x295   : > { %v13923_v5 = vpack.i.b16 %v4949_v43, %v4948_v30  ;;  %v13932_v45 = vcombine.high %v13612_v19, %v13615_v40  ;;  %v4786_v46 = vshrl.u32 %v13765_v37, 16  ;;  %v4787_v60 = vshrl.u32 %v13745_v32, 16  ;;  %10198 = vmatmul.mubr.msk.bf16.gmra.mrb[84].mxu0 %vm5021_vm0, %v13783_v26  ;;  %v13948_v19 = vpop.f32.mrb[32].mxu0 }
 0x296   : > { %v13940_v7 = vcombine.high %v13685_v23, %v13662_v2  ;;  %v13944_v8 = vpack.i.b16 %v4961_v11, %v4960_v9  ;;  %18680 = vst [vmem:[#allocation14_spill] sm:$0xff] %v13948_v19  ;;  %v13952_v40 = vcombine.high %v13665_v10, %v13668_v54  ;;  %v4798_v50 = vshrl.u32 %v13789_v21, 16  ;;  %5403 = vmatprep.mubr.bf16.mxu0 %v18431_v55  ;;  %v13958_v23 = vpop.f32.mrb[33].mxu0 }
 0x297   : > { %v13956_v2 = vpack.i.b16 %v4787_v60, %v4786_v46  ;;  %18681 = vst [vmem:[#allocation64_spill] sm:$0xff] %v13958_v23  ;;  %v4799_v26 = vshrl.u32 %v13769_v24, 16  ;;  %v13963_v36 = vcombine.high %v13727_v28, %v13712_v20  ;;  %v13967_v3 = vcombine.high %v13715_v0, %v13718_v6  ;;  %v13971_v54 = vpop.f32.mrb[34].mxu0  ;;  %v18686_v6 = vld [vmem:[#allocation43_spill] sm:$0xff] }
 0x298   : > { %18682 = vst [vmem:[#allocation24_spill] sm:$0xff] %v13971_v54  ;;  %v6046_v44 = vmax.f32 %v13948_v19, %v13958_v23  ;;  %v4810_v31 = vshrl.u32 %v18683_v51, 16  ;;  %v4811_v39 = vshrl.u32 %v18684_v16, 16  ;;  %v13977_v30 = vpop.f32.mrb[35].mxu0  ;;  %v18687_v28 = vld [vmem:[#allocation47_spill] sm:$0xff]  ;;  %v13989_v9 = vcombine.high %v18689_v13, %v18688_v29  ;;  %v18696_v23 = vld [vmem:[#allocation17_spill] sm:$0xff] }
 0x299   : > { %18685 = vst [vmem:[#allocation23_spill] sm:$0xff] %v13977_v30  ;;  %v13979_v20 = vpack.i.b16 %v4799_v26, %v4798_v50  ;;  %v13985_v43 = vcombine.high %v18687_v28, %v18686_v6  ;;  %v18690_v11 = vpack.i.b16 %v13745_v32, %v13765_v37  ;;  %v6049_v46 = vmax.f32 %v13971_v54, %v13977_v30  ;;  %v18691_v37 = vld [vmem:[#allocation15_spill] sm:$0xff] }
 0x29a   : > { %6047 = vmax.xlane.f32.xlu0 %v6046_v44  ;;  %v13997_v60 = vpack.i.b16 %v4811_v39, %v4810_v31  ;;  %v4822_v50 = vshrl.u32 %v13812_v57, 16  ;;  %v4823_v26 = vshrl.u32 %v13819_v25, 16  ;;  %v4834_v28 = vshrl.u32 %v13825_v49, 16 }
 0x29b   : > { %10215 = vmatmul.mubr.msk.bf16.vlgmr.msra.gmra.mrb[24].mxu1 %vm5021_vm0, %v18690_v11  ;;  %v4835_v32 = vshrl.u32 %v13829_v62, 16  ;;  %v4846_v44 = vshrl.u32 %v18691_v37, 16  ;;  %6050 = vmax.xlane.f32.xlu1 %v6049_v46  ;;  %v4847_v31 = vshrl.u32 %v13842_v48, 16  ;;  %v4858_v39 = vshrl.u32 %v13846_v53, 16 }
 0x29c   : > { %5634 = vmatprep.mubr.bf16.mxu1 %v18431_v55  ;;  %v14007_v29 = vpack.i.b16 %v4823_v26, %v4822_v50  ;;  %v4859_v13 = vshrl.u32 %v13854_v63, 16  ;;  %v4870_v0 = vshrl.u32 %v13876_v56, 16  ;;  %v4871_v6 = vshrl.u32 %v13858_v33, 16 }
 0x29d   : > { %v14012_v11 = vpack.i.b16 %v4835_v32, %v4834_v28  ;;  %v4882_v10 = vshrl.u32 %v13867_v35, 16  ;;  %10199 = vmatmul.mubr.msk.bf16.gmra.mrb[88].mxu0 %vm5021_vm0, %v18692_v58  ;;  %v14019_v46 = vpack.i.b16 %v4847_v31, %v4846_v44  ;;  %v4883_v26 = vshrl.u32 %v13871_v15, 16 }
 0x29e   : > { %v14021_v50 = vpack.i.b16 %v4859_v13, %v4858_v39  ;;  %v4894_v18 = vshrl.u32 %v13882_v61, 16  ;;  %5413 = vmatprep.mubr.bf16.mxu0 %v18431_v55  ;;  %v14026_v28 = vpack.i.b16 %v4871_v6, %v4870_v0  ;;  %v4895_v32 = vshrl.u32 %v13890_v42, 16 }
 0x29f   : > { %v4906_v22 = vshrl.u32 %v13898_v27, 16  ;;  %v4907_v59 = vshrl.u32 %v13902_v52, 16  ;;  %v14031_v17 = vpack.i.b16 %v4883_v26, %v4882_v10  ;;  %v4918_v58 = vshrl.u32 %v13911_v4, 16 }
 0x2a0   : > { %v4919_v44 = vshrl.u32 %v13920_v41, 16  ;;  %v4930_v31 = vshrl.u32 %v13928_v12, 16  ;;  %v14036_v39 = vpack.i.b16 %v4895_v32, %v4894_v18  ;;  %v4931_v0 = vshrl.u32 %v13932_v45, 16 }
 0x2a1   : > { %v14038_v13 = vpack.i.b16 %v4907_v59, %v4906_v22  ;;  %v4942_v6 = vshrl.u32 %v13940_v7, 16  ;;  %v18693_v30 = vpack.i.b16 %v13769_v24, %v13789_v21  ;;  %v4943_v26 = vshrl.u32 %v13952_v40, 16  ;;  %v18698_v21 = vld [vmem:[#allocation7_spill] sm:$0xff] }
 0x2a2   : > { %v14046_v10 = vpack.i.b16 %v4919_v44, %v4918_v58  ;;  %v4954_v54 = vshrl.u32 %v13963_v36, 16  ;;  %v4955_v18 = vshrl.u32 %v13967_v3, 16  ;;  %v14052_v59 = vpack.i.b16 %v4931_v0, %v4930_v31  ;;  %v18700_v0 = vld [vmem:[#allocation63_spill] sm:$0xff] }
 0x2a3   : > { %10216 = vmatmul.mubr.msk.bf16.gmra.mrb[28].mxu1 %vm5021_vm0, %v18693_v30  ;;  %v4966_v22 = vshrl.u32 %v13985_v43, 16  ;;  %v4967_v32 = vshrl.u32 %v13989_v9, 16  ;;  %v18697_v24 = vshrl.u32 %v18696_v23, 16  ;;  %v18699_v30 = vshrl.u32 %v18698_v21, 16  ;;  %v18701_v23 = vld [vmem:[#allocation9_spill] sm:$0xff] }
 0x2a4   : > { %18694 = vst [vmem:[#allocation33_spill] sm:$0xff] %v14046_v10  ;;  %5644 = vmatprep.mubr.bf16.mxu1 %v18431_v55  ;;  %18695 = vst [vmem:[#allocation30_spill] sm:$0xff] %v14052_v59  ;;  %v14060_v44 = vpack.i.b16 %v4943_v26, %v4942_v6  ;;  %v14062_v19 = vpack.i.b16 %v4955_v18, %v4954_v54  ;;  %v4809_v31 = vpack.i.b16 %v18684_v16, %v18683_v51 }
 0x2a5   : > { %v4842_v58 = vpack.i.b16 %v18699_v30, %v18697_v24  ;;  %v14064_v10 = vpack.i.b16 %v4967_v32, %v4966_v22  ;;  %v4853_v59 = vshrl.u32 %v18700_v0, 16  ;;  %v4852_v21 = vshrl.u32 %v18701_v23, 16  ;;  %v18703_v32 = vld [vmem:[#allocation58_spill] sm:$0xff] }
 0x2a6   : > { %v4821_v54 = vpack.i.b16 %v13819_v25, %v13812_v57  ;;  %v18702_v57 = vld [vmem:[#allocation57_spill] sm:$0xff]  ;;  %v4833_v25 = vpack.i.b16 %v13829_v62, %v13825_v49  ;;  %v4845_v24 = vpack.i.b16 %v13842_v48, %v18691_v37  ;;  %v4857_v49 = vpack.i.b16 %v13854_v63, %v13846_v53 }
 0x2a7   : > { %10200 = vmatmul.mubr.msk.bf16.gmra.mrb[92].mxu0 %vm5021_vm0, %v4842_v58  ;;  %v4854_v6 = vpack.i.b16 %v4853_v59, %v4852_v21  ;;  %v4869_v63 = vpack.i.b16 %v13858_v33, %v13876_v56  ;;  %v18704_v53 = vpack.i.b16 %v13871_v15, %v13867_v35  ;;  %v18705_v15 = vpack.i.b16 %v13890_v42, %v13882_v61 }
 0x2a8   : > { %5423 = vmatprep.mubr.bf16.mxu0 %v18431_v55 }
 0x2aa   : > { %v14078_v26 = vpop.f32.mrb[36].mxu0 }
 0x2ab   : > { %10217 = vmatmul.mubr.msk.bf16.gmra.mrb[32].mxu1 %vm5021_vm0, %v4809_v31  ;;  %v14081_v51 = vpop.f32.mrb[37].mxu0 }
 0x2ac   : > { %5654 = vmatprep.mubr.bf16.mxu1 %v18431_v55  ;;  %v14084_v16 = vpop.f32.mrb[38].mxu0  ;;  %v6052_v18 = vmax.f32 %v14078_v26, %v14081_v51 }
 0x2ad   : > { %v14088_v59 = vpop.f32.mrb[39].mxu0 }
 0x2ae   : > { %6053 = vmax.xlane.f32.xlu0 %v6052_v18  ;;  %v6055_v22 = vmax.f32 %v14084_v16, %v14088_v59 }
 0x2af   : > { %10201 = vmatmul.mubr.msk.bf16.gmra.mrb[96].mxu0 %vm5021_vm0, %v4854_v6 }
 0x2b0   : > { %5433 = vmatprep.mubr.bf16.mxu0 %v18431_v55 }
 0x2b2   : > { %6056 = vmax.xlane.f32.xlu0 %v6055_v22 }
 0x2b3   : > { %10218 = vmatmul.mubr.msk.bf16.gmra.mrb[36].mxu1 %vm5021_vm0, %v4821_v54 }
 0x2b4   : > { %5664 = vmatprep.mubr.bf16.mxu1 %v18431_v55 }
 0x2b7   : > { %10202 = vmatmul.mubr.msk.bf16.gmra.mrb[100].mxu0 %vm5021_vm0, %v18702_v57 }
 0x2b8   : > { %5443 = vmatprep.mubr.bf16.mxu0 %v18431_v55 }
 0x2bb   : > { %10219 = vmatmul.mubr.msk.bf16.gmra.mrb[40].mxu1 %vm5021_vm0, %v4833_v25 }
 0x2bc   : > { %5674 = vmatprep.mubr.bf16.mxu1 %v18431_v55 }
 0x2bf   : > { %10203 = vmatmul.mubr.msk.bf16.gmra.mrb[104].mxu0 %vm5021_vm0, %v18703_v32 }
 0x2c0   : > { %5453 = vmatprep.mubr.bf16.mxu0 %v18431_v55 }
 0x2c2   : > { %v14111_v62 = vpop.f32.mrb[40].mxu0 }
 0x2c3   : > { %10220 = vmatmul.mubr.msk.bf16.gmra.mrb[44].mxu1 %vm5021_vm0, %v4845_v24  ;;  %v14114_v30 = vpop.f32.mrb[41].mxu0 }
 0x2c4   : > { %5684 = vmatprep.mubr.bf16.mxu1 %v18431_v55  ;;  %v14117_v48 = vpop.f32.mrb[42].mxu0  ;;  %v6058_v37 = vmax.f32 %v14111_v62, %v14114_v30 }
 0x2c5   : > { %v14121_v58 = vpop.f32.mrb[43].mxu0 }
 0x2c6   : > { %6059 = vmax.xlane.f32.xlu1 %v6058_v37 }
 0x2c7   : > { %10204 = vmatmul.mubr.msk.bf16.gmra.mrb[108].mxu0 %vm5021_vm0, %v13850_v1  ;;  %v6061_v1 = vmax.f32 %v14117_v48, %v14121_v58 }
 0x2c8   : > { %5463 = vmatprep.mubr.bf16.mxu0 %v18431_v55 }
 0x2c9   : > { %6062 = vmax.xlane.f32.xlu0 %v6061_v1 }
 0x2cb   : > { %10221 = vmatmul.mubr.msk.bf16.gmra.mrb[48].mxu1 %vm5021_vm0, %v4857_v49 }
 0x2cc   : > { %5694 = vmatprep.mubr.bf16.mxu1 %v18431_v55 }
 0x2cf   : > { %10205 = vmatmul.mubr.msk.bf16.gmra.mrb[112].mxu0 %vm5021_vm0, %v13862_v38 }
 0x2d0   : > { %5473 = vmatprep.mubr.bf16.mxu0 %v18431_v55 }
 0x2d3   : > { %10222 = vmatmul.mubr.msk.bf16.gmra.mrb[52].mxu1 %vm5021_vm0, %v4869_v63 }
 0x2d4   : > { %5704 = vmatprep.mubr.bf16.mxu1 %v18431_v55  ;;  %v14140_v38 = vpop.f32.mrb[44].mxu0 }
 0x2d5   : > { %v14142_v31 = vpop.f32.mrb[45].mxu0 }
 0x2d6   : > { %v14144_v33 = vpop.f32.mrb[46].mxu0  ;;  %v6064_v56 = vmax.f32 %v14140_v38, %v14142_v31 }
 0x2d7   : > { %10206 = vmatmul.mubr.msk.bf16.gmra.mrb[116].mxu0 %vm5021_vm0, %v13884_v34  ;;  %v14150_v34 = vpop.f32.mrb[47].mxu0 }
 0x2d8   : > { %5483 = vmatprep.mubr.bf16.mxu0 %v18431_v55  ;;  %6065 = vmax.xlane.f32.xlu1 %v6064_v56  ;;  %v6067_v35 = vmax.f32 %v14144_v33, %v14150_v34 }
 0x2da   : > { %6068 = vmax.xlane.f32.xlu0 %v6067_v35 }
 0x2db   : > { %10223 = vmatmul.mubr.msk.bf16.gmra.mrb[56].mxu1 %vm5021_vm0, %v18704_v53 }
 0x2dc   : > { %5714 = vmatprep.mubr.bf16.mxu1 %v18431_v55 }
 0x2df   : > { %10207 = vmatmul.mubr.msk.bf16.gmra.mrb[120].mxu0 %vm5021_vm0, %v13893_v47  ;;  %v18706_v47 = vpack.i.b16 %v13902_v52, %v13898_v27  ;;  %v18707_v52 = vpack.i.b16 %v13920_v41, %v13911_v4 }
 0x2e0   : > { %5493 = vmatprep.mubr.bf16.mxu0 %v18431_v55 }
 0x2e3   : > { %10224 = vmatmul.mubr.msk.bf16.gmra.mrb[60].mxu1 %vm5021_vm0, %v18705_v15 }
 0x2e4   : > { %5724 = vmatprep.mubr.bf16.mxu1 %v18431_v55  ;;  %v14167_v0 = vpop.f32.mrb[48].mxu0 }
 0x2e5   : > { %v14170_v23 = vpop.f32.mrb[49].mxu0 }
 0x2e6   : > { %v14172_v61 = vpop.f32.mrb[50].mxu0  ;;  %v6070_v42 = vmax.f32 %v14167_v0, %v14170_v23 }
 0x2e7   : > { %10208 = vmatmul.mubr.msk.bf16.gmra.mrb[124].mxu0 %vm5021_vm0, %v13914_v14  ;;  %v14176_v21 = vpop.f32.mrb[51].mxu0  ;;  %v18708_v14 = vpack.i.b16 %v13932_v45, %v13928_v12 }
 0x2e8   : > { %5503 = vmatprep.mubr.bf16.mxu0 %v18431_v55  ;;  %6071 = vmax.xlane.f32.xlu1 %v6070_v42  ;;  %v6073_v27 = vmax.f32 %v14172_v61, %v14176_v21 }
 0x2ea   : > { %6074 = vmax.xlane.f32.xlu0 %v6073_v27 }
 0x2eb   : > { %10225 = vmatmul.mubr.msk.bf16.gmra.mrb[64].mxu1 %vm5021_vm0, %v18706_v47 }
 0x2ec   : > { %5734 = vmatprep.mubr.bf16.mxu1 %v18431_v55 }
 0x2ef   : > { %10209 = vmatmul.mubr.msk.bf16.gmra.mrb[128].mxu0 %vm5021_vm0, %v13923_v5  ;;  %v18709_v5 = vpack.i.b16 %v13952_v40, %v13940_v7  ;;  %v18710_v7 = vpack.i.b16 %v13967_v3, %v13963_v36  ;;  %v18711_v40 = vpack.i.b16 %v13989_v9, %v13985_v43 }
 0x2f0   : > { %5513 = vmatprep.mubr.bf16.mxu0 %v18431_v55 }
 0x2f3   : > { %10226 = vmatmul.mubr.msk.bf16.gmra.mrb[68].mxu1 %vm5021_vm0, %v18707_v52 }
 0x2f4   : > { %5744 = vmatprep.mubr.bf16.mxu1 %v18431_v55 }
 0x2f7   : > { %10210 = vmatmul.mubr.msk.bf16.gmra.mrb[132].mxu0 %vm5021_vm0, %v13944_v8 }
 0x2f8   : > { %5885 = vmatprep.mubr.bf16.mxu0 %v18431_v55  ;;  %v14199_v4 = vpop.f32.mrb[52].mxu0 }
 0x2f9   : > { %v14201_v41 = vpop.f32.mrb[53].mxu0 }
 0x2fa   : > { %v14207_v8 = vpop.f32.mrb[54].mxu0  ;;  %v6076_v12 = vmax.f32 %v14199_v4, %v14201_v41 }
 0x2fb   : > { %10227 = vmatmul.mubr.msk.bf16.gmra.mrb[72].mxu1 %vm5021_vm0, %v18708_v14  ;;  %v14212_v45 = vpop.f32.mrb[55].mxu0 }
 0x2fc   : > { %5754 = vmatprep.mubr.bf16.mxu1 %v18431_v55  ;;  %6077 = vmax.xlane.f32.xlu1 %v6076_v12 }
 0x2ff   : > { %10235 = vmatmul.mubr.msk.bf16.vlgmr.msra.gmra.mrb[136].mxu0 %vm5021_vm0, %v13956_v2  ;;  %v6079_v2 = vmax.f32 %v14207_v8, %v14212_v45 }
 0x300   : > { %5895 = vmatprep.mubr.bf16.mxu0 %v18431_v55 }
 0x301   : > { %6080 = vmax.xlane.f32.xlu0 %v6079_v2 }
 0x303   : > { %10228 = vmatmul.mubr.msk.bf16.gmra.mrb[76].mxu1 %vm5021_vm0, %v18709_v5 }
 0x304   : > { %5764 = vmatprep.mubr.bf16.mxu1 %v18431_v55 }
 0x307   : > { %10236 = vmatmul.mubr.msk.bf16.gmra.mrb[140].mxu0 %vm5021_vm0, %v13979_v20 }
 0x308   : > { %5905 = vmatprep.mubr.bf16.mxu0 %v18431_v55 }
 0x30b   : > { %10229 = vmatmul.mubr.msk.bf16.gmra.mrb[80].mxu1 %vm5021_vm0, %v18710_v7 }
 0x30c   : > { %5774 = vmatprep.mubr.bf16.mxu1 %v18431_v55 }
 0x30f   : > { %10237 = vmatmul.mubr.msk.bf16.gmra.mrb[144].mxu0 %vm5021_vm0, %v13997_v60  ;;  %v14231_v20 = vpop.f32.mrb[56].mxu0 }
 0x310   : > { %5915 = vmatprep.mubr.bf16.mxu0 %v18431_v55  ;;  %v14235_v36 = vpop.f32.mrb[57].mxu0 }
 0x311   : > { %v14238_v3 = vpop.f32.mrb[58].mxu0  ;;  %v6082_v60 = vmax.f32 %v14231_v20, %v14235_v36 }
 0x312   : > { %v14242_v6 = vpop.f32.mrb[59].mxu0 }
 0x313   : > { %10230 = vmatmul.mubr.msk.bf16.gmra.mrb[84].mxu1 %vm5021_vm0, %v18711_v40  ;;  %v6085_v43 = vmax.f32 %v14238_v3, %v14242_v6 }
 0x317   : > { %10238 = vmatmul.mubr.msk.bf16.gmra.mrb[148].mxu0 %vm5021_vm0, %v14007_v29 }
 0x318   : > { %5925 = vmatprep.mubr.bf16.mxu0 %v18431_v55 }
 0x31f   : > { %10239 = vmatmul.mubr.msk.bf16.gmra.mrb[152].mxu0 %vm5021_vm0, %v14012_v11  ;;  %v14249_v9 = vpop.f32.mrb[60].mxu0 }
 0x320   : > { %5935 = vmatprep.mubr.bf16.mxu0 %v18431_v55  ;;  %v14251_v29 = vpop.f32.mrb[61].mxu0 }
 0x321   : > { %v14255_v54 = vpop.f32.mrb[62].mxu0  ;;  %v6088_v18 = vmax.f32 %v14249_v9, %v14251_v29 }
 0x322   : > { %v14260_v22 = vpop.f32.mrb[63].mxu0 }
 0x323   : > { %v6091_v11 = vmax.f32 %v14255_v54, %v14260_v22 }
 0x327   : > { %10240 = vmatmul.mubr.msk.bf16.gmra.mrb[156].mxu0 %vm5021_vm0, %v14019_v46 }
 0x328   : > { %5945 = vmatprep.mubr.bf16.mxu0 %v18431_v55 }
 0x32e   : > { %v14267_v57 = vpop.f32.mrb[0].mxu1 }
 0x32f   : > { %10241 = vmatmul.mubr.msk.bf16.gmra.mrb[160].mxu0 %vm5021_vm0, %v14021_v50  ;;  %v14269_v46 = vpop.f32.mrb[1].mxu1 }
 0x330   : > { %5955 = vmatprep.mubr.bf16.mxu0 %v18431_v55  ;;  %v14271_v25 = vpop.f32.mrb[2].mxu1  ;;  %v6106_v32 = vmax.f32 %v14267_v57, %v14269_v46 }
 0x331   : > { %v14277_v24 = vpop.f32.mrb[3].mxu1 }
 0x332   : > { %6107 = vmax.xlane.f32.xlu1 %v6106_v32  ;;  %v6109_v50 = vmax.f32 %v14271_v25, %v14277_v24 }
 0x334   : > { %6110 = vmax.xlane.f32.xlu0 %v6109_v50 }
 0x336   : > { %6083 = vmax.xlane.f32.xlu1 %v6082_v60 }
 0x337   : > { %10242 = vmatmul.mubr.msk.bf16.gmra.mrb[164].mxu0 %vm5021_vm0, %v14026_v28 }
 0x338   : > { %5965 = vmatprep.mubr.bf16.mxu0 %v18431_v55  ;;  %6086 = vmax.xlane.f32.xlu0 %v6085_v43 }
 0x33d   : > { %v14285_v49 = vpop.f32.mrb[64].mxu0 }
 0x33e   : > { %18712 = vst [vmem:[#allocation41_spill] sm:$0xff] %v14285_v49  ;;  %v14287_v37 = vpop.f32.mrb[65].mxu0 }
 0x33f   : > { %10243 = vmatmul.mubr.msk.bf16.gmra.mrb[168].mxu0 %vm5021_vm0, %v14031_v17  ;;  %18713 = vst [vmem:[#allocation13_spill] sm:$0xff] %v14287_v37  ;;  %v14289_v28 = vpop.f32.mrb[66].mxu0  ;;  %v6094_v1 = vmax.f32 %v14285_v49, %v14287_v37 }
 0x340   : > { %5975 = vmatprep.mubr.bf16.mxu0 %v18431_v55  ;;  %18714 = vst [vmem:[#allocation12_spill] sm:$0xff] %v14289_v28  ;;  %v14293_v63 = vpop.f32.mrb[67].mxu0 }
 0x341   : > { %18715 = vst [vmem:[#allocation54_spill] sm:$0xff] %v14293_v63  ;;  %v6097_v17 = vmax.f32 %v14289_v28, %v14293_v63  ;;  %v18806_v63 = vld [vmem:[#allocation23_spill] sm:$0xff] }
 0x343   : > { %v14295_v53 = vpop.f32.mrb[4].mxu1 }
 0x344   : > { %v14297_v56 = vpop.f32.mrb[5].mxu1 }
 0x345   : > { %v14303_v35 = vpop.f32.mrb[6].mxu1  ;;  %v6112_v15 = vmax.f32 %v14295_v53, %v14297_v56 }
 0x346   : > { %v14307_v47 = vpop.f32.mrb[7].mxu1 }
 0x347   : > { %10244 = vmatmul.mubr.msk.bf16.gmra.mrb[172].mxu0 %vm5021_vm0, %v14036_v39  ;;  %6113 = vmax.xlane.f32.xlu1 %v6112_v15  ;;  %v6115_v42 = vmax.f32 %v14303_v35, %v14307_v47 }
 0x348   : > { %5985 = vmatprep.mubr.bf16.mxu0 %v18431_v55  ;;  %v14312_v27 = vpop.f32.mrb[68].mxu0 }
 0x349   : > { %18716 = vst [vmem:[#allocation38_spill] sm:$0xff] %v14312_v27  ;;  %v14314_v52 = vpop.f32.mrb[69].mxu0  ;;  %6116 = vmax.xlane.f32.xlu0 %v6115_v42 }
 0x34a   : > { %18717 = vst [vmem:[#allocation11_spill] sm:$0xff] %v14314_v52  ;;  %v14316_v14 = vpop.f32.mrb[70].mxu0  ;;  %v6100_v39 = vmax.f32 %v14312_v27, %v14314_v52 }
 0x34b   : > { %18718 = vst [vmem:[#allocation10_spill] sm:$0xff] %v14316_v14  ;;  %v14320_v5 = vpop.f32.mrb[71].mxu0  ;;  %6089 = vmax.xlane.f32.xlu1 %v6088_v18 }
 0x34c   : > { %18719 = vst [vmem:[#allocation22_spill] sm:$0xff] %v14320_v5  ;;  %v6103_v2 = vmax.f32 %v14316_v14, %v14320_v5  ;;  %v18728_v14 = vld [vmem:[#allocation33_spill] sm:$0xff] }
 0x34d   : > { %v14322_v12 = vpop.f32.mrb[8].mxu1  ;;  %6092 = vmax.xlane.f32.xlu0 %v6091_v11 }
 0x34e   : > { %v14326_v7 = vpop.f32.mrb[9].mxu1 }
 0x34f   : > { %10245 = vmatmul.mubr.msk.bf16.gmra.mrb[176].mxu0 %vm5021_vm0, %v14038_v13  ;;  %v14330_v40 = vpop.f32.mrb[10].mxu1  ;;  %v6118_v60 = vmax.f32 %v14322_v12, %v14326_v7 }
 0x350   : > { %18720 = vst [vmem:[#allocation21_spill] sm:$0xff] %v14330_v40  ;;  %5995 = vmatprep.mubr.bf16.mxu0 %v18431_v55  ;;  %v14335_v43 = vpop.f32.mrb[11].mxu1  ;;  %v14337_v18 = vpop.f32.mrb[72].mxu0 }
 0x351   : > { %18721 = vst [vmem:[#allocation53_spill] sm:$0xff] %v14335_v43  ;;  %18722 = vst [vmem:[#allocation19_spill] sm:$0xff] %v14337_v18  ;;  %6119 = vmax.xlane.f32.xlu1 %v6118_v60  ;;  %v6121_v32 = vmax.f32 %v14330_v40, %v14335_v43  ;;  %v14341_v50 = vpop.f32.mrb[73].mxu0 }
 0x352   : > { %18723 = vst [vmem:[#allocation20_spill] sm:$0xff] %v14341_v50  ;;  %v14343_v15 = vpop.f32.mrb[74].mxu0  ;;  %v6142_v13 = vmax.f32 %v14337_v18, %v14341_v50 }
 0x353   : > { %18724 = vst [vmem:[#allocation26_spill] sm:$0xff] %v14343_v15  ;;  %6122 = vmax.xlane.f32.xlu0 %v6121_v32  ;;  %v14347_v11 = vpop.f32.mrb[75].mxu0 }
 0x354   : > { %18725 = vst [vmem:[#allocation25_spill] sm:$0xff] %v14347_v11  ;;  %v6145_v5 = vmax.f32 %v14343_v15, %v14347_v11 }
 0x355   : > { %6095 = vmax.xlane.f32.xlu1 %v6094_v1 }
 0x356   : > { %v14349_v42 = vpop.f32.mrb[12].mxu1 }
 0x357   : > { %18726 = vst [vmem:[#allocation32_spill] sm:$0xff] %v14349_v42  ;;  %v14353_v60 = vpop.f32.mrb[13].mxu1  ;;  %10246 = vmatmul.mubr.msk.bf16.gmra.mrb[180].mxu0 %vm5021_vm0, %v18728_v14  ;;  %6098 = vmax.xlane.f32.xlu0 %v6097_v17 }
 0x358   : > { %18727 = vst [vmem:[#allocation31_spill] sm:$0xff] %v14353_v60  ;;  %v14357_v52 = vpop.f32.mrb[14].mxu1  ;;  %v6124_v32 = vmax.f32 %v14349_v42, %v14353_v60  ;;  %6005 = vmatprep.mubr.bf16.mxu0 %v18431_v55  ;;  %v14364_v18 = vpop.f32.mrb[76].mxu0  ;;  %v18737_v42 = vld [vmem:[#allocation30_spill] sm:$0xff] }
 0x359   : > { %18729 = vst [vmem:[#allocation65_spill] sm:$0xff] %v14357_v52  ;;  %v14362_v50 = vpop.f32.mrb[15].mxu1  ;;  %18731 = vst [vmem:[#allocation37_spill] sm:$0xff] %v14364_v18  ;;  %v14368_v11 = vpop.f32.mrb[77].mxu0 }
 0x35a   : > { %18730 = vst [vmem:[#allocation36_spill] sm:$0xff] %v14362_v50  ;;  %6125 = vmax.xlane.f32.xlu1 %v6124_v32  ;;  %v6127_v1 = vmax.f32 %v14357_v52, %v14362_v50  ;;  %18732 = vst [vmem:[#allocation40_spill] sm:$0xff] %v14368_v11  ;;  %v14370_v15 = vpop.f32.mrb[78].mxu0  ;;  %v6148_v17 = vmax.f32 %v14364_v18, %v14368_v11  ;;  %v18804_v52 = vld [vmem:[#allocation24_spill] sm:$0xff] }
 0x35b   : > { %18733 = vst [vmem:[#allocation39_spill] sm:$0xff] %v14370_v15  ;;  %v14374_v14 = vpop.f32.mrb[79].mxu0 }
 0x35c   : > { %6128 = vmax.xlane.f32.xlu0 %v6127_v1  ;;  %18734 = vst [vmem:[#allocation50_spill] sm:$0xff] %v14374_v14  ;;  %v6151_v60 = vmax.f32 %v14370_v15, %v14374_v14 }
 0x35e   : > { %6101 = vmax.xlane.f32.xlu1 %v6100_v39  ;;  %v14376_v27 = vpop.f32.mrb[16].mxu1 }
 0x35f   : > { %18735 = vst [vmem:[#allocation51_spill] sm:$0xff] %v14376_v27  ;;  %v14380_v32 = vpop.f32.mrb[17].mxu1  ;;  %10247 = vmatmul.mubr.msk.bf16.gmra.mrb[184].mxu0 %vm5021_vm0, %v18737_v42 }
 0x360   : > { %18736 = vst [vmem:[#allocation52_spill] sm:$0xff] %v14380_v32  ;;  %6104 = vmax.xlane.f32.xlu0 %v6103_v2  ;;  %v14384_v50 = vpop.f32.mrb[18].mxu1  ;;  %v6130_v1 = vmax.f32 %v14376_v27, %v14380_v32  ;;  %6015 = vmatprep.mubr.bf16.mxu0 %v18431_v55  ;;  %v14391_v39 = vpop.f32.mrb[80].mxu0 }
 0x361   : > { %18738 = vst [vmem:[#allocation5_spill] sm:$0xff] %v14384_v50  ;;  %v14389_v11 = vpop.f32.mrb[19].mxu1  ;;  %18740 = vst [vmem:[#allocation18_spill] sm:$0xff] %v14391_v39  ;;  %v14395_v15 = vpop.f32.mrb[81].mxu0 }
 0x362   : > { %18739 = vst [vmem:[#allocation16_spill] sm:$0xff] %v14389_v11  ;;  %6131 = vmax.xlane.f32.xlu1 %v6130_v1  ;;  %v6133_v14 = vmax.f32 %v14384_v50, %v14389_v11  ;;  %18741 = vst [vmem:[#allocation56_spill] sm:$0xff] %v14395_v15  ;;  %v14397_v18 = vpop.f32.mrb[82].mxu0  ;;  %v6154_v2 = vmax.f32 %v14391_v39, %v14395_v15 }
 0x363   : > { %18742 = vst [vmem:[#allocation55_spill] sm:$0xff] %v14397_v18  ;;  %v14401_v42 = vpop.f32.mrb[83].mxu0 }
 0x364   : > { %6134 = vmax.xlane.f32.xlu0 %v6133_v14  ;;  %18743 = vst [vmem:[#allocation59_spill] sm:$0xff] %v14401_v42  ;;  %v6157_v27 = vmax.f32 %v14397_v18, %v14401_v42 }
 0x366   : > { %6143 = vmax.xlane.f32.xlu1 %v6142_v13  ;;  %v14403_v32 = vpop.f32.mrb[20].mxu1 }
 0x367   : > { %18744 = vst [vmem:[#allocation60_spill] sm:$0xff] %v14403_v32  ;;  %v14407_v1 = vpop.f32.mrb[21].mxu1  ;;  %10248 = vmatmul.mubr.msk.bf16.gmra.mrb[188].mxu0 %vm5021_vm0, %v14060_v44 }
 0x368   : > { %18745 = vst [vmem:[#allocation62_spill] sm:$0xff] %v14407_v1  ;;  %6146 = vmax.xlane.f32.xlu0 %v6145_v5  ;;  %v14411_v11 = vpop.f32.mrb[22].mxu1  ;;  %v6136_v14 = vmax.f32 %v14403_v32, %v14407_v1  ;;  %6025 = vmatprep.mubr.bf16.mxu0 %v18431_v55  ;;  %v14418_v13 = vpop.f32.mrb[84].mxu0 }
 0x369   : > { %18746 = vst [vmem:[#allocation61_spill] sm:$0xff] %v14411_v11  ;;  %v14416_v15 = vpop.f32.mrb[23].mxu1  ;;  %18748 = vst [vmem:[#allocation29_spill] sm:$0xff] %v14418_v13  ;;  %v14422_v18 = vpop.f32.mrb[85].mxu0 }
 0x36a   : > { %18747 = vst [vmem:[#allocation8_spill] sm:$0xff] %v14416_v15  ;;  %6137 = vmax.xlane.f32.xlu1 %v6136_v14  ;;  %v6139_v42 = vmax.f32 %v14411_v11, %v14416_v15  ;;  %18749 = vst [vmem:[#allocation28_spill] sm:$0xff] %v14422_v18  ;;  %v14424_v39 = vpop.f32.mrb[86].mxu0  ;;  %v6160_v44 = vmax.f32 %v14418_v13, %v14422_v18 }
 0x36b   : > { %18750 = vst [vmem:[#allocation27_spill] sm:$0xff] %v14424_v39  ;;  %v14428_v5 = vpop.f32.mrb[87].mxu0 }
 0x36c   : > { %6140 = vmax.xlane.f32.xlu0 %v6139_v42  ;;  %18751 = vst [vmem:[#allocation66_spill] sm:$0xff] %v14428_v5  ;;  %v6163_v32 = vmax.f32 %v14424_v39, %v14428_v5 }
 0x36e   : > { %6149 = vmax.xlane.f32.xlu1 %v6148_v17  ;;  %v14430_v1 = vpop.f32.mrb[24].mxu1 }
 0x36f   : > { %18752 = vst [vmem:[#allocation35_spill] sm:$0xff] %v14430_v1  ;;  %v14434_v14 = vpop.f32.mrb[25].mxu1  ;;  %10249 = vmatmul.mubr.msk.bf16.gmra.mrb[192].mxu0 %vm5021_vm0, %v14062_v19 }
 0x370   : > { %18753 = vst [vmem:[#allocation34_spill] sm:$0xff] %v14434_v14  ;;  %6152 = vmax.xlane.f32.xlu0 %v6151_v60  ;;  %v14438_v15 = vpop.f32.mrb[26].mxu1  ;;  %v6238_v42 = vmax.f32 %v14430_v1, %v14434_v14  ;;  %6035 = vmatprep.mubr.bf16.mxu0 %v18431_v55  ;;  %v14445_v17 = vpop.f32.mrb[88].mxu0 }
 0x371   : > { %18754 = vst [vmem:[#allocation42_spill] sm:$0xff] %v14438_v15  ;;  %v14443_v18 = vpop.f32.mrb[27].mxu1  ;;  %18756 = vst [vmem:[#allocation48_spill] sm:$0xff] %v14445_v17  ;;  %v14449_v39 = vpop.f32.mrb[89].mxu0 }
 0x372   : > { %18755 = vst [vmem:[#allocation6_spill] sm:$0xff] %v14443_v18  ;;  %6239 = vmax.xlane.f32.xlu1 %v6238_v42  ;;  %v6241_v5 = vmax.f32 %v14438_v15, %v14443_v18  ;;  %18757 = vst [vmem:[#allocation49_spill] sm:$0xff] %v14449_v39  ;;  %v14451_v13 = vpop.f32.mrb[90].mxu0  ;;  %v6166_v19 = vmax.f32 %v14445_v17, %v14449_v39 }
 0x373   : > { %18758 = vst [vmem:[#allocation43_spill] sm:$0xff] %v14451_v13  ;;  %v14455_v60 = vpop.f32.mrb[91].mxu0 }
 0x374   : > { %6242 = vmax.xlane.f32.xlu0 %v6241_v5  ;;  %18759 = vst [vmem:[#allocation47_spill] sm:$0xff] %v14455_v60  ;;  %v6169_v14 = vmax.f32 %v14451_v13, %v14455_v60 }
 0x376   : > { %6155 = vmax.xlane.f32.xlu1 %v6154_v2  ;;  %v14457_v55 = vpop.f32.mrb[28].mxu1 }
 0x377   : > { %18760 = vst [vmem:[#allocation45_spill] sm:$0xff] %v14457_v55  ;;  %v14461_v42 = vpop.f32.mrb[29].mxu1  ;;  %10250 = vmatmul.mubr.msk.bf16.gmra.mrb[196].mxu0 %vm5021_vm0, %v14064_v10 }
 0x378   : > { %18761 = vst [vmem:[#allocation44_spill] sm:$0xff] %v14461_v42  ;;  %6158 = vmax.xlane.f32.xlu0 %v6157_v27  ;;  %v14465_v18 = vpop.f32.mrb[30].mxu1  ;;  %v6244_v5 = vmax.f32 %v14457_v55, %v14461_v42 }
 0x379   : > { %18762 = vst [vmem:[#allocation15_spill] sm:$0xff] %v14465_v18  ;;  %v14469_v15 = vpop.f32.mrb[31].mxu1 }
 0x37a   : > { %18763 = vst [vmem:[#allocation46_spill] sm:$0xff] %v14469_v15  ;;  %v14471_v1 = vpop.f32.mrb[92].mxu0  ;;  %6245 = vmax.xlane.f32.xlu1 %v6244_v5  ;;  %v6247_v2 = vmax.f32 %v14465_v18, %v14469_v15 }
 0x37b   : > { %18764 = vst [vmem:[#allocation17_spill] sm:$0xff] %v14471_v1  ;;  %v14475_v11 = vpop.f32.mrb[93].mxu0 }
 0x37c   : > { %18765 = vst [vmem:[#allocation7_spill] sm:$0xff] %v14475_v11  ;;  %v14477_v60 = vpop.f32.mrb[94].mxu0  ;;  %6248 = vmax.xlane.f32.xlu0 %v6247_v2  ;;  %v6172_v10 = vmax.f32 %v14471_v1, %v14475_v11 }
 0x37d   : > { %18766 = vst [vmem:[#allocation63_spill] sm:$0xff] %v14477_v60  ;;  %v14481_v27 = vpop.f32.mrb[95].mxu0 }
 0x37e   : > { %18767 = vst [vmem:[#allocation9_spill] sm:$0xff] %v14481_v27  ;;  %v6175_v42 = vmax.f32 %v14477_v60, %v14481_v27  ;;  %6161 = vmax.xlane.f32.xlu1 %v6160_v44  ;;  %v14485_v55 = vpop.f32.mrb[32].mxu1 }
 0x37f   : > { %18768 = vst [vmem:[#allocation57_spill] sm:$0xff] %v14485_v55  ;;  %v14487_v5 = vpop.f32.mrb[33].mxu1 }
 0x380   : > { %18769 = vst [vmem:[#allocation58_spill] sm:$0xff] %v14487_v5  ;;  %6164 = vmax.xlane.f32.xlu0 %v6163_v32  ;;  %v14489_v15 = vpop.f32.mrb[34].mxu1  ;;  %v6250_v18 = vmax.f32 %v14485_v55, %v14487_v5 }
 0x381   : > { %18770 = vst [vmem:[#allocation33_spill] sm:$0xff] %v14489_v15  ;;  %v14493_v2 = vpop.f32.mrb[35].mxu1 }
 0x382   : > { %18771 = vst [vmem:[#allocation30_spill] sm:$0xff] %v14493_v2  ;;  %v14495_v13 = vpop.f32.mrb[96].mxu0  ;;  %6251 = vmax.xlane.f32.xlu1 %v6250_v18  ;;  %v6253_v11 = vmax.f32 %v14489_v15, %v14493_v2 }
 0x383   : > { %18772 = vst [vmem:[#allocation67_spill] sm:$0xff] %v14495_v13  ;;  %v14499_v27 = vpop.f32.mrb[97].mxu0 }
 0x384   : > { %18773 = vst [vmem:[#allocation68_spill] sm:$0xff] %v14499_v27  ;;  %v6178_v44 = vmax.f32 %v14495_v13, %v14499_v27  ;;  %v14503_v60 = vpop.f32.mrb[98].mxu0  ;;  %6254 = vmax.xlane.f32.xlu0 %v6253_v11 }
 0x385   : > { %18774 = vst [vmem:[#allocation69_spill] sm:$0xff] %v14503_v60  ;;  %v14505_v32 = vpop.f32.mrb[99].mxu0 }
 0x386   : > { %18775 = vst [vmem:[#allocation70_spill] sm:$0xff] %v14505_v32  ;;  %v6181_v5 = vmax.f32 %v14503_v60, %v14505_v32  ;;  %6167 = vmax.xlane.f32.xlu1 %v6166_v19  ;;  %v14509_v55 = vpop.f32.mrb[36].mxu1 }
 0x387   : > { %18776 = vst [vmem:[#allocation71_spill] sm:$0xff] %v14509_v55  ;;  %v14511_v18 = vpop.f32.mrb[37].mxu1 }
 0x388   : > { %18777 = vst [vmem:[#allocation72_spill] sm:$0xff] %v14511_v18  ;;  %6170 = vmax.xlane.f32.xlu0 %v6169_v14  ;;  %v14513_v2 = vpop.f32.mrb[38].mxu1  ;;  %v6256_v15 = vmax.f32 %v14509_v55, %v14511_v18 }
 0x389   : > { %18778 = vst [vmem:[#allocation73_spill] sm:$0xff] %v14513_v2  ;;  %v14517_v27 = vpop.f32.mrb[39].mxu1 }
 0x38a   : > { %18779 = vst [vmem:[#allocation74_spill] sm:$0xff] %v14517_v27  ;;  %v6259_v11 = vmax.f32 %v14513_v2, %v14517_v27  ;;  %v14521_v13 = vpop.f32.mrb[100].mxu0  ;;  %6257 = vmax.xlane.f32.xlu1 %v6256_v15 }
 0x38b   : > { %18780 = vst [vmem:[#allocation75_spill] sm:$0xff] %v14521_v13  ;;  %v14523_v32 = vpop.f32.mrb[101].mxu0 }
 0x38c   : > { %18781 = vst [vmem:[#allocation76_spill] sm:$0xff] %v14523_v32  ;;  %v6184_v19 = vmax.f32 %v14521_v13, %v14523_v32  ;;  %v14527_v60 = vpop.f32.mrb[102].mxu0  ;;  %6260 = vmax.xlane.f32.xlu0 %v6259_v11 }
 0x38d   : > { %18782 = vst [vmem:[#allocation77_spill] sm:$0xff] %v14527_v60  ;;  %v14529_v14 = vpop.f32.mrb[103].mxu0 }
 0x38e   : > { %18783 = vst [vmem:[#allocation78_spill] sm:$0xff] %v14529_v14  ;;  %v6187_v1 = vmax.f32 %v14527_v60, %v14529_v14  ;;  %6173 = vmax.xlane.f32.xlu1 %v6172_v10  ;;  %v14533_v18 = vpop.f32.mrb[40].mxu1 }
 0x38f   : > { %18784 = vst [vmem:[#allocation79_spill] sm:$0xff] %v14533_v18  ;;  %v14535_v27 = vpop.f32.mrb[41].mxu1 }
 0x390   : > { %18785 = vst [vmem:[#allocation80_spill] sm:$0xff] %v14535_v27  ;;  %v6262_v15 = vmax.f32 %v14533_v18, %v14535_v27  ;;  %6176 = vmax.xlane.f32.xlu0 %v6175_v42  ;;  %v14539_v2 = vpop.f32.mrb[42].mxu1 }
 0x391   : > { %18786 = vst [vmem:[#allocation81_spill] sm:$0xff] %v14539_v2  ;;  %v14541_v32 = vpop.f32.mrb[43].mxu1 }
 0x392   : > { %18787 = vst [vmem:[#allocation82_spill] sm:$0xff] %v14541_v32  ;;  %v6265_v11 = vmax.f32 %v14539_v2, %v14541_v32  ;;  %v14545_v13 = vpop.f32.mrb[104].mxu0  ;;  %6263 = vmax.xlane.f32.xlu1 %v6262_v15 }
 0x393   : > { %18788 = vst [vmem:[#allocation83_spill] sm:$0xff] %v14545_v13  ;;  %v14547_v14 = vpop.f32.mrb[105].mxu0 }
 0x394   : > { %18789 = vst [vmem:[#allocation84_spill] sm:$0xff] %v14547_v14  ;;  %v6190_v10 = vmax.f32 %v14545_v13, %v14547_v14  ;;  %v14551_v60 = vpop.f32.mrb[106].mxu0  ;;  %6266 = vmax.xlane.f32.xlu0 %v6265_v11 }
 0x395   : > { %18790 = vst [vmem:[#allocation85_spill] sm:$0xff] %v14551_v60  ;;  %v14553_v27 = vpop.f32.mrb[107].mxu0 }
 0x396   : > { %18791 = vst [vmem:[#allocation86_spill] sm:$0xff] %v14553_v27  ;;  %v6193_v42 = vmax.f32 %v14551_v60, %v14553_v27  ;;  %6179 = vmax.xlane.f32.xlu1 %v6178_v44  ;;  %v14557_v18 = vpop.f32.mrb[44].mxu1  ;;  %v6048_v27 = vpop.xlane.xlu0 %6047 }
 0x397   : > { %18792 = vst [vmem:[#allocation87_spill] sm:$0xff] %v14557_v18  ;;  %v14559_v32 = vpop.f32.mrb[45].mxu1 }
 0x398   : > { %18793 = vst [vmem:[#allocation88_spill] sm:$0xff] %v14559_v32  ;;  %v6268_v15 = vmax.f32 %v14557_v18, %v14559_v32  ;;  %6182 = vmax.xlane.f32.xlu0 %v6181_v5  ;;  %v14563_v2 = vpop.f32.mrb[46].mxu1  ;;  %v6051_v5 = vpop.xlane.xlu1 %6050  ;;  %v18800_v18 = vld [vmem:[#allocation14_spill] sm:$0xff] }
 0x399   : > { %18794 = vst [vmem:[#allocation89_spill] sm:$0xff] %v14563_v2  ;;  %v14565_v14 = vpop.f32.mrb[47].mxu1  ;;  %v6430_v39 = vsub.f32 %v18800_v18, %v6048_v27  ;;  %v6433_v18 = vsub.f32 %v18806_v63, %v6051_v5 }
 0x39a   : > { %18795 = vst [vmem:[#allocation90_spill] sm:$0xff] %v14565_v14  ;;  %v6271_v11 = vmax.f32 %v14563_v2, %v14565_v14  ;;  %v14569_v13 = vpop.f32.mrb[108].mxu0  ;;  %6269 = vmax.xlane.f32.xlu1 %v6268_v15  ;;  %v18802_v15 = vld [vmem:[#allocation64_spill] sm:$0xff] }
 0x39b   : > { %18796 = vst [vmem:[#allocation91_spill] sm:$0xff] %v14569_v13  ;;  %v14571_v44 = vpop.f32.mrb[109].mxu0  ;;  %v6431_v17 = vsub.f32 %v18802_v15, %v6048_v27  ;;  %v6054_v15 = vpop.xlane.xlu0 %6053  ;;  %v6692_v63 = vmul.f32 1.442695, %v6433_v18 }
 0x39c   : > { %18797 = vst [vmem:[#allocation92_spill] sm:$0xff] %v14571_v44  ;;  %v6196_v60 = vmax.f32 %v14569_v13, %v14571_v44  ;;  %v14575_v55 = vpop.f32.mrb[110].mxu0  ;;  %6272 = vmax.xlane.f32.xlu0 %v6271_v11  ;;  %v6432_v44 = vsub.f32 %v18804_v52, %v6051_v5 }
 0x39d   : > { %18798 = vst [vmem:[#allocation93_spill] sm:$0xff] %v14575_v55  ;;  %v14577_v32 = vpop.f32.mrb[111].mxu0  ;;  %v6688_v27 = vmul.f32 1.442695, %v6431_v17 }
 0x39e   : > { %18799 = vst [vmem:[#allocation94_spill] sm:$0xff] %v14577_v32  ;;  %v6199_v14 = vmax.f32 %v14575_v55, %v14577_v32  ;;  %6185 = vmax.xlane.f32.xlu1 %v6184_v19  ;;  %v14582_v2 = vpop.f32.mrb[48].mxu1  ;;  %v6686_v32 = vmul.f32 1.442695, %v6430_v39  ;;  %v6690_v37 = vmul.f32 1.442695, %v6432_v44 }
 0x39f   : > { %18801 = vst [vmem:[#allocation14_spill] sm:$0xff] %v14582_v2  ;;  %v14585_v50 = vpop.f32.mrb[49].mxu1  ;;  %v6057_v18 = vpop.xlane.xlu0 %6056 }
 0x3a0   : > { %18803 = vst [vmem:[#allocation64_spill] sm:$0xff] %v14585_v50  ;;  %v6274_v11 = vmax.f32 %v14582_v2, %v14585_v50  ;;  %6188 = vmax.xlane.f32.xlu0 %v6187_v1  ;;  %v14590_v13 = vpop.f32.mrb[50].mxu1  ;;  %10924 = vpow2.f32 %v6686_v32  ;;  %v6434_v32 = vsub.f32 %v14078_v26, %v6054_v15  ;;  %v6437_v26 = vsub.f32 %v14088_v59, %v6057_v18 }
 0x3a1   : > { %18805 = vst [vmem:[#allocation24_spill] sm:$0xff] %v14590_v13  ;;  %v14593_v28 = vpop.f32.mrb[51].mxu1  ;;  %10926 = vpow2.f32 %v6688_v27 }
 0x3a2   : > { %18807 = vst [vmem:[#allocation23_spill] sm:$0xff] %v14593_v28  ;;  %v6277_v19 = vmax.f32 %v14590_v13, %v14593_v28  ;;  %v14597_v55 = vpop.f32.mrb[112].mxu0  ;;  %6275 = vmax.xlane.f32.xlu1 %v6274_v11  ;;  %10928 = vpow2.f32 %v6690_v37  ;;  %v6435_v37 = vsub.f32 %v14081_v51, %v6054_v15 }
 0x3a3   : > { %18808 = vst [vmem:[#allocation95_spill] sm:$0xff] %v14597_v55  ;;  %v14599_v52 = vpop.f32.mrb[113].mxu0  ;;  %10930 = vpow2.f32 %v6692_v63 }
 0x3a4   : > { %18809 = vst [vmem:[#allocation96_spill] sm:$0xff] %v14599_v52  ;;  %v14603_v50 = vpop.f32.mrb[114].mxu0  ;;  %6278 = vmax.xlane.f32.xlu0 %v6277_v19  ;;  %v6696_v15 = vmul.f32 1.442695, %v6435_v37 }
 0x3a5   : > { %18810 = vst [vmem:[#allocation97_spill] sm:$0xff] %v14603_v50  ;;  %v14605_v5 = vpop.f32.mrb[115].mxu0 }
 0x3a6   : > { %18811 = vst [vmem:[#allocation98_spill] sm:$0xff] %v14605_v5  ;;  %6191 = vmax.xlane.f32.xlu1 %v6190_v10  ;;  %v14609_v11 = vpop.f32.mrb[52].mxu1 }
 0x3a7   : > { %18812 = vst [vmem:[#allocation99_spill] sm:$0xff] %v14609_v11  ;;  %v14611_v17 = vpop.f32.mrb[53].mxu1 }
 0x3a8   : > { %18813 = vst [vmem:[#allocation100_spill] sm:$0xff] %v14611_v17  ;;  %v6280_v44 = vmax.f32 %v14609_v11, %v14611_v17  ;;  %6194 = vmax.xlane.f32.xlu0 %v6193_v42  ;;  %v14615_v1 = vpop.f32.mrb[54].mxu1  ;;  %v6436_v42 = vsub.f32 %v14084_v16, %v6057_v18 }
 0x3a9   : > { %18814 = vst [vmem:[#allocation101_spill] sm:$0xff] %v14615_v1  ;;  %v14617_v19 = vpop.f32.mrb[55].mxu1 }
 0x3aa   : > { %18815 = vst [vmem:[#allocation102_spill] sm:$0xff] %v14617_v19  ;;  %v6283_v10 = vmax.f32 %v14615_v1, %v14617_v19  ;;  %v14622_v39 = vpop.f32.mrb[116].mxu0  ;;  %6281 = vmax.xlane.f32.xlu1 %v6280_v44  ;;  %v6694_v19 = vmul.f32 1.442695, %v6434_v32  ;;  %v14641_v16 = vpop.eup %10924  ;;  %v6698_v63 = vmul.f32 1.442695, %v6436_v42 }
 0x3ab   : > { %18816 = vst [vmem:[#allocation103_spill] sm:$0xff] %v14622_v39  ;;  %v14625_v27 = vpop.f32.mrb[117].mxu0  ;;  %18822 = vst [vmem:[#allocation109_spill] sm:$0xff] %v14641_v16  ;;  %v14647_v18 = vpop.eup %10926  ;;  %v6700_v32 = vmul.f32 1.442695, %v6437_v26 }
 0x3ac   : > { %18817 = vst [vmem:[#allocation104_spill] sm:$0xff] %v14625_v27  ;;  %v14630_v17 = vpop.f32.mrb[118].mxu0  ;;  %6284 = vmax.xlane.f32.xlu0 %v6283_v10  ;;  %18824 = vst [vmem:[#allocation111_spill] sm:$0xff] %v14647_v18  ;;  %10932 = vpow2.f32 %v6694_v19  ;;  %v7198_v19 = vadd.f32 %v14647_v18, %v14641_v16 }
 0x3ad   : > { %18818 = vst [vmem:[#allocation105_spill] sm:$0xff] %v14630_v17  ;;  %v14633_v11 = vpop.f32.mrb[119].mxu0  ;;  %10934 = vpow2.f32 %v6696_v15 }
 0x3ae   : > { %18819 = vst [vmem:[#allocation106_spill] sm:$0xff] %v14633_v11  ;;  %6197 = vmax.xlane.f32.xlu1 %v6196_v60  ;;  %v14637_v51 = vpop.f32.mrb[56].mxu1  ;;  %v14651_v60 = vpop.eup %10928  ;;  %10936 = vpow2.f32 %v6698_v63 }
 0x3af   : > { %18820 = vst [vmem:[#allocation107_spill] sm:$0xff] %v14637_v51  ;;  %v14639_v1 = vpop.f32.mrb[57].mxu1  ;;  %18826 = vst [vmem:[#allocation113_spill] sm:$0xff] %v14651_v60  ;;  %v14657_v42 = vpop.eup %10930  ;;  %10938 = vpow2.f32 %v6700_v32 }
 0x3b0   : > { %18821 = vst [vmem:[#allocation108_spill] sm:$0xff] %v14639_v1  ;;  %v6286_v10 = vmax.f32 %v14637_v51, %v14639_v1  ;;  %6200 = vmax.xlane.f32.xlu0 %v6199_v14  ;;  %v14645_v59 = vpop.f32.mrb[58].mxu1  ;;  %18828 = vst [vmem:[#allocation115_spill] sm:$0xff] %v14657_v42  ;;  %v6060_v14 = vpop.xlane.xlu1 %6059  ;;  %v7201_v26 = vadd.f32 %v14657_v42, %v14651_v60 }
 0x3b1   : > { %18823 = vst [vmem:[#allocation110_spill] sm:$0xff] %v14645_v59  ;;  %v14649_v28 = vpop.f32.mrb[59].mxu1 }
 0x3b2   : > { %18825 = vst [vmem:[#allocation112_spill] sm:$0xff] %v14649_v28  ;;  %v6289_v37 = vmax.f32 %v14645_v59, %v14649_v28  ;;  %v14655_v44 = vpop.f32.mrb[120].mxu0  ;;  %6287 = vmax.xlane.f32.xlu1 %v6286_v10  ;;  %v6063_v28 = vpop.xlane.xlu0 %6062  ;;  %v6438_v10 = vsub.f32 %v14111_v62, %v6060_v14 }
 0x3b3   : > { %18827 = vst [vmem:[#allocation114_spill] sm:$0xff] %v14655_v44  ;;  %v14659_v1 = vpop.f32.mrb[121].mxu0  ;;  %v6440_v32 = vsub.f32 %v14117_v48, %v6063_v28  ;;  %v6441_v15 = vsub.f32 %v14121_v58, %v6063_v28 }
 0x3b4   : > { %18829 = vst [vmem:[#allocation116_spill] sm:$0xff] %v14659_v1  ;;  %v14663_v51 = vpop.f32.mrb[122].mxu0  ;;  %6290 = vmax.xlane.f32.xlu0 %v6289_v37  ;;  %v6439_v37 = vsub.f32 %v14114_v30, %v6060_v14  ;;  %v6702_v16 = vmul.f32 1.442695, %v6438_v10  ;;  %v18837_v30 = vmax.f32 %v14597_v55, %v14599_v52  ;;  %v18841_v10 = vmax.f32 %v14603_v50, %v14605_v5 }
 0x3b5   : > { %18830 = vst [vmem:[#allocation117_spill] sm:$0xff] %v14663_v51  ;;  %v14667_v59 = vpop.f32.mrb[123].mxu0 }
 0x3b6   : > { %18831 = vst [vmem:[#allocation118_spill] sm:$0xff] %v14667_v59  ;;  %7199 = vadd.xlane.f32.xlu1 %v7198_v19  ;;  %v14672_v63 = vpop.f32.mrb[60].mxu1  ;;  %v6704_v48 = vmul.f32 1.442695, %v6439_v37  ;;  %10940 = vpow2.f32 %v6702_v16 }
 0x3b7   : > { %18832 = vst [vmem:[#allocation119_spill] sm:$0xff] %v14672_v63  ;;  %v14677_v13 = vpop.f32.mrb[61].mxu1 }
 0x3b8   : > { %18833 = vst [vmem:[#allocation120_spill] sm:$0xff] %v14677_v13  ;;  %v6292_v18 = vmax.f32 %v14672_v63, %v14677_v13  ;;  %7202 = vadd.xlane.f32.xlu0 %v7201_v26  ;;  %v14682_v62 = vpop.f32.mrb[62].mxu1  ;;  %v14696_v26 = vpop.eup %10932  ;;  %v6706_v13 = vmul.f32 1.442695, %v6440_v32  ;;  %10942 = vpow2.f32 %v6704_v48 }
 0x3b9   : > { %18834 = vst [vmem:[#allocation121_spill] sm:$0xff] %v14682_v62  ;;  %v14685_v19 = vpop.f32.mrb[63].mxu1  ;;  %18839 = vst [vmem:[#allocation125_spill] sm:$0xff] %v14696_v26 }
 0x3ba   : > { %18835 = vst [vmem:[#allocation122_spill] sm:$0xff] %v14685_v19  ;;  %v6295_v42 = vmax.f32 %v14682_v62, %v14685_v19  ;;  %v14689_v60 = vpop.f32.mrb[124].mxu0  ;;  %6203 = vmax.xlane.f32.xlu1 %v18837_v30  ;;  %v14705_v19 = vpop.eup %10934  ;;  %v6708_v62 = vmul.f32 1.442695, %v6441_v15  ;;  %10944 = vpow2.f32 %v6706_v13 }
 0x3bb   : > { %18836 = vst [vmem:[#allocation123_spill] sm:$0xff] %v14689_v60  ;;  %v14694_v14 = vpop.f32.mrb[125].mxu0  ;;  %18842 = vst [vmem:[#allocation127_spill] sm:$0xff] %v14705_v19  ;;  %v14709_v37 = vpop.eup %10936  ;;  %v7204_v16 = vadd.f32 %v14705_v19, %v14696_v26 }
 0x3bc   : > { %18838 = vst [vmem:[#allocation124_spill] sm:$0xff] %v14694_v14  ;;  %v14700_v28 = vpop.f32.mrb[126].mxu0  ;;  %6206 = vmax.xlane.f32.xlu0 %v18841_v10  ;;  %18844 = vst [vmem:[#allocation129_spill] sm:$0xff] %v14709_v37  ;;  %v6066_v30 = vpop.xlane.xlu1 %6065  ;;  %10946 = vpow2.f32 %v6708_v62 }
 0x3bd   : > { %18840 = vst [vmem:[#allocation126_spill] sm:$0xff] %v14700_v28  ;;  %v14707_v63 = vpop.f32.mrb[127].mxu0  ;;  %v14715_v52 = vpop.eup %10938  ;;  %v6442_v32 = vsub.f32 %v14140_v38, %v6066_v30 }
 0x3be   : > { %18843 = vst [vmem:[#allocation128_spill] sm:$0xff] %v14707_v63  ;;  %6293 = vmax.xlane.f32.xlu1 %v6292_v18  ;;  %v14713_v58 = vpop.f32.mrb[64].mxu1  ;;  %18846 = vst [vmem:[#allocation131_spill] sm:$0xff] %v14715_v52  ;;  %v6069_v10 = vpop.xlane.xlu0 %6068 }
 0x3bf   : > { %18845 = vst [vmem:[#allocation130_spill] sm:$0xff] %v14713_v58  ;;  %v14717_v5 = vpop.f32.mrb[65].mxu1  ;;  %v6444_v62 = vsub.f32 %v14144_v33, %v6069_v10  ;;  %v18854_v33 = vmax.f32 %v14622_v39, %v14625_v27 }
 0x3c0   : > { %18847 = vst [vmem:[#allocation132_spill] sm:$0xff] %v14717_v5  ;;  %v6298_v15 = vmax.f32 %v14713_v58, %v14717_v5  ;;  %6296 = vmax.xlane.f32.xlu0 %v6295_v42  ;;  %v14721_v50 = vpop.f32.mrb[66].mxu1  ;;  %v14728_v55 = vpop.xlane.xlu1 %6071  ;;  %v7207_v42 = vadd.f32 %v14715_v52, %v14709_v37  ;;  %v6443_v5 = vsub.f32 %v14142_v31, %v6066_v30 }
 0x3c1   : > { %18848 = vst [vmem:[#allocation133_spill] sm:$0xff] %v14721_v50  ;;  %v14725_v18 = vpop.f32.mrb[67].mxu1  ;;  %v18858_v31 = vmax.f32 %v14630_v17, %v14633_v11 }
 0x3c2   : > { %18849 = vst [vmem:[#allocation134_spill] sm:$0xff] %v14725_v18  ;;  %v6301_v13 = vmax.f32 %v14721_v50, %v14725_v18  ;;  %v14732_v48 = vpop.f32.mrb[128].mxu0  ;;  %7205 = vadd.xlane.f32.xlu1 %v7204_v16  ;;  %v6075_v26 = vpop.xlane.xlu0 %6074  ;;  %v6445_v18 = vsub.f32 %v14150_v34, %v6069_v10  ;;  %v6710_v16 = vmul.f32 1.442695, %v6442_v32  ;;  %v6712_v38 = vmul.f32 1.442695, %v6443_v5 }
 0x3c3   : > { %18850 = vst [vmem:[#allocation135_spill] sm:$0xff] %v14732_v48  ;;  %v14737_v58 = vpop.f32.mrb[129].mxu0  ;;  %v6714_v34 = vmul.f32 1.442695, %v6444_v62 }
 0x3c4   : > { %18851 = vst [vmem:[#allocation136_spill] sm:$0xff] %v14737_v58  ;;  %v14742_v19 = vpop.f32.mrb[130].mxu0  ;;  %7208 = vadd.xlane.f32.xlu0 %v7207_v42  ;;  %v14747_v2 = vpop.xlane.xlu1 %6077  ;;  %v6716_v27 = vmul.f32 1.442695, %v6445_v18  ;;  %10948 = vpow2.f32 %v6710_v16  ;;  %v6447_v18 = vsub.f32 %v14170_v23, %v14728_v55  ;;  %v18877_v23 = vmax.f32 %v14663_v51, %v14667_v59  ;;  %v10894_v51 = vld [vmem:[%s14841_s13 + $0x4] ss:$8 sps:$4 sm:$0xff]  }
 0x3c5   : > { %18852 = vst [vmem:[#allocation137_spill] sm:$0xff] %v14742_v19  ;;  %v14745_v50 = vpop.f32.mrb[131].mxu0  ;;  %v14758_v42 = vpop.eup %10940  ;;  %10950 = vpow2.f32 %v6712_v38  ;;  %v6446_v38 = vsub.f32 %v14167_v0, %v14728_v55  ;;  %8114 = vmatprep.subr.bf16.mxu1 %v10894_v51 }
 0x3c6   : > { %18853 = vst [vmem:[#allocation138_spill] sm:$0xff] %v14745_v50  ;;  %6209 = vmax.xlane.f32.xlu1 %v18854_v33  ;;  %v14754_v30 = vpop.f32.mrb[68].mxu1  ;;  %18857 = vst [vmem:[#allocation141_spill] sm:$0xff] %v14758_v42  ;;  %v14760_v10 = vpop.xlane.xlu0 %6080  ;;  %10952 = vpow2.f32 %v6714_v34 }
 0x3c7   : > { %18855 = vst [vmem:[#allocation139_spill] sm:$0xff] %v14754_v30  ;;  %v14756_v37 = vpop.f32.mrb[69].mxu1  ;;  %v14769_v33 = vpop.eup %10942  ;;  %10954 = vpow2.f32 %v6716_v27  ;;  %v6448_v27 = vsub.f32 %v14172_v61, %v6075_v26  ;;  %v18873_v61 = vmax.f32 %v14655_v44, %v14659_v1 }
 0x3c8   : > { %18856 = vst [vmem:[#allocation140_spill] sm:$0xff] %v14756_v37  ;;  %v6304_v32 = vmax.f32 %v14754_v30, %v14756_v37  ;;  %6212 = vmax.xlane.f32.xlu0 %v18858_v31  ;;  %v14767_v52 = vpop.f32.mrb[70].mxu1  ;;  %18860 = vst [vmem:[#allocation143_spill] sm:$0xff] %v14769_v33  ;;  %v14773_v39 = vpop.eup %10944  ;;  %v7210_v16 = vadd.f32 %v14769_v33, %v14758_v42  ;;  %v6449_v33 = vsub.f32 %v14176_v21, %v6075_v26 }
 0x3c9   : > { %18859 = vst [vmem:[#allocation142_spill] sm:$0xff] %v14767_v52  ;;  %v14771_v5 = vpop.f32.mrb[71].mxu1  ;;  %18862 = vst [vmem:[#allocation145_spill] sm:$0xff] %v14773_v39  ;;  %v14779_v37 = vpop.xlane.xlu1 %6107  ;;  %v6720_v26 = vmul.f32 1.442695, %v6447_v18 }
 0x3ca   : > { %18861 = vst [vmem:[#allocation144_spill] sm:$0xff] %v14771_v5  ;;  %v6307_v62 = vmax.f32 %v14767_v52, %v14771_v5  ;;  %v14777_v49 = vpop.f32.mrb[132].mxu0  ;;  %6299 = vmax.xlane.f32.xlu1 %v6298_v15  ;;  %v14781_v30 = vpop.eup %10946  ;;  %v6724_v43 = vmul.f32 1.442695, %v6449_v33 }
 0x3cb   : > { %18863 = vst [vmem:[#allocation146_spill] sm:$0xff] %v14777_v49  ;;  %18864 = vst [vmem:[#allocation147_spill] sm:$0xff] %v14781_v30  ;;  %v14783_v31 = vpop.f32.mrb[133].mxu0  ;;  %v14791_v5 = vpop.xlane.xlu0 %6110 }
 0x3cc   : > { %18865 = vst [vmem:[#allocation148_spill] sm:$0xff] %v14783_v31  ;;  %v14787_v11 = vpop.f32.mrb[134].mxu0  ;;  %6302 = vmax.xlane.f32.xlu0 %v6301_v13  ;;  %v7213_v13 = vadd.f32 %v14781_v30, %v14773_v39  ;;  %v6718_v39 = vmul.f32 1.442695, %v6446_v38  ;;  %v6722_v30 = vmul.f32 1.442695, %v6448_v27 }
 0x3cd   : > { %18866 = vst [vmem:[#allocation149_spill] sm:$0xff] %v14787_v11  ;;  %v14793_v15 = vpop.f32.mrb[135].mxu0  ;;  %v10892_v27 = vld [vmem:[%s14841_s13] ss:$8 sps:$4 sm:$0xff]  }
 0x3ce   : > { %18867 = vst [vmem:[#allocation150_spill] sm:$0xff] %v14793_v15  ;;  %7211 = vadd.xlane.f32.xlu1 %v7210_v16  ;;  %v14799_v52 = vpop.f32.mrb[72].mxu1  ;;  %v14813_v16 = vpop.xlane.xlu1 %6083  ;;  %10956 = vpow2.f32 %v6718_v39  ;;  %8115 = vmatpush1.bf16.xpose.msra.mxu1 %v10892_v27  ;;  %v18890_v27 = vmax.f32 %v14689_v60, %v14694_v14  ;;  %v6473_v60 = vsub.f32 %v14277_v24, %v14791_v5 }
 0x3cf   : > { %18868 = vst [vmem:[#allocation151_spill] sm:$0xff] %v14799_v52  ;;  %v14805_v42 = vpop.f32.mrb[73].mxu1  ;;  %v14824_v21 = vpop.xlane.xlu0 %6086  ;;  %10958 = vpow2.f32 %v6720_v26  ;;  %v6450_v26 = vsub.f32 %v14199_v4, %v14747_v2  ;;  %v6452_v4 = vsub.f32 %v14207_v8, %v14760_v10  ;;  %v6472_v8 = vsub.f32 %v14271_v25, %v14791_v5 }
 0x3d0   : > { %18869 = vst [vmem:[#allocation152_spill] sm:$0xff] %v14805_v42  ;;  %7214 = vadd.xlane.f32.xlu0 %v7213_v13  ;;  %v14811_v34 = vpop.f32.mrb[74].mxu1  ;;  %v14828_v0 = vpop.eup %10948  ;;  %10960 = vpow2.f32 %v6722_v30 }
 0x3d1   : > { %18870 = vst [vmem:[#allocation153_spill] sm:$0xff] %v14811_v34  ;;  %v14815_v17 = vpop.f32.mrb[75].mxu1  ;;  %18875 = vst [vmem:[#allocation157_spill] sm:$0xff] %v14828_v0  ;;  %v14843_v18 = vpop.eup %10950  ;;  %10962 = vpow2.f32 %v6724_v43  ;;  %v6451_v43 = vsub.f32 %v14201_v41, %v14747_v2  ;;  %v6726_v41 = vmul.f32 1.442695, %v6450_v26  ;;  %v6470_v2 = vsub.f32 %v14267_v57, %v14779_v37 }
 0x3d2   : > { %18871 = vst [vmem:[#allocation154_spill] sm:$0xff] %v14815_v17  ;;  %v14819_v55 = vpop.f32.mrb[136].mxu0  ;;  %6215 = vmax.xlane.f32.xlu1 %v18873_v61  ;;  %18878 = vst [vmem:[#allocation159_spill] sm:$0xff] %v14843_v18  ;;  %v14848_v61 = vpop.eup %10952  ;;  %v6730_v57 = vmul.f32 1.442695, %v6452_v4 }
 0x3d3   : > { %18872 = vst [vmem:[#allocation155_spill] sm:$0xff] %v14819_v55  ;;  %v14826_v13 = vpop.f32.mrb[137].mxu0  ;;  %18880 = vst [vmem:[#allocation161_spill] sm:$0xff] %v14848_v61  ;;  %v14857_v1 = vpop.eup %10954  ;;  %10964 = vpow2.f32 %v6726_v41  ;;  %v6766_v14 = vmul.f32 1.442695, %v6470_v2 }
 0x3d4   : > { %18874 = vst [vmem:[#allocation156_spill] sm:$0xff] %v14826_v13  ;;  %v14832_v40 = vpop.f32.mrb[138].mxu0  ;;  %6218 = vmax.xlane.f32.xlu0 %v18877_v23  ;;  %v14854_v59 = vpop.xlane.xlu1 %6113  ;;  %18882 = vst [vmem:[#allocation163_spill] sm:$0xff] %v14857_v1  ;;  %v10897_v13 = vld [vmem:[%s14841_s13 + $0x14] ss:$8 sps:$4 sm:$0xff]  }
 0x3d5   : > { %18876 = vst [vmem:[#allocation158_spill] sm:$0xff] %v14832_v40  ;;  %v14845_v33 = vpop.f32.mrb[139].mxu0  ;;  %8116 = vmatprep.subr.bf16.mxu1 %v10897_v13  ;;  %v6770_v41 = vmul.f32 1.442695, %v6472_v8 }
 0x3d6   : > { %18879 = vst [vmem:[#allocation160_spill] sm:$0xff] %v14845_v33  ;;  %6305 = vmax.xlane.f32.xlu1 %v6304_v32  ;;  %v14852_v23 = vpop.f32.mrb[76].mxu1  ;;  %v14866_v38 = vpop.xlane.xlu0 %6116  ;;  %v7216_v32 = vadd.f32 %v14843_v18, %v14828_v0  ;;  %v7219_v0 = vadd.f32 %v14857_v1, %v14848_v61  ;;  %v6453_v61 = vsub.f32 %v14212_v45, %v14760_v10  ;;  %v10895_v1 = vld [vmem:[%s14841_s13 + $0x10] ss:$8 sps:$4 sm:$0xff]   ;;  %v6728_v18 = vmul.f32 1.442695, %v6451_v43 }
 0x3d7   : > { %18881 = vst [vmem:[#allocation162_spill] sm:$0xff] %v14852_v23  ;;  %v14859_v44 = vpop.f32.mrb[77].mxu1  ;;  %v6471_v45 = vsub.f32 %v14269_v46, %v14779_v37  ;;  %8117 = vmatpush1.bf16.xpose.msra.mxu1 %v10895_v1 }
 0x3d8   : > { %18883 = vst [vmem:[#allocation164_spill] sm:$0xff] %v14859_v44  ;;  %6308 = vmax.xlane.f32.xlu0 %v6307_v62  ;;  %v14864_v39 = vpop.f32.mrb[78].mxu1  ;;  %v14878_v55 = vpop.xlane.xlu1 %6089  ;;  %v6732_v37 = vmul.f32 1.442695, %v6453_v61  ;;  %10966 = vpow2.f32 %v6728_v18  ;;  %v6772_v18 = vmul.f32 1.442695, %v6473_v60 }
 0x3d9   : > { %18884 = vst [vmem:[#allocation165_spill] sm:$0xff] %v14864_v39  ;;  %v14870_v33 = vpop.f32.mrb[79].mxu1  ;;  %v14914_v26 = vpop.eup %10956  ;;  %v6768_v61 = vmul.f32 1.442695, %v6471_v45  ;;  %10968 = vpow2.f32 %v6730_v57 }
 0x3da   : > { %18885 = vst [vmem:[#allocation166_spill] sm:$0xff] %v14870_v33  ;;  %v14876_v62 = vpop.f32.mrb[140].mxu0  ;;  %7217 = vadd.xlane.f32.xlu1 %v7216_v32  ;;  %v14892_v32 = vpop.xlane.xlu0 %6092  ;;  %18893 = vst [vmem:[#allocation173_spill] sm:$0xff] %v14914_v26  ;;  %10970 = vpow2.f32 %v6732_v37 }
 0x3db   : > { %18886 = vst [vmem:[#allocation167_spill] sm:$0xff] %v14876_v62  ;;  %v14884_v51 = vpop.f32.mrb[141].mxu0  ;;  %v14925_v46 = vpop.eup %10958  ;;  %10972 = vpow2.f32 %v6766_v14 }
 0x3dc   : > { %18887 = vst [vmem:[#allocation168_spill] sm:$0xff] %v14884_v51  ;;  %v14890_v30 = vpop.f32.mrb[142].mxu0  ;;  %7220 = vadd.xlane.f32.xlu0 %v7219_v0  ;;  %18896 = vst [vmem:[#allocation175_spill] sm:$0xff] %v14925_v46  ;;  %v14933_v25 = vpop.eup %10960  ;;  %10974 = vpow2.f32 %v6768_v61  ;;  %v6454_v61 = vsub.f32 %v14231_v20, %v14813_v16  ;;  %v6456_v20 = vsub.f32 %v14238_v3, %v14824_v21 }
 0x3dd   : > { %18888 = vst [vmem:[#allocation169_spill] sm:$0xff] %v14890_v30  ;;  %v14896_v13 = vpop.f32.mrb[143].mxu0  ;;  %18898 = vst [vmem:[#allocation177_spill] sm:$0xff] %v14933_v25  ;;  %10976 = vpow2.f32 %v6770_v41  ;;  %v6455_v41 = vsub.f32 %v14235_v36, %v14813_v16  ;;  %v6457_v36 = vsub.f32 %v14242_v6, %v14824_v21  ;;  %v6475_v21 = vsub.f32 %v14297_v56, %v14854_v59 }
 0x3de   : > { %18889 = vst [vmem:[#allocation170_spill] sm:$0xff] %v14896_v13  ;;  %6221 = vmax.xlane.f32.xlu1 %v18890_v27  ;;  %v14906_v0 = vpop.f32.mrb[80].mxu1  ;;  %v14910_v10 = vpop.xlane.xlu1 %6119  ;;  %v18894_v27 = vmax.f32 %v14700_v28, %v14707_v63  ;;  %v18904_v28 = vmax.f32 %v14811_v34, %v14815_v17  ;;  %10978 = vpow2.f32 %v6772_v18  ;;  %v6734_v3 = vmul.f32 1.442695, %v6454_v61 }
 0x3df   : > { %18891 = vst [vmem:[#allocation171_spill] sm:$0xff] %v14906_v0  ;;  %v14912_v51 = vpop.f32.mrb[81].mxu1  ;;  %v14940_v63 = vpop.eup %10962  ;;  %v6474_v34 = vsub.f32 %v14295_v53, %v14854_v59  ;;  %v6736_v6 = vmul.f32 1.442695, %v6455_v41  ;;  %v6738_v61 = vmul.f32 1.442695, %v6456_v20  ;;  %v6476_v53 = vsub.f32 %v14303_v35, %v14866_v38 }
 0x3e0   : > { %18892 = vst [vmem:[#allocation172_spill] sm:$0xff] %v14912_v51  ;;  %6224 = vmax.xlane.f32.xlu0 %v18894_v27  ;;  %v14923_v43 = vpop.f32.mrb[82].mxu1  ;;  %v14929_v13 = vpop.xlane.xlu0 %6122  ;;  %v18900_v27 = vmax.f32 %v14799_v52, %v14805_v42  ;;  %18901 = vst [vmem:[#allocation179_spill] sm:$0xff] %v14940_v63  ;;  %v7225_v57 = vadd.f32 %v14940_v63, %v14933_v25  ;;  %v18911_v25 = vmax.f32 %v14732_v48, %v14737_v58 }
 0x3e1   : > { %18895 = vst [vmem:[#allocation174_spill] sm:$0xff] %v14923_v43  ;;  %v14931_v4 = vpop.f32.mrb[83].mxu1  ;;  %v14994_v63 = vpop.eup %10964  ;;  %v6740_v56 = vmul.f32 1.442695, %v6457_v36  ;;  %v6477_v59 = vsub.f32 %v14307_v47, %v14866_v38  ;;  %10980 = vpow2.f32 %v6734_v3  ;;  %v6774_v20 = vmul.f32 1.442695, %v6474_v34 }
 0x3e2   : > { %18897 = vst [vmem:[#allocation176_spill] sm:$0xff] %v14931_v4  ;;  %v14935_v30 = vpop.f32.mrb[144].mxu0  ;;  %6311 = vmax.xlane.f32.xlu1 %v18900_v27  ;;  %v14944_v5 = vpop.xlane.xlu1 %6095  ;;  %v7222_v27 = vadd.f32 %v14925_v46, %v14914_v26  ;;  %18913 = vst [vmem:[#allocation189_spill] sm:$0xff] %v14994_v63  ;;  %10982 = vpow2.f32 %v6736_v6  ;;  %v6778_v47 = vmul.f32 1.442695, %v6476_v53  ;;  %v6458_v53 = vsub.f32 %v14249_v9, %v14878_v55 }
 0x3e3   : > { %18899 = vst [vmem:[#allocation178_spill] sm:$0xff] %v14935_v30  ;;  %v14946_v1 = vpop.f32.mrb[145].mxu0  ;;  %v15003_v58 = vpop.eup %10966  ;;  %10984 = vpow2.f32 %v6738_v61  ;;  %v18931_v9 = vmax.f32 %v14777_v49, %v14783_v31 }
 0x3e4   : > { %18902 = vst [vmem:[#allocation180_spill] sm:$0xff] %v14946_v1  ;;  %v14948_v2 = vpop.f32.mrb[146].mxu0  ;;  %6314 = vmax.xlane.f32.xlu0 %v18904_v28  ;;  %v14957_v24 = vpop.xlane.xlu0 %6098  ;;  %18916 = vst [vmem:[#allocation191_spill] sm:$0xff] %v15003_v58  ;;  %v7228_v41 = vadd.f32 %v15003_v58, %v14994_v63  ;;  %v6776_v63 = vmul.f32 1.442695, %v6475_v21  ;;  %10986 = vpow2.f32 %v6740_v56  ;;  %v6459_v56 = vsub.f32 %v14251_v29, %v14878_v55 }
 0x3e5   : > { %18903 = vst [vmem:[#allocation181_spill] sm:$0xff] %v14948_v2  ;;  %v14959_v42 = vpop.f32.mrb[147].mxu0  ;;  %v15013_v17 = vpop.eup %10968  ;;  %10988 = vpow2.f32 %v6774_v20  ;;  %v6478_v29 = vsub.f32 %v14322_v12, %v14910_v10  ;;  %v18935_v21 = vmax.f32 %v14787_v11, %v14793_v15  ;;  %v6479_v12 = vsub.f32 %v14326_v7, %v14910_v10  ;;  %v18941_v7 = vld [vmem:[#allocation21_spill] sm:$0xff] }
 0x3e6   : > { %18905 = vst [vmem:[#allocation182_spill] sm:$0xff] %v14959_v42  ;;  %7223 = vadd.xlane.f32.xlu1 %v7222_v27  ;;  %v14961_v8 = vpop.f32.mrb[84].mxu1  ;;  %18918 = vst [vmem:[#allocation193_spill] sm:$0xff] %v15013_v17  ;;  %10990 = vpow2.f32 %v6776_v63  ;;  %v6480_v10 = vsub.f32 %v18941_v7, %v14929_v13  ;;  %v18946_v7 = vld [vmem:[#allocation41_spill] sm:$0xff] }
 0x3e7   : > { %18906 = vst [vmem:[#allocation183_spill] sm:$0xff] %v14961_v8  ;;  %v14967_v37 = vpop.xlane.xlu1 %6125  ;;  %v14969_v60 = vpop.f32.mrb[85].mxu1  ;;  %10992 = vpow2.f32 %v6778_v47  ;;  %v6742_v47 = vmul.f32 1.442695, %v6458_v53  ;;  %v6462_v31 = vsub.f32 %v18946_v7, %v14944_v5 }
 0x3e8   : > { %18907 = vst [vmem:[#allocation184_spill] sm:$0xff] %v14969_v60  ;;  %7226 = vadd.xlane.f32.xlu0 %v7225_v57  ;;  %v14971_v45 = vpop.f32.mrb[86].mxu1 }
 0x3e9   : > { %18908 = vst [vmem:[#allocation185_spill] sm:$0xff] %v14971_v45  ;;  %v14975_v27 = vpop.xlane.xlu0 %6128  ;;  %v14977_v26 = vpop.f32.mrb[87].mxu1 }
 0x3ea   : > { %18909 = vst [vmem:[#allocation186_spill] sm:$0xff] %v14977_v26  ;;  %v14981_v28 = vpop.f32.mrb[148].mxu0  ;;  %6227 = vmax.xlane.f32.xlu1 %v18911_v25  ;;  %v18915_v25 = vmax.f32 %v14742_v19, %v14745_v50  ;;  %v15020_v50 = vpop.eup %10970 }
 0x3eb   : > { %18910 = vst [vmem:[#allocation187_spill] sm:$0xff] %v14981_v28  ;;  %v14990_v57 = vpop.xlane.xlu1 %6101  ;;  %v14992_v14 = vpop.f32.mrb[149].mxu0  ;;  %18920 = vst [vmem:[#allocation194_spill] sm:$0xff] %v15020_v50 }
 0x3ec   : > { %18912 = vst [vmem:[#allocation188_spill] sm:$0xff] %v14992_v14  ;;  %v14998_v46 = vpop.f32.mrb[150].mxu0  ;;  %6230 = vmax.xlane.f32.xlu0 %v18915_v25  ;;  %v18919_v25 = vmax.f32 %v14852_v23, %v14859_v44  ;;  %v15028_v52 = vpop.eup %10972 }
 0x3ed   : > { %18914 = vst [vmem:[#allocation190_spill] sm:$0xff] %v14998_v46  ;;  %v15009_v18 = vpop.xlane.xlu0 %6104  ;;  %v15011_v48 = vpop.f32.mrb[151].mxu0  ;;  %18921 = vst [vmem:[#allocation195_spill] sm:$0xff] %v15028_v52 }
 0x3ee   : > { %18917 = vst [vmem:[#allocation192_spill] sm:$0xff] %v15011_v48  ;;  %6317 = vmax.xlane.f32.xlu1 %v18919_v25  ;;  %v18922_v25 = vmax.f32 %v14864_v39, %v14870_v33  ;;  %v15037_v44 = vpop.eup %10974 }
 0x3ef   : > { %v15026_v19 = vpop.xlane.xlu1 %6131  ;;  %18923 = vst [vmem:[#allocation196_spill] sm:$0xff] %v15037_v44  ;;  %v15043_v23 = vpop.eup %10976  ;;  %v7258_v3 = vadd.f32 %v15037_v44, %v15028_v52  ;;  %v18939_v44 = vmax.f32 %v14906_v0, %v14912_v51 }
 0x3f0   : > { %6320 = vmax.xlane.f32.xlu0 %v18922_v25  ;;  %18924 = vst [vmem:[#allocation197_spill] sm:$0xff] %v15043_v23  ;;  %v7231_v25 = vadd.f32 %v15020_v50, %v15013_v17  ;;  %v15049_v33 = vpop.eup %10978 }
 0x3f1   : > { %v15041_v16 = vpop.xlane.xlu0 %6134  ;;  %18926 = vst [vmem:[#allocation199_spill] sm:$0xff] %v15049_v33  ;;  %v7261_v61 = vadd.f32 %v15049_v33, %v15043_v23 }
 0x3f2   : > { %v15045_v35 = vpop.f32.mrb[152].mxu0  ;;  %7229 = vadd.xlane.f32.xlu1 %v7228_v41  ;;  %v6780_v41 = vmul.f32 1.442695, %v6477_v59  ;;  %v6460_v59 = vsub.f32 %v14255_v54, %v14892_v32  ;;  %v15092_v54 = vpop.eup %10980 }
 0x3f3   : > { %18925 = vst [vmem:[#allocation198_spill] sm:$0xff] %v15045_v35  ;;  %v15051_v36 = vpop.f32.mrb[153].mxu0  ;;  %v15053_v58 = vpop.xlane.xlu1 %6143  ;;  %18933 = vst [vmem:[#allocation205_spill] sm:$0xff] %v15092_v54 }
 0x3f4   : > { %18927 = vst [vmem:[#allocation200_spill] sm:$0xff] %v15051_v36  ;;  %v15057_v34 = vpop.f32.mrb[154].mxu0  ;;  %7232 = vadd.xlane.f32.xlu0 %v7231_v25  ;;  %10994 = vpow2.f32 %v6780_v41  ;;  %v15101_v53 = vpop.eup %10982 }
 0x3f5   : > { %18928 = vst [vmem:[#allocation201_spill] sm:$0xff] %v15057_v34  ;;  %v15061_v17 = vpop.f32.mrb[155].mxu0  ;;  %v15063_v6 = vpop.xlane.xlu0 %6146  ;;  %18936 = vst [vmem:[#allocation207_spill] sm:$0xff] %v15101_v53  ;;  %10996 = vpow2.f32 %v6742_v47 }
 0x3f6   : > { %18929 = vst [vmem:[#allocation202_spill] sm:$0xff] %v15061_v17  ;;  %7259 = vadd.xlane.f32.xlu1 %v7258_v3  ;;  %v6461_v3 = vsub.f32 %v14260_v22, %v14892_v32  ;;  %v18944_v22 = vmax.f32 %v14923_v43, %v14931_v4 }
 0x3f7   : > { %v15071_v25 = vpop.xlane.xlu1 %6137 }
 0x3f8   : > { %7262 = vadd.xlane.f32.xlu0 %v7261_v61  ;;  %v6744_v61 = vmul.f32 1.442695, %v6459_v56  ;;  %v15109_v56 = vpop.eup %10984  ;;  %v6748_v23 = vmul.f32 1.442695, %v6461_v3  ;;  %v18943_v3 = vld [vmem:[#allocation53_spill] sm:$0xff] }
 0x3f9   : > { %v15077_v20 = vpop.xlane.xlu0 %6140  ;;  %18938 = vst [vmem:[#allocation209_spill] sm:$0xff] %v15109_v56  ;;  %v6481_v11 = vsub.f32 %v18943_v3, %v14929_v13  ;;  %v18948_v13 = vld [vmem:[#allocation13_spill] sm:$0xff] }
 0x3fa   : > { %v15081_v63 = vpop.f32.mrb[156].mxu0  ;;  %6233 = vmax.xlane.f32.xlu1 %v18931_v9  ;;  %v6746_v9 = vmul.f32 1.442695, %v6460_v59  ;;  %v6782_v59 = vmul.f32 1.442695, %v6478_v29  ;;  %10998 = vpow2.f32 %v6744_v61  ;;  %v6463_v3 = vsub.f32 %v18948_v13, %v14944_v5  ;;  %v18953_v5 = vld [vmem:[#allocation54_spill] sm:$0xff] }
 0x3fb   : > { %18930 = vst [vmem:[#allocation203_spill] sm:$0xff] %v15081_v63  ;;  %v15088_v55 = vpop.f32.mrb[157].mxu0  ;;  %v15090_v41 = vpop.xlane.xlu1 %6149  ;;  %v6784_v29 = vmul.f32 1.442695, %v6479_v12  ;;  %v18951_v12 = vld [vmem:[#allocation12_spill] sm:$0xff]  ;;  %v6465_v13 = vsub.f32 %v18953_v5, %v14957_v24 }
 0x3fc   : > { %18932 = vst [vmem:[#allocation204_spill] sm:$0xff] %v15088_v55  ;;  %v15096_v32 = vpop.f32.mrb[158].mxu0  ;;  %6236 = vmax.xlane.f32.xlu0 %v18935_v21  ;;  %v15116_v21 = vpop.eup %10986  ;;  %11000 = vpow2.f32 %v6746_v9  ;;  %v6786_v9 = vmul.f32 1.442695, %v6480_v10  ;;  %v6464_v7 = vsub.f32 %v18951_v12, %v14957_v24  ;;  %v6750_v10 = vmul.f32 1.442695, %v6462_v31 }
 0x3fd   : > { %18934 = vst [vmem:[#allocation206_spill] sm:$0xff] %v15096_v32  ;;  %v15105_v38 = vpop.f32.mrb[159].mxu0  ;;  %v15107_v52 = vpop.xlane.xlu0 %6152  ;;  %18940 = vst [vmem:[#allocation210_spill] sm:$0xff] %v15116_v21  ;;  %11002 = vpow2.f32 %v6748_v23  ;;  %v6788_v23 = vmul.f32 1.442695, %v6481_v11  ;;  %v18955_v12 = vld [vmem:[#allocation32_spill] sm:$0xff] }
 0x3fe   : > { %18937 = vst [vmem:[#allocation208_spill] sm:$0xff] %v15105_v38  ;;  %6323 = vmax.xlane.f32.xlu1 %v18939_v44  ;;  %v15122_v15 = vpop.eup %10988  ;;  %v7234_v44 = vadd.f32 %v15101_v53, %v15092_v54  ;;  %11004 = vpow2.f32 %v6782_v59  ;;  %v6752_v51 = vmul.f32 1.442695, %v6463_v3  ;;  %v18957_v24 = vld [vmem:[#allocation31_spill] sm:$0xff]  ;;  %v6754_v31 = vmul.f32 1.442695, %v6464_v7 }
 0x3ff   : > { %v15120_v33 = vpop.xlane.xlu1 %6239  ;;  %18942 = vst [vmem:[#allocation21_spill] sm:$0xff] %v15122_v15  ;;  %v15131_v47 = vpop.eup %10990  ;;  %11006 = vpow2.f32 %v6784_v29  ;;  %v6483_v5 = vsub.f32 %v18957_v24, %v14967_v37  ;;  %v18958_v29 = vld [vmem:[#allocation65_spill] sm:$0xff]  ;;  %v18959_v3 = vld [vmem:[#allocation36_spill] sm:$0xff]  ;;  %v18961_v24 = vld [vmem:[#allocation38_spill] sm:$0xff] }
 0x400   : > { %6326 = vmax.xlane.f32.xlu0 %v18944_v22  ;;  %18945 = vst [vmem:[#allocation53_spill] sm:$0xff] %v15131_v47  ;;  %v15137_v61 = vpop.eup %10992  ;;  %v7237_v22 = vadd.f32 %v15116_v21, %v15109_v56  ;;  %v7264_v59 = vadd.f32 %v15131_v47, %v15122_v15  ;;  %v6482_v56 = vsub.f32 %v18955_v12, %v14967_v37  ;;  %11008 = vpow2.f32 %v6786_v9 }
 0x401   : > { %v15135_v49 = vpop.xlane.xlu0 %6242  ;;  %18947 = vst [vmem:[#allocation41_spill] sm:$0xff] %v15137_v61  ;;  %v15145_v54 = vpop.eup %10994  ;;  %v6484_v12 = vsub.f32 %v18958_v29, %v14975_v27  ;;  %11010 = vpow2.f32 %v6788_v23  ;;  %v6756_v47 = vmul.f32 1.442695, %v6465_v13  ;;  %v6485_v0 = vsub.f32 %v18959_v3, %v14975_v27  ;;  %v18963_v23 = vld [vmem:[#allocation11_spill] sm:$0xff] }
 0x402   : > { %v15141_v50 = vpop.f32.mrb[160].mxu0  ;;  %7235 = vadd.xlane.f32.xlu1 %v7234_v44  ;;  %18950 = vst [vmem:[#allocation211_spill] sm:$0xff] %v15145_v54  ;;  %v15179_v37 = vpop.eup %10996  ;;  %11012 = vpow2.f32 %v6750_v10  ;;  %v6466_v44 = vsub.f32 %v18961_v24, %v14990_v57  ;;  %v6792_v29 = vmul.f32 1.442695, %v6483_v5  ;;  %v6467_v13 = vsub.f32 %v18963_v23, %v14990_v57  ;;  %v18965_v27 = vld [vmem:[#allocation155_spill] sm:$0xff]  ;;  %v18969_v24 = vld [vmem:[#allocation10_spill] sm:$0xff] }
 0x403   : > { %18949 = vst [vmem:[#allocation13_spill] sm:$0xff] %v15141_v50  ;;  %v15149_v53 = vpop.f32.mrb[161].mxu0  ;;  %v15151_v4 = vpop.xlane.xlu1 %6155  ;;  %18960 = vst [vmem:[#allocation31_spill] sm:$0xff] %v15179_v37  ;;  %11014 = vpow2.f32 %v6752_v51  ;;  %v6796_v57 = vmul.f32 1.442695, %v6485_v0  ;;  %v18978_v23 = vld [vmem:[#allocation51_spill] sm:$0xff] }
 0x404   : > { %18952 = vst [vmem:[#allocation12_spill] sm:$0xff] %v15149_v53  ;;  %v15157_v43 = vpop.f32.mrb[162].mxu0  ;;  %7238 = vadd.xlane.f32.xlu0 %v7237_v22  ;;  %v7267_v22 = vadd.f32 %v15145_v54, %v15137_v61  ;;  %v15185_v7 = vpop.eup %10998  ;;  %11016 = vpow2.f32 %v6754_v31  ;;  %v6468_v54 = vsub.f32 %v18969_v24, %v15009_v18  ;;  %v6758_v24 = vmul.f32 1.442695, %v6466_v44 }
 0x405   : > { %18954 = vst [vmem:[#allocation54_spill] sm:$0xff] %v15157_v43  ;;  %v15163_v21 = vpop.f32.mrb[163].mxu0  ;;  %v15165_v11 = vpop.xlane.xlu0 %6158  ;;  %18962 = vst [vmem:[#allocation65_spill] sm:$0xff] %v15185_v7  ;;  %11018 = vpow2.f32 %v6756_v47  ;;  %v6760_v0 = vmul.f32 1.442695, %v6467_v13 }
 0x406   : > { %18956 = vst [vmem:[#allocation32_spill] sm:$0xff] %v15163_v21  ;;  %7265 = vadd.xlane.f32.xlu1 %v7264_v59  ;;  %v6790_v59 = vmul.f32 1.442695, %v6482_v56  ;;  %v15194_v10 = vpop.eup %11000  ;;  %v6794_v56 = vmul.f32 1.442695, %v6484_v12 }
 0x407   : > { %v15175_v15 = vpop.xlane.xlu1 %6245  ;;  %18968 = vst [vmem:[#allocation38_spill] sm:$0xff] %v15194_v10  ;;  %v15202_v5 = vpop.eup %11002 }
 0x408   : > { %7268 = vadd.xlane.f32.xlu0 %v7267_v22  ;;  %v18966_v22 = vld [vmem:[#allocation156_spill] sm:$0xff]  ;;  %18971 = vst [vmem:[#allocation10_spill] sm:$0xff] %v15202_v5  ;;  %v15211_v12 = vpop.eup %11004  ;;  %11020 = vpow2.f32 %v6790_v59 }
 0x409   : > { %v15183_v9 = vpop.xlane.xlu0 %6248  ;;  %v18967_v3 = vmax.f32 %v18965_v27, %v18966_v22  ;;  %18975 = vst [vmem:[#allocation213_spill] sm:$0xff] %v15211_v12  ;;  %v18976_v27 = vld [vmem:[#allocation22_spill] sm:$0xff]  ;;  %11022 = vpow2.f32 %v6792_v29  ;;  %v15226_v44 = vpop.eup %11006  ;;  %v18981_v59 = vld [vmem:[#allocation52_spill] sm:$0xff]  ;;  %v18982_v29 = vld [vmem:[#allocation5_spill] sm:$0xff] }
 0x40a   : > { %v15189_v61 = vpop.f32.mrb[164].mxu0  ;;  %v6469_v21 = vsub.f32 %v18976_v27, %v15009_v18  ;;  %18980 = vst [vmem:[#allocation51_spill] sm:$0xff] %v15226_v44  ;;  %11024 = vpow2.f32 %v6794_v56  ;;  %v6762_v18 = vmul.f32 1.442695, %v6468_v54  ;;  %v6487_v27 = vsub.f32 %v18981_v59, %v15026_v19  ;;  %v18985_v56 = vld [vmem:[#allocation16_spill] sm:$0xff] }
 0x40b   : > { %18964 = vst [vmem:[#allocation36_spill] sm:$0xff] %v15189_v61  ;;  %6335 = vmax.xlane.f32.xlu1 %v18967_v3  ;;  %v15198_v39 = vpop.f32.mrb[165].mxu0  ;;  %v15200_v51 = vpop.xlane.xlu1 %6161  ;;  %v18973_v3 = vld [vmem:[#allocation160_spill] sm:$0xff]  ;;  %11026 = vpow2.f32 %v6796_v57  ;;  %v6488_v13 = vsub.f32 %v18982_v29, %v15041_v16 }
 0x40c   : > { %18970 = vst [vmem:[#allocation11_spill] sm:$0xff] %v15198_v39  ;;  %v15206_v22 = vpop.f32.mrb[166].mxu0  ;;  %v18974_v31 = vmax.f32 %v14832_v40, %v18973_v3  ;;  %v6486_v39 = vsub.f32 %v18978_v23, %v15026_v19  ;;  %v18983_v23 = vmax.f32 %v14971_v45, %v14977_v26  ;;  %v15239_v3 = vpop.eup %11008  ;;  %11028 = vpow2.f32 %v6758_v24  ;;  %v18992_v26 = vld [vmem:[#allocation20_spill] sm:$0xff] }
 0x40d   : > { %18972 = vst [vmem:[#allocation212_spill] sm:$0xff] %v15206_v22  ;;  %v15215_v43 = vpop.f32.mrb[167].mxu0  ;;  %v15217_v47 = vpop.xlane.xlu0 %6164  ;;  %18984 = vst [vmem:[#allocation52_spill] sm:$0xff] %v15239_v3  ;;  %v6764_v54 = vmul.f32 1.442695, %v6469_v21  ;;  %v6489_v19 = vsub.f32 %v18985_v56, %v15041_v16  ;;  %11030 = vpow2.f32 %v6760_v0  ;;  %v18989_v21 = vld [vmem:[#allocation19_spill] sm:$0xff] }
 0x40e   : > { %6338 = vmax.xlane.f32.xlu0 %v18974_v31  ;;  %18977 = vst [vmem:[#allocation22_spill] sm:$0xff] %v15215_v43  ;;  %v18979_v31 = vmax.f32 %v14961_v8, %v14969_v60  ;;  %v15245_v57 = vpop.eup %11010  ;;  %v6798_v29 = vmul.f32 1.442695, %v6486_v39  ;;  %11032 = vpow2.f32 %v6762_v18  ;;  %v6800_v24 = vmul.f32 1.442695, %v6487_v27  ;;  %v18993_v27 = vld [vmem:[#allocation48_spill] sm:$0xff] }
 0x40f   : > { %v15230_v40 = vpop.xlane.xlu1 %6251  ;;  %18986 = vst [vmem:[#allocation5_spill] sm:$0xff] %v15245_v57  ;;  %v7270_v39 = vadd.f32 %v15226_v44, %v15211_v12  ;;  %11034 = vpow2.f32 %v6764_v54  ;;  %v6804_v8 = vmul.f32 1.442695, %v6489_v19  ;;  %v18996_v12 = vld [vmem:[#allocation49_spill] sm:$0xff]  ;;  %v18999_v18 = vld [vmem:[#allocation26_spill] sm:$0xff]  ;;  %v19000_v19 = vld [vmem:[#allocation43_spill] sm:$0xff] }
 0x410   : > { %6329 = vmax.xlane.f32.xlu1 %v18979_v31  ;;  %v7240_v31 = vadd.f32 %v15185_v7, %v15179_v37  ;;  %v15251_v37 = vpop.eup %11012  ;;  %v6494_v7 = vsub.f32 %v18989_v21, %v15053_v58  ;;  %11036 = vpow2.f32 %v6798_v29 }
 0x411   : > { %v15243_v59 = vpop.xlane.xlu0 %6254  ;;  %18988 = vst [vmem:[#allocation214_spill] sm:$0xff] %v15251_v37  ;;  %v15261_v0 = vpop.eup %11014  ;;  %11038 = vpow2.f32 %v6800_v24 }
 0x412   : > { %6332 = vmax.xlane.f32.xlu0 %v18983_v23  ;;  %v15247_v60 = vpop.f32.mrb[168].mxu0  ;;  %v7243_v23 = vadd.f32 %v15202_v5, %v15194_v10  ;;  %18991 = vst [vmem:[#allocation215_spill] sm:$0xff] %v15261_v0  ;;  %v6495_v10 = vsub.f32 %v18992_v26, %v15053_v58  ;;  %v15271_v45 = vpop.eup %11016  ;;  %v7273_v58 = vadd.f32 %v15245_v57, %v15239_v3  ;;  %v19003_v57 = vld [vmem:[#allocation47_spill] sm:$0xff]  ;;  %v19011_v5 = vld [vmem:[#allocation62_spill] sm:$0xff] }
 0x413   : > { %18987 = vst [vmem:[#allocation16_spill] sm:$0xff] %v15247_v60  ;;  %v15255_v16 = vpop.f32.mrb[169].mxu0  ;;  %v15257_v56 = vpop.xlane.xlu1 %6167  ;;  %18995 = vst [vmem:[#allocation48_spill] sm:$0xff] %v15271_v45  ;;  %v19002_v60 = vld [vmem:[#allocation25_spill] sm:$0xff]  ;;  %v7246_v29 = vadd.f32 %v15261_v0, %v15251_v37  ;;  %v6491_v61 = vsub.f32 %v19011_v5, %v15071_v25  ;;  %v19026_v5 = vld [vmem:[#allocation170_spill] sm:$0xff] }
 0x414   : > { %7241 = vadd.xlane.f32.xlu1 %v7240_v31  ;;  %18990 = vst [vmem:[#allocation19_spill] sm:$0xff] %v15255_v16  ;;  %v6802_v31 = vmul.f32 1.442695, %v6488_v13  ;;  %v15269_v21 = vpop.f32.mrb[170].mxu0  ;;  %v15281_v26 = vpop.eup %11018  ;;  %v6814_v16 = vmul.f32 1.442695, %v6494_v7  ;;  %v6497_v3 = vsub.f32 %v19002_v60, %v15063_v6 }
 0x415   : > { %18994 = vst [vmem:[#allocation20_spill] sm:$0xff] %v15269_v21  ;;  %v15275_v13 = vpop.f32.mrb[171].mxu0  ;;  %v15277_v43 = vpop.xlane.xlu0 %6170  ;;  %18998 = vst [vmem:[#allocation216_spill] sm:$0xff] %v15281_v26  ;;  %v6816_v54 = vmul.f32 1.442695, %v6495_v10  ;;  %v19008_v60 = vld [vmem:[#allocation60_spill] sm:$0xff] }
 0x416   : > { %7244 = vadd.xlane.f32.xlu0 %v7243_v23  ;;  %18997 = vst [vmem:[#allocation49_spill] sm:$0xff] %v15275_v13  ;;  %v6496_v23 = vsub.f32 %v18999_v18, %v15063_v6  ;;  %v15289_v44 = vpop.eup %11020  ;;  %11040 = vpow2.f32 %v6802_v31  ;;  %v19005_v13 = vld [vmem:[#allocation71_spill] sm:$0xff]  ;;  %v6490_v6 = vsub.f32 %v19008_v60, %v15071_v25  ;;  %v7249_v60 = vadd.f32 %v15281_v26, %v15271_v45  ;;  %v19025_v26 = vld [vmem:[#allocation169_spill] sm:$0xff] }
 0x417   : > { %19001 = vst [vmem:[#allocation26_spill] sm:$0xff] %v15289_v44  ;;  %v15295_v22 = vpop.xlane.xlu1 %6257  ;;  %v15297_v18 = vpop.eup %11022  ;;  %11042 = vpow2.f32 %v6804_v8  ;;  %v19014_v8 = vld [vmem:[#allocation168_spill] sm:$0xff]  ;;  %v6820_v37 = vmul.f32 1.442695, %v6497_v3  ;;  %v19023_v3 = vld [vmem:[#allocation17_spill] sm:$0xff] }
 0x418   : > { %7271 = vadd.xlane.f32.xlu1 %v7270_v39  ;;  %19004 = vst [vmem:[#allocation43_spill] sm:$0xff] %v15297_v18  ;;  %v19006_v39 = vld [vmem:[#allocation72_spill] sm:$0xff]  ;;  %v15303_v7 = vpop.eup %11024  ;;  %v6818_v10 = vmul.f32 1.442695, %v6496_v23  ;;  %v19015_v50 = vmax.f32 %v14876_v62, %v19014_v8  ;;  %11044 = vpow2.f32 %v6814_v16  ;;  %v19017_v23 = vld [vmem:[#allocation61_spill] sm:$0xff]  ;;  %v19027_v62 = vmax.f32 %v19025_v26, %v19026_v5  ;;  %v19044_v5 = vld [vmem:[#allocation35_spill] sm:$0xff] }
 0x419   : > { %19007 = vst [vmem:[#allocation25_spill] sm:$0xff] %v15303_v7  ;;  %v15307_v24 = vpop.xlane.xlu0 %6260  ;;  %v15311_v31 = vpop.eup %11026  ;;  %v6492_v0 = vsub.f32 %v19017_v23, %v15077_v20  ;;  %11046 = vpow2.f32 %v6816_v54  ;;  %v6806_v25 = vmul.f32 1.442695, %v6490_v6  ;;  %v19029_v54 = vld [vmem:[#allocation37_spill] sm:$0xff]  ;;  %v7276_v45 = vadd.f32 %v15297_v18, %v15289_v44  ;;  %v19032_v6 = vld [vmem:[#allocation63_spill] sm:$0xff]  ;;  %v19034_v26 = vld [vmem:[#allocation40_spill] sm:$0xff] }
 0x41a   : > { %7274 = vadd.xlane.f32.xlu0 %v7273_v58  ;;  %19009 = vst [vmem:[#allocation47_spill] sm:$0xff] %v15307_v24  ;;  %19010 = vst [vmem:[#allocation71_spill] sm:$0xff] %v15311_v31  ;;  %v15317_v53 = vpop.f32.mrb[172].mxu0  ;;  %v15324_v38 = vpop.eup %11028  ;;  %v6498_v24 = vsub.f32 %v19029_v54, %v15090_v41  ;;  %11048 = vpow2.f32 %v6818_v10 }
 0x41b   : > { %19013 = vst [vmem:[#allocation72_spill] sm:$0xff] %v15317_v53  ;;  %19016 = vst [vmem:[#allocation60_spill] sm:$0xff] %v15324_v38  ;;  %v15330_v58 = vpop.f32.mrb[173].mxu0  ;;  %v15332_v32 = vpop.xlane.xlu1 %6173  ;;  %11050 = vpow2.f32 %v6820_v37  ;;  %v6499_v53 = vsub.f32 %v19034_v26, %v15090_v41  ;;  %v19042_v26 = vld [vmem:[#allocation50_spill] sm:$0xff] }
 0x41c   : > { %6341 = vmax.xlane.f32.xlu1 %v19015_v50  ;;  %19019 = vst [vmem:[#allocation62_spill] sm:$0xff] %v15330_v58  ;;  %19020 = vst [vmem:[#allocation61_spill] sm:$0xff] %v15332_v32  ;;  %v15334_v55 = vpop.eup %11030  ;;  %v19022_v50 = vld [vmem:[#allocation8_spill] sm:$0xff]  ;;  %v15342_v23 = vpop.f32.mrb[174].mxu0  ;;  %v6808_v58 = vmul.f32 1.442695, %v6491_v61  ;;  %11052 = vpow2.f32 %v6806_v25  ;;  %v6501_v32 = vsub.f32 %v19042_v26, %v15107_v52 }
 0x41d   : > { %19021 = vst [vmem:[#allocation217_spill] sm:$0xff] %v15334_v55  ;;  %v6493_v8 = vsub.f32 %v19022_v50, %v15077_v20  ;;  %19024 = vst [vmem:[#allocation8_spill] sm:$0xff] %v15342_v23  ;;  %v15347_v63 = vpop.eup %11032  ;;  %v15353_v21 = vpop.f32.mrb[175].mxu0  ;;  %v6810_v50 = vmul.f32 1.442695, %v6492_v0  ;;  %v19035_v20 = vld [vmem:[#allocation9_spill] sm:$0xff] }
 0x41e   : > { %6344 = vmax.xlane.f32.xlu0 %v19027_v62  ;;  %19028 = vst [vmem:[#allocation17_spill] sm:$0xff] %v15347_v63  ;;  %19031 = vst [vmem:[#allocation37_spill] sm:$0xff] %v15353_v21  ;;  %v15355_v16 = vpop.xlane.xlu0 %6176  ;;  %v15363_v54 = vpop.eup %11034  ;;  %v19038_v62 = vld [vmem:[#allocation39_spill] sm:$0xff]  ;;  %v6822_v41 = vmul.f32 1.442695, %v6498_v24  ;;  %11054 = vpow2.f32 %v6808_v58  ;;  %v19048_v26 = vld [vmem:[#allocation34_spill] sm:$0xff] }
 0x41f   : > { %19033 = vst [vmem:[#allocation63_spill] sm:$0xff] %v15363_v54  ;;  %v15369_v44 = vpop.xlane.xlu1 %6263  ;;  %v15371_v61 = vpop.eup %11036  ;;  %v6812_v10 = vmul.f32 1.442695, %v6493_v8  ;;  %v6500_v18 = vsub.f32 %v19038_v62, %v15107_v52  ;;  %v7279_v8 = vadd.f32 %v15311_v31, %v15303_v7  ;;  %v7252_v52 = vadd.f32 %v15334_v55, %v15324_v38 }
 0x420   : > { %7247 = vadd.xlane.f32.xlu1 %v7246_v29  ;;  %19036 = vst [vmem:[#allocation40_spill] sm:$0xff] %v15369_v44  ;;  %19037 = vst [vmem:[#allocation9_spill] sm:$0xff] %v15371_v61  ;;  %v15379_v21 = vpop.eup %11038  ;;  %v6558_v29 = vsub.f32 %v19044_v5, %v15120_v33  ;;  %11056 = vpow2.f32 %v6810_v50  ;;  %v6824_v25 = vmul.f32 1.442695, %v6499_v53  ;;  %v6559_v7 = vsub.f32 %v19048_v26, %v15120_v33 }
 0x421   : > { %19041 = vst [vmem:[#allocation39_spill] sm:$0xff] %v15379_v21  ;;  %v15387_v62 = vpop.eup %11040  ;;  %11058 = vpow2.f32 %v6812_v10  ;;  %v6826_v0 = vmul.f32 1.442695, %v6500_v18  ;;  %v6828_v33 = vmul.f32 1.442695, %v6501_v32  ;;  %v7255_v18 = vadd.f32 %v15363_v54, %v15347_v63  ;;  %v19059_v32 = vld [vmem:[#allocation69_spill] sm:$0xff] }
 0x422   : > { %7250 = vadd.xlane.f32.xlu0 %v7249_v60  ;;  %v15383_v23 = vpop.xlane.xlu0 %6266  ;;  %19043 = vst [vmem:[#allocation50_spill] sm:$0xff] %v15387_v62  ;;  %v19045_v60 = vld [vmem:[#allocation81_spill] sm:$0xff]  ;;  %v15393_v37 = vpop.f32.mrb[176].mxu0  ;;  %11060 = vpow2.f32 %v6822_v41  ;;  %v6942_v55 = vmul.f32 1.442695, %v6558_v29  ;;  %v19060_v31 = vmax.f32 %v14935_v30, %v14946_v1  ;;  %v19061_v63 = vld [vmem:[#allocation6_spill] sm:$0xff] }
 0x423   : > { %19046 = vst [vmem:[#allocation35_spill] sm:$0xff] %v15393_v37  ;;  %v15397_v24 = vpop.eup %11042  ;;  %v15403_v5 = vpop.f32.mrb[177].mxu0  ;;  %11062 = vpow2.f32 %v6824_v25  ;;  %v6944_v26 = vmul.f32 1.442695, %v6559_v7  ;;  %v6561_v54 = vsub.f32 %v19061_v63, %v15135_v49  ;;  %v19062_v29 = vld [vmem:[#allocation70_spill] sm:$0xff]  ;;  %v19070_v25 = vld [vmem:[#allocation56_spill] sm:$0xff] }
 0x424   : > { %7277 = vadd.xlane.f32.xlu1 %v7276_v45  ;;  %19047 = vst [vmem:[#allocation81_spill] sm:$0xff] %v15397_v24  ;;  %19050 = vst [vmem:[#allocation34_spill] sm:$0xff] %v15403_v5  ;;  %v15405_v44 = vpop.xlane.xlu1 %6179  ;;  %v15411_v50 = vpop.f32.mrb[178].mxu0  ;;  %v19058_v5 = vld [vmem:[#allocation42_spill] sm:$0xff]  ;;  %11064 = vpow2.f32 %v6826_v0  ;;  %v7285_v1 = vadd.f32 %v15397_v24, %v15387_v62  ;;  %v19072_v30 = vld [vmem:[#allocation55_spill] sm:$0xff] }
 0x425   : > { %19051 = vst [vmem:[#allocation218_spill] sm:$0xff] %v15405_v44  ;;  %19053 = vst [vmem:[#allocation219_spill] sm:$0xff] %v15411_v50  ;;  %v15413_v53 = vpop.eup %11044  ;;  %v15417_v58 = vpop.f32.mrb[179].mxu0  ;;  %v19065_v41 = vld [vmem:[#allocation18_spill] sm:$0xff]  ;;  %11066 = vpow2.f32 %v6828_v33  ;;  %v6503_v44 = vsub.f32 %v19070_v25, %v15151_v4  ;;  %v6948_v25 = vmul.f32 1.442695, %v6561_v54 }
 0x426   : > { %7280 = vadd.xlane.f32.xlu0 %v7279_v8  ;;  %19054 = vst [vmem:[#allocation220_spill] sm:$0xff] %v15413_v53  ;;  %19056 = vst [vmem:[#allocation221_spill] sm:$0xff] %v15417_v58  ;;  %v15419_v10 = vpop.xlane.xlu0 %6182  ;;  %v15423_v45 = vpop.eup %11046  ;;  %v6560_v8 = vsub.f32 %v19058_v5, %v15135_v49  ;;  %v6502_v37 = vsub.f32 %v19065_v41, %v15151_v4  ;;  %v19066_v58 = vld [vmem:[#allocation87_spill] sm:$0xff]  ;;  %v19068_v49 = vmax.f32 %v14948_v2, %v14959_v42 }
 0x427   : > { %19057 = vst [vmem:[#allocation222_spill] sm:$0xff] %v15423_v45  ;;  %v15440_v5 = vpop.eup %11048  ;;  %v7282_v41 = vadd.f32 %v15379_v21, %v15371_v61  ;;  %11068 = vpow2.f32 %v6942_v55  ;;  %v6504_v42 = vsub.f32 %v19072_v30, %v15165_v11  ;;  %v19076_v61 = vld [vmem:[#allocation59_spill] sm:$0xff]  ;;  %v6832_v62 = vmul.f32 1.442695, %v6503_v44  ;;  %v19093_v44 = vld [vmem:[#allocation14_spill] sm:$0xff] }
 0x428   : > { %6347 = vmax.xlane.f32.xlu1 %v19060_v31  ;;  %v15438_v38 = vpop.xlane.xlu1 %6269  ;;  %19064 = vst [vmem:[#allocation69_spill] sm:$0xff] %v15440_v5  ;;  %v15451_v63 = vpop.eup %11050  ;;  %v6946_v7 = vmul.f32 1.442695, %v6560_v8  ;;  %11070 = vpow2.f32 %v6944_v26  ;;  %v6505_v21 = vsub.f32 %v19076_v61, %v15165_v11  ;;  %v6830_v2 = vmul.f32 1.442695, %v6502_v37 }
 0x429   : > { %19063 = vst [vmem:[#allocation42_spill] sm:$0xff] %v15438_v38  ;;  %19069 = vst [vmem:[#allocation6_spill] sm:$0xff] %v15451_v63  ;;  %v15467_v4 = vpop.eup %11052  ;;  %v7294_v54 = vadd.f32 %v15423_v45, %v15413_v53  ;;  %v10898_v11 = vld [vmem:[%s14841_s13 + $0x20] ss:$8 sps:$4 sm:$0xff]   ;;  %v10900_v31 = vld [vmem:[%s14841_s13 + $0x24] ss:$8 sps:$4 sm:$0xff]  }
 0x42a   : > { %6350 = vmax.xlane.f32.xlu0 %v19068_v49  ;;  %v15455_v0 = vpop.xlane.xlu0 %6272  ;;  %v15465_v33 = vpop.f32.mrb[180].mxu0  ;;  %19075 = vst [vmem:[#allocation87_spill] sm:$0xff] %v15467_v4  ;;  %11072 = vpow2.f32 %v6946_v7  ;;  %v6836_v37 = vmul.f32 1.442695, %v6505_v21  ;;  %v19092_v53 = vld [vmem:[#allocation78_spill] sm:$0xff]  ;;  %8295 = vmatprep.subr.bf16.mxu0 %v10900_v31 }
 0x42b   : > { %19071 = vst [vmem:[#allocation70_spill] sm:$0xff] %v15455_v0  ;;  %19074 = vst [vmem:[#allocation18_spill] sm:$0xff] %v15465_v33  ;;  %v15473_v8 = vpop.f32.mrb[181].mxu0  ;;  %v15477_v24 = vpop.eup %11054  ;;  %v19085_v0 = vld [vmem:[#allocation44_spill] sm:$0xff]  ;;  %11074 = vpow2.f32 %v6948_v25  ;;  %8296 = vmatpush1.bf16.xpose.msra.mxu0 %v10898_v11 }
 0x42c   : > { %7253 = vadd.xlane.f32.xlu1 %v7252_v52  ;;  %19078 = vst [vmem:[#allocation56_spill] sm:$0xff] %v15473_v8  ;;  %v15475_v30 = vpop.xlane.xlu1 %6185  ;;  %19080 = vst [vmem:[#allocation59_spill] sm:$0xff] %v15477_v24  ;;  %v19081_v52 = vld [vmem:[#allocation45_spill] sm:$0xff]  ;;  %v15485_v61 = vpop.f32.mrb[182].mxu0  ;;  %v6563_v49 = vsub.f32 %v19085_v0, %v15175_v15  ;;  %11076 = vpow2.f32 %v6830_v2  ;;  %v7297_v2 = vadd.f32 %v15451_v63, %v15440_v5 }
 0x42d   : > { %19079 = vst [vmem:[#allocation55_spill] sm:$0xff] %v15475_v30  ;;  %v6562_v50 = vsub.f32 %v19081_v52, %v15175_v15  ;;  %19083 = vst [vmem:[#allocation45_spill] sm:$0xff] %v15485_v61  ;;  %v15487_v55 = vpop.eup %11056  ;;  %v15493_v52 = vpop.f32.mrb[183].mxu0  ;;  %v19089_v15 = vld [vmem:[#allocation77_spill] sm:$0xff]  ;;  %v19091_v30 = vld [vmem:[#allocation15_spill] sm:$0xff]  ;;  %11078 = vpow2.f32 %v6832_v62 }
 0x42e   : > { %7256 = vadd.xlane.f32.xlu0 %v7255_v18  ;;  %19084 = vst [vmem:[#allocation223_spill] sm:$0xff] %v15487_v55  ;;  %19087 = vst [vmem:[#allocation44_spill] sm:$0xff] %v15493_v52  ;;  %v15495_v38 = vpop.xlane.xlu0 %6188  ;;  %v15500_v8 = vpop.eup %11058  ;;  %v6834_v18 = vmul.f32 1.442695, %v6504_v42  ;;  %v6564_v45 = vsub.f32 %v19091_v30, %v15183_v9  ;;  %v6952_v21 = vmul.f32 1.442695, %v6563_v49  ;;  %v7288_v49 = vadd.f32 %v15477_v24, %v15467_v4 }
 0x42f   : > { %19088 = vst [vmem:[#allocation224_spill] sm:$0xff] %v15500_v8  ;;  %v15507_v33 = vpop.eup %11060  ;;  %v6950_v42 = vmul.f32 1.442695, %v6562_v50  ;;  %v19096_v30 = vld [vmem:[#allocation46_spill] sm:$0xff]  ;;  %v19098_v0 = vld [vmem:[#allocation29_spill] sm:$0xff] }
 0x430   : > { %7283 = vadd.xlane.f32.xlu1 %v7282_v41  ;;  %19090 = vst [vmem:[#allocation77_spill] sm:$0xff] %v15507_v33  ;;  %v15513_v7 = vpop.xlane.xlu1 %6275  ;;  %v15519_v25 = vpop.eup %11062  ;;  %v6565_v61 = vsub.f32 %v19096_v30, %v15183_v9  ;;  %11080 = vpow2.f32 %v6834_v18  ;;  %v19101_v9 = vmax.f32 %v14981_v28, %v14992_v14  ;;  %v6954_v11 = vmul.f32 1.442695, %v6564_v45  ;;  %v19103_v18 = vld [vmem:[#allocation28_spill] sm:$0xff] }
 0x431   : > { %19095 = vst [vmem:[#allocation15_spill] sm:$0xff] %v15519_v25  ;;  %v15527_v50 = vpop.eup %11064  ;;  %11082 = vpow2.f32 %v6836_v37  ;;  %v6507_v63 = vsub.f32 %v19103_v18, %v15200_v51  ;;  %v19111_v18 = vmax.f32 %v14998_v46, %v15011_v48 }
 0x432   : > { %7286 = vadd.xlane.f32.xlu0 %v7285_v1  ;;  %v15523_v26 = vpop.xlane.xlu0 %6278  ;;  %19097 = vst [vmem:[#allocation78_spill] sm:$0xff] %v15527_v50  ;;  %v6506_v1 = vsub.f32 %v19098_v0, %v15200_v51  ;;  %v15533_v62 = vpop.f32.mrb[184].mxu0  ;;  %11084 = vpow2.f32 %v6950_v42  ;;  %v6956_v14 = vmul.f32 1.442695, %v6565_v61  ;;  %v19113_v42 = vld [vmem:[#allocation66_spill] sm:$0xff] }
 0x433   : > { %19100 = vst [vmem:[#allocation14_spill] sm:$0xff] %v15533_v62  ;;  %v15540_v30 = vpop.eup %11066  ;;  %v15546_v52 = vpop.f32.mrb[185].mxu0  ;;  %11086 = vpow2.f32 %v6952_v21  ;;  %v6509_v28 = vsub.f32 %v19113_v42, %v15217_v47  ;;  %v19116_v62 = vld [vmem:[#allocation57_spill] sm:$0xff]  ;;  %v19118_v42 = vld [vmem:[#allocation58_spill] sm:$0xff] }
 0x434   : > { %6353 = vmax.xlane.f32.xlu1 %v19101_v9  ;;  %19102 = vst [vmem:[#allocation46_spill] sm:$0xff] %v15540_v30  ;;  %19105 = vst [vmem:[#allocation29_spill] sm:$0xff] %v15546_v52  ;;  %v15548_v31 = vpop.xlane.xlu1 %6191  ;;  %v15550_v41 = vpop.eup %11068  ;;  %v19108_v9 = vld [vmem:[#allocation27_spill] sm:$0xff]  ;;  %v6838_v24 = vmul.f32 1.442695, %v6506_v1  ;;  %v6566_v45 = vsub.f32 %v19116_v62, %v15230_v40  ;;  %v19117_v21 = vld [vmem:[#allocation85_spill] sm:$0xff]  ;;  %11088 = vpow2.f32 %v6954_v11  ;;  %v6567_v0 = vsub.f32 %v19118_v42, %v15230_v40 }
 0x435   : > { %19106 = vst [vmem:[#allocation28_spill] sm:$0xff] %v15548_v31  ;;  %19107 = vst [vmem:[#allocation225_spill] sm:$0xff] %v15550_v41  ;;  %v6508_v4 = vsub.f32 %v19108_v9, %v15217_v47  ;;  %v15558_v51 = vpop.f32.mrb[186].mxu0  ;;  %v15563_v5 = vpop.eup %11070  ;;  %v6840_v47 = vmul.f32 1.442695, %v6507_v63  ;;  %v19121_v31 = vld [vmem:[#allocation33_spill] sm:$0xff]  ;;  %11090 = vpow2.f32 %v6956_v14 }
 0x436   : > { %19110 = vst [vmem:[#allocation27_spill] sm:$0xff] %v15558_v51  ;;  %6356 = vmax.xlane.f32.xlu0 %v19111_v18  ;;  %19112 = vst [vmem:[#allocation226_spill] sm:$0xff] %v15563_v5  ;;  %v15569_v37 = vpop.f32.mrb[187].mxu0  ;;  %v15571_v52 = vpop.xlane.xlu0 %6194  ;;  %v6568_v18 = vsub.f32 %v19121_v31, %v15243_v59  ;;  %v6844_v40 = vmul.f32 1.442695, %v6509_v28  ;;  %v19125_v42 = vld [vmem:[#allocation30_spill] sm:$0xff]  ;;  %11092 = vpow2.f32 %v6838_v24 }
 0x437   : > { %19115 = vst [vmem:[#allocation66_spill] sm:$0xff] %v15569_v37  ;;  %v15585_v1 = vpop.eup %11072  ;;  %v6842_v62 = vmul.f32 1.442695, %v6508_v4  ;;  %v6569_v46 = vsub.f32 %v19125_v42, %v15243_v59  ;;  %v6958_v31 = vmul.f32 1.442695, %v6566_v45  ;;  %11094 = vpow2.f32 %v6840_v47 }
 0x438   : > { %7295 = vadd.xlane.f32.xlu1 %v7294_v54  ;;  %v15583_v9 = vpop.xlane.xlu1 %6281  ;;  %19120 = vst [vmem:[#allocation57_spill] sm:$0xff] %v15585_v1  ;;  %v19123_v54 = vld [vmem:[#allocation100_spill] sm:$0xff]  ;;  %v15593_v11 = vpop.eup %11074  ;;  %v6960_v28 = vmul.f32 1.442695, %v6567_v0  ;;  %v6962_v61 = vmul.f32 1.442695, %v6568_v18  ;;  %v19142_v59 = vmax.f32 %v15045_v35, %v15051_v36 }
 0x439   : > { %19124 = vst [vmem:[#allocation85_spill] sm:$0xff] %v15593_v11  ;;  %v15599_v4 = vpop.eup %11076  ;;  %11096 = vpow2.f32 %v6842_v62  ;;  %v6964_v47 = vmul.f32 1.442695, %v6569_v46  ;;  %v19146_v46 = vsub.f32 %v19000_v19, %v15277_v43  ;;  %v19147_v36 = vld [vmem:[#allocation107_spill] sm:$0xff]  ;;  %v19148_v35 = vld [vmem:[#allocation108_spill] sm:$0xff]  ;;  %v19152_v19 = vsub.f32 %v19005_v13, %v15295_v22 }
 0x43a   : > { %7298 = vadd.xlane.f32.xlu0 %v7297_v2  ;;  %v15597_v51 = vpop.xlane.xlu0 %6284  ;;  %19127 = vst [vmem:[#allocation33_spill] sm:$0xff] %v15599_v4  ;;  %v15603_v37 = vpop.f32.mrb[188].mxu0  ;;  %v7291_v2 = vadd.f32 %v15500_v8, %v15487_v55  ;;  %v19134_v55 = vld [vmem:[#allocation91_spill] sm:$0xff]  ;;  %11098 = vpow2.f32 %v6844_v40  ;;  %v19141_v40 = vld [vmem:[#allocation93_spill] sm:$0xff] }
 0x43b   : > { %19126 = vst [vmem:[#allocation58_spill] sm:$0xff] %v15597_v51  ;;  %19129 = vst [vmem:[#allocation100_spill] sm:$0xff] %v15603_v37  ;;  %v15607_v14 = vpop.eup %11078  ;;  %v15611_v63 = vpop.f32.mrb[189].mxu0  ;;  %11100 = vpow2.f32 %v6958_v31  ;;  %v19144_v31 = vsub.f32 %v18996_v12, %v15257_v56  ;;  %v19153_v12 = vld [vmem:[#allocation110_spill] sm:$0xff] }
 0x43c   : > { %7289 = vadd.xlane.f32.xlu1 %v7288_v49  ;;  %19130 = vst [vmem:[#allocation30_spill] sm:$0xff] %v15607_v14  ;;  %19132 = vst [vmem:[#allocation227_spill] sm:$0xff] %v15611_v63  ;;  %v15613_v24 = vpop.xlane.xlu1 %6197  ;;  %v15615_v45 = vpop.eup %11080  ;;  %v19140_v49 = vsub.f32 %v18993_v27, %v15257_v56  ;;  %11102 = vpow2.f32 %v6960_v28  ;;  %v19145_v27 = vld [vmem:[#allocation94_spill] sm:$0xff]  ;;  %v19149_v56 = vmax.f32 %v15057_v34, %v15061_v17 }
 0x43d   : > { %19133 = vst [vmem:[#allocation228_spill] sm:$0xff] %v15615_v45  ;;  %v15621_v48 = vpop.f32.mrb[190].mxu0  ;;  %v15623_v0 = vpop.eup %11082  ;;  %v6848_v37 = vmul.f32 1.442695, %v19144_v31  ;;  %11104 = vpow2.f32 %v6962_v61  ;;  %v19151_v61 = vsub.f32 %v19003_v57, %v15277_v43  ;;  %v19156_v43 = vsub.f32 %v19006_v39, %v15295_v22 }
 0x43e   : > { %19135 = vst [vmem:[#allocation91_spill] sm:$0xff] %v15621_v48  ;;  %7292 = vadd.xlane.f32.xlu0 %v7291_v2  ;;  %19136 = vst [vmem:[#allocation229_spill] sm:$0xff] %v15623_v0  ;;  %v15627_v51 = vpop.f32.mrb[191].mxu0  ;;  %v15629_v62 = vpop.xlane.xlu0 %6200  ;;  %v6846_v8 = vmul.f32 1.442695, %v19140_v49  ;;  %v7300_v2 = vadd.f32 %v15519_v25, %v15507_v33  ;;  %11106 = vpow2.f32 %v6964_v47  ;;  %v7303_v47 = vadd.f32 %v15540_v30, %v15527_v50  ;;  %v19164_v30 = vld [vmem:[#allocation73_spill] sm:$0xff] }
 0x43f   : > { %19138 = vst [vmem:[#allocation230_spill] sm:$0xff] %v15627_v51  ;;  %v15631_v18 = vpop.eup %11084  ;;  %v6852_v49 = vmul.f32 1.442695, %v19151_v61  ;;  %v6968_v57 = vmul.f32 1.442695, %v19156_v43  ;;  %v19185_v48 = vld [vmem:[#allocation204_spill] sm:$0xff] }
 0x440   : > { %19139 = vst [vmem:[#allocation231_spill] sm:$0xff] %v15631_v18  ;;  %6359 = vmax.xlane.f32.xlu1 %v19142_v59  ;;  %v15643_v63 = vpop.eup %11086  ;;  %v15650_v42 = vpop.xlane.xlu1 %6287  ;;  %v6850_v59 = vmul.f32 1.442695, %v19146_v46  ;;  %11108 = vpow2.f32 %v6846_v8  ;;  %v6966_v46 = vmul.f32 1.442695, %v19152_v19 }
 0x441   : > { %19143 = vst [vmem:[#allocation93_spill] sm:$0xff] %v15643_v63  ;;  %v15664_v31 = vpop.eup %11088  ;;  %11110 = vpow2.f32 %v6848_v37  ;;  %v7390_v37 = vadd.f32 %v15563_v5, %v15550_v41 }
 0x442   : > { %6362 = vmax.xlane.f32.xlu0 %v19149_v56  ;;  %19150 = vst [vmem:[#allocation94_spill] sm:$0xff] %v15664_v31  ;;  %v15669_v33 = vpop.xlane.xlu0 %6290  ;;  %v15676_v25 = vpop.f32.mrb[192].mxu0  ;;  %11112 = vpow2.f32 %v6850_v59  ;;  %v19165_v59 = vld [vmem:[#allocation47_spill] sm:$0xff] }
 0x443   : > { %19154 = vst [vmem:[#allocation107_spill] sm:$0xff] %v15676_v25  ;;  %v15680_v56 = vpop.eup %11090  ;;  %v15687_v61 = vpop.f32.mrb[193].mxu0  ;;  %11114 = vpow2.f32 %v6852_v49  ;;  %v19166_v17 = vsub.f32 %v19164_v30, %v19165_v59  ;;  %v19168_v49 = vld [vmem:[#allocation74_spill] sm:$0xff] }
 0x444   : > { %7301 = vadd.xlane.f32.xlu1 %v7300_v2  ;;  %19155 = vst [vmem:[#allocation108_spill] sm:$0xff] %v15680_v56  ;;  %19158 = vst [vmem:[#allocation110_spill] sm:$0xff] %v15687_v61  ;;  %v7200_v19 = vpop.xlane.xlu1 %7199  ;;  %v15689_v28 = vpop.eup %11092  ;;  %11116 = vpow2.f32 %v6966_v46  ;;  %v19169_v5 = vsub.f32 %v19168_v49, %v19165_v59  ;;  %v19177_v59 = vld [vmem:[#allocation7_spill] sm:$0xff]  ;;  %v7306_v2 = vadd.f32 %v15607_v14, %v15599_v4  ;;  %v19199_v14 = vld [vmem:[#allocation40_spill] sm:$0xff] }
 0x445   : > { %19159 = vst [vmem:[#allocation232_spill] sm:$0xff] %v15689_v28  ;;  %v15693_v50 = vpop.f32.mrb[194].mxu0  ;;  %v15697_v22 = vpop.eup %11094  ;;  %v6970_v34 = vmul.f32 1.442695, %v19166_v17  ;;  %11118 = vpow2.f32 %v6968_v57  ;;  %v19172_v17 = vld [vmem:[#allocation61_spill] sm:$0xff] }
 0x446   : > { %19160 = vst [vmem:[#allocation233_spill] sm:$0xff] %v15693_v50  ;;  %7304 = vadd.xlane.f32.xlu0 %v7303_v47  ;;  %19161 = vst [vmem:[#allocation234_spill] sm:$0xff] %v15697_v22  ;;  %v15699_v39 = vpop.f32.mrb[195].mxu0  ;;  %v7203_v43 = vpop.xlane.xlu0 %7202  ;;  %v7393_v47 = vadd.f32 %v15593_v11, %v15585_v1  ;;  %v6972_v61 = vmul.f32 1.442695, %v19169_v5  ;;  %v19173_v30 = vsub.f32 %v19023_v3, %v19172_v17  ;;  %11120 = vrcp.f32 %v7200_v19 }
 0x447   : > { %19162 = vst [vmem:[#allocation235_spill] sm:$0xff] %v15699_v39  ;;  %v15701_v13 = vpop.eup %11096  ;;  %v19178_v5 = vsub.f32 %v19177_v59, %v19172_v17  ;;  %11122 = vrcp.f32 %v7203_v43  ;;  %v19188_v43 = vsub.f32 %v19032_v6, %v15355_v16  ;;  %v19194_v6 = vld [vmem:[#allocation206_spill] sm:$0xff] }
 0x448   : > { %19163 = vst [vmem:[#allocation236_spill] sm:$0xff] %v15701_v13  ;;  %7391 = vadd.xlane.f32.xlu1 %v7390_v37  ;;  %v15710_v41 = vpop.eup %11098  ;;  %v15715_v25 = vpop.xlane.xlu1 %6203  ;;  %v6854_v51 = vmul.f32 1.442695, %v19173_v30  ;;  %11124 = vpow2.f32 %v6970_v34  ;;  %v19228_v37 = vld [vmem:[#allocation111_spill] sm:$0xff] }
 0x449   : > { %19167 = vst [vmem:[#allocation73_spill] sm:$0xff] %v15710_v41  ;;  %19170 = vst [vmem:[#allocation47_spill] sm:$0xff] %v15715_v25  ;;  %v15717_v46 = vpop.eup %11100  ;;  %v6856_v49 = vmul.f32 1.442695, %v19178_v5  ;;  %11126 = vpow2.f32 %v6972_v61  ;;  %v6858_v59 = vmul.f32 1.442695, %v19188_v43 }
 0x44a   : > { %19171 = vst [vmem:[#allocation74_spill] sm:$0xff] %v15717_v46  ;;  %7394 = vadd.xlane.f32.xlu0 %v7393_v47  ;;  %v15726_v57 = vpop.eup %11102  ;;  %v15731_v39 = vpop.xlane.xlu0 %6206  ;;  %v19184_v47 = vld [vmem:[#allocation203_spill] sm:$0xff]  ;;  %11128 = vpow2.f32 %v6854_v51  ;;  %v19195_v43 = vld [vmem:[#allocation208_spill] sm:$0xff] }
 0x44b   : > { %19176 = vst [vmem:[#allocation61_spill] sm:$0xff] %v15726_v57  ;;  %19179 = vst [vmem:[#allocation7_spill] sm:$0xff] %v15731_v39  ;;  %v15733_v50 = vpop.eup %11104  ;;  %v15739_v11 = vpop.f32.mrb[196].mxu0  ;;  %v19186_v1 = vmax.f32 %v19184_v47, %v19185_v48  ;;  %v19196_v30 = vmax.f32 %v19194_v6, %v19195_v43  ;;  %v7309_v39 = vadd.f32 %v15623_v0, %v15615_v45  ;;  %11130 = vpow2.f32 %v6856_v49  ;;  %v19198_v51 = vld [vmem:[#allocation79_spill] sm:$0xff]  ;;  %v19206_v45 = vld [vmem:[#allocation80_spill] sm:$0xff] }
 0x44c   : > { %19180 = vst [vmem:[#allocation237_spill] sm:$0xff] %v15733_v50  ;;  %19183 = vst [vmem:[#allocation238_spill] sm:$0xff] %v15739_v11  ;;  %v15744_v17 = vpop.eup %11106  ;;  %v15749_v34 = vpop.f32.mrb[197].mxu0  ;;  %v19200_v3 = vsub.f32 %v19198_v51, %v19199_v14  ;;  %v19207_v0 = vsub.f32 %v19206_v45, %v19199_v14  ;;  %11132 = vpow2.f32 %v6858_v59  ;;  %v7396_v14 = vadd.f32 %v15643_v63, %v15631_v18  ;;  %v19216_v63 = vld [vmem:[#allocation67_spill] sm:$0xff] }
 0x44d   : > { %6365 = vmax.xlane.f32.xlu1 %v19186_v1  ;;  %19187 = vst [vmem:[#allocation239_spill] sm:$0xff] %v15744_v17  ;;  %19189 = vst [vmem:[#allocation240_spill] sm:$0xff] %v15749_v34  ;;  %v15751_v5 = vpop.xlane.xlu1 %6293  ;;  %v15755_v19 = vpop.eup %11108  ;;  %v19192_v1 = vsub.f32 %v19035_v20, %v15355_v16  ;;  %v19214_v20 = vld [vmem:[#allocation82_spill] sm:$0xff] }
 0x44e   : > { %19190 = vst [vmem:[#allocation241_spill] sm:$0xff] %v15751_v5  ;;  %19191 = vst [vmem:[#allocation242_spill] sm:$0xff] %v15755_v19  ;;  %v15762_v47 = vpop.f32.mrb[198].mxu0  ;;  %6368 = vmax.xlane.f32.xlu0 %v19196_v30  ;;  %v15769_v4 = vpop.eup %11110  ;;  %v6974_v16 = vmul.f32 1.442695, %v19200_v3  ;;  %v19215_v6 = vsub.f32 %v19214_v20, %v15383_v23  ;;  %v19227_v20 = vld [vmem:[#allocation109_spill] sm:$0xff] }
 0x44f   : > { %v6860_v48 = vmul.f32 1.442695, %v19192_v1  ;;  %19193 = vst [vmem:[#allocation243_spill] sm:$0xff] %v15762_v47  ;;  %19197 = vst [vmem:[#allocation244_spill] sm:$0xff] %v15769_v4  ;;  %v15778_v11 = vpop.f32.mrb[199].mxu0  ;;  %v15780_v43 = vpop.xlane.xlu0 %6296  ;;  %v19232_v3 = vld [vmem:[#allocation105_spill] sm:$0xff] }
 0x450   : > { %19203 = vst [vmem:[#allocation79_spill] sm:$0xff] %v15778_v11  ;;  %19204 = vst [vmem:[#allocation40_spill] sm:$0xff] %v15780_v43  ;;  %v15782_v30 = vpop.eup %11112  ;;  %v6976_v49 = vmul.f32 1.442695, %v19207_v0  ;;  %v6980_v18 = vmul.f32 1.442695, %v19215_v6  ;;  %v19231_v6 = vsub.f32 %v19059_v32, %v15419_v10 }
 0x451   : > { %19205 = vst [vmem:[#allocation245_spill] sm:$0xff] %v15782_v30  ;;  %7307 = vadd.xlane.f32.xlu1 %v7306_v2  ;;  %v15793_v34 = vpop.eup %11114  ;;  %v7206_v61 = vpop.xlane.xlu1 %7205  ;;  %11134 = vpow2.f32 %v6860_v48  ;;  %v19213_v2 = vsub.f32 %v19045_v60, %v15383_v23  ;;  %v7399_v48 = vadd.f32 %v15680_v56, %v15664_v31  ;;  %v19221_v60 = vld [vmem:[#allocation68_spill] sm:$0xff]  ;;  %v19223_v43 = vld [vmem:[#allocation113_spill] sm:$0xff] }
 0x452   : > { %19210 = vst [vmem:[#allocation80_spill] sm:$0xff] %v15793_v34  ;;  %v15795_v5 = vpop.eup %11116  ;;  %7310 = vadd.xlane.f32.xlu0 %v7309_v39  ;;  %11136 = vpow2.f32 %v6974_v16  ;;  %v19217_v16 = vld [vmem:[#allocation218_spill] sm:$0xff]  ;;  %v19235_v56 = vld [vmem:[#allocation12_spill] sm:$0xff] }
 0x453   : > { %19211 = vst [vmem:[#allocation246_spill] sm:$0xff] %v15795_v5  ;;  %v15799_v45 = vpop.eup %11118  ;;  %v7209_v0 = vpop.xlane.xlu0 %7208  ;;  %11138 = vpow2.f32 %v6976_v49  ;;  %v6978_v59 = vmul.f32 1.442695, %v19213_v2  ;;  %v19218_v11 = vsub.f32 %v19216_v63, %v19217_v16  ;;  %v10901_v63 = vld [vmem:[%s14841_s13 + $0x30] ss:$8 sps:$4 sm:$0xff]  }
 0x454   : > { %19212 = vst [vmem:[#allocation247_spill] sm:$0xff] %v15799_v45  ;;  %v11121_v51 = vpop.eup %11120  ;;  %11140 = vrcp.f32 %v7206_v61 }
 0x455   : > { %7397 = vadd.xlane.f32.xlu1 %v7396_v14  ;;  %v11123_v39 = vpop.eup %11122  ;;  %v6862_v47 = vmul.f32 1.442695, %v19218_v11  ;;  %v15812_v49 = vpop.xlane.xlu1 %6209  ;;  %v19222_v14 = vsub.f32 %v19221_v60, %v19217_v16  ;;  %v10903_v11 = vld [vmem:[%s14841_s13 + $0x34] ss:$8 sps:$4 sm:$0xff]   ;;  %v7710_v25 = vmul.f32 %v11121_v51, %v19227_v20  ;;  %11142 = vrcp.f32 %v7209_v0  ;;  %v19234_v0 = vld [vmem:[#allocation13_spill] sm:$0xff]  ;;  %v19239_v20 = vld [vmem:[#allocation42_spill] sm:$0xff] }
 0x456   : > { %19219 = vst [vmem:[#allocation82_spill] sm:$0xff] %v15812_v49  ;;  %v15814_v1 = vpop.eup %11124  ;;  %v7712_v31 = vmul.f32 %v11123_v39, %v19223_v43  ;;  %7400 = vadd.xlane.f32.xlu0 %v7399_v48  ;;  %v7711_v8 = vmul.f32 %v11121_v51, %v19228_v37  ;;  %v19229_v16 = vld [vmem:[#allocation115_spill] sm:$0xff]  ;;  %11144 = vpow2.f32 %v6978_v59  ;;  %v6866_v48 = vmul.f32 1.442695, %v19231_v6  ;;  %8297 = vmatprep.subr.bf16.mxu0 %v10903_v11 }
 0x457   : > { %19220 = vst [vmem:[#allocation67_spill] sm:$0xff] %v15814_v1  ;;  %v6864_v2 = vmul.f32 1.442695, %v19222_v14  ;;  %v15826_v61 = vpop.eup %11126  ;;  %v7713_v60 = vmul.f32 %v11123_v39, %v19229_v16  ;;  %v15831_v14 = vpop.xlane.xlu0 %6212  ;;  %v19236_v37 = vmax.f32 %v19234_v0, %v19235_v56  ;;  %11146 = vpow2.f32 %v6980_v18  ;;  %8298 = vmatpush1.bf16.xpose.msra.mxu0 %v10901_v63  ;;  %v19242_v56 = vld [vmem:[#allocation54_spill] sm:$0xff]  ;;  %v19243_v0 = vld [vmem:[#allocation32_spill] sm:$0xff] }
 0x458   : > { %19226 = vst [vmem:[#allocation218_spill] sm:$0xff] %v15826_v61  ;;  %v15833_v43 = vpop.eup %11128  ;;  %v19238_v59 = vsub.f32 %v19062_v29, %v15419_v10  ;;  %v7966_v6 = vpack.c.bf16 %v7712_v31, %v7710_v25  ;;  %11148 = vpow2.f32 %v6862_v47  ;;  %v19240_v23 = vsub.f32 %v19066_v58, %v19239_v20  ;;  %v19246_v25 = vld [vmem:[#allocation88_spill] sm:$0xff] }
 0x459   : > { %19230 = vst [vmem:[#allocation68_spill] sm:$0xff] %v15833_v43  ;;  %6371 = vmax.xlane.f32.xlu1 %v19236_v37  ;;  %v15845_v51 = vpop.eup %11130  ;;  %v7967_v32 = vpack.c.bf16 %v7713_v60, %v7711_v8  ;;  %v15850_v16 = vpop.xlane.xlu1 %6299  ;;  %v19241_v37 = vld [vmem:[#allocation130_spill] sm:$0xff]  ;;  %v19244_v18 = vmax.f32 %v19242_v56, %v19243_v0  ;;  %v7312_v10 = vadd.f32 %v15697_v22, %v15689_v28  ;;  %11150 = vpow2.f32 %v6864_v2  ;;  %v19248_v58 = vld [vmem:[#allocation132_spill] sm:$0xff]  ;;  %v19272_v56 = vld [vmem:[#allocation129_spill] sm:$0xff] }
 0x45a   : > { %19237 = vst [vmem:[#allocation113_spill] sm:$0xff] %v15845_v51  ;;  %v6868_v39 = vmul.f32 1.442695, %v19238_v59  ;;  %v6982_v49 = vmul.f32 1.442695, %v19240_v23  ;;  %v15862_v29 = vpop.eup %11132  ;;  %v19247_v31 = vsub.f32 %v19246_v25, %v19239_v20  ;;  %v7315_v63 = vadd.f32 %v15710_v41, %v15701_v13  ;;  %v19251_v59 = vld [vmem:[#allocation89_spill] sm:$0xff] }
 0x45b   : > { %6374 = vmax.xlane.f32.xlu0 %v19244_v18  ;;  %19245 = vst [vmem:[#allocation109_spill] sm:$0xff] %v15862_v29  ;;  %8146 = vmatprep.mubr.bf16.mxu1 %v7967_v32  ;;  %v15869_v23 = vpop.xlane.xlu0 %6302  ;;  %v15873_v60 = vpop.eup %11134  ;;  %11152 = vpow2.f32 %v6866_v48  ;;  %v19252_v18 = vld [vmem:[#allocation70_spill] sm:$0xff]  ;;  %v19254_v20 = vld [vmem:[#allocation133_spill] sm:$0xff]  ;;  %v19276_v32 = vld [vmem:[#allocation11_spill] sm:$0xff] }
 0x45c   : > { %v6984_v8 = vmul.f32 1.442695, %v19247_v31  ;;  %19249 = vst [vmem:[#allocation111_spill] sm:$0xff] %v15869_v23  ;;  %19250 = vst [vmem:[#allocation115_spill] sm:$0xff] %v15873_v60  ;;  %v19253_v11 = vsub.f32 %v19251_v59, %v19252_v18  ;;  %8147 = vmatmul.mubr.bf16.vlgmr.msra.gmra.mrb[88].mxu1 %v7966_v6  ;;  %v15882_v47 = vpop.eup %11136  ;;  %11154 = vpow2.f32 %v6868_v39  ;;  %v19257_v28 = vld [vmem:[#allocation90_spill] sm:$0xff]  ;;  %v7402_v6 = vadd.f32 %v15726_v57, %v15717_v46  ;;  %v19261_v31 = vld [vmem:[#allocation55_spill] sm:$0xff] }
 0x45d   : > { %7313 = vadd.xlane.f32.xlu1 %v7312_v10  ;;  %19256 = vst [vmem:[#allocation105_spill] sm:$0xff] %v15882_v47  ;;  %v19258_v13 = vsub.f32 %v19257_v28, %v19252_v18  ;;  %v7212_v48 = vpop.xlane.xlu1 %7211  ;;  %v15887_v22 = vpop.eup %11138  ;;  %11156 = vpow2.f32 %v6982_v49  ;;  %v19260_v10 = vld [vmem:[#allocation75_spill] sm:$0xff]  ;;  %v7405_v28 = vadd.f32 %v15744_v17, %v15733_v50  ;;  %v19263_v18 = vld [vmem:[#allocation76_spill] sm:$0xff] }
 0x45e   : > { %v6986_v2 = vmul.f32 1.442695, %v19253_v11  ;;  %19259 = vst [vmem:[#allocation42_spill] sm:$0xff] %v15887_v22  ;;  %v11141_v11 = vpop.eup %11140  ;;  %11158 = vpow2.f32 %v6984_v8  ;;  %v19262_v25 = vsub.f32 %v19260_v10, %v19261_v31  ;;  %v19264_v49 = vsub.f32 %v19263_v18, %v19261_v31  ;;  %v19268_v10 = vld [vmem:[#allocation131_spill] sm:$0xff] }
 0x45f   : > { %v6988_v41 = vmul.f32 1.442695, %v19258_v13  ;;  %7316 = vadd.xlane.f32.xlu0 %v7315_v63  ;;  %v7215_v59 = vpop.xlane.xlu0 %7214  ;;  %v11143_v13 = vpop.eup %11142  ;;  %v19266_v8 = vsub.f32 %v19089_v15, %v15495_v38 }
 0x460   : > { %11160 = vpow2.f32 %v6986_v2  ;;  %v6870_v39 = vmul.f32 1.442695, %v19262_v25  ;;  %v6872_v63 = vmul.f32 1.442695, %v19264_v49  ;;  %v15901_v46 = vpop.eup %11144  ;;  %v19267_v25 = vld [vmem:[#allocation127_spill] sm:$0xff]  ;;  %v7717_v50 = vmul.f32 %v11143_v13, %v19268_v10  ;;  %v19271_v49 = vld [vmem:[#allocation125_spill] sm:$0xff] }
 0x461   : > { %7403 = vadd.xlane.f32.xlu1 %v7402_v6  ;;  %11162 = vpow2.f32 %v6988_v41  ;;  %v15899_v0 = vpop.xlane.xlu1 %6215  ;;  %19265 = vst [vmem:[#allocation130_spill] sm:$0xff] %v15901_v46  ;;  %v6874_v2 = vmul.f32 1.442695, %v19266_v8  ;;  %v7715_v6 = vmul.f32 %v11141_v11, %v19267_v25  ;;  %v15908_v57 = vpop.eup %11146  ;;  %v19270_v41 = vsub.f32 %v19092_v53, %v15495_v38  ;;  %v19275_v10 = vld [vmem:[#allocation36_spill] sm:$0xff] }
 0x462   : > { %11164 = vrcp.f32 %v7212_v48  ;;  %19269 = vst [vmem:[#allocation88_spill] sm:$0xff] %v15908_v57  ;;  %v7714_v17 = vmul.f32 %v11141_v11, %v19271_v49  ;;  %v7716_v15 = vmul.f32 %v11143_v13, %v19272_v56  ;;  %v15917_v8 = vpop.eup %11148  ;;  %v19274_v48 = vsub.f32 %v19093_v44, %v15513_v7  ;;  %v19279_v53 = vld [vmem:[#allocation64_spill] sm:$0xff] }
 0x463   : > { %7406 = vadd.xlane.f32.xlu0 %v7405_v28  ;;  %v6876_v31 = vmul.f32 1.442695, %v19270_v41  ;;  %11166 = vrcp.f32 %v7215_v59  ;;  %v15913_v18 = vpop.xlane.xlu0 %6218  ;;  %19273 = vst [vmem:[#allocation132_spill] sm:$0xff] %v15917_v8  ;;  %v7969_v25 = vpack.c.bf16 %v7717_v50, %v7715_v6  ;;  %v19277_v23 = vmax.f32 %v19275_v10, %v19276_v32  ;;  %v15925_v38 = vpop.eup %11150  ;;  %v19283_v50 = vld [vmem:[#allocation24_spill] sm:$0xff] }
 0x464   : > { %11168 = vpow2.f32 %v6870_v39  ;;  %v6990_v28 = vmul.f32 1.442695, %v19274_v48  ;;  %19278 = vst [vmem:[#allocation89_spill] sm:$0xff] %v15925_v38  ;;  %v19280_v11 = vsub.f32 %v19279_v53, %v15513_v7  ;;  %v7968_v56 = vpack.c.bf16 %v7716_v15, %v7714_v17  ;;  %v19287_v17 = vld [vmem:[#allocation212_spill] sm:$0xff]  ;;  %v19288_v15 = vld [vmem:[#allocation22_spill] sm:$0xff] }
 0x465   : > { %6377 = vmax.xlane.f32.xlu1 %v19277_v23  ;;  %11170 = vpow2.f32 %v6872_v63  ;;  %v15930_v13 = vpop.xlane.xlu1 %6305  ;;  %v7318_v39 = vadd.f32 %v15769_v4, %v15755_v19  ;;  %v15934_v44 = vpop.eup %11152  ;;  %v19284_v6 = vsub.f32 %v19283_v50, %v15523_v26  ;;  %8154 = vmatprep.mubr.bf16.mxu1 %v7969_v25  ;;  %v19289_v48 = vmax.f32 %v19287_v17, %v19288_v15  ;;  %v19296_v41 = vld [vmem:[#allocation28_spill] sm:$0xff] }
 0x466   : > { %v6992_v59 = vmul.f32 1.442695, %v19280_v11  ;;  %19281 = vst [vmem:[#allocation70_spill] sm:$0xff] %v15930_v13  ;;  %19282 = vst [vmem:[#allocation133_spill] sm:$0xff] %v15934_v44  ;;  %11172 = vpow2.f32 %v6874_v2  ;;  %v15946_v53 = vpop.eup %11154  ;;  %v19291_v11 = vld [vmem:[#allocation23_spill] sm:$0xff]  ;;  %8155 = vmatmul.mubr.bf16.gmra.mrb[92].mxu1 %v7968_v56 }
 0x467   : > { %v6994_v23 = vmul.f32 1.442695, %v19284_v6  ;;  %6380 = vmax.xlane.f32.xlu0 %v19289_v48  ;;  %19290 = vst [vmem:[#allocation90_spill] sm:$0xff] %v15946_v53  ;;  %11174 = vpow2.f32 %v6876_v31  ;;  %v19292_v2 = vsub.f32 %v19291_v11, %v15523_v26  ;;  %v15951_v50 = vpop.xlane.xlu0 %6308  ;;  %v15953_v25 = vpop.eup %11156  ;;  %v19295_v6 = vld [vmem:[#allocation83_spill] sm:$0xff]  ;;  %v7321_v31 = vadd.f32 %v15793_v34, %v15782_v30  ;;  %v19300_v26 = vld [vmem:[#allocation84_spill] sm:$0xff] }
 0x468   : > { %19293 = vst [vmem:[#allocation75_spill] sm:$0xff] %v15951_v50  ;;  %19294 = vst [vmem:[#allocation55_spill] sm:$0xff] %v15953_v25  ;;  %11176 = vpow2.f32 %v6990_v28  ;;  %v19297_v49 = vsub.f32 %v19295_v6, %v19296_v41  ;;  %v15962_v17 = vpop.eup %11158  ;;  %v19301_v56 = vsub.f32 %v19300_v26, %v19296_v41  ;;  %v19305_v41 = vsub.f32 %v19117_v21, %v15571_v52  ;;  %v19310_v30 = vld [vmem:[#allocation99_spill] sm:$0xff]  ;;  %v19316_v28 = vld [vmem:[#allocation141_spill] sm:$0xff] }
 0x469   : > { %v6996_v19 = vmul.f32 1.442695, %v19292_v2  ;;  %7319 = vadd.xlane.f32.xlu1 %v7318_v39  ;;  %19299 = vst [vmem:[#allocation76_spill] sm:$0xff] %v15962_v17  ;;  %11178 = vpow2.f32 %v6992_v59  ;;  %v7218_v32 = vpop.xlane.xlu1 %7217  ;;  %v7408_v39 = vadd.f32 %v15799_v45, %v15795_v5  ;;  %v19312_v21 = vld [vmem:[#allocation143_spill] sm:$0xff] }
 0x46a   : > { %v6878_v4 = vmul.f32 1.442695, %v19297_v49  ;;  %v6880_v11 = vmul.f32 1.442695, %v19301_v56  ;;  %v15969_v6 = vpop.eup %11160  ;;  %11180 = vpow2.f32 %v6994_v23  ;;  %v6882_v26 = vmul.f32 1.442695, %v19305_v41 }
 0x46b   : > { %19303 = vst [vmem:[#allocation127_spill] sm:$0xff] %v15969_v6  ;;  %7322 = vadd.xlane.f32.xlu0 %v7321_v31  ;;  %v15973_v49 = vpop.eup %11162  ;;  %11182 = vpow2.f32 %v6996_v19  ;;  %v7221_v48 = vpop.xlane.xlu0 %7220  ;;  %v7411_v23 = vadd.f32 %v15826_v61, %v15814_v1  ;;  %v19306_v56 = vld [vmem:[#allocation86_spill] sm:$0xff]  ;;  %v19313_v41 = vld [vmem:[#allocation147_spill] sm:$0xff] }
 0x46c   : > { %19304 = vst [vmem:[#allocation131_spill] sm:$0xff] %v15973_v49  ;;  %v11165_v59 = vpop.eup %11164  ;;  %11184 = vpow2.f32 %v6878_v4  ;;  %v19307_v2 = vsub.f32 %v19306_v56, %v15571_v52  ;;  %v19311_v4 = vsub.f32 %v19310_v30, %v15583_v9  ;;  %v10904_v61 = vld [vmem:[%s14841_s13 + $0x40] ss:$8 sps:$4 sm:$0xff]   ;;  %v19315_v52 = vsub.f32 %v19123_v54, %v15583_v9  ;;  %v19323_v13 = vld [vmem:[#allocation19_spill] sm:$0xff] }
 0x46d   : > { %7409 = vadd.xlane.f32.xlu1 %v7408_v39  ;;  %v11167_v31 = vpop.eup %11166  ;;  %11186 = vpow2.f32 %v6880_v11  ;;  %v15983_v19 = vpop.xlane.xlu1 %6221  ;;  %v7719_v39 = vmul.f32 %v11165_v59, %v19312_v21  ;;  %v10906_v11 = vld [vmem:[%s14841_s13 + $0x44] ss:$8 sps:$4 sm:$0xff]   ;;  %v7718_v30 = vmul.f32 %v11165_v59, %v19316_v28 }
 0x46e   : > { %v6884_v5 = vmul.f32 1.442695, %v19307_v2  ;;  %19308 = vst [vmem:[#allocation125_spill] sm:$0xff] %v15983_v19  ;;  %v15985_v45 = vpop.eup %11168  ;;  %v6998_v34 = vmul.f32 1.442695, %v19311_v4  ;;  %11188 = vrcp.f32 %v7218_v32  ;;  %v7721_v1 = vmul.f32 %v11167_v31, %v19313_v41  ;;  %v19317_v4 = vld [vmem:[#allocation145_spill] sm:$0xff]  ;;  %8476 = vmatprep.subr.bf16.mxu1 %v10906_v11 }
 0x46f   : > { %19309 = vst [vmem:[#allocation129_spill] sm:$0xff] %v15985_v45  ;;  %7412 = vadd.xlane.f32.xlu0 %v7411_v23  ;;  %v15994_v10 = vpop.eup %11170  ;;  %v7000_v2 = vmul.f32 1.442695, %v19315_v52  ;;  %11190 = vrcp.f32 %v7221_v48  ;;  %v15999_v56 = vpop.xlane.xlu0 %6224  ;;  %v7720_v32 = vmul.f32 %v11167_v31, %v19317_v4  ;;  %v19319_v21 = vld [vmem:[#allocation101_spill] sm:$0xff]  ;;  %v19320_v41 = vld [vmem:[#allocation58_spill] sm:$0xff]  ;;  %v19322_v19 = vld [vmem:[#allocation16_spill] sm:$0xff]  ;;  %8477 = vmatpush1.bf16.xpose.msra.mxu1 %v10904_v61 }
 0x470   : > { %19314 = vst [vmem:[#allocation64_spill] sm:$0xff] %v15994_v10  ;;  %v16003_v23 = vpop.eup %11172  ;;  %11192 = vpow2.f32 %v6882_v26  ;;  %v19321_v50 = vsub.f32 %v19319_v21, %v19320_v41  ;;  %v7971_v7 = vpack.c.bf16 %v7721_v1, %v7719_v39  ;;  %v19324_v63 = vmax.f32 %v19322_v19, %v19323_v13  ;;  %v19326_v54 = vld [vmem:[#allocation102_spill] sm:$0xff]  ;;  %v19331_v11 = vld [vmem:[#allocation152_spill] sm:$0xff]  ;;  %v19333_v4 = vld [vmem:[#allocation49_spill] sm:$0xff] }
 0x471   : > { %19318 = vst [vmem:[#allocation24_spill] sm:$0xff] %v16003_v23  ;;  %v16011_v9 = vpop.eup %11174  ;;  %11194 = vpow2.f32 %v6884_v5  ;;  %v19327_v48 = vsub.f32 %v19326_v54, %v19320_v41  ;;  %v7970_v59 = vpack.c.bf16 %v7720_v32, %v7718_v30  ;;  %v16016_v31 = vpop.xlane.xlu1 %6311  ;;  %v7324_v26 = vadd.f32 %v15845_v51, %v15833_v43  ;;  %v19330_v5 = vld [vmem:[#allocation151_spill] sm:$0xff]  ;;  %v19332_v30 = vld [vmem:[#allocation20_spill] sm:$0xff]  ;;  %v19356_v43 = vld [vmem:[#allocation161_spill] sm:$0xff] }
 0x472   : > { %v7002_v15 = vmul.f32 1.442695, %v19321_v50  ;;  %6383 = vmax.xlane.f32.xlu1 %v19324_v63  ;;  %19325 = vst [vmem:[#allocation23_spill] sm:$0xff] %v16011_v9  ;;  %v16020_v1 = vpop.eup %11176  ;;  %11196 = vpow2.f32 %v6998_v34  ;;  %v19329_v63 = vsub.f32 %v19134_v55, %v15613_v24  ;;  %8162 = vmatprep.mubr.bf16.mxu1 %v7971_v7  ;;  %v19334_v32 = vmax.f32 %v19332_v30, %v19333_v4  ;;  %v19336_v61 = vld [vmem:[#allocation92_spill] sm:$0xff]  ;;  %v19362_v4 = vld [vmem:[#allocation62_spill] sm:$0xff] }
 0x473   : > { %v7004_v28 = vmul.f32 1.442695, %v19327_v48  ;;  %19328 = vst [vmem:[#allocation83_spill] sm:$0xff] %v16020_v1  ;;  %v16032_v21 = vpop.eup %11178  ;;  %11198 = vpow2.f32 %v7000_v2  ;;  %v19337_v34 = vsub.f32 %v19336_v61, %v15613_v24  ;;  %8163 = vmatmul.mubr.bf16.gmra.mrb[96].mxu1 %v7970_v59  ;;  %v16037_v55 = vpop.xlane.xlu0 %6314  ;;  %v19339_v54 = vsub.f32 %v19141_v40, %v15629_v62  ;;  %v19361_v51 = vld [vmem:[#allocation72_spill] sm:$0xff]  ;;  %v19394_v13 = vld [vmem:[#allocation122_spill] sm:$0xff] }
 0x474   : > { %v6886_v50 = vmul.f32 1.442695, %v19329_v63  ;;  %6386 = vmax.xlane.f32.xlu0 %v19334_v32  ;;  %19335 = vst [vmem:[#allocation28_spill] sm:$0xff] %v16032_v21  ;;  %v16039_v7 = vpop.eup %11180  ;;  %11200 = vpow2.f32 %v7002_v15  ;;  %v19340_v63 = vld [vmem:[#allocation153_spill] sm:$0xff]  ;;  %v7327_v2 = vadd.f32 %v15873_v60, %v15862_v29  ;;  %v19342_v24 = vsub.f32 %v19145_v27, %v15629_v62  ;;  %v19343_v15 = vld [vmem:[#allocation154_spill] sm:$0xff] }
 0x475   : > { %v6888_v41 = vmul.f32 1.442695, %v19337_v34  ;;  %19338 = vst [vmem:[#allocation84_spill] sm:$0xff] %v16039_v7  ;;  %v6890_v48 = vmul.f32 1.442695, %v19339_v54  ;;  %v16048_v52 = vpop.eup %11182  ;;  %11202 = vpow2.f32 %v7004_v28  ;;  %v7224_v34 = vpop.xlane.xlu1 %7223  ;;  %v19346_v62 = vsub.f32 %v19147_v36, %v15650_v42  ;;  %v19350_v36 = vld [vmem:[#allocation159_spill] sm:$0xff] }
 0x476   : > { %7325 = vadd.xlane.f32.xlu1 %v7324_v26  ;;  %19341 = vst [vmem:[#allocation86_spill] sm:$0xff] %v16048_v52  ;;  %v6892_v59 = vmul.f32 1.442695, %v19342_v24  ;;  %v16055_v40 = vpop.eup %11184  ;;  %11204 = vpow2.f32 %v6886_v50  ;;  %v7414_v26 = vadd.f32 %v15887_v22, %v15882_v47  ;;  %v7417_v24 = vadd.f32 %v15908_v57, %v15901_v46  ;;  %v19355_v57 = vld [vmem:[#allocation157_spill] sm:$0xff] }
 0x477   : > { %19344 = vst [vmem:[#allocation99_spill] sm:$0xff] %v16055_v40  ;;  %v16059_v54 = vpop.eup %11186  ;;  %11206 = vpow2.f32 %v6888_v41  ;;  %v7227_v32 = vpop.xlane.xlu0 %7226  ;;  %v7006_v27 = vmul.f32 1.442695, %v19346_v62  ;;  %v19347_v50 = vsub.f32 %v19148_v35, %v15650_v42  ;;  %v19351_v62 = vld [vmem:[#allocation163_spill] sm:$0xff] }
 0x478   : > { %7328 = vadd.xlane.f32.xlu0 %v7327_v2  ;;  %19345 = vst [vmem:[#allocation143_spill] sm:$0xff] %v16059_v54  ;;  %v11189_v28 = vpop.eup %11188  ;;  %11208 = vpow2.f32 %v6890_v48  ;;  %v19349_v48 = vsub.f32 %v19153_v12, %v15669_v33 }
 0x479   : > { %v11191_v61 = vpop.eup %11190  ;;  %11210 = vpow2.f32 %v6892_v59  ;;  %v7008_v2 = vmul.f32 1.442695, %v19347_v50  ;;  %v16069_v39 = vpop.xlane.xlu1 %6227  ;;  %v19353_v59 = vld [vmem:[#allocation112_spill] sm:$0xff]  ;;  %v7722_v29 = vmul.f32 %v11189_v28, %v19355_v57 }
 0x47a   : > { %7415 = vadd.xlane.f32.xlu1 %v7414_v26  ;;  %v16071_v41 = vpop.eup %11192  ;;  %v7010_v47 = vmul.f32 1.442695, %v19349_v48  ;;  %11212 = vrcp.f32 %v7224_v34  ;;  %v7723_v26 = vmul.f32 %v11189_v28, %v19350_v36  ;;  %v7725_v46 = vmul.f32 %v11191_v61, %v19351_v62  ;;  %v19358_v34 = vld [vmem:[#allocation95_spill] sm:$0xff]  ;;  %v19365_v57 = vld [vmem:[#allocation96_spill] sm:$0xff] }
 0x47b   : > { %19348 = vst [vmem:[#allocation147_spill] sm:$0xff] %v16071_v41  ;;  %v16078_v22 = vpop.eup %11194  ;;  %v19354_v35 = vsub.f32 %v19353_v59, %v15669_v33  ;;  %11214 = vrcp.f32 %v7227_v32  ;;  %v16083_v50 = vpop.xlane.xlu0 %6230  ;;  %v7724_v12 = vmul.f32 %v11191_v61, %v19356_v43  ;;  %v19363_v33 = vmax.f32 %v19361_v51, %v19362_v4  ;;  %v10907_v4 = vld [vmem:[%s14841_s13 + $0x50] ss:$8 sps:$4 sm:$0xff]   ;;  %v19382_v51 = vld [vmem:[#allocation241_spill] sm:$0xff] }
 0x47c   : > { %7418 = vadd.xlane.f32.xlu0 %v7417_v24  ;;  %19352 = vst [vmem:[#allocation141_spill] sm:$0xff] %v16078_v22  ;;  %v16087_v48 = vpop.eup %11196  ;;  %11216 = vpow2.f32 %v7006_v27  ;;  %v19359_v24 = vld [vmem:[#allocation47_spill] sm:$0xff]  ;;  %v7973_v60 = vpack.c.bf16 %v7725_v46, %v7723_v26  ;;  %v7330_v59 = vadd.f32 %v15925_v38, %v15917_v8  ;;  %v19368_v46 = vld [vmem:[#allocation97_spill] sm:$0xff] }
 0x47d   : > { %v7012_v42 = vmul.f32 1.442695, %v19354_v35  ;;  %19357 = vst [vmem:[#allocation145_spill] sm:$0xff] %v16087_v48  ;;  %v19360_v36 = vsub.f32 %v19358_v34, %v19359_v24  ;;  %v16095_v32 = vpop.eup %11198  ;;  %11218 = vpow2.f32 %v7008_v2  ;;  %v19366_v43 = vsub.f32 %v19365_v57, %v19359_v24  ;;  %v16100_v27 = vpop.xlane.xlu1 %6317  ;;  %v19369_v26 = vld [vmem:[#allocation7_spill] sm:$0xff]  ;;  %v19371_v2 = vld [vmem:[#allocation162_spill] sm:$0xff]  ;;  %v19372_v24 = vld [vmem:[#allocation164_spill] sm:$0xff] }
 0x47e   : > { %6389 = vmax.xlane.f32.xlu1 %v19363_v33  ;;  %19364 = vst [vmem:[#allocation101_spill] sm:$0xff] %v16095_v32  ;;  %v7972_v28 = vpack.c.bf16 %v7724_v12, %v7722_v29  ;;  %v16104_v35 = vpop.eup %11200  ;;  %11220 = vpow2.f32 %v7010_v47  ;;  %v19370_v34 = vsub.f32 %v19368_v46, %v19369_v26  ;;  %8170 = vmatprep.mubr.bf16.mxu1 %v7973_v60  ;;  %v19373_v29 = vld [vmem:[#allocation8_spill] sm:$0xff]  ;;  %v19374_v12 = vld [vmem:[#allocation37_spill] sm:$0xff]  ;;  %v19377_v47 = vld [vmem:[#allocation98_spill] sm:$0xff] }
 0x47f   : > { %v6894_v62 = vmul.f32 1.442695, %v19360_v36  ;;  %v6896_v61 = vmul.f32 1.442695, %v19366_v43  ;;  %19367 = vst [vmem:[#allocation58_spill] sm:$0xff] %v16104_v35  ;;  %v19375_v43 = vmax.f32 %v19373_v29, %v19374_v12  ;;  %v16118_v38 = vpop.eup %11202  ;;  %11222 = vpow2.f32 %v7012_v42  ;;  %v16123_v60 = vpop.xlane.xlu0 %6320  ;;  %v19381_v57 = vld [vmem:[#allocation119_spill] sm:$0xff] }
 0x480   : > { %v6898_v36 = vmul.f32 1.442695, %v19370_v34  ;;  %v10909_v8 = vld [vmem:[%s14841_s13 + $0x54] ss:$8 sps:$4 sm:$0xff]   ;;  %19376 = vst [vmem:[#allocation102_spill] sm:$0xff] %v16118_v38  ;;  %v19378_v46 = vsub.f32 %v19377_v47, %v19369_v26  ;;  %8171 = vmatmul.mubr.bf16.gmra.mrb[100].mxu1 %v7972_v28  ;;  %19379 = vst [vmem:[#allocation151_spill] sm:$0xff] %v16123_v60  ;;  %v16125_v33 = vpop.eup %11204  ;;  %v19383_v30 = vsub.f32 %v19381_v57, %v19382_v51 }
 0x481   : > { %6392 = vmax.xlane.f32.xlu0 %v19375_v43  ;;  %19380 = vst [vmem:[#allocation152_spill] sm:$0xff] %v16125_v33  ;;  %11224 = vpow2.f32 %v6894_v62  ;;  %v19384_v43 = vld [vmem:[#allocation165_spill] sm:$0xff]  ;;  %v7333_v42 = vadd.f32 %v15946_v53, %v15934_v44  ;;  %8478 = vmatprep.subr.bf16.mxu1 %v10909_v8  ;;  %v16134_v26 = vpop.eup %11206  ;;  %v19386_v28 = vld [vmem:[#allocation120_spill] sm:$0xff]  ;;  %v7230_v57 = vpop.xlane.xlu1 %7229  ;;  %v19397_v53 = vld [vmem:[#allocation82_spill] sm:$0xff] }
 0x482   : > { %v6900_v34 = vmul.f32 1.442695, %v19378_v46  ;;  %v7014_v12 = vmul.f32 1.442695, %v19383_v30  ;;  %7331 = vadd.xlane.f32.xlu1 %v7330_v59  ;;  %19385 = vst [vmem:[#allocation92_spill] sm:$0xff] %v16134_v26  ;;  %11226 = vpow2.f32 %v6896_v61  ;;  %v19387_v47 = vsub.f32 %v19386_v28, %v19382_v51  ;;  %8479 = vmatpush1.bf16.xpose.msra.mxu1 %v10907_v4  ;;  %v16141_v30 = vpop.eup %11208  ;;  %v19391_v51 = vld [vmem:[#allocation121_spill] sm:$0xff] }
 0x483   : > { %19389 = vst [vmem:[#allocation153_spill] sm:$0xff] %v16141_v30  ;;  %11228 = vpow2.f32 %v6898_v36  ;;  %v7420_v59 = vadd.f32 %v15962_v17, %v15953_v25  ;;  %v16145_v8 = vpop.eup %11210  ;;  %v7233_v61 = vpop.xlane.xlu0 %7232  ;;  %v19392_v28 = vld [vmem:[#allocation40_spill] sm:$0xff]  ;;  %v7423_v4 = vadd.f32 %v15973_v49, %v15969_v6  ;;  %v7336_v36 = vadd.f32 %v15994_v10, %v15985_v45  ;;  %v19396_v17 = vld [vmem:[#allocation103_spill] sm:$0xff]  ;;  %v19402_v10 = vld [vmem:[#allocation173_spill] sm:$0xff] }
 0x484   : > { %v7016_v46 = vmul.f32 1.442695, %v19387_v47  ;;  %19390 = vst [vmem:[#allocation154_spill] sm:$0xff] %v16145_v8  ;;  %11230 = vpow2.f32 %v6900_v34  ;;  %v11213_v29 = vpop.eup %11212  ;;  %v19393_v47 = vsub.f32 %v19391_v51, %v19392_v28  ;;  %v19395_v25 = vsub.f32 %v19394_v13, %v19392_v28  ;;  %v19399_v51 = vld [vmem:[#allocation175_spill] sm:$0xff]  ;;  %v19403_v49 = vld [vmem:[#allocation177_spill] sm:$0xff] }
 0x485   : > { %7334 = vadd.xlane.f32.xlu0 %v7333_v42  ;;  %11232 = vpow2.f32 %v7014_v12  ;;  %v11215_v42 = vpop.eup %11214  ;;  %v19398_v12 = vsub.f32 %v19396_v17, %v19397_v53  ;;  %v16160_v62 = vpop.xlane.xlu1 %7259  ;;  %v19401_v6 = vld [vmem:[#allocation179_spill] sm:$0xff] }
 0x486   : > { %v7018_v44 = vmul.f32 1.442695, %v19393_v47  ;;  %7421 = vadd.xlane.f32.xlu1 %v7420_v59  ;;  %11234 = vpow2.f32 %v7016_v46  ;;  %v7020_v34 = vmul.f32 1.442695, %v19395_v25  ;;  %v7727_v59 = vmul.f32 %v11213_v29, %v19399_v51  ;;  %v16163_v47 = vpop.eup %11216  ;;  %v19405_v25 = vld [vmem:[#allocation104_spill] sm:$0xff] }
 0x487   : > { %v6902_v19 = vmul.f32 1.442695, %v19398_v12  ;;  %19400 = vst [vmem:[#allocation159_spill] sm:$0xff] %v16163_v47  ;;  %11236 = vrcp.f32 %v7230_v57  ;;  %v7729_v45 = vmul.f32 %v11215_v42, %v19401_v6  ;;  %v7726_v46 = vmul.f32 %v11213_v29, %v19402_v10  ;;  %v16168_v13 = vpop.eup %11218  ;;  %v16173_v12 = vpop.xlane.xlu0 %7262 }
 0x488   : > { %v7728_v60 = vmul.f32 %v11215_v42, %v19403_v49  ;;  %19404 = vst [vmem:[#allocation163_spill] sm:$0xff] %v16168_v13  ;;  %v19406_v17 = vsub.f32 %v19405_v25, %v19397_v53  ;;  %11238 = vrcp.f32 %v7233_v61  ;;  %v7339_v51 = vadd.f32 %v16011_v9, %v16003_v23  ;;  %v16177_v57 = vpop.eup %11220  ;;  %v19410_v53 = vld [vmem:[#allocation106_spill] sm:$0xff] }
 0x489   : > { %7424 = vadd.xlane.f32.xlu0 %v7423_v4  ;;  %19407 = vst [vmem:[#allocation112_spill] sm:$0xff] %v16177_v57  ;;  %11240 = vpow2.f32 %v7018_v44  ;;  %v19408_v10 = vsub.f32 %v19232_v3, %v15831_v14  ;;  %v7975_v49 = vpack.c.bf16 %v7729_v45, %v7727_v59  ;;  %v16182_v4 = vpop.eup %11222  ;;  %v19411_v61 = vsub.f32 %v19410_v53, %v15831_v14  ;;  %v16187_v25 = vpop.xlane.xlu1 %6233  ;;  %v19414_v45 = vld [vmem:[#allocation114_spill] sm:$0xff] }
 0x48a   : > { %v6904_v28 = vmul.f32 1.442695, %v19406_v17  ;;  %v7974_v29 = vpack.c.bf16 %v7728_v60, %v7726_v46  ;;  %7337 = vadd.xlane.f32.xlu1 %v7336_v36  ;;  %19409 = vst [vmem:[#allocation157_spill] sm:$0xff] %v16182_v4  ;;  %11242 = vpow2.f32 %v7020_v34  ;;  %v19413_v44 = vsub.f32 %v19241_v37, %v15850_v16 }
 0x48b   : > { %v6906_v6 = vmul.f32 1.442695, %v19408_v10  ;;  %v6908_v42 = vmul.f32 1.442695, %v19411_v61  ;;  %v16189_v17 = vpop.eup %11224  ;;  %11244 = vpow2.f32 %v6902_v19  ;;  %v6542_v60 = vsub.f32 %v19414_v45, %v15899_v0  ;;  %8178 = vmatprep.mubr.bf16.mxu1 %v7975_v49  ;;  %v19417_v19 = vld [vmem:[#allocation116_spill] sm:$0xff]  ;;  %v16205_v37 = vpop.xlane.xlu0 %6236  ;;  %v19421_v61 = vld [vmem:[#allocation117_spill] sm:$0xff] }
 0x48c   : > { %19412 = vst [vmem:[#allocation161_spill] sm:$0xff] %v16189_v17  ;;  %v7022_v3 = vmul.f32 1.442695, %v19413_v44  ;;  %v7426_v36 = vadd.f32 %v16032_v21, %v16020_v1  ;;  %v16198_v34 = vpop.eup %11226  ;;  %11246 = vpow2.f32 %v6904_v28  ;;  %v19416_v14 = vsub.f32 %v19248_v58, %v15850_v16  ;;  %8179 = vmatmul.mubr.bf16.gmra.mrb[104].mxu1 %v7974_v29  ;;  %v19433_v21 = vld [vmem:[#allocation191_spill] sm:$0xff] }
 0x48d   : > { %7340 = vadd.xlane.f32.xlu0 %v7339_v51  ;;  %19415 = vst [vmem:[#allocation95_spill] sm:$0xff] %v16198_v34  ;;  %v6543_v46 = vsub.f32 %v19417_v19, %v15899_v0  ;;  %v16207_v10 = vpop.eup %11228  ;;  %11248 = vpow2.f32 %v6906_v6  ;;  %v19419_v51 = vld [vmem:[#allocation111_spill] sm:$0xff]  ;;  %v6544_v28 = vsub.f32 %v19421_v61, %v15913_v18  ;;  %v7429_v16 = vadd.f32 %v16048_v52, %v16039_v7  ;;  %v19423_v0 = vld [vmem:[#allocation134_spill] sm:$0xff]  ;;  %v19437_v7 = vld [vmem:[#allocation193_spill] sm:$0xff] }
 0x48e   : > { %v7024_v59 = vmul.f32 1.442695, %v19416_v14  ;;  %19418 = vst [vmem:[#allocation47_spill] sm:$0xff] %v16207_v10  ;;  %v19420_v49 = vsub.f32 %v19254_v20, %v19419_v51  ;;  %7427 = vadd.xlane.f32.xlu1 %v7426_v36  ;;  %v16216_v58 = vpop.eup %11230  ;;  %11250 = vpow2.f32 %v6908_v42  ;;  %v19424_v29 = vsub.f32 %v19423_v0, %v19419_v51  ;;  %v19425_v6 = vld [vmem:[#allocation118_spill] sm:$0xff]  ;;  %v16223_v14 = vpop.xlane.xlu1 %6323  ;;  %v19427_v36 = vld [vmem:[#allocation171_spill] sm:$0xff]  ;;  %v19429_v0 = vld [vmem:[#allocation172_spill] sm:$0xff] }
 0x48f   : > { %19422 = vst [vmem:[#allocation96_spill] sm:$0xff] %v16216_v58  ;;  %v6545_v45 = vsub.f32 %v19425_v6, %v15913_v18  ;;  %v16225_v20 = vpop.eup %11232  ;;  %11252 = vpow2.f32 %v7022_v3  ;;  %v6910_v19 = vmul.f32 1.442695, %v6542_v60  ;;  %v7342_v42 = vadd.f32 %v16059_v54, %v16055_v40  ;;  %v19436_v54 = vld [vmem:[#allocation189_spill] sm:$0xff] }
 0x490   : > { %v7026_v53 = vmul.f32 1.442695, %v19420_v49  ;;  %v7028_v44 = vmul.f32 1.442695, %v19424_v29  ;;  %19426 = vst [vmem:[#allocation97_spill] sm:$0xff] %v16225_v20  ;;  %v16231_v61 = vpop.eup %11234  ;;  %11254 = vpow2.f32 %v7024_v59  ;;  %v16235_v29 = vpop.xlane.xlu0 %6326  ;;  %v7345_v3 = vadd.f32 %v16078_v22, %v16071_v41  ;;  %v19434_v22 = vld [vmem:[#allocation194_spill] sm:$0xff] }
 0x491   : > { %7430 = vadd.xlane.f32.xlu0 %v7429_v16  ;;  %19428 = vst [vmem:[#allocation7_spill] sm:$0xff] %v16231_v61  ;;  %v6912_v51 = vmul.f32 1.442695, %v6543_v46  ;;  %v11237_v60 = vpop.eup %11236  ;;  %v6914_v6 = vmul.f32 1.442695, %v6544_v28  ;;  %v19430_v16 = vld [vmem:[#allocation174_spill] sm:$0xff] }
 0x492   : > { %11256 = vpow2.f32 %v7026_v53  ;;  %7343 = vadd.xlane.f32.xlu1 %v7342_v42  ;;  %v11239_v59 = vpop.eup %11238  ;;  %v6916_v46 = vmul.f32 1.442695, %v6545_v45  ;;  %v7236_v40 = vpop.xlane.xlu1 %7235  ;;  %v7731_v41 = vmul.f32 %v11237_v60, %v19433_v21  ;;  %v7730_v52 = vmul.f32 %v11237_v60, %v19436_v54  ;;  %v19440_v45 = vld [vmem:[#allocation70_spill] sm:$0xff]  ;;  %v19448_v54 = vld [vmem:[#allocation140_spill] sm:$0xff] }
 0x493   : > { %11258 = vpow2.f32 %v7028_v44  ;;  %v16243_v18 = vpop.eup %11240  ;;  %v7733_v53 = vmul.f32 %v11239_v59, %v19434_v22  ;;  %v7732_v42 = vmul.f32 %v11239_v59, %v19437_v7  ;;  %v19439_v44 = vld [vmem:[#allocation139_spill] sm:$0xff]  ;;  %v19445_v20 = vld [vmem:[#allocation34_spill] sm:$0xff]  ;;  %v19449_v7 = vsub.f32 %v19448_v54, %v19440_v45 }
 0x494   : > { %19432 = vst [vmem:[#allocation162_spill] sm:$0xff] %v16243_v18  ;;  %11260 = vpow2.f32 %v6910_v19  ;;  %v16247_v28 = vpop.eup %11242  ;;  %v7239_v49 = vpop.xlane.xlu0 %7238  ;;  %v19441_v9 = vsub.f32 %v19439_v44, %v19440_v45  ;;  %v19443_v18 = vld [vmem:[#allocation123_spill] sm:$0xff]  ;;  %v19457_v45 = vld [vmem:[#allocation221_spill] sm:$0xff] }
 0x495   : > { %7346 = vadd.xlane.f32.xlu0 %v7345_v3  ;;  %19435 = vst [vmem:[#allocation164_spill] sm:$0xff] %v16247_v28  ;;  %11262 = vpow2.f32 %v6912_v51  ;;  %v16251_v23 = vpop.eup %11244  ;;  %v19442_v3 = vld [vmem:[#allocation125_spill] sm:$0xff]  ;;  %v7977_v61 = vpack.c.bf16 %v7733_v53, %v7731_v41  ;;  %v19444_v22 = vld [vmem:[#allocation35_spill] sm:$0xff]  ;;  %v7032_v60 = vmul.f32 1.442695, %v19449_v7  ;;  %v7976_v44 = vpack.c.bf16 %v7732_v42, %v7730_v52  ;;  %v19452_v41 = vld [vmem:[#allocation142_spill] sm:$0xff] }
 0x496   : > { %19438 = vst [vmem:[#allocation98_spill] sm:$0xff] %v16251_v23  ;;  %11264 = vpow2.f32 %v6914_v6  ;;  %v7030_v19 = vmul.f32 1.442695, %v19441_v9  ;;  %v6546_v21 = vsub.f32 %v19443_v18, %v19442_v3  ;;  %v19446_v28 = vmax.f32 %v19444_v22, %v19445_v20  ;;  %v16261_v51 = vpop.eup %11246  ;;  %v19450_v6 = vld [vmem:[#allocation124_spill] sm:$0xff]  ;;  %v16268_v9 = vpop.xlane.xlu1 %7265  ;;  %v19453_v18 = vld [vmem:[#allocation75_spill] sm:$0xff] }
 0x497   : > { %19447 = vst [vmem:[#allocation119_spill] sm:$0xff] %v16261_v51  ;;  %11266 = vpow2.f32 %v6916_v46  ;;  %v6547_v59 = vsub.f32 %v19450_v6, %v19442_v3  ;;  %v16270_v1 = vpop.eup %11248  ;;  %v19454_v53 = vsub.f32 %v19452_v41, %v19453_v18  ;;  %8186 = vmatprep.mubr.bf16.mxu1 %v7977_v61  ;;  %v19456_v46 = vld [vmem:[#allocation219_spill] sm:$0xff]  ;;  %v7348_v52 = vadd.f32 %v16134_v26, %v16125_v33  ;;  %v19460_v3 = vld [vmem:[#allocation144_spill] sm:$0xff] }
 0x498   : > { %6395 = vmax.xlane.f32.xlu1 %v19446_v28  ;;  %19451 = vst [vmem:[#allocation241_spill] sm:$0xff] %v16270_v1  ;;  %v19455_v28 = vld [vmem:[#allocation126_spill] sm:$0xff]  ;;  %11268 = vrcp.f32 %v7236_v40  ;;  %v19458_v54 = vmax.f32 %v19456_v46, %v19457_v45  ;;  %v16282_v42 = vpop.eup %11250  ;;  %v19461_v7 = vsub.f32 %v19460_v3, %v19453_v18  ;;  %v19462_v41 = vld [vmem:[#allocation128_spill] sm:$0xff]  ;;  %8187 = vmatmul.mubr.bf16.gmra.mrb[108].mxu1 %v7976_v44  ;;  %v16289_v40 = vpop.xlane.xlu0 %7268  ;;  %v19488_v45 = vld [vmem:[#allocation209_spill] sm:$0xff] }
 0x499   : > { %v7034_v20 = vmul.f32 1.442695, %v19454_v53  ;;  %v6548_v22 = vsub.f32 %v19455_v28, %v15999_v56  ;;  %19459 = vst [vmem:[#allocation165_spill] sm:$0xff] %v16282_v42  ;;  %v6549_v53 = vsub.f32 %v19462_v41, %v15999_v56  ;;  %11270 = vrcp.f32 %v7239_v49  ;;  %v16291_v61 = vpop.eup %11252  ;;  %v19470_v41 = vld [vmem:[#allocation135_spill] sm:$0xff] }
 0x49a   : > { %6398 = vmax.xlane.f32.xlu0 %v19458_v54  ;;  %v7036_v6 = vmul.f32 1.442695, %v19461_v7  ;;  %19463 = vst [vmem:[#allocation120_spill] sm:$0xff] %v16291_v61  ;;  %11272 = vpow2.f32 %v7030_v19  ;;  %v6918_v28 = vmul.f32 1.442695, %v6546_v21  ;;  %v7351_v54 = vadd.f32 %v16145_v8, %v16141_v30  ;;  %v16295_v33 = vpop.eup %11254  ;;  %v16297_v3 = vpop.xlane.xlu1 %6335 }
 0x49b   : > { %19464 = vst [vmem:[#allocation121_spill] sm:$0xff] %v16295_v33  ;;  %11274 = vpow2.f32 %v7032_v60  ;;  %v6920_v18 = vmul.f32 1.442695, %v6547_v59  ;;  %v6922_v56 = vmul.f32 1.442695, %v6548_v22  ;;  %v7432_v49 = vadd.f32 %v16095_v32, %v16087_v48  ;;  %v19473_v48 = vld [vmem:[#allocation183_spill] sm:$0xff] }
 0x49c   : > { %7349 = vadd.xlane.f32.xlu1 %v7348_v52  ;;  %v16299_v7 = vpop.eup %11256  ;;  %11276 = vpow2.f32 %v7034_v20  ;;  %v6924_v21 = vmul.f32 1.442695, %v6549_v53  ;;  %v16305_v44 = vpop.xlane.xlu0 %6338  ;;  %v7435_v60 = vadd.f32 %v16118_v38, %v16104_v35  ;;  %v19469_v20 = vsub.f32 %v19330_v5, %v16016_v31  ;;  %v19478_v35 = vld [vmem:[#allocation136_spill] sm:$0xff] }
 0x49d   : > { %19465 = vst [vmem:[#allocation40_spill] sm:$0xff] %v16299_v7  ;;  %v16303_v19 = vpop.eup %11258  ;;  %11278 = vpow2.f32 %v7036_v6  ;;  %v6550_v6 = vsub.f32 %v19470_v41, %v16069_v39  ;;  %v7354_v5 = vadd.f32 %v16198_v34, %v16189_v17  ;;  %v19479_v17 = vld [vmem:[#allocation185_spill] sm:$0xff] }
 0x49e   : > { %7352 = vadd.xlane.f32.xlu0 %v7351_v54  ;;  %19466 = vst [vmem:[#allocation122_spill] sm:$0xff] %v16303_v19  ;;  %v16307_v52 = vpop.eup %11260  ;;  %11280 = vpow2.f32 %v6918_v28  ;;  %v7038_v22 = vmul.f32 1.442695, %v19469_v20  ;;  %v16318_v53 = vpop.xlane.xlu1 %6329  ;;  %v19472_v28 = vsub.f32 %v19331_v11, %v16016_v31  ;;  %v19475_v20 = vsub.f32 %v19340_v63, %v16037_v55 }
 0x49f   : > { %19467 = vst [vmem:[#allocation103_spill] sm:$0xff] %v16307_v52  ;;  %v16311_v59 = vpop.eup %11262  ;;  %11282 = vpow2.f32 %v6920_v18  ;;  %v7357_v31 = vadd.f32 %v16216_v58, %v16207_v10  ;;  %v6926_v30 = vmul.f32 1.442695, %v6550_v6  ;;  %v19481_v10 = vld [vmem:[#allocation137_spill] sm:$0xff] }
 0x4a0   : > { %7433 = vadd.xlane.f32.xlu1 %v7432_v49  ;;  %19468 = vst [vmem:[#allocation82_spill] sm:$0xff] %v16311_v59  ;;  %v16320_v54 = vpop.eup %11264  ;;  %11284 = vpow2.f32 %v6922_v56  ;;  %v7040_v49 = vmul.f32 1.442695, %v19472_v28  ;;  %v7042_v41 = vmul.f32 1.442695, %v19475_v20  ;;  %v19476_v56 = vld [vmem:[#allocation184_spill] sm:$0xff]  ;;  %v16336_v32 = vpop.xlane.xlu0 %6332  ;;  %v6552_v58 = vsub.f32 %v19481_v10, %v16083_v50 }
 0x4a1   : > { %19471 = vst [vmem:[#allocation175_spill] sm:$0xff] %v16320_v54  ;;  %v16329_v18 = vpop.eup %11266  ;;  %11286 = vpow2.f32 %v6924_v21  ;;  %v6551_v21 = vsub.f32 %v19478_v35, %v16069_v39  ;;  %v19487_v6 = vld [vmem:[#allocation205_spill] sm:$0xff] }
 0x4a2   : > { %7436 = vadd.xlane.f32.xlu0 %v7435_v60  ;;  %19474 = vst [vmem:[#allocation179_spill] sm:$0xff] %v16329_v18  ;;  %v11269_v11 = vpop.eup %11268  ;;  %v19477_v60 = vsub.f32 %v19343_v15, %v16037_v55  ;;  %11288 = vpow2.f32 %v7038_v22  ;;  %v7242_v8 = vpop.xlane.xlu1 %7241  ;;  %v19483_v55 = vld [vmem:[#allocation138_spill] sm:$0xff]  ;;  %v19484_v15 = vld [vmem:[#allocation207_spill] sm:$0xff] }
 0x4a3   : > { %v11271_v38 = vpop.eup %11270  ;;  %11290 = vpow2.f32 %v7040_v49  ;;  %v6553_v39 = vsub.f32 %v19483_v55, %v16083_v50  ;;  %v7735_v35 = vmul.f32 %v11269_v11, %v19484_v15  ;;  %v6928_v49 = vmul.f32 1.442695, %v6551_v21  ;;  %v19491_v50 = vld [vmem:[#allocation56_spill] sm:$0xff] }
 0x4a4   : > { %v7044_v28 = vmul.f32 1.442695, %v19477_v60  ;;  %7355 = vadd.xlane.f32.xlu1 %v7354_v5  ;;  %v16351_v26 = vpop.eup %11272  ;;  %v19485_v60 = vld [vmem:[#allocation210_spill] sm:$0xff]  ;;  %11292 = vpow2.f32 %v7042_v41  ;;  %v7245_v22 = vpop.xlane.xlu0 %7244  ;;  %v7734_v5 = vmul.f32 %v11269_v11, %v19487_v6  ;;  %v7736_v10 = vmul.f32 %v11271_v38, %v19488_v45  ;;  %v19496_v45 = vld [vmem:[#allocation44_spill] sm:$0xff] }
 0x4a5   : > { %19482 = vst [vmem:[#allocation173_spill] sm:$0xff] %v16351_v26  ;;  %v7737_v63 = vmul.f32 %v11271_v38, %v19485_v60  ;;  %v16357_v34 = vpop.eup %11274  ;;  %v19490_v26 = vld [vmem:[#allocation18_spill] sm:$0xff]  ;;  %v6930_v15 = vmul.f32 1.442695, %v6552_v58  ;;  %v6932_v11 = vmul.f32 1.442695, %v6553_v39  ;;  %v7360_v21 = vadd.f32 %v16261_v51, %v16251_v23 }
 0x4a6   : > { %7358 = vadd.xlane.f32.xlu0 %v7357_v31  ;;  %19486 = vst [vmem:[#allocation177_spill] sm:$0xff] %v16357_v34  ;;  %v16361_v46 = vpop.eup %11276  ;;  %11294 = vpow2.f32 %v7044_v28  ;;  %v19492_v31 = vmax.f32 %v19490_v26, %v19491_v50  ;;  %v7978_v60 = vpack.c.bf16 %v7736_v10, %v7734_v5  ;;  %v16368_v41 = vpop.xlane.xlu1 %7271  ;;  %v19495_v38 = vld [vmem:[#allocation45_spill] sm:$0xff]  ;;  %v7363_v6 = vadd.f32 %v16282_v42, %v16270_v1 }
 0x4a7   : > { %19489 = vst [vmem:[#allocation104_spill] sm:$0xff] %v16361_v46  ;;  %v7979_v20 = vpack.c.bf16 %v7737_v63, %v7735_v35  ;;  %v16366_v55 = vpop.eup %11278  ;;  %11296 = vpow2.f32 %v6926_v30  ;;  %v19497_v28 = vmax.f32 %v19495_v38, %v19496_v45  ;;  %v19499_v30 = vsub.f32 %v19371_v2, %v16100_v27  ;;  %v19503_v2 = vld [vmem:[#allocation151_spill] sm:$0xff] }
 0x4a8   : > { %6401 = vmax.xlane.f32.xlu1 %v19492_v31  ;;  %19493 = vst [vmem:[#allocation106_spill] sm:$0xff] %v16366_v55  ;;  %v16370_v34 = vpop.eup %11280  ;;  %11298 = vrcp.f32 %v7242_v8  ;;  %v16382_v35 = vpop.xlane.xlu0 %7274  ;;  %v19501_v8 = vsub.f32 %v19372_v24, %v16100_v27  ;;  %v19505_v31 = vld [vmem:[#allocation146_spill] sm:$0xff] }
 0x4a9   : > { %19494 = vst [vmem:[#allocation114_spill] sm:$0xff] %v16370_v34  ;;  %8194 = vmatprep.mubr.bf16.mxu1 %v7979_v20  ;;  %v16377_v63 = vpop.eup %11282  ;;  %v7046_v58 = vmul.f32 1.442695, %v19499_v30  ;;  %11300 = vrcp.f32 %v7245_v22  ;;  %v19504_v22 = vsub.f32 %v19384_v43, %v19503_v2 }
 0x4aa   : > { %6404 = vmax.xlane.f32.xlu0 %v19497_v28  ;;  %19498 = vst [vmem:[#allocation116_spill] sm:$0xff] %v16377_v63  ;;  %8195 = vmatmul.mubr.bf16.gmra.mrb[112].mxu1 %v7978_v60  ;;  %v16384_v39 = vpop.eup %11284  ;;  %11302 = vpow2.f32 %v6928_v49  ;;  %v7048_v20 = vmul.f32 1.442695, %v19501_v8  ;;  %v6554_v60 = vsub.f32 %v19505_v31, %v16187_v25  ;;  %v16398_v28 = vpop.xlane.xlu1 %6341  ;;  %v19506_v49 = vld [vmem:[#allocation166_spill] sm:$0xff]  ;;  %v19509_v8 = vld [vmem:[#allocation148_spill] sm:$0xff]  ;;  %v19511_v31 = vld [vmem:[#allocation149_spill] sm:$0xff] }
 0x4ab   : > { %19500 = vst [vmem:[#allocation111_spill] sm:$0xff] %v16384_v39  ;;  %v16391_v5 = vpop.eup %11286  ;;  %11304 = vpow2.f32 %v6930_v15  ;;  %v7050_v10 = vmul.f32 1.442695, %v19504_v22  ;;  %v19507_v27 = vsub.f32 %v19506_v49, %v19503_v2  ;;  %v7441_v2 = vadd.f32 %v16182_v4, %v16177_v57 }
 0x4ac   : > { %7361 = vadd.xlane.f32.xlu1 %v7360_v21  ;;  %19502 = vst [vmem:[#allocation117_spill] sm:$0xff] %v16391_v5  ;;  %11306 = vpow2.f32 %v6932_v11  ;;  %v7438_v21 = vadd.f32 %v16168_v13, %v16163_v47  ;;  %v16405_v15 = vpop.eup %11288  ;;  %v16407_v43 = vpop.xlane.xlu0 %6344  ;;  %v6555_v11 = vsub.f32 %v19509_v8, %v16187_v25  ;;  %v6934_v22 = vmul.f32 1.442695, %v6554_v60  ;;  %v10912_v13 = vld [vmem:[%s14841_s13 + $0x64] ss:$8 sps:$4 sm:$0xff]  }
 0x4ad   : > { %v7052_v24 = vmul.f32 1.442695, %v19507_v27  ;;  %19508 = vst [vmem:[#allocation134_spill] sm:$0xff] %v16405_v15  ;;  %11308 = vpow2.f32 %v7046_v58  ;;  %v16409_v30 = vpop.eup %11290  ;;  %v6556_v49 = vsub.f32 %v19511_v31, %v16205_v37  ;;  %v19512_v58 = vld [vmem:[#allocation150_spill] sm:$0xff]  ;;  %v7366_v25 = vadd.f32 %v16311_v59, %v16307_v52  ;;  %8657 = vmatprep.subr.bf16.mxu0 %v10912_v13  ;;  %v19515_v52 = vld [vmem:[#allocation65_spill] sm:$0xff] }
 0x4ae   : > { %7364 = vadd.xlane.f32.xlu0 %v7363_v6  ;;  %11310 = vpow2.f32 %v7048_v20  ;;  %v16415_v6 = vpop.eup %11292  ;;  %v6557_v27 = vsub.f32 %v19512_v58, %v16205_v37  ;;  %v7248_v47 = vpop.xlane.xlu1 %7247  ;;  %v6936_v8 = vmul.f32 1.442695, %v6555_v11  ;;  %v7369_v37 = vadd.f32 %v16329_v18, %v16320_v54 }
 0x4af   : > { %19510 = vst [vmem:[#allocation118_spill] sm:$0xff] %v16415_v6  ;;  %11312 = vpow2.f32 %v7050_v10 }
 0x4b0   : > { %7439 = vadd.xlane.f32.xlu1 %v7438_v21  ;;  %v16422_v20 = vpop.eup %11294  ;;  %11314 = vpow2.f32 %v7052_v24  ;;  %v7251_v10 = vpop.xlane.xlu0 %7250  ;;  %v6938_v24 = vmul.f32 1.442695, %v6556_v49 }
 0x4b1   : > { %19513 = vst [vmem:[#allocation171_spill] sm:$0xff] %v16422_v20  ;;  %v16426_v21 = vpop.eup %11296  ;;  %11316 = vrcp.f32 %v16160_v62  ;;  %v19517_v62 = vld [vmem:[#allocation10_spill] sm:$0xff] }
 0x4b2   : > { %7442 = vadd.xlane.f32.xlu0 %v7441_v2  ;;  %19514 = vst [vmem:[#allocation172_spill] sm:$0xff] %v16426_v21  ;;  %v11299_v60 = vpop.eup %11298  ;;  %11318 = vrcp.f32 %v16173_v12  ;;  %v6940_v2 = vmul.f32 1.442695, %v6557_v27  ;;  %v16432_v58 = vpop.xlane.xlu1 %7277  ;;  %v19518_v12 = vld [vmem:[#allocation31_spill] sm:$0xff] }
 0x4b3   : > { %v11301_v31 = vpop.eup %11300  ;;  %11320 = vpow2.f32 %v6934_v22  ;;  %v7739_v59 = vmul.f32 %v11299_v60, %v19515_v52  ;;  %v7738_v11 = vmul.f32 %v11299_v60, %v19518_v12  ;;  %v19521_v22 = vsub.f32 %v19427_v36, %v16223_v14  ;;  %v19524_v60 = vld [vmem:[#allocation14_spill] sm:$0xff]  ;;  %v19525_v12 = vld [vmem:[#allocation29_spill] sm:$0xff] }
 0x4b4   : > { %7367 = vadd.xlane.f32.xlu1 %v7366_v25  ;;  %v16435_v57 = vpop.eup %11302  ;;  %11322 = vrcp.f32 %v7248_v47  ;;  %v7741_v13 = vmul.f32 %v11301_v31, %v19517_v62  ;;  %v19519_v25 = vld [vmem:[#allocation38_spill] sm:$0xff]  ;;  %v16445_v27 = vpop.xlane.xlu0 %7280  ;;  %v19523_v47 = vsub.f32 %v19429_v0, %v16223_v14  ;;  %v19528_v36 = vsub.f32 %v19430_v16, %v16235_v29  ;;  %v19530_v0 = vld [vmem:[#allocation176_spill] sm:$0xff] }
 0x4b5   : > { %19516 = vst [vmem:[#allocation174_spill] sm:$0xff] %v16435_v57  ;;  %v7740_v4 = vmul.f32 %v11301_v31, %v19519_v25  ;;  %v16440_v1 = vpop.eup %11304  ;;  %v7054_v49 = vmul.f32 1.442695, %v19521_v22  ;;  %11324 = vrcp.f32 %v7251_v10  ;;  %v19526_v31 = vmax.f32 %v19524_v60, %v19525_v12  ;;  %v19529_v22 = vld [vmem:[#allocation155_spill] sm:$0xff] }
 0x4b6   : > { %7370 = vadd.xlane.f32.xlu0 %v7369_v37  ;;  %19520 = vst [vmem:[#allocation191_spill] sm:$0xff] %v16440_v1  ;;  %v16447_v52 = vpop.eup %11306  ;;  %11326 = vpow2.f32 %v6936_v8  ;;  %v7056_v37 = vmul.f32 1.442695, %v19523_v47  ;;  %v7981_v62 = vpack.c.bf16 %v7741_v13, %v7739_v59  ;;  %v7058_v10 = vmul.f32 1.442695, %v19528_v36  ;;  %v16462_v18 = vpop.xlane.xlu1 %6347 }
 0x4b7   : > { %19522 = vst [vmem:[#allocation194_spill] sm:$0xff] %v16447_v52  ;;  %v7980_v25 = vpack.c.bf16 %v7740_v4, %v7738_v11  ;;  %v16455_v54 = vpop.eup %11308  ;;  %11328 = vpow2.f32 %v6938_v24  ;;  %v6622_v8 = vsub.f32 %v19529_v22, %v16297_v3  ;;  %v19531_v59 = vsub.f32 %v19530_v0, %v16235_v29  ;;  %v19532_v4 = vld [vmem:[#allocation27_spill] sm:$0xff]  ;;  %v19533_v11 = vld [vmem:[#allocation66_spill] sm:$0xff]  ;;  %v19537_v29 = vld [vmem:[#allocation156_spill] sm:$0xff] }
 0x4b8   : > { %6407 = vmax.xlane.f32.xlu1 %v19526_v31  ;;  %19527 = vst [vmem:[#allocation189_spill] sm:$0xff] %v16455_v54  ;;  %v16464_v14 = vpop.eup %11310  ;;  %11330 = vpow2.f32 %v6940_v2  ;;  %8202 = vmatprep.mubr.bf16.mxu1 %v7981_v62  ;;  %v19534_v24 = vmax.f32 %v19532_v4, %v19533_v11  ;;  %v7372_v16 = vadd.f32 %v16377_v63, %v16370_v34  ;;  %v16476_v31 = vpop.xlane.xlu0 %6350  ;;  %v19540_v34 = vld [vmem:[#allocation7_spill] sm:$0xff] }
 0x4b9   : > { %v7060_v13 = vmul.f32 1.442695, %v19531_v59  ;;  %v16474_v47 = vpop.eup %11312  ;;  %11332 = vpow2.f32 %v7054_v49  ;;  %8203 = vmatmul.mubr.bf16.gmra.mrb[116].mxu1 %v7980_v25  ;;  %v6623_v2 = vsub.f32 %v19537_v29, %v16297_v3  ;;  %v7375_v62 = vadd.f32 %v16391_v5, %v16384_v39  ;;  %v19538_v59 = vld [vmem:[#allocation158_spill] sm:$0xff]  ;;  %v19544_v5 = vld [vmem:[#allocation164_spill] sm:$0xff] }
 0x4ba   : > { %6410 = vmax.xlane.f32.xlu0 %v19534_v24  ;;  %19535 = vst [vmem:[#allocation193_spill] sm:$0xff] %v16474_v47  ;;  %v16478_v36 = vpop.eup %11314  ;;  %11334 = vpow2.f32 %v7056_v37  ;;  %v7070_v0 = vmul.f32 1.442695, %v6622_v8  ;;  %v6624_v49 = vsub.f32 %v19538_v59, %v16305_v44  ;;  %v7254_v25 = vpop.xlane.xlu1 %7253  ;;  %v19539_v37 = vld [vmem:[#allocation97_spill] sm:$0xff]  ;;  %v19543_v39 = vld [vmem:[#allocation162_spill] sm:$0xff] }
 0x4bb   : > { %19536 = vst [vmem:[#allocation139_spill] sm:$0xff] %v16478_v36  ;;  %v16484_v22 = vpop.eup %11316  ;;  %11336 = vpow2.f32 %v7058_v10  ;;  %v7444_v63 = vadd.f32 %v19540_v34, %v19539_v37  ;;  %v7072_v59 = vmul.f32 1.442695, %v6623_v2  ;;  %v19549_v2 = vld [vmem:[#allocation214_spill] sm:$0xff] }
 0x4bc   : > { %7373 = vadd.xlane.f32.xlu1 %v7372_v16  ;;  %v16488_v24 = vpop.eup %11318  ;;  %11338 = vpow2.f32 %v7060_v13  ;;  %v19542_v16 = vld [vmem:[#allocation160_spill] sm:$0xff]  ;;  %v7257_v10 = vpop.xlane.xlu0 %7256  ;;  %v7447_v13 = vadd.f32 %v19544_v5, %v19543_v39  ;;  %v7074_v34 = vmul.f32 1.442695, %v6624_v49 }
 0x4bd   : > { %v16492_v3 = vpop.eup %11320  ;;  %11340 = vrcp.f32 %v16268_v9  ;;  %v6625_v29 = vsub.f32 %v19542_v16, %v16305_v44  ;;  %v19545_v9 = vld [vmem:[#allocation167_spill] sm:$0xff]  ;;  %v19550_v5 = vld [vmem:[#allocation48_spill] sm:$0xff] }
 0x4be   : > { %7376 = vadd.xlane.f32.xlu0 %v7375_v62  ;;  %19541 = vst [vmem:[#allocation70_spill] sm:$0xff] %v16492_v3  ;;  %v11323_v8 = vpop.eup %11322  ;;  %11342 = vrcp.f32 %v16289_v40  ;;  %v7378_v62 = vadd.f32 %v16435_v57, %v16426_v21  ;;  %v6626_v42 = vsub.f32 %v19545_v9, %v16398_v28  ;;  %v16504_v23 = vpop.xlane.xlu1 %7283  ;;  %v19546_v44 = vld [vmem:[#allocation215_spill] sm:$0xff]  ;;  %v19548_v40 = vld [vmem:[#allocation216_spill] sm:$0xff] }
 0x4bf   : > { %v11325_v37 = vpop.eup %11324  ;;  %11344 = vpow2.f32 %v7070_v0  ;;  %v7743_v16 = vmul.f32 %v11323_v8, %v19546_v44  ;;  %v7742_v39 = vmul.f32 %v11323_v8, %v19549_v2  ;;  %v7076_v0 = vmul.f32 1.442695, %v6625_v29  ;;  %v19552_v49 = vld [vmem:[#allocation168_spill] sm:$0xff] }
 0x4c0   : > { %7445 = vadd.xlane.f32.xlu1 %v7444_v63  ;;  %v16507_v51 = vpop.eup %11326  ;;  %11346 = vrcp.f32 %v7254_v25  ;;  %v7745_v63 = vmul.f32 %v11325_v37, %v19548_v40  ;;  %v7744_v21 = vmul.f32 %v11325_v37, %v19550_v5  ;;  %v6627_v9 = vsub.f32 %v19552_v49, %v16398_v28  ;;  %v16516_v11 = vpop.xlane.xlu0 %7286  ;;  %v19555_v5 = vld [vmem:[#allocation169_spill] sm:$0xff]  ;;  %v19558_v49 = vld [vmem:[#allocation170_spill] sm:$0xff] }
 0x4c1   : > { %19547 = vst [vmem:[#allocation125_spill] sm:$0xff] %v16507_v51  ;;  %v16512_v57 = vpop.eup %11328  ;;  %11348 = vrcp.f32 %v7257_v10  ;;  %v7381_v44 = vadd.f32 %v16447_v52, %v16440_v1  ;;  %v6628_v37 = vsub.f32 %v19555_v5, %v16407_v43  ;;  %v19557_v28 = vsub.f32 %v19476_v56, %v16318_v53 }
 0x4c2   : > { %7448 = vadd.xlane.f32.xlu0 %v7447_v13  ;;  %19551 = vst [vmem:[#allocation123_spill] sm:$0xff] %v16512_v57  ;;  %v16520_v25 = vpop.eup %11330  ;;  %v19554_v13 = vsub.f32 %v19473_v48, %v16318_v53  ;;  %v7983_v40 = vpack.c.bf16 %v7745_v63, %v7743_v16  ;;  %v7982_v29 = vpack.c.bf16 %v7744_v21, %v7742_v39  ;;  %11350 = vpow2.f32 %v7072_v59  ;;  %v16534_v1 = vpop.xlane.xlu1 %6353  ;;  %v19561_v59 = vld [vmem:[#allocation227_spill] sm:$0xff] }
 0x4c3   : > { %19553 = vst [vmem:[#allocation140_spill] sm:$0xff] %v16520_v25  ;;  %v16527_v2 = vpop.eup %11332  ;;  %v7064_v10 = vmul.f32 1.442695, %v19557_v28  ;;  %v6629_v52 = vsub.f32 %v19558_v49, %v16407_v43  ;;  %11352 = vpow2.f32 %v7074_v34  ;;  %v7080_v39 = vmul.f32 1.442695, %v6627_v9  ;;  %v19560_v43 = vld [vmem:[#allocation100_spill] sm:$0xff] }
 0x4c4   : > { %v7062_v8 = vmul.f32 1.442695, %v19554_v13  ;;  %7379 = vadd.xlane.f32.xlu1 %v7378_v62  ;;  %19556 = vst [vmem:[#allocation124_spill] sm:$0xff] %v16527_v2  ;;  %v16536_v48 = vpop.eup %11334  ;;  %v7078_v13 = vmul.f32 1.442695, %v6626_v42  ;;  %8210 = vmatprep.mubr.bf16.mxu1 %v7983_v40  ;;  %11354 = vpow2.f32 %v7076_v0  ;;  %v16540_v21 = vpop.xlane.xlu0 %6356  ;;  %v19562_v16 = vmax.f32 %v19560_v43, %v19561_v59  ;;  %v19563_v0 = vld [vmem:[#allocation91_spill] sm:$0xff] }
 0x4c5   : > { %19559 = vst [vmem:[#allocation142_spill] sm:$0xff] %v16536_v48  ;;  %v16538_v62 = vpop.eup %11336  ;;  %8211 = vmatmul.mubr.bf16.gmra.mrb[120].mxu1 %v7982_v29  ;;  %v7082_v56 = vmul.f32 1.442695, %v6628_v37  ;;  %v7084_v34 = vmul.f32 1.442695, %v6629_v52  ;;  %v19564_v9 = vld [vmem:[#allocation230_spill] sm:$0xff]  ;;  %v7450_v29 = vadd.f32 %v16295_v33, %v16291_v61  ;;  %v7387_v49 = vadd.f32 %v16520_v25, %v16512_v57 }
 0x4c6   : > { %7382 = vadd.xlane.f32.xlu0 %v7381_v44  ;;  %v16542_v53 = vpop.eup %11338  ;;  %11356 = vpow2.f32 %v7062_v8  ;;  %v7296_v42 = vpop.xlane.xlu1 %7295  ;;  %v19565_v5 = vmax.f32 %v19563_v0, %v19564_v9  ;;  %v7384_v8 = vadd.f32 %v16507_v51, %v16492_v3  ;;  %v19567_v52 = vld [vmem:[#allocation178_spill] sm:$0xff]  ;;  %v19570_v3 = vld [vmem:[#allocation181_spill] sm:$0xff]  ;;  %v19573_v25 = vld [vmem:[#allocation60_spill] sm:$0xff] }
 0x4c7   : > { %v16547_v63 = vpop.eup %11340  ;;  %11358 = vpow2.f32 %v7064_v10  ;;  %v6630_v10 = vsub.f32 %v19567_v52, %v16462_v18  ;;  %v6632_v61 = vsub.f32 %v19570_v3, %v16476_v31  ;;  %v19574_v0 = vld [vmem:[#allocation17_spill] sm:$0xff]  ;;  %v19577_v3 = vld [vmem:[#allocation196_spill] sm:$0xff] }
 0x4c8   : > { %6413 = vmax.xlane.f32.xlu1 %v19562_v16  ;;  %v16549_v44 = vpop.eup %11342  ;;  %11360 = vpow2.f32 %v7078_v13  ;;  %v7299_v40 = vpop.xlane.xlu0 %7298  ;;  %v19568_v13 = vld [vmem:[#allocation199_spill] sm:$0xff]  ;;  %v7751_v43 = vmul.f32 %v16484_v22, %v19577_v3 }
 0x4c9   : > { %v16556_v37 = vpop.eup %11344  ;;  %11362 = vpow2.f32 %v7080_v39  ;;  %v7753_v16 = vmul.f32 %v16488_v24, %v19568_v13  ;;  %v19569_v39 = vld [vmem:[#allocation180_spill] sm:$0xff] }
 0x4ca   : > { %6416 = vmax.xlane.f32.xlu0 %v19565_v5  ;;  %19566 = vst [vmem:[#allocation75_spill] sm:$0xff] %v16556_v37  ;;  %v11347_v28 = vpop.eup %11346  ;;  %11364 = vpow2.f32 %v7082_v56  ;;  %v6631_v51 = vsub.f32 %v19569_v39, %v16462_v18  ;;  %v16570_v33 = vpop.xlane.xlu1 %7289  ;;  %v19571_v56 = vld [vmem:[#allocation217_spill] sm:$0xff] }
 0x4cb   : > { %v11349_v5 = vpop.eup %11348  ;;  %11366 = vpow2.f32 %v7084_v34  ;;  %v7747_v9 = vmul.f32 %v11347_v28, %v19571_v56  ;;  %v7746_v57 = vmul.f32 %v11347_v28, %v19573_v25  ;;  %v19576_v34 = vld [vmem:[#allocation182_spill] sm:$0xff]  ;;  %v7086_v25 = vmul.f32 1.442695, %v6630_v10 }
 0x4cc   : > { %7385 = vadd.xlane.f32.xlu1 %v7384_v8  ;;  %11368 = vrcp.f32 %v7296_v42  ;;  %v19572_v8 = vld [vmem:[#allocation63_spill] sm:$0xff]  ;;  %v7748_v13 = vmul.f32 %v11349_v5, %v19574_v0  ;;  %v16576_v59 = vpop.eup %11350  ;;  %v6633_v18 = vsub.f32 %v19576_v34, %v16476_v31  ;;  %v16580_v39 = vpop.xlane.xlu0 %7292  ;;  %v7453_v42 = vadd.f32 %v16303_v19, %v16299_v7 }
 0x4cd   : > { %v7749_v52 = vmul.f32 %v11349_v5, %v19572_v8  ;;  %19575 = vst [vmem:[#allocation126_spill] sm:$0xff] %v16576_v59  ;;  %11370 = vrcp.f32 %v7299_v40  ;;  %v7088_v31 = vmul.f32 1.442695, %v6631_v51  ;;  %v7090_v8 = vmul.f32 1.442695, %v6632_v61  ;;  %v19584_v61 = vld [vmem:[#allocation187_spill] sm:$0xff] }
 0x4ce   : > { %7388 = vadd.xlane.f32.xlu0 %v7387_v49  ;;  %v16586_v49 = vpop.eup %11352  ;;  %11372 = vrcp.f32 %v16368_v41  ;;  %v7984_v28 = vpack.c.bf16 %v7748_v13, %v7746_v57  ;;  %v16592_v40 = vpop.xlane.xlu1 %6359  ;;  %v7987_v34 = vpack.c.bf16 %v7753_v16, %v7751_v43  ;;  %v7486_v41 = vadd.f32 %v16576_v59, %v16556_v37  ;;  %v19585_v16 = vld [vmem:[#allocation211_spill] sm:$0xff]  ;;  %v19587_v13 = vld [vmem:[#allocation188_spill] sm:$0xff] }
 0x4cf   : > { %19578 = vst [vmem:[#allocation144_spill] sm:$0xff] %v16586_v49  ;;  %v7985_v0 = vpack.c.bf16 %v7749_v52, %v7747_v9  ;;  %v16589_v5 = vpop.eup %11354  ;;  %11374 = vrcp.f32 %v16382_v35  ;;  %v7092_v57 = vmul.f32 1.442695, %v6633_v18  ;;  %v19582_v35 = vld [vmem:[#allocation197_spill] sm:$0xff]  ;;  %v19588_v18 = vld [vmem:[#allocation190_spill] sm:$0xff] }
 0x4d0   : > { %7451 = vadd.xlane.f32.xlu1 %v7450_v29  ;;  %19579 = vst [vmem:[#allocation128_spill] sm:$0xff] %v16589_v5  ;;  %v16594_v56 = vpop.eup %11356  ;;  %11376 = vrcp.f32 %v16432_v58  ;;  %v16602_v51 = vpop.xlane.xlu0 %6362  ;;  %v7752_v29 = vmul.f32 %v16488_v24, %v19582_v35  ;;  %v6634_v58 = vsub.f32 %v19584_v61, %v16534_v1  ;;  %v7489_v43 = vadd.f32 %v16589_v5, %v16586_v49  ;;  %v19593_v61 = vld [vmem:[#allocation192_spill] sm:$0xff] }
 0x4d1   : > { %19580 = vst [vmem:[#allocation135_spill] sm:$0xff] %v16594_v56  ;;  %8218 = vmatprep.mubr.bf16.mxu1 %v7985_v0  ;;  %v16599_v9 = vpop.eup %11358  ;;  %11378 = vrcp.f32 %v16445_v27  ;;  %v7757_v27 = vmul.f32 %v16549_v44, %v19585_v16  ;;  %v6635_v24 = vsub.f32 %v19587_v13, %v16534_v1  ;;  %v6636_v3 = vsub.f32 %v19588_v18, %v16540_v21  ;;  %v19597_v5 = vld [vmem:[#allocation220_spill] sm:$0xff] }
 0x4d2   : > { %7454 = vadd.xlane.f32.xlu0 %v7453_v42  ;;  %19581 = vst [vmem:[#allocation183_spill] sm:$0xff] %v16599_v9  ;;  %8219 = vmatmul.mubr.bf16.gmra.mrb[124].mxu1 %v7984_v28  ;;  %v16606_v10 = vpop.eup %11360  ;;  %11380 = vpow2.f32 %v7086_v25  ;;  %v7302_v42 = vpop.xlane.xlu1 %7301  ;;  %v19589_v25 = vld [vmem:[#allocation195_spill] sm:$0xff]  ;;  %v6637_v16 = vsub.f32 %v19593_v61, %v16540_v21  ;;  %v19598_v21 = vld [vmem:[#allocation198_spill] sm:$0xff] }
 0x4d3   : > { %19583 = vst [vmem:[#allocation184_spill] sm:$0xff] %v16606_v10  ;;  %8226 = vmatprep.mubr.bf16.mxu1 %v7987_v34  ;;  %v16614_v52 = vpop.eup %11362  ;;  %11382 = vpow2.f32 %v7088_v31  ;;  %v7750_v0 = vmul.f32 %v16484_v22, %v19589_v25  ;;  %v19590_v34 = vld [vmem:[#allocation53_spill] sm:$0xff]  ;;  %v19592_v31 = vsub.f32 %v19479_v17, %v16336_v32  ;;  %v19595_v25 = vld [vmem:[#allocation110_spill] sm:$0xff] }
 0x4d4   : > { %7487 = vadd.xlane.f32.xlu1 %v7486_v41  ;;  %19586 = vst [vmem:[#allocation136_spill] sm:$0xff] %v16614_v52  ;;  %v16622_v28 = vpop.eup %11364  ;;  %11384 = vpow2.f32 %v7090_v8  ;;  %v7755_v41 = vmul.f32 %v16547_v63, %v19590_v34  ;;  %v7305_v13 = vpop.xlane.xlu0 %7304  ;;  %v7094_v8 = vmul.f32 1.442695, %v6634_v58  ;;  %v7492_v49 = vadd.f32 %v16614_v52, %v16606_v10  ;;  %v19599_v58 = vld [vmem:[#allocation69_spill] sm:$0xff]  ;;  %v19603_v52 = vld [vmem:[#allocation222_spill] sm:$0xff] }
 0x4d5   : > { %v16626_v35 = vpop.eup %11366  ;;  %v7066_v1 = vmul.f32 1.442695, %v19592_v31  ;;  %11386 = vpow2.f32 %v7092_v57  ;;  %v7986_v18 = vpack.c.bf16 %v7752_v29, %v7750_v0  ;;  %v7096_v31 = vmul.f32 1.442695, %v6635_v24  ;;  %v19604_v24 = vld [vmem:[#allocation6_spill] sm:$0xff] }
 0x4d6   : > { %7490 = vadd.xlane.f32.xlu0 %v7489_v43  ;;  %19591 = vst [vmem:[#allocation185_spill] sm:$0xff] %v16626_v35  ;;  %v11369_v22 = vpop.eup %11368  ;;  %11388 = vrcp.f32 %v16516_v11  ;;  %v19594_v43 = vld [vmem:[#allocation107_spill] sm:$0xff]  ;;  %v7989_v34 = vpack.c.bf16 %v7757_v27, %v7755_v41  ;;  %v7098_v57 = vmul.f32 1.442695, %v6636_v3  ;;  %v6638_v29 = vsub.f32 %v19598_v21, %v16592_v40  ;;  %v16642_v0 = vpop.xlane.xlu1 %7391  ;;  %v19605_v21 = vld [vmem:[#allocation200_spill] sm:$0xff] }
 0x4d7   : > { %v19596_v37 = vmax.f32 %v19594_v43, %v19595_v25  ;;  %v11371_v17 = vpop.eup %11370  ;;  %v7774_v59 = vmul.f32 %v11369_v22, %v19597_v5  ;;  %11390 = vrcp.f32 %v7302_v42  ;;  %v19601_v27 = vld [vmem:[#allocation235_spill] sm:$0xff]  ;;  %v7775_v10 = vmul.f32 %v11369_v22, %v19603_v52  ;;  %v19606_v52 = vld [vmem:[#allocation201_spill] sm:$0xff] }
 0x4d8   : > { %v16644_v11 = vpop.eup %11372  ;;  %v7776_v61 = vmul.f32 %v11371_v17, %v19599_v58  ;;  %v7777_v3 = vmul.f32 %v11371_v17, %v19604_v24  ;;  %v7100_v7 = vmul.f32 1.442695, %v6637_v16  ;;  %v6639_v19 = vsub.f32 %v19605_v21, %v16592_v40  ;;  %v16654_v25 = vpop.xlane.xlu0 %7394  ;;  %v19607_v40 = vld [vmem:[#allocation202_spill] sm:$0xff]  ;;  %v19608_v21 = vld [vmem:[#allocation41_spill] sm:$0xff] }
 0x4d9   : > { %6419 = vmax.xlane.f32.xlu1 %v19596_v37  ;;  %v19600_v37 = vld [vmem:[#allocation233_spill] sm:$0xff]  ;;  %v11375_v5 = vpop.eup %11374  ;;  %11392 = vrcp.f32 %v7305_v13  ;;  %v7495_v42 = vadd.f32 %v16626_v35, %v16622_v28  ;;  %v6640_v22 = vsub.f32 %v19606_v52, %v16602_v51  ;;  %v6641_v13 = vsub.f32 %v19607_v40, %v16602_v51 }
 0x4da   : > { %v19602_v41 = vmax.f32 %v19600_v37, %v19601_v27  ;;  %8227 = vmatmul.mubr.bf16.gmra.mrb[128].mxu1 %v7986_v18  ;;  %v16658_v58 = vpop.eup %11376  ;;  %11394 = vpow2.f32 %v7094_v8  ;;  %v7999_v17 = vpack.c.bf16 %v7777_v3, %v7775_v10  ;;  %v7998_v16 = vpack.c.bf16 %v7776_v61, %v7774_v59  ;;  %v16667_v18 = vpop.xlane.xlu1 %6365  ;;  %v19611_v59 = vld [vmem:[#allocation177_spill] sm:$0xff] }
 0x4db   : > { %8234 = vmatprep.mubr.bf16.mxu1 %v7989_v34  ;;  %v16663_v24 = vpop.eup %11378  ;;  %11396 = vpow2.f32 %v7096_v31  ;;  %v7756_v35 = vmul.f32 %v16549_v44, %v19608_v21  ;;  %v7102_v52 = vmul.f32 1.442695, %v6638_v29  ;;  %v19612_v34 = vld [vmem:[#allocation5_spill] sm:$0xff]  ;;  %v7104_v51 = vmul.f32 1.442695, %v6639_v19  ;;  %v19616_v29 = vld [vmem:[#allocation51_spill] sm:$0xff] }
 0x4dc   : > { %6422 = vmax.xlane.f32.xlu0 %v19602_v41  ;;  %v10910_v41 = vld [vmem:[%s14841_s13 + $0x60] ss:$8 sps:$4 sm:$0xff]   ;;  %v16671_v8 = vpop.eup %11380  ;;  %11398 = vpow2.f32 %v7098_v57  ;;  %8327 = vmatprep.mubr.bf16.mxu0 %v7999_v17  ;;  %v7761_v61 = vmul.f32 %v11375_v5, %v19612_v34  ;;  %v16678_v3 = vpop.xlane.xlu0 %6368  ;;  %v7106_v57 = vmul.f32 1.442695, %v6640_v22  ;;  %v7459_v17 = vadd.f32 %v16366_v55, %v16361_v46  ;;  %v19620_v46 = vld [vmem:[#allocation52_spill] sm:$0xff] }
 0x4dd   : > { %7493 = vadd.xlane.f32.xlu1 %v7492_v49  ;;  %19609 = vst [vmem:[#allocation137_spill] sm:$0xff] %v16671_v8  ;;  %v19610_v49 = vld [vmem:[#allocation173_spill] sm:$0xff]  ;;  %v16676_v31 = vpop.eup %11382  ;;  %11400 = vpow2.f32 %v7100_v7  ;;  %8328 = vmatmul.mubr.bf16.vlgmr.msra.gmra.mrb[200].mxu0 %v7998_v16  ;;  %v7108_v19 = vmul.f32 1.442695, %v6641_v13 }
 0x4de   : > { %v7456_v10 = vadd.f32 %v19611_v59, %v19610_v49  ;;  %19613 = vst [vmem:[#allocation138_spill] sm:$0xff] %v16676_v31  ;;  %v19614_v40 = vld [vmem:[#allocation21_spill] sm:$0xff]  ;;  %v16682_v21 = vpop.eup %11384  ;;  %11402 = vpow2.f32 %v7066_v1  ;;  %8658 = vmatpush1.bf16.xpose.msra.mxu0 %v10910_v41  ;;  %v7308_v34 = vpop.xlane.xlu1 %7307  ;;  %v7498_v22 = vadd.f32 %v16676_v31, %v16671_v8  ;;  %v19628_v8 = vld [vmem:[#allocation78_spill] sm:$0xff]  ;;  %v19631_v31 = vld [vmem:[#allocation43_spill] sm:$0xff] }
 0x4df   : > { %v7754_v44 = vmul.f32 %v16547_v63, %v19614_v40  ;;  %19615 = vst [vmem:[#allocation207_spill] sm:$0xff] %v16682_v21  ;;  %v16688_v7 = vpop.eup %11386  ;;  %11404 = vrcp.f32 %v16504_v23  ;;  %v7760_v23 = vmul.f32 %v11375_v5, %v19620_v46  ;;  %v19624_v46 = vld [vmem:[#allocation206_spill] sm:$0xff] }
 0x4e0   : > { %7496 = vadd.xlane.f32.xlu0 %v7495_v42  ;;  %v7759_v42 = vmul.f32 %v16644_v11, %v19616_v29  ;;  %19617 = vst [vmem:[#allocation210_spill] sm:$0xff] %v16688_v7  ;;  %v16691_v63 = vpop.eup %11388  ;;  %11406 = vpow2.f32 %v7102_v52  ;;  %v7311_v41 = vpop.xlane.xlu0 %7310  ;;  %v7501_v52 = vadd.f32 %v16688_v7, %v16682_v21  ;;  %v6644_v5 = vsub.f32 %v19624_v46, %v16678_v3  ;;  %v19630_v7 = vld [vmem:[#allocation213_spill] sm:$0xff] }
 0x4e1   : > { %7457 = vadd.xlane.f32.xlu1 %v7456_v10  ;;  %v7988_v16 = vpack.c.bf16 %v7756_v35, %v7754_v44  ;;  %v19618_v10 = vld [vmem:[#allocation186_spill] sm:$0xff]  ;;  %11408 = vpow2.f32 %v7104_v51  ;;  %v11391_v13 = vpop.eup %11390  ;;  %v19621_v35 = vld [vmem:[#allocation203_spill] sm:$0xff]  ;;  %v19623_v51 = vld [vmem:[#allocation204_spill] sm:$0xff] }
 0x4e2   : > { %v7991_v1 = vpack.c.bf16 %v7761_v61, %v7759_v42  ;;  %v19619_v40 = vsub.f32 %v19618_v10, %v16336_v32  ;;  %11410 = vpow2.f32 %v7106_v57  ;;  %v6642_v44 = vsub.f32 %v19621_v35, %v16667_v18  ;;  %v19622_v61 = vld [vmem:[#allocation71_spill] sm:$0xff]  ;;  %v16709_v57 = vpop.xlane.xlu1 %7397  ;;  %v19627_v35 = vld [vmem:[#allocation77_spill] sm:$0xff] }
 0x4e3   : > { %8235 = vmatmul.mubr.bf16.gmra.mrb[132].mxu1 %v7988_v16  ;;  %v7765_v42 = vmul.f32 %v16663_v24, %v19622_v61  ;;  %v11393_v32 = vpop.eup %11392  ;;  %11412 = vpow2.f32 %v7108_v19  ;;  %v19625_v16 = vld [vmem:[#allocation15_spill] sm:$0xff]  ;;  %v7778_v61 = vmul.f32 %v11391_v13, %v19627_v35 }
 0x4e4   : > { %7460 = vadd.xlane.f32.xlu0 %v7459_v17  ;;  %v7068_v29 = vmul.f32 1.442695, %v19619_v40  ;;  %8242 = vmatprep.mubr.bf16.mxu1 %v7991_v1  ;;  %v6643_v17 = vsub.f32 %v19623_v51, %v16667_v18  ;;  %v7779_v10 = vmul.f32 %v11391_v13, %v19625_v16  ;;  %v16712_v1 = vpop.eup %11394  ;;  %11414 = vrcp.f32 %v7308_v34  ;;  %v19629_v18 = vld [vmem:[#allocation208_spill] sm:$0xff]  ;;  %v16721_v46 = vpop.xlane.xlu0 %7400 }
 0x4e5   : > { %7499 = vadd.xlane.f32.xlu1 %v7498_v22  ;;  %v19626_v22 = vld [vmem:[#allocation46_spill] sm:$0xff]  ;;  %v7780_v19 = vmul.f32 %v11393_v32, %v19628_v8  ;;  %v16717_v21 = vpop.eup %11396  ;;  %v6645_v51 = vsub.f32 %v19629_v18, %v16678_v3  ;;  %11416 = vrcp.f32 %v7311_v41  ;;  %v7758_v16 = vmul.f32 %v16644_v11, %v19630_v7 }
 0x4e6   : > { %v7781_v40 = vmul.f32 %v11393_v32, %v19626_v22  ;;  %v7763_v34 = vmul.f32 %v16658_v58, %v19631_v31  ;;  %11418 = vrcp.f32 %v16580_v39  ;;  %v7110_v13 = vmul.f32 1.442695, %v6642_v44  ;;  %v19632_v32 = vld [vmem:[#allocation238_spill] sm:$0xff]  ;;  %v19633_v22 = vld [vmem:[#allocation240_spill] sm:$0xff]  ;;  %v6372_v11 = vpop.xlane.xlu1 %6371  ;;  %v19636_v39 = vld [vmem:[#allocation13_spill] sm:$0xff] }
 0x4e7   : > { %v19634_v35 = vmax.f32 %v19632_v32, %v19633_v22  ;;  %v8000_v3 = vpack.c.bf16 %v7780_v19, %v7778_v61  ;;  %11420 = vpow2.f32 %v7068_v29  ;;  %v7112_v18 = vmul.f32 1.442695, %v6643_v17 }
 0x4e8   : > { %7502 = vadd.xlane.f32.xlu0 %v7501_v52  ;;  %v16727_v52 = vpop.eup %11398  ;;  %v8001_v8 = vpack.c.bf16 %v7781_v40, %v7779_v10  ;;  %v7990_v55 = vpack.c.bf16 %v7760_v23, %v7758_v16  ;;  %v7993_v7 = vpack.c.bf16 %v7765_v42, %v7763_v34  ;;  %11422 = vrcp.f32 %v16570_v33  ;;  %v19637_v10 = vld [vmem:[#allocation243_spill] sm:$0xff]  ;;  %v6375_v42 = vpop.xlane.xlu0 %6374  ;;  %v19640_v33 = vld [vmem:[#allocation26_spill] sm:$0xff] }
 0x4e9   : > { %6425 = vmax.xlane.f32.xlu1 %v19634_v35  ;;  %v16733_v41 = vpop.eup %11400  ;;  %v7114_v31 = vmul.f32 1.442695, %v6644_v5  ;;  %v6646_v44 = vsub.f32 %v19636_v39, %v6372_v11  ;;  %v19638_v40 = vld [vmem:[#allocation79_spill] sm:$0xff]  ;;  %v7504_v61 = vadd.f32 %v16717_v21, %v16712_v1  ;;  %11424 = vrcp.f32 %v16642_v0  ;;  %v19641_v5 = vld [vmem:[#allocation25_spill] sm:$0xff]  ;;  %v19644_v35 = vld [vmem:[#allocation54_spill] sm:$0xff] }
 0x4ea   : > { %v16735_v49 = vpop.eup %11402  ;;  %8335 = vmatprep.mubr.bf16.mxu0 %v8001_v8  ;;  %v19639_v59 = vmax.f32 %v19637_v10, %v19638_v40  ;;  %v7116_v23 = vmul.f32 1.442695, %v6645_v51  ;;  %v7762_v17 = vmul.f32 %v16658_v58, %v19640_v33  ;;  %v7764_v19 = vmul.f32 %v16663_v24, %v19641_v5  ;;  %v19643_v51 = vld [vmem:[#allocation81_spill] sm:$0xff]  ;;  %v19645_v24 = vld [vmem:[#allocation32_spill] sm:$0xff]  ;;  %v7314_v33 = vpop.xlane.xlu1 %7313 }
 0x4eb   : > { %19635 = vst [vmem:[#allocation205_spill] sm:$0xff] %v16735_v49  ;;  %v16744_v29 = vpop.eup %11404  ;;  %8243 = vmatmul.mubr.bf16.gmra.mrb[136].mxu1 %v7990_v55  ;;  %8336 = vmatmul.mubr.bf16.gmra.mrb[204].mxu0 %v8000_v3  ;;  %11426 = vpow2.f32 %v7110_v13  ;;  %v7507_v0 = vadd.f32 %v16733_v41, %v16727_v52  ;;  %v7769_v55 = vmul.f32 %v16691_v63, %v19643_v51  ;;  %v7118_v58 = vmul.f32 1.442695, %v6646_v44 }
 0x4ec   : > { %6428 = vmax.xlane.f32.xlu0 %v19639_v59  ;;  %v16751_v16 = vpop.eup %11406  ;;  %v19642_v59 = vld [vmem:[#allocation12_spill] sm:$0xff]  ;;  %8250 = vmatprep.mubr.bf16.mxu1 %v7993_v7  ;;  %11428 = vpow2.f32 %v7112_v18  ;;  %v6648_v3 = vsub.f32 %v19644_v35, %v6375_v42  ;;  %v6649_v39 = vsub.f32 %v19645_v24, %v6375_v42  ;;  %v19646_v7 = vld [vmem:[#allocation39_spill] sm:$0xff]  ;;  %v7317_v18 = vpop.xlane.xlu0 %7316  ;;  %v7992_v44 = vpack.c.bf16 %v7764_v19, %v7762_v17 }
 0x4ed   : > { %v6647_v34 = vsub.f32 %v19642_v59, %v6372_v11  ;;  %7505 = vadd.xlane.f32.xlu1 %v7504_v61  ;;  %v16758_v8 = vpop.eup %11408  ;;  %11430 = vpow2.f32 %v7114_v31  ;;  %v7462_v11 = vadd.f32 %v16409_v30, %v16405_v15  ;;  %v7767_v61 = vmul.f32 %v16744_v29, %v19646_v7 }
 0x4ee   : > { %v16762_v13 = vpop.eup %11410  ;;  %11432 = vpow2.f32 %v7116_v23  ;;  %v7465_v59 = vadd.f32 %v16422_v20, %v16415_v6  ;;  %v7122_v24 = vmul.f32 1.442695, %v6648_v3  ;;  %v7124_v7 = vmul.f32 1.442695, %v6649_v39  ;;  %v16775_v15 = vpop.xlane.xlu1 %7403  ;;  %v19647_v23 = vld [vmem:[#allocation30_spill] sm:$0xff]  ;;  %v19648_v6 = vld [vmem:[#allocation229_spill] sm:$0xff] }
 0x4ef   : > { %v16768_v5 = vpop.eup %11412  ;;  %11434 = vrcp.f32 %v16654_v25  ;;  %v7120_v51 = vmul.f32 1.442695, %v6647_v34  ;;  %v7995_v31 = vpack.c.bf16 %v7769_v55, %v7767_v61  ;;  %v19649_v34 = vld [vmem:[#allocation33_spill] sm:$0xff]  ;;  %v19650_v55 = vld [vmem:[#allocation228_spill] sm:$0xff] }
 0x4f0   : > { %7508 = vadd.xlane.f32.xlu0 %v7507_v0  ;;  %v11415_v42 = vpop.eup %11414  ;;  %v7510_v0 = vadd.f32 %v16758_v8, %v16751_v16  ;;  %11436 = vpow2.f32 %v7118_v58  ;;  %v16785_v58 = vpop.xlane.xlu0 %7406 }
 0x4f1   : > { %7463 = vadd.xlane.f32.xlu1 %v7462_v11  ;;  %v11417_v35 = vpop.eup %11416  ;;  %v7783_v17 = vmul.f32 %v11415_v42, %v19647_v23  ;;  %11438 = vrcp.f32 %v7314_v33  ;;  %v7782_v11 = vmul.f32 %v11415_v42, %v19649_v34 }
 0x4f2   : > { %v16778_v19 = vpop.eup %11418  ;;  %v7785_v25 = vmul.f32 %v11417_v35, %v19648_v6  ;;  %v7784_v61 = vmul.f32 %v11417_v35, %v19650_v55  ;;  %11440 = vrcp.f32 %v7317_v18  ;;  %v7513_v6 = vadd.f32 %v16768_v5, %v16762_v13  ;;  %v6378_v42 = vpop.xlane.xlu1 %6377  ;;  %v19652_v35 = vld [vmem:[#allocation50_spill] sm:$0xff] }
 0x4f3   : > { %v16783_v20 = vpop.eup %11420  ;;  %8251 = vmatmul.mubr.bf16.gmra.mrb[140].mxu1 %v7992_v44  ;;  %11442 = vpow2.f32 %v7120_v51  ;;  %v7768_v18 = vmul.f32 %v16691_v63, %v19652_v35  ;;  %v19653_v44 = vld [vmem:[#allocation224_spill] sm:$0xff] }
 0x4f4   : > { %7466 = vadd.xlane.f32.xlu0 %v7465_v59  ;;  %19651 = vst [vmem:[#allocation209_spill] sm:$0xff] %v16783_v20  ;;  %v16787_v3 = vpop.eup %11422  ;;  %8258 = vmatprep.mubr.bf16.mxu1 %v7995_v31  ;;  %v8003_v39 = vpack.c.bf16 %v7785_v25, %v7783_v17  ;;  %v8002_v33 = vpack.c.bf16 %v7784_v61, %v7782_v11  ;;  %11444 = vpow2.f32 %v7122_v24  ;;  %v19655_v51 = vld [vmem:[#allocation36_spill] sm:$0xff]  ;;  %v6381_v63 = vpop.xlane.xlu0 %6380  ;;  %v19657_v11 = vld [vmem:[#allocation9_spill] sm:$0xff]  ;;  %v19658_v61 = vld [vmem:[#allocation59_spill] sm:$0xff] }
 0x4f5   : > { %7511 = vadd.xlane.f32.xlu1 %v7510_v0  ;;  %v16791_v59 = vpop.eup %11424  ;;  %v7773_v23 = vmul.f32 %v16778_v19, %v19653_v44  ;;  %11446 = vpow2.f32 %v7124_v7  ;;  %v6650_v31 = vsub.f32 %v19655_v51, %v6378_v42  ;;  %v19656_v0 = vld [vmem:[#allocation11_spill] sm:$0xff]  ;;  %v7468_v25 = vadd.f32 %v16464_v14, %v16455_v54  ;;  %v19660_v44 = vld [vmem:[#allocation212_spill] sm:$0xff] }
 0x4f6   : > { %v16797_v34 = vpop.eup %11426  ;;  %8343 = vmatprep.mubr.bf16.mxu0 %v8003_v39  ;;  %v6651_v17 = vsub.f32 %v19656_v0, %v6378_v42  ;;  %11448 = vrcp.f32 %v16721_v46  ;;  %v7766_v55 = vmul.f32 %v16744_v29, %v19657_v11  ;;  %v7771_v7 = vmul.f32 %v16787_v3, %v19658_v61  ;;  %v19661_v0 = vld [vmem:[#allocation22_spill] sm:$0xff] }
 0x4f7   : > { %19654 = vst [vmem:[#allocation18_spill] sm:$0xff] %v16797_v34  ;;  %v16803_v24 = vpop.eup %11428  ;;  %8344 = vmatmul.mubr.bf16.gmra.mrb[208].mxu0 %v8002_v33  ;;  %v7471_v39 = vadd.f32 %v16478_v36, %v16474_v47  ;;  %v6652_v51 = vsub.f32 %v19660_v44, %v6381_v63  ;;  %v6653_v54 = vsub.f32 %v19661_v0, %v6381_v63  ;;  %11450 = vrcp.f32 %v16709_v57  ;;  %v7320_v33 = vpop.xlane.xlu1 %7319 }
 0x4f8   : > { %7514 = vadd.xlane.f32.xlu0 %v7513_v6  ;;  %v16812_v42 = vpop.eup %11430  ;;  %v7126_v6 = vmul.f32 1.442695, %v6650_v31  ;;  %v7128_v35 = vmul.f32 1.442695, %v6651_v17  ;;  %v7994_v29 = vpack.c.bf16 %v7768_v18, %v7766_v55  ;;  %v7997_v11 = vpack.c.bf16 %v7773_v23, %v7771_v7  ;;  %v10915_v23 = vld [vmem:[%s14841_s13 + $0x74] ss:$8 sps:$4 sm:$0xff]  }
 0x4f9   : > { %19659 = vst [vmem:[#allocation56_spill] sm:$0xff] %v16812_v42  ;;  %7469 = vadd.xlane.f32.xlu1 %v7468_v25  ;;  %v16816_v46 = vpop.eup %11432  ;;  %v7130_v47 = vmul.f32 1.442695, %v6652_v51  ;;  %v7132_v36 = vmul.f32 1.442695, %v6653_v54  ;;  %v7516_v31 = vadd.f32 %v16803_v24, %v16797_v34  ;;  %v7323_v25 = vpop.xlane.xlu0 %7322  ;;  %v7474_v18 = vadd.f32 %v16536_v48, %v16527_v2  ;;  %v19664_v51 = vld [vmem:[#allocation85_spill] sm:$0xff]  ;;  %8659 = vmatprep.subr.bf16.mxu0 %v10915_v23 }
 0x4fa   : > { %v11435_v61 = vpop.eup %11434  ;;  %11452 = vpow2.f32 %v7126_v6  ;;  %v7519_v57 = vadd.f32 %v16816_v46, %v16812_v42  ;;  %v10913_v54 = vld [vmem:[%s14841_s13 + $0x70] ss:$8 sps:$4 sm:$0xff]   ;;  %s11778_s13 = smov [#allocation2]  }
 0x4fb   : > { %v16821_v17 = vpop.eup %11436  ;;  %11454 = vpow2.f32 %v7128_v35  ;;  %8259 = vmatmul.mubr.bf16.gmra.mrb[144].mxu1 %v7994_v29  ;;  %v7410_v7 = vpop.xlane.xlu1 %7409  ;;  %v19663_v35 = vld [vmem:[#allocation223_spill] sm:$0xff]  ;;  %v19665_v29 = vld [vmem:[#allocation73_spill] sm:$0xff]  ;;  %v19667_v48 = vld [vmem:[#allocation236_spill] sm:$0xff]  ;;  %8660 = vmatpush1.bf16.xpose.msra.mxu0 %v10913_v54  ;;  %s11696_s18 = sshll.u32 %s11778_s13, 4  ;;  %s11697_s18 = int_to_ptr.vmem [resolvable:$false] %s11696_s18 }
 0x4fc   : > { %7472 = vadd.xlane.f32.xlu0 %v7471_v39  ;;  %v11439_v63 = vpop.eup %11438  ;;  %11456 = vpow2.f32 %v7130_v47  ;;  %8266 = vmatprep.mubr.bf16.mxu1 %v7997_v11  ;;  %v19662_v39 = vld [vmem:[#allocation234_spill] sm:$0xff]  ;;  %v7772_v44 = vmul.f32 %v16778_v19, %v19663_v35  ;;  %v7841_v47 = vmul.f32 %v11435_v61, %v19664_v51  ;;  %v19668_v42 = vld [vmem:[#allocation87_spill] sm:$0xff]  ;;  %s11698_s14 = scalar_lea.vmem %s11697_s18, 8192  ;;  %p11699_p1 = scmp.lt.s32.totalorder %s17642_s27, %s11697_s18 }
 0x4fd   : > { %7517 = vadd.xlane.f32.xlu1 %v7516_v31  ;;  %v11441_v55 = vpop.eup %11440  ;;  %11458 = vpow2.f32 %v7132_v36  ;;  %v7787_v6 = vmul.f32 %v11439_v63, %v19662_v39  ;;  %v19666_v31 = vld [vmem:[#allocation232_spill] sm:$0xff]  ;;  %v7413_v39 = vpop.xlane.xlu0 %7412  ;;  %v7770_v19 = vmul.f32 %v16787_v3, %v19668_v42  ;;  %v19669_v35 = vld [vmem:[#allocation226_spill] sm:$0xff]  ;;  %v19671_v54 = vld [vmem:[#allocation19_spill] sm:$0xff]  ;;  %p11700_p2 = scmp.lt.s32.totalorder %s11698_s14, %s11692_s12 }
 0x4fe   : > { %v16833_v0 = vpop.eup %11442  ;;  %11460 = vrcp.f32 %v7320_v33  ;;  %v7789_v11 = vmul.f32 %v11441_v55, %v19665_v29  ;;  %v7786_v2 = vmul.f32 %v11439_v63, %v19666_v31  ;;  %v7788_v34 = vmul.f32 %v11441_v55, %v19667_v48  ;;  %v19670_v3 = vld [vmem:[#allocation16_spill] sm:$0xff] }
 0x4ff   : > { %v16838_v36 = vpop.eup %11444  ;;  %11462 = vrcp.f32 %v7323_v25  ;;  %v7839_v51 = vmul.f32 %v16791_v59, %v19669_v35  ;;  %v7477_v48 = vadd.f32 %v16542_v53, %v16538_v62  ;;  %v7996_v25 = vpack.c.bf16 %v7772_v44, %v7770_v19  ;;  %v6384_v55 = vpop.xlane.xlu1 %6383  ;;  %v19674_v19 = vld [vmem:[#allocation20_spill] sm:$0xff]  ;;  %p11701_p3 = por %p11700_p2, %p11699_p1 }
 0x500   : > { %7520 = vadd.xlane.f32.xlu0 %v7519_v57  ;;  %v16844_v33 = vpop.eup %11446  ;;  %11464 = vrcp.f32 %v16785_v58  ;;  %v8005_v57 = vpack.c.bf16 %v7789_v11, %v7787_v6  ;;  %v8004_v63 = vpack.c.bf16 %v7788_v34, %v7786_v2  ;;  %v6654_v42 = vsub.f32 %v19670_v3, %v6384_v55  ;;  %v19672_v34 = vld [vmem:[#allocation57_spill] sm:$0xff] }
 0x501   : > { %7475 = vadd.xlane.f32.xlu1 %v7474_v18  ;;  %v16849_v23 = vpop.eup %11448  ;;  %v8031_v29 = vpack.c.bf16 %v7841_v47, %v7839_v51  ;;  %11466 = vrcp.f32 %v16775_v15  ;;  %v6655_v31 = vsub.f32 %v19671_v54, %v6384_v55  ;;  %v7522_v58 = vadd.f32 %v16833_v0, %v16821_v17  ;;  %v6387_v6 = vpop.xlane.xlu0 %6386  ;;  %v19675_v51 = vld [vmem:[#allocation49_spill] sm:$0xff]  ;;  %p11702_p5 = pnand %p11701_p3, %p11695_p0 }
 0x502   : > { %8351 = vmatprep.mubr.bf16.mxu0 %v8005_v57  ;;  %v16856_v2 = vpop.eup %11450  ;;  %v7840_v18 = vmul.f32 %v11435_v61, %v19672_v34  ;;  %11468 = vrcp.f32 %v7410_v7  ;;  %v7525_v15 = vadd.f32 %v16844_v33, %v16838_v36  ;;  %v7134_v47 = vmul.f32 1.442695, %v6654_v42  ;;  %v19679_v3 = vld [vmem:[#allocation225_spill] sm:$0xff] }
 0x503   : > { %8267 = vmatmul.mubr.bf16.gmra.mrb[148].mxu1 %v7996_v25  ;;  %8352 = vmatmul.mubr.bf16.gmra.mrb[212].mxu0 %v8004_v63  ;;  %v7136_v11 = vmul.f32 1.442695, %v6655_v31  ;;  %v6656_v35 = vsub.f32 %v19674_v19, %v6387_v6  ;;  %v6657_v57 = vsub.f32 %v19675_v51, %v6387_v6  ;;  %11470 = vrcp.f32 %v7413_v39  ;;  %v7326_v61 = vpop.xlane.xlu1 %7325  ;;  %v19677_v63 = vld [vmem:[#allocation108_spill] sm:$0xff] }
 0x504   : > { %7478 = vadd.xlane.f32.xlu0 %v7477_v48  ;;  %v16861_v44 = vpop.eup %11452  ;;  %8508 = vmatprep.mubr.bf16.mxu1 %v8031_v29  ;;  %v7480_v7 = vadd.f32 %v16599_v9, %v16594_v56  ;;  %v7845_v25 = vmul.f32 %v16849_v23, %v19677_v63  ;;  %v7838_v29 = vmul.f32 %v16791_v59, %v19679_v3  ;;  %11472 = vpow2.f32 %v7134_v47  ;;  %v19683_v3 = vld [vmem:[#allocation80_spill] sm:$0xff]  ;;  %v19728_v56 = vld [vmem:[#allocation221_spill] sm:$0xff] }
 0x505   : > { %19673 = vst [vmem:[#allocation45_spill] sm:$0xff] %v16861_v44  ;;  %7523 = vadd.xlane.f32.xlu1 %v7522_v58  ;;  %v16865_v48 = vpop.eup %11454  ;;  %v7138_v42 = vmul.f32 1.442695, %v6656_v35  ;;  %v7140_v54 = vmul.f32 1.442695, %v6657_v57  ;;  %11474 = vpow2.f32 %v7136_v11  ;;  %v7329_v39 = vpop.xlane.xlu0 %7328  ;;  %v19681_v58 = vld [vmem:[#allocation93_spill] sm:$0xff]  ;;  %v7483_v51 = vadd.f32 %v16783_v20, %v16735_v49 }
 0x506   : > { %19676 = vst [vmem:[#allocation44_spill] sm:$0xff] %v16865_v48  ;;  %v16871_v55 = vpop.eup %11456  ;;  %v7843_v34 = vmul.f32 %v16856_v2, %v19681_v58  ;;  %v8030_v19 = vpack.c.bf16 %v7840_v18, %v7838_v29  ;;  %v19682_v35 = vld [vmem:[#allocation244_spill] sm:$0xff]  ;;  %v7528_v11 = vadd.f32 %v16865_v48, %v16861_v44  ;;  %v19685_v18 = vld [vmem:[#allocation245_spill] sm:$0xff]  ;;  %v19727_v48 = vld [vmem:[#allocation219_spill] sm:$0xff] }
 0x507   : > { %19678 = vst [vmem:[#allocation151_spill] sm:$0xff] %v16871_v55  ;;  %v16875_v31 = vpop.eup %11458  ;;  %11476 = vpow2.f32 %v7138_v42  ;;  %v7416_v59 = vpop.xlane.xlu1 %7415  ;;  %v19684_v42 = vld [vmem:[#allocation242_spill] sm:$0xff] }
 0x508   : > { %7526 = vadd.xlane.f32.xlu0 %v7525_v15  ;;  %19680 = vst [vmem:[#allocation146_spill] sm:$0xff] %v16875_v31  ;;  %v11461_v6 = vpop.eup %11460  ;;  %11478 = vpow2.f32 %v7140_v54  ;;  %v8033_v47 = vpack.c.bf16 %v7845_v25, %v7843_v34 }
 0x509   : > { %7481 = vadd.xlane.f32.xlu1 %v7480_v7  ;;  %v11463_v63 = vpop.eup %11462  ;;  %v7791_v15 = vmul.f32 %v11461_v6, %v19682_v35  ;;  %11480 = vrcp.f32 %v7326_v61  ;;  %v7790_v7 = vmul.f32 %v11461_v6, %v19684_v42  ;;  %v7419_v49 = vpop.xlane.xlu0 %7418  ;;  %v7531_v35 = vadd.f32 %v16875_v31, %v16871_v55  ;;  %v19687_v6 = vld [vmem:[#allocation239_spill] sm:$0xff] }
 0x50a   : > { %v11465_v57 = vpop.eup %11464  ;;  %v7793_v58 = vmul.f32 %v11463_v63, %v19683_v3  ;;  %v7792_v29 = vmul.f32 %v11463_v63, %v19685_v18  ;;  %11482 = vrcp.f32 %v7329_v39  ;;  %v19688_v39 = vld [vmem:[#allocation72_spill] sm:$0xff]  ;;  %v19689_v63 = vld [vmem:[#allocation62_spill] sm:$0xff] }
 0x50b   : > { %8509 = vmatmul.mubr.bf16.vlgmr.msra.gmra.mrb[152].mxu1 %v8030_v19  ;;  %v11467_v54 = vpop.eup %11466  ;;  %v6390_v61 = vpop.xlane.xlu1 %6389  ;;  %v7849_v42 = vmul.f32 %v11465_v57, %v19687_v6  ;;  %11484 = vrcp.f32 %v7419_v49 }
 0x50c   : > { %7484 = vadd.xlane.f32.xlu0 %v7483_v51  ;;  %8516 = vmatprep.mubr.bf16.mxu1 %v8033_v47  ;;  %v8007_v25 = vpack.c.bf16 %v7793_v58, %v7791_v15  ;;  %v8006_v34 = vpack.c.bf16 %v7792_v29, %v7790_v7  ;;  %v16889_v44 = vpop.eup %11468  ;;  %v19686_v51 = vld [vmem:[#allocation94_spill] sm:$0xff]  ;;  %v6658_v19 = vsub.f32 %v19688_v39, %v6390_v61  ;;  %v19691_v7 = vld [vmem:[#allocation61_spill] sm:$0xff]  ;;  %11486 = vrcp.f32 %v7416_v59 }
 0x50d   : > { %7529 = vadd.xlane.f32.xlu1 %v7528_v11  ;;  %v7844_v3 = vmul.f32 %v16849_v23, %v19686_v51  ;;  %v6659_v18 = vsub.f32 %v19689_v63, %v6390_v61  ;;  %v16896_v47 = vpop.eup %11470  ;;  %v19690_v11 = vld [vmem:[#allocation231_spill] sm:$0xff]  ;;  %v7847_v29 = vmul.f32 %v11467_v54, %v19691_v7  ;;  %v19694_v39 = vld [vmem:[#allocation37_spill] sm:$0xff] }
 0x50e   : > { %8359 = vmatprep.mubr.bf16.mxu0 %v8007_v25  ;;  %v6393_v15 = vpop.xlane.xlu0 %6392  ;;  %v7842_v58 = vmul.f32 %v16856_v2, %v19690_v11  ;;  %v16901_v55 = vpop.eup %11472  ;;  %v7142_v23 = vmul.f32 1.442695, %v6658_v19  ;;  %v19693_v25 = vld [vmem:[#allocation8_spill] sm:$0xff]  ;;  %v10916_v2 = vld [vmem:[%s17700_s4] sm:$0xff]  }
 0x50f   : > { %8360 = vmatmul.mubr.bf16.gmra.mrb[216].mxu0 %v8006_v34  ;;  %19692 = vst [vmem:[#allocation166_spill] sm:$0xff] %v16901_v55  ;;  %v7144_v51 = vmul.f32 1.442695, %v6659_v18  ;;  %v6660_v6 = vsub.f32 %v19693_v25, %v6393_v15  ;;  %v6661_v31 = vsub.f32 %v19694_v39, %v6393_v15  ;;  %v16905_v61 = vpop.eup %11474  ;;  %v7332_v49 = vpop.xlane.xlu1 %7331  ;;  %v8035_v34 = vpack.c.bf16 %v7849_v42, %v7847_v29  ;;  %v19701_v39 = vld [vmem:[#allocation115_spill] sm:$0xff] }
 0x510   : > { %7532 = vadd.xlane.f32.xlu0 %v7531_v35  ;;  %19695 = vst [vmem:[#allocation148_spill] sm:$0xff] %v16905_v61  ;;  %v8032_v35 = vpack.c.bf16 %v7844_v3, %v7842_v58  ;;  %11488 = vpow2.f32 %v7142_v23  ;;  %v7534_v18 = vadd.f32 %v16905_v61, %v16901_v55  ;;  %10505 = vmatprep.subr.bf16.mxu1 %v10916_v2  ;;  %v19699_v23 = vld [vmem:[#allocation237_spill] sm:$0xff] }
 0x511   : > { %v16910_v63 = vpop.eup %11476  ;;  %v7146_v11 = vmul.f32 1.442695, %v6660_v6  ;;  %v7148_v19 = vmul.f32 1.442695, %v6661_v31  ;;  %11490 = vpow2.f32 %v7144_v51  ;;  %v19698_v31 = vld [vmem:[#allocation113_spill] sm:$0xff]  ;;  %v7848_v25 = vmul.f32 %v11465_v57, %v19699_v23  ;;  %v19700_v6 = vld [vmem:[#allocation218_spill] sm:$0xff]  ;;  %10506 = vmatpush3.bf16.msra.mxu1 %v10916_v2 }
 0x512   : > { %19696 = vst [vmem:[#allocation149_spill] sm:$0xff] %v16910_v63  ;;  %v16914_v7 = vpop.eup %11478  ;;  %v7335_v59 = vpop.xlane.xlu0 %7334  ;;  %7535 = vadd.xlane.f32.xlu1 %v7534_v18  ;;  %v7853_v51 = vmul.f32 %v16896_v47, %v19700_v6  ;;  %v19703_v18 = vld [vmem:[#allocation109_spill] sm:$0xff]  ;;  %v19705_v57 = vld [vmem:[#allocation247_spill] sm:$0xff] }
 0x513   : > { %19697 = vst [vmem:[#allocation150_spill] sm:$0xff] %v16914_v7  ;;  %8517 = vmatmul.mubr.bf16.gmra.mrb[156].mxu1 %v8032_v35  ;;  %v11481_v3 = vpop.eup %11480  ;;  %11492 = vpow2.f32 %v7146_v11  ;;  %v7537_v42 = vadd.f32 %v16914_v7, %v16910_v63  ;;  %v7422_v58 = vpop.xlane.xlu1 %7421  ;;  %v7851_v23 = vmul.f32 %v16889_v44, %v19705_v57 }
 0x514   : > { %8524 = vmatprep.mubr.bf16.mxu1 %v8035_v34  ;;  %v11483_v15 = vpop.eup %11482  ;;  %11494 = vpow2.f32 %v7148_v19  ;;  %v7795_v29 = vmul.f32 %v11481_v3, %v19698_v31  ;;  %v19702_v34 = vld [vmem:[#allocation68_spill] sm:$0xff]  ;;  %v19704_v19 = vld [vmem:[#allocation74_spill] sm:$0xff] }
 0x515   : > { %11496 = vrcp.f32 %v7332_v49  ;;  %7538 = vadd.xlane.f32.xlu0 %v7537_v42  ;;  %v7797_v35 = vmul.f32 %v11483_v15, %v19701_v39  ;;  %v7794_v11 = vmul.f32 %v11481_v3, %v19702_v34  ;;  %v7796_v55 = vmul.f32 %v11483_v15, %v19703_v18  ;;  %v11485_v6 = vpop.eup %11484 }
 0x516   : > { %11498 = vrcp.f32 %v7335_v59  ;;  %v7425_v63 = vpop.xlane.xlu0 %7424  ;;  %v7846_v7 = vmul.f32 %v11467_v54, %v19704_v19  ;;  %v8037_v42 = vpack.c.bf16 %v7853_v51, %v7851_v23  ;;  %v11487_v3 = vpop.eup %11486 }
 0x517   : > { %11500 = vrcp.f32 %v7422_v58  ;;  %v8009_v31 = vpack.c.bf16 %v7797_v35, %v7795_v29  ;;  %v8008_v61 = vpack.c.bf16 %v7796_v55, %v7794_v11  ;;  %v7338_v2 = vpop.xlane.xlu1 %7337  ;;  %v19708_v58 = vld [vmem:[#allocation67_spill] sm:$0xff]  ;;  %v19712_v35 = vld [vmem:[#allocation246_spill] sm:$0xff] }
 0x518   : > { %11502 = vrcp.f32 %v7425_v63  ;;  %v8034_v49 = vpack.c.bf16 %v7848_v25, %v7846_v7  ;;  %v7852_v29 = vmul.f32 %v16896_v47, %v19708_v58  ;;  %v19709_v63 = vld [vmem:[#allocation88_spill] sm:$0xff]  ;;  %v7850_v34 = vmul.f32 %v16889_v44, %v19712_v35  ;;  %v19713_v11 = vld [vmem:[#allocation42_spill] sm:$0xff] }
 0x519   : > { %8367 = vmatprep.mubr.bf16.mxu0 %v8009_v31  ;;  %11504 = vrcp.f32 %v7338_v2  ;;  %v7857_v7 = vmul.f32 %v11485_v6, %v19709_v63  ;;  %v7855_v18 = vmul.f32 %v11487_v3, %v19713_v11  ;;  %v19714_v2 = vld [vmem:[#allocation89_spill] sm:$0xff]  ;;  %v19715_v58 = vld [vmem:[#allocation90_spill] sm:$0xff]  ;;  %v19716_v44 = vld [vmem:[#allocation132_spill] sm:$0xff] }
 0x51a   : > { %8368 = vmatmul.mubr.bf16.gmra.mrb[220].mxu0 %v8008_v61  ;;  %v7341_v59 = vpop.xlane.xlu0 %7340  ;;  %v16928_v15 = vpop.eup %11488  ;;  %v8036_v57 = vpack.c.bf16 %v7852_v29, %v7850_v34  ;;  %v19717_v11 = vld [vmem:[#allocation133_spill] sm:$0xff]  ;;  %v19718_v34 = vld [vmem:[#allocation130_spill] sm:$0xff] }
 0x51b   : > { %8525 = vmatmul.mubr.bf16.gmra.mrb[160].mxu1 %v8034_v49  ;;  %19706 = vst [vmem:[#allocation65_spill] sm:$0xff] %v16928_v15  ;;  %11506 = vrcp.f32 %v7341_v59  ;;  %v16930_v54 = vpop.eup %11490  ;;  %v7428_v55 = vpop.xlane.xlu1 %7427  ;;  %v8039_v49 = vpack.c.bf16 %v7857_v7, %v7855_v18  ;;  %v7856_v18 = vmul.f32 %v11485_v6, %v19718_v34 }
 0x51c   : > { %8532 = vmatprep.mubr.bf16.mxu1 %v8037_v42  ;;  %19707 = vst [vmem:[#allocation10_spill] sm:$0xff] %v16930_v54  ;;  %v7540_v51 = vadd.f32 %v16930_v54, %v16928_v15  ;;  %v19723_v15 = vld [vmem:[#allocation76_spill] sm:$0xff] }
 0x51d   : > { %v16935_v25 = vpop.eup %11492 }
 0x51e   : > { %19710 = vst [vmem:[#allocation31_spill] sm:$0xff] %v16935_v25  ;;  %v16939_v61 = vpop.eup %11494  ;;  %v7431_v39 = vpop.xlane.xlu0 %7430  ;;  %7541 = vadd.xlane.f32.xlu1 %v7540_v51 }
 0x51f   : > { %19711 = vst [vmem:[#allocation38_spill] sm:$0xff] %v16939_v61  ;;  %v11497_v19 = vpop.eup %11496  ;;  %v7543_v47 = vadd.f32 %v16939_v61, %v16935_v25  ;;  %11508 = vrcp.f32 %v7431_v39  ;;  %v7344_v23 = vpop.xlane.xlu1 %7343 }
 0x520   : > { %v11499_v31 = vpop.eup %11498  ;;  %v7799_v42 = vmul.f32 %v11497_v19, %v19714_v2  ;;  %11510 = vrcp.f32 %v7344_v23  ;;  %v7798_v35 = vmul.f32 %v11497_v19, %v19716_v44  ;;  %v19721_v44 = vld [vmem:[#allocation105_spill] sm:$0xff] }
 0x521   : > { %v11501_v59 = vpop.eup %11500  ;;  %7544 = vadd.xlane.f32.xlu0 %v7543_v47  ;;  %v7801_v63 = vmul.f32 %v11499_v31, %v19715_v58  ;;  %v7800_v54 = vmul.f32 %v11499_v31, %v19717_v11  ;;  %11512 = vrcp.f32 %v7428_v55  ;;  %v19719_v47 = vld [vmem:[#allocation35_spill] sm:$0xff]  ;;  %v19720_v58 = vld [vmem:[#allocation34_spill] sm:$0xff]  ;;  %v7854_v31 = vmul.f32 %v11487_v3, %v19721_v44 }
 0x522   : > { %v11503_v51 = vpop.eup %11502  ;;  %v7347_v61 = vpop.xlane.xlu0 %7346  ;;  %v19722_v11 = vld [vmem:[#allocation131_spill] sm:$0xff] }
 0x523   : > { %8533 = vmatmul.mubr.bf16.gmra.mrb[164].mxu1 %v8036_v57  ;;  %v11505_v25 = vpop.eup %11504  ;;  %v8011_v29 = vpack.c.bf16 %v7801_v63, %v7799_v42  ;;  %11514 = vrcp.f32 %v7347_v61  ;;  %v8010_v7 = vpack.c.bf16 %v7800_v54, %v7798_v35  ;;  %v7861_v55 = vmul.f32 %v11503_v51, %v19722_v11  ;;  %v19724_v42 = vld [vmem:[#allocation64_spill] sm:$0xff]  ;;  %v19725_v54 = vld [vmem:[#allocation23_spill] sm:$0xff]  ;;  %v19729_v11 = vld [vmem:[#allocation129_spill] sm:$0xff] }
 0x524   : > { %8540 = vmatprep.mubr.bf16.mxu1 %v8039_v49  ;;  %v7859_v49 = vmul.f32 %v11501_v59, %v19723_v15  ;;  %v7803_v61 = vmul.f32 %v11505_v25, %v19724_v42  ;;  %v19726_v35 = vld [vmem:[#allocation24_spill] sm:$0xff] }
 0x525   : > { %v6396_v39 = vpop.xlane.xlu1 %6395  ;;  %v11507_v23 = vpop.eup %11506  ;;  %8375 = vmatprep.mubr.bf16.mxu0 %v8011_v29 }
 0x526   : > { %v6662_v2 = vsub.f32 %v19719_v47, %v6396_v39  ;;  %v6663_v19 = vsub.f32 %v19720_v58, %v6396_v39  ;;  %8376 = vmatmul.mubr.bf16.gmra.mrb[224].mxu0 %v8010_v7  ;;  %v7805_v63 = vmul.f32 %v11507_v23, %v19725_v54  ;;  %v7804_v6 = vmul.f32 %v11507_v23, %v19726_v35  ;;  %v19732_v54 = vld [vmem:[#allocation86_spill] sm:$0xff] }
 0x527   : > { %v6399_v57 = vpop.xlane.xlu0 %6398  ;;  %v8038_v58 = vpack.c.bf16 %v7856_v18, %v7854_v31  ;;  %v7802_v7 = vmul.f32 %v11505_v25, %v19729_v11  ;;  %v8041_v9 = vpack.c.bf16 %v7861_v55, %v7859_v49  ;;  %v19730_v18 = vld [vmem:[#allocation127_spill] sm:$0xff] }
 0x528   : > { %v7150_v34 = vmul.f32 1.442695, %v6662_v2  ;;  %v7152_v29 = vmul.f32 1.442695, %v6663_v19  ;;  %v6664_v47 = vsub.f32 %v19727_v48, %v6399_v57  ;;  %v6665_v39 = vsub.f32 %v19728_v56, %v6399_v57  ;;  %v19731_v25 = vld [vmem:[#allocation55_spill] sm:$0xff] }
 0x529   : > { %v7350_v3 = vpop.xlane.xlu1 %7349  ;;  %v8013_v44 = vpack.c.bf16 %v7805_v63, %v7803_v61  ;;  %v11509_v42 = vpop.eup %11508  ;;  %v8012_v2 = vpack.c.bf16 %v7804_v6, %v7802_v7  ;;  %v7860_v31 = vmul.f32 %v11503_v51, %v19730_v18  ;;  %v7858_v61 = vmul.f32 %v11501_v59, %v19731_v25  ;;  %v19733_v63 = vld [vmem:[#allocation143_spill] sm:$0xff]  ;;  %v19734_v6 = vld [vmem:[#allocation141_spill] sm:$0xff] }
 0x52a   : > { %11516 = vpow2.f32 %v7150_v34  ;;  %v7154_v20 = vmul.f32 1.442695, %v6664_v47  ;;  %v7156_v15 = vmul.f32 1.442695, %v6665_v39  ;;  %v11511_v19 = vpop.eup %11510  ;;  %v7865_v55 = vmul.f32 %v11509_v42, %v19732_v54 }
 0x52b   : > { %11518 = vpow2.f32 %v7152_v29  ;;  %8541 = vmatmul.mubr.bf16.gmra.mrb[168].mxu1 %v8038_v58  ;;  %8383 = vmatprep.mubr.bf16.mxu0 %v8013_v44  ;;  %v7353_v23 = vpop.xlane.xlu0 %7352  ;;  %v11513_v48 = vpop.eup %11512  ;;  %v7807_v35 = vmul.f32 %v11511_v19, %v19733_v63  ;;  %v19736_v29 = vld [vmem:[#allocation28_spill] sm:$0xff]  ;;  %v8040_v51 = vpack.c.bf16 %v7860_v31, %v7858_v61 }
 0x52c   : > { %11520 = vpow2.f32 %v7154_v20  ;;  %8548 = vmatprep.mubr.bf16.mxu1 %v8041_v9  ;;  %v19735_v20 = vld [vmem:[#allocation147_spill] sm:$0xff]  ;;  %v7863_v47 = vmul.f32 %v11513_v48, %v19736_v29 }
 0x52d   : > { %11522 = vpow2.f32 %v7156_v15  ;;  %v7434_v56 = vpop.xlane.xlu1 %7433  ;;  %v11515_v57 = vpop.eup %11514 }
 0x52e   : > { %11524 = vrcp.f32 %v7350_v3  ;;  %8384 = vmatmul.mubr.bf16.gmra.mrb[228].mxu0 %v8012_v2  ;;  %v7809_v34 = vmul.f32 %v11515_v57, %v19734_v6  ;;  %v7808_v9 = vmul.f32 %v11515_v57, %v19735_v20  ;;  %v19737_v3 = vld [vmem:[#allocation99_spill] sm:$0xff]  ;;  %v8043_v44 = vpack.c.bf16 %v7865_v55, %v7863_v47  ;;  %v19738_v57 = vld [vmem:[#allocation84_spill] sm:$0xff] }
 0x52f   : > { %11526 = vrcp.f32 %v7353_v23  ;;  %v7437_v49 = vpop.xlane.xlu0 %7436  ;;  %v7806_v59 = vmul.f32 %v11511_v19, %v19737_v3  ;;  %v16970_v11 = vpop.f32.mrb[88].mxu1  ;;  %v7864_v19 = vmul.f32 %v11509_v42, %v19738_v57  ;;  %v19741_v3 = vld [vmem:[#allocation92_spill] sm:$0xff] }
 0x530   : > { %11528 = vrcp.f32 %v7434_v56  ;;  %v8015_v58 = vpack.c.bf16 %v7809_v34, %v7807_v35  ;;  %v8150_v2 = vpop.f32.mrb[89].mxu1  ;;  %v19740_v34 = vld [vmem:[#allocation83_spill] sm:$0xff]  ;;  %v19743_v57 = vld [vmem:[#allocation152_spill] sm:$0xff] }
 0x531   : > { %11530 = vrcp.f32 %v7437_v49  ;;  %v7356_v39 = vpop.xlane.xlu1 %7355  ;;  %v8014_v15 = vpack.c.bf16 %v7808_v9, %v7806_v59  ;;  %v16976_v18 = vpop.f32.mrb[90].mxu1  ;;  %v7862_v20 = vmul.f32 %v11513_v48, %v19740_v34  ;;  %v10917_v48 = vld [vmem:[%s17700_s4 + $0x8] sm:$0xff]  }
 0x532   : > { %11532 = vrcp.f32 %v7356_v39  ;;  %8391 = vmatprep.mubr.bf16.mxu0 %v8015_v58  ;;  %v8153_v54 = vpop.f32.mrb[91].mxu1  ;;  %v19742_v2 = vld [vmem:[#allocation154_spill] sm:$0xff]  ;;  %10507 = vmatprep.subr.bf16.mxu1 %v10917_v48 }
 0x533   : > { %8549 = vmatmul.mubr.bf16.gmra.mrb[172].mxu1 %v8040_v51  ;;  %v7359_v7 = vpop.xlane.xlu0 %7358  ;;  %v8042_v39 = vpack.c.bf16 %v7864_v19, %v7862_v20  ;;  %v19744_v54 = vld [vmem:[#allocation153_spill] sm:$0xff]  ;;  %v19746_v20 = vld [vmem:[#allocation102_spill] sm:$0xff] }
 0x534   : > { %v16972_v23 = vpop.eup %11516  ;;  %8556 = vmatprep.mubr.bf16.mxu1 %v8043_v44  ;;  %11534 = vrcp.f32 %v7359_v7  ;;  %10508 = vmatpush3.bf16.msra.mxu1 %v10917_v48 }
 0x535   : > { %v16974_v56 = vpop.eup %11518  ;;  %v6402_v31 = vpop.xlane.xlu1 %6401 }
 0x536   : > { %v16979_v25 = vpop.eup %11520  ;;  %v6666_v55 = vsub.f32 %v19490_v26, %v6402_v31  ;;  %v6667_v49 = vsub.f32 %v19491_v50, %v6402_v31  ;;  %v7546_v63 = vadd.f32 %v16974_v56, %v16972_v23  ;;  %8392 = vmatmul.mubr.bf16.gmra.mrb[232].mxu0 %v8014_v15 }
 0x537   : > { %v16987_v35 = vpop.eup %11522  ;;  %v6405_v6 = vpop.xlane.xlu0 %6404 }
 0x538   : > { %19739 = vst [vmem:[#allocation14_spill] sm:$0xff] %v16987_v35  ;;  %v11525_v42 = vpop.eup %11524  ;;  %v7158_v9 = vmul.f32 1.442695, %v6666_v55  ;;  %v7160_v29 = vmul.f32 1.442695, %v6667_v49  ;;  %7547 = vadd.xlane.f32.xlu1 %v7546_v63  ;;  %v6668_v47 = vsub.f32 %v19495_v38, %v6405_v6  ;;  %v6669_v51 = vsub.f32 %v19496_v45, %v6405_v6  ;;  %v19745_v49 = vld [vmem:[#allocation101_spill] sm:$0xff] }
 0x539   : > { %v11527_v26 = vpop.eup %11526  ;;  %v7362_v50 = vpop.xlane.xlu1 %7361  ;;  %v7549_v58 = vadd.f32 %v16987_v35, %v16979_v25  ;;  %v7811_v59 = vmul.f32 %v11525_v42, %v19741_v3  ;;  %v7810_v19 = vmul.f32 %v11525_v42, %v19743_v57  ;;  %v19749_v57 = vld [vmem:[#allocation95_spill] sm:$0xff] }
 0x53a   : > { %v11529_v44 = vpop.eup %11528  ;;  %11536 = vpow2.f32 %v7158_v9  ;;  %v7162_v7 = vmul.f32 1.442695, %v6668_v47  ;;  %v7164_v15 = vmul.f32 1.442695, %v6669_v51  ;;  %v7813_v38 = vmul.f32 %v11527_v26, %v19742_v2  ;;  %v19747_v47 = vld [vmem:[#allocation58_spill] sm:$0xff]  ;;  %v17005_v42 = vpop.f32.mrb[92].mxu1 }
 0x53b   : > { %v11531_v31 = vpop.eup %11530  ;;  %11538 = vpow2.f32 %v7160_v29  ;;  %8557 = vmatmul.mubr.bf16.gmra.mrb[176].mxu1 %v8042_v39  ;;  %7550 = vadd.xlane.f32.xlu0 %v7549_v58  ;;  %v7365_v45 = vpop.xlane.xlu0 %7364  ;;  %v7812_v55 = vmul.f32 %v11527_v26, %v19744_v54  ;;  %v7867_v63 = vmul.f32 %v11529_v44, %v19745_v49  ;;  %v19748_v39 = vld [vmem:[#allocation145_spill] sm:$0xff]  ;;  %v19750_v54 = vld [vmem:[#allocation96_spill] sm:$0xff] }
 0x53c   : > { %v11533_v6 = vpop.eup %11532  ;;  %11540 = vpow2.f32 %v7162_v7  ;;  %v8017_v34 = vpack.c.bf16 %v7813_v38, %v7811_v59  ;;  %v7869_v9 = vmul.f32 %v11531_v31, %v19746_v20  ;;  %v7868_v51 = vmul.f32 %v11531_v31, %v19747_v47  ;;  %v8158_v59 = vpop.f32.mrb[93].mxu1 }
 0x53d   : > { %11542 = vpow2.f32 %v7164_v15  ;;  %v8016_v3 = vpack.c.bf16 %v7812_v55, %v7810_v19  ;;  %v7440_v29 = vpop.xlane.xlu1 %7439  ;;  %v7866_v58 = vmul.f32 %v11529_v44, %v19748_v39  ;;  %v7815_v7 = vmul.f32 %v11533_v6, %v19749_v57  ;;  %v19751_v19 = vld [vmem:[#allocation47_spill] sm:$0xff]  ;;  %v17010_v44 = vpop.f32.mrb[94].mxu1 }
 0x53e   : > { %v11535_v2 = vpop.eup %11534  ;;  %11544 = vrcp.f32 %v7362_v50  ;;  %8399 = vmatprep.mubr.bf16.mxu0 %v8017_v34  ;;  %v8045_v26 = vpack.c.bf16 %v7869_v9, %v7867_v63  ;;  %v8161_v48 = vpop.f32.mrb[95].mxu1 }
 0x53f   : > { %11546 = vrcp.f32 %v7365_v45  ;;  %8400 = vmatmul.mubr.bf16.gmra.mrb[236].mxu0 %v8016_v3  ;;  %v7443_v38 = vpop.xlane.xlu0 %7442  ;;  %v8044_v31 = vpack.c.bf16 %v7868_v51, %v7866_v58  ;;  %v7817_v15 = vmul.f32 %v11535_v2, %v19750_v54  ;;  %v7816_v55 = vmul.f32 %v11535_v2, %v19751_v19  ;;  %v19752_v45 = vld [vmem:[#allocation161_spill] sm:$0xff]  ;;  %v19759_v48 = vld [vmem:[#allocation98_spill] sm:$0xff] }
 0x540   : > { %11548 = vrcp.f32 %v7440_v29  ;;  %8564 = vmatprep.mubr.bf16.mxu1 %v8045_v26  ;;  %v7814_v34 = vmul.f32 %v11533_v6, %v19752_v45 }
 0x541   : > { %11550 = vrcp.f32 %v7443_v38  ;;  %v7368_v49 = vpop.xlane.xlu1 %7367  ;;  %v8019_v63 = vpack.c.bf16 %v7817_v15, %v7815_v7 }
 0x542   : > { %11552 = vrcp.f32 %v7368_v49  ;;  %v8018_v9 = vpack.c.bf16 %v7816_v55, %v7814_v34 }
 0x543   : > { %8565 = vmatmul.mubr.bf16.gmra.mrb[180].mxu1 %v8044_v31  ;;  %8407 = vmatprep.mubr.bf16.mxu0 %v8019_v63  ;;  %v7371_v20 = vpop.xlane.xlu0 %7370  ;;  %v19757_v31 = vld [vmem:[#allocation66_spill] sm:$0xff] }
 0x544   : > { %v17015_v47 = vpop.eup %11536  ;;  %11554 = vrcp.f32 %v7371_v20 }
 0x545   : > { %19753 = vst [vmem:[#allocation29_spill] sm:$0xff] %v17015_v47  ;;  %v17017_v51 = vpop.eup %11538  ;;  %v6408_v3 = vpop.xlane.xlu1 %6407 }
 0x546   : > { %19754 = vst [vmem:[#allocation155_spill] sm:$0xff] %v17017_v51  ;;  %v17019_v29 = vpop.eup %11540  ;;  %v6670_v39 = vsub.f32 %v19524_v60, %v6408_v3  ;;  %v6671_v58 = vsub.f32 %v19525_v12, %v6408_v3  ;;  %v7552_v6 = vadd.f32 %v17017_v51, %v17015_v47  ;;  %v19758_v12 = vld [vmem:[#allocation119_spill] sm:$0xff]  ;;  %v17033_v45 = vpop.f32.mrb[96].mxu1  ;;  %v19783_v47 = vld [vmem:[#allocation97_spill] sm:$0xff] }
 0x547   : > { %19755 = vst [vmem:[#allocation176_spill] sm:$0xff] %v17019_v29  ;;  %v17025_v2 = vpop.eup %11542  ;;  %8408 = vmatmul.mubr.bf16.gmra.mrb[240].mxu0 %v8018_v9  ;;  %v6411_v26 = vpop.xlane.xlu0 %6410  ;;  %v19760_v9 = vld [vmem:[#allocation165_spill] sm:$0xff]  ;;  %v19782_v51 = vld [vmem:[#allocation7_spill] sm:$0xff] }
 0x548   : > { %19756 = vst [vmem:[#allocation27_spill] sm:$0xff] %v17025_v2  ;;  %v11545_v57 = vpop.eup %11544  ;;  %v7166_v7 = vmul.f32 1.442695, %v6670_v39  ;;  %v7168_v59 = vmul.f32 1.442695, %v6671_v58  ;;  %7553 = vadd.xlane.f32.xlu1 %v7552_v6  ;;  %v6672_v38 = vsub.f32 %v19532_v4, %v6411_v26  ;;  %v6673_v54 = vsub.f32 %v19757_v31, %v6411_v26  ;;  %v8166_v39 = vpop.f32.mrb[97].mxu1 }
 0x549   : > { %v11547_v15 = vpop.eup %11546  ;;  %v7374_v19 = vpop.xlane.xlu1 %7373  ;;  %v7555_v60 = vadd.f32 %v17025_v2, %v17019_v29  ;;  %v7819_v55 = vmul.f32 %v11545_v57, %v19758_v12  ;;  %v7818_v49 = vmul.f32 %v11545_v57, %v19759_v48  ;;  %v19761_v6 = vld [vmem:[#allocation241_spill] sm:$0xff]  ;;  %v19762_v31 = vld [vmem:[#allocation163_spill] sm:$0xff]  ;;  %v19765_v2 = vld [vmem:[#allocation112_spill] sm:$0xff] }
 0x54a   : > { %v11549_v63 = vpop.eup %11548  ;;  %11556 = vpow2.f32 %v7166_v7  ;;  %v7170_v34 = vmul.f32 1.442695, %v6672_v38  ;;  %v7172_v20 = vmul.f32 1.442695, %v6673_v54  ;;  %v7821_v3 = vmul.f32 %v11547_v15, %v19760_v9  ;;  %v19763_v12 = vld [vmem:[#allocation159_spill] sm:$0xff]  ;;  %v17039_v7 = vpop.f32.mrb[98].mxu1 }
 0x54b   : > { %v11551_v4 = vpop.eup %11550  ;;  %11558 = vpow2.f32 %v7168_v59  ;;  %7556 = vadd.xlane.f32.xlu0 %v7555_v60  ;;  %v7377_v58 = vpop.xlane.xlu0 %7376  ;;  %v7820_v26 = vmul.f32 %v11547_v15, %v19761_v6  ;;  %v7871_v50 = vmul.f32 %v11549_v63, %v19762_v31  ;;  %v7870_v61 = vmul.f32 %v11549_v63, %v19763_v12  ;;  %v19764_v38 = vld [vmem:[#allocation157_spill] sm:$0xff]  ;;  %v19767_v12 = vld [vmem:[#allocation179_spill] sm:$0xff] }
 0x54c   : > { %v11553_v57 = vpop.eup %11552  ;;  %11560 = vpow2.f32 %v7170_v34  ;;  %v8021_v48 = vpack.c.bf16 %v7821_v3, %v7819_v55  ;;  %v7873_v54 = vmul.f32 %v11551_v4, %v19764_v38  ;;  %v7872_v9 = vmul.f32 %v11551_v4, %v19765_v2  ;;  %v8169_v60 = vpop.f32.mrb[99].mxu1  ;;  %v19766_v55 = vld [vmem:[#allocation82_spill] sm:$0xff]  ;;  %v19768_v2 = vld [vmem:[#allocation175_spill] sm:$0xff] }
 0x54d   : > { %11562 = vpow2.f32 %v7172_v20  ;;  %v8020_v39 = vpack.c.bf16 %v7820_v26, %v7818_v49  ;;  %v7446_v15 = vpop.xlane.xlu1 %7445  ;;  %v7823_v3 = vmul.f32 %v11553_v57, %v19766_v55  ;;  %v19769_v26 = vld [vmem:[#allocation103_spill] sm:$0xff] }
 0x54e   : > { %v11555_v6 = vpop.eup %11554  ;;  %11564 = vrcp.f32 %v7374_v19  ;;  %8415 = vmatprep.mubr.bf16.mxu0 %v8021_v48  ;;  %v8047_v63 = vpack.c.bf16 %v7873_v54, %v7871_v50  ;;  %v8046_v31 = vpack.c.bf16 %v7872_v9, %v7870_v61  ;;  %v7822_v19 = vmul.f32 %v11553_v57, %v19769_v26 }
 0x54f   : > { %11566 = vrcp.f32 %v7377_v58  ;;  %8416 = vmatmul.mubr.bf16.gmra.mrb[244].mxu0 %v8020_v39  ;;  %v7449_v34 = vpop.xlane.xlu0 %7448  ;;  %v7825_v38 = vmul.f32 %v11555_v6, %v19767_v12  ;;  %v7824_v20 = vmul.f32 %v11555_v6, %v19768_v2  ;;  %v19773_v39 = vld [vmem:[#allocation100_spill] sm:$0xff]  ;;  %v19774_v6 = vld [vmem:[#allocation227_spill] sm:$0xff] }
 0x550   : > { %11568 = vrcp.f32 %v7446_v15  ;;  %8572 = vmatprep.mubr.bf16.mxu1 %v8047_v63 }
 0x551   : > { %11570 = vrcp.f32 %v7449_v34  ;;  %8573 = vmatmul.mubr.bf16.gmra.mrb[184].mxu1 %v8046_v31  ;;  %v7380_v49 = vpop.xlane.xlu1 %7379  ;;  %v8023_v4 = vpack.c.bf16 %v7825_v38, %v7823_v3  ;;  %v8022_v50 = vpack.c.bf16 %v7824_v20, %v7822_v19  ;;  %v19776_v20 = vld [vmem:[#allocation91_spill] sm:$0xff] }
 0x552   : > { %11572 = vrcp.f32 %v7380_v49 }
 0x553   : > { %8423 = vmatprep.mubr.bf16.mxu0 %v8023_v4  ;;  %v7383_v61 = vpop.xlane.xlu0 %7382  ;;  %v17055_v60 = vpop.f32.mrb[100].mxu1  ;;  %v19777_v4 = vld [vmem:[#allocation230_spill] sm:$0xff] }
 0x554   : > { %v17049_v58 = vpop.eup %11556  ;;  %11574 = vrcp.f32 %v7383_v61  ;;  %v8174_v34 = vpop.f32.mrb[101].mxu1  ;;  %v19781_v61 = vld [vmem:[#allocation111_spill] sm:$0xff] }
 0x555   : > { %19770 = vst [vmem:[#allocation156_spill] sm:$0xff] %v17049_v58  ;;  %v17051_v48 = vpop.eup %11558  ;;  %v6414_v54 = vpop.xlane.xlu1 %6413 }
 0x556   : > { %19771 = vst [vmem:[#allocation158_spill] sm:$0xff] %v17051_v48  ;;  %v17053_v9 = vpop.eup %11560  ;;  %v6674_v15 = vsub.f32 %v19773_v39, %v6414_v54  ;;  %v6675_v63 = vsub.f32 %v19774_v6, %v6414_v54  ;;  %v7558_v57 = vadd.f32 %v17051_v48, %v17049_v58  ;;  %v17063_v2 = vpop.f32.mrb[102].mxu1  ;;  %v19778_v6 = vld [vmem:[#allocation116_spill] sm:$0xff] }
 0x557   : > { %19772 = vst [vmem:[#allocation160_spill] sm:$0xff] %v17053_v9  ;;  %v17061_v31 = vpop.eup %11562  ;;  %8424 = vmatmul.mubr.bf16.gmra.mrb[248].mxu0 %v8022_v50  ;;  %v6417_v55 = vpop.xlane.xlu0 %6416 }
 0x558   : > { %19775 = vst [vmem:[#allocation167_spill] sm:$0xff] %v17061_v31  ;;  %v11565_v3 = vpop.eup %11564  ;;  %v7174_v12 = vmul.f32 1.442695, %v6674_v15  ;;  %v7176_v38 = vmul.f32 1.442695, %v6675_v63  ;;  %7559 = vadd.xlane.f32.xlu1 %v7558_v57  ;;  %v6676_v49 = vsub.f32 %v19776_v20, %v6417_v55  ;;  %v6677_v26 = vsub.f32 %v19777_v4, %v6417_v55  ;;  %v8177_v54 = vpop.f32.mrb[103].mxu1 }
 0x559   : > { %v11567_v19 = vpop.eup %11566  ;;  %v7386_v39 = vpop.xlane.xlu1 %7385  ;;  %v7561_v50 = vadd.f32 %v17061_v31, %v17053_v9  ;;  %v7827_v34 = vmul.f32 %v11565_v3, %v19778_v6  ;;  %v19779_v15 = vld [vmem:[#allocation114_spill] sm:$0xff]  ;;  %v19780_v20 = vld [vmem:[#allocation117_spill] sm:$0xff] }
 0x55a   : > { %v7826_v63 = vmul.f32 %v11565_v3, %v19779_v15  ;;  %v11569_v59 = vpop.eup %11568  ;;  %11576 = vpow2.f32 %v7174_v12  ;;  %v7178_v57 = vmul.f32 1.442695, %v6676_v49  ;;  %v7180_v48 = vmul.f32 1.442695, %v6677_v26  ;;  %v19784_v3 = vld [vmem:[#allocation164_spill] sm:$0xff]  ;;  %v19785_v12 = vld [vmem:[#allocation162_spill] sm:$0xff] }
 0x55b   : > { %v7829_v58 = vmul.f32 %v11567_v19, %v19780_v20  ;;  %v11571_v55 = vpop.eup %11570  ;;  %11578 = vpow2.f32 %v7176_v38  ;;  %7562 = vadd.xlane.f32.xlu0 %v7561_v50  ;;  %v7389_v4 = vpop.xlane.xlu0 %7388  ;;  %v7828_v54 = vmul.f32 %v11567_v19, %v19781_v61  ;;  %v7875_v29 = vmul.f32 %v11569_v59, %v19782_v51  ;;  %v19786_v19 = vld [vmem:[#allocation191_spill] sm:$0xff]  ;;  %v19787_v51 = vld [vmem:[#allocation174_spill] sm:$0xff] }
 0x55c   : > { %v7874_v31 = vmul.f32 %v11569_v59, %v19783_v47  ;;  %v11573_v9 = vpop.eup %11572  ;;  %11580 = vpow2.f32 %v7178_v57  ;;  %v7877_v15 = vmul.f32 %v11571_v55, %v19784_v3  ;;  %v7876_v49 = vmul.f32 %v11571_v55, %v19785_v12  ;;  %v19789_v57 = vld [vmem:[#allocation172_spill] sm:$0xff] }
 0x55d   : > { %v8025_v6 = vpack.c.bf16 %v7829_v58, %v7827_v34  ;;  %11582 = vpow2.f32 %v7180_v48  ;;  %v8024_v26 = vpack.c.bf16 %v7828_v54, %v7826_v63  ;;  %v7452_v20 = vpop.xlane.xlu1 %7451  ;;  %v7831_v59 = vmul.f32 %v11573_v9, %v19787_v51  ;;  %v19788_v58 = vld [vmem:[#allocation194_spill] sm:$0xff] }
 0x55e   : > { %v11575_v35 = vpop.eup %11574  ;;  %11584 = vrcp.f32 %v7386_v39  ;;  %v8049_v38 = vpack.c.bf16 %v7877_v15, %v7875_v29  ;;  %v8048_v50 = vpack.c.bf16 %v7876_v49, %v7874_v31  ;;  %v7830_v48 = vmul.f32 %v11573_v9, %v19789_v57  ;;  %v19794_v57 = vld [vmem:[#allocation70_spill] sm:$0xff] }
 0x55f   : > { %8431 = vmatprep.mubr.bf16.mxu0 %v8025_v6  ;;  %v7832_v61 = vmul.f32 %v11575_v35, %v19786_v19  ;;  %11586 = vrcp.f32 %v7389_v4  ;;  %v7455_v47 = vpop.xlane.xlu0 %7454  ;;  %v7833_v34 = vmul.f32 %v11575_v35, %v19788_v58  ;;  %v17083_v55 = vpop.f32.mrb[104].mxu1 }
 0x560   : > { %8432 = vmatmul.mubr.bf16.gmra.mrb[252].mxu0 %v8024_v26  ;;  %11588 = vrcp.f32 %v7452_v20  ;;  %8580 = vmatprep.mubr.bf16.mxu1 %v8049_v38  ;;  %v8182_v31 = vpop.f32.mrb[105].mxu1  ;;  %v19792_v26 = vld [vmem:[#allocation110_spill] sm:$0xff] }
 0x561   : > { %11590 = vrcp.f32 %v7455_v47  ;;  %8581 = vmatmul.mubr.bf16.gmra.mrb[188].mxu1 %v8048_v50  ;;  %v7488_v63 = vpop.xlane.xlu1 %7487  ;;  %v8027_v39 = vpack.c.bf16 %v7833_v34, %v7831_v59  ;;  %v8026_v29 = vpack.c.bf16 %v7832_v61, %v7830_v48  ;;  %v17087_v6 = vpop.f32.mrb[106].mxu1 }
 0x562   : > { %11592 = vrcp.f32 %v7488_v63  ;;  %v8185_v3 = vpop.f32.mrb[107].mxu1 }
 0x563   : > { %8439 = vmatprep.mubr.bf16.mxu0 %v8027_v39  ;;  %v7491_v4 = vpop.xlane.xlu0 %7490  ;;  %v19795_v39 = vld [vmem:[#allocation125_spill] sm:$0xff] }
 0x564   : > { %v17085_v54 = vpop.eup %11576  ;;  %11594 = vrcp.f32 %v7491_v4 }
 0x565   : > { %v17089_v35 = vpop.eup %11578 }
 0x566   : > { %19790 = vst [vmem:[#allocation215_spill] sm:$0xff] %v17089_v35  ;;  %v6420_v15 = vpop.xlane.xlu1 %6419  ;;  %v17093_v12 = vpop.eup %11580  ;;  %v7564_v38 = vadd.f32 %v17089_v35, %v17085_v54 }
 0x567   : > { %19791 = vst [vmem:[#allocation216_spill] sm:$0xff] %v17093_v12  ;;  %v6678_v49 = vsub.f32 %v19594_v43, %v6420_v15  ;;  %v6679_v20 = vsub.f32 %v19792_v26, %v6420_v15  ;;  %v17099_v50 = vpop.eup %11582 }
 0x568   : > { %19793 = vst [vmem:[#allocation214_spill] sm:$0xff] %v17099_v50  ;;  %8440 = vmatmul.mubr.bf16.gmra.mrb[0].mxu0 %v8026_v29  ;;  %v11585_v61 = vpop.eup %11584  ;;  %7565 = vadd.xlane.f32.xlu1 %v7564_v38  ;;  %v7567_v63 = vadd.f32 %v17099_v50, %v17093_v12  ;;  %v19796_v29 = vld [vmem:[#allocation123_spill] sm:$0xff]  ;;  %v19798_v38 = vld [vmem:[#allocation121_spill] sm:$0xff]  ;;  %v19801_v12 = vld [vmem:[#allocation40_spill] sm:$0xff] }
 0x569   : > { %v6423_v19 = vpop.xlane.xlu0 %6422  ;;  %v7182_v47 = vmul.f32 1.442695, %v6678_v49  ;;  %v7184_v51 = vmul.f32 1.442695, %v6679_v20  ;;  %v11587_v34 = vpop.eup %11586  ;;  %v7834_v43 = vmul.f32 %v11585_v61, %v19794_v57  ;;  %v7835_v31 = vmul.f32 %v11585_v61, %v19795_v39  ;;  %v19799_v57 = vld [vmem:[#allocation120_spill] sm:$0xff]  ;;  %v19800_v61 = vld [vmem:[#allocation122_spill] sm:$0xff] }
 0x56a   : > { %v6680_v59 = vsub.f32 %v19600_v37, %v6423_v19  ;;  %v6681_v58 = vsub.f32 %v19601_v27, %v6423_v19  ;;  %v7494_v48 = vpop.xlane.xlu1 %7493  ;;  %v11589_v4 = vpop.eup %11588  ;;  %v7836_v3 = vmul.f32 %v11587_v34, %v19796_v29  ;;  %7568 = vadd.xlane.f32.xlu0 %v7567_v63  ;;  %v19797_v37 = vld [vmem:[#allocation140_spill] sm:$0xff] }
 0x56b   : > { %11596 = vpow2.f32 %v7182_v47  ;;  %v11591_v26 = vpop.eup %11590  ;;  %v7837_v27 = vmul.f32 %v11587_v34, %v19797_v37  ;;  %v7879_v19 = vmul.f32 %v11589_v4, %v19798_v38  ;;  %v7878_v9 = vmul.f32 %v11589_v4, %v19799_v57  ;;  %v19802_v38 = vld [vmem:[#allocation126_spill] sm:$0xff]  ;;  %v19804_v57 = vld [vmem:[#allocation144_spill] sm:$0xff] }
 0x56c   : > { %v7186_v15 = vmul.f32 1.442695, %v6680_v59  ;;  %v7188_v49 = vmul.f32 1.442695, %v6681_v58  ;;  %11598 = vpow2.f32 %v7184_v51  ;;  %v11593_v35 = vpop.eup %11592  ;;  %v8028_v50 = vpack.c.bf16 %v7836_v3, %v7834_v43  ;;  %v17113_v51 = vpop.f32.mrb[108].mxu1  ;;  %v19803_v3 = vld [vmem:[#allocation128_spill] sm:$0xff] }
 0x56d   : > { %v7497_v20 = vpop.xlane.xlu0 %7496  ;;  %v7881_v39 = vmul.f32 %v11591_v26, %v19800_v61  ;;  %v7880_v29 = vmul.f32 %v11591_v26, %v19801_v12  ;;  %v8029_v47 = vpack.c.bf16 %v7837_v27, %v7835_v31  ;;  %v8190_v37 = vpop.f32.mrb[109].mxu1  ;;  %v7903_v43 = vmul.f32 %v11593_v35, %v19802_v38  ;;  %v19805_v26 = vld [vmem:[#allocation75_spill] sm:$0xff] }
 0x56e   : > { %11600 = vpow2.f32 %v7186_v15  ;;  %v7458_v59 = vpop.xlane.xlu1 %7457  ;;  %v11595_v58 = vpop.eup %11594  ;;  %v7902_v27 = vmul.f32 %v11593_v35, %v19805_v26  ;;  %v17136_v35 = vld [vmem:[%s17700_s4 + $0x10] sm:$0xff]  }
 0x56f   : > { %11602 = vpow2.f32 %v7188_v49  ;;  %v8051_v34 = vpack.c.bf16 %v7881_v39, %v7879_v19  ;;  %v8050_v63 = vpack.c.bf16 %v7880_v29, %v7878_v9  ;;  %8447 = vmatprep.mubr.bf16.mxu0 %v8029_v47  ;;  %v7905_v15 = vmul.f32 %v11595_v58, %v19803_v3  ;;  %v17118_v12 = vpop.f32.mrb[110].mxu1  ;;  %10541 = vmatprep.subr.bf16.mxu1 %v17136_v35 }
 0x570   : > { %11604 = vrcp.f32 %v7494_v48  ;;  %v7904_v61 = vmul.f32 %v11595_v58, %v19804_v57  ;;  %8448 = vmatmul.mubr.bf16.gmra.mrb[4].mxu0 %v8028_v50  ;;  %v8193_v31 = vpop.f32.mrb[111].mxu1 }
 0x571   : > { %11606 = vrcp.f32 %v7497_v20  ;;  %v7461_v4 = vpop.xlane.xlu0 %7460  ;;  %8588 = vmatprep.mubr.bf16.mxu1 %v8051_v34  ;;  %v8063_v49 = vpack.c.bf16 %v7905_v15, %v7903_v43  ;;  %v19808_v15 = vld [vmem:[#allocation184_spill] sm:$0xff] }
 0x572   : > { %11608 = vrcp.f32 %v7458_v59  ;;  %8589 = vmatmul.mubr.bf16.gmra.mrb[192].mxu1 %v8050_v63  ;;  %v7500_v9 = vpop.xlane.xlu1 %7499  ;;  %v8062_v50 = vpack.c.bf16 %v7904_v61, %v7902_v27 }
 0x573   : > { %11610 = vrcp.f32 %v7461_v4  ;;  %8689 = vmatprep.mubr.bf16.mxu0 %v8063_v49 }
 0x574   : > { %11612 = vrcp.f32 %v7500_v9  ;;  %v19809_v9 = vld [vmem:[#allocation136_spill] sm:$0xff] }
 0x575   : > { %v7503_v20 = vpop.xlane.xlu0 %7502  ;;  %v17123_v19 = vpop.eup %11596 }
 0x576   : > { %11614 = vrcp.f32 %v7503_v20  ;;  %v17125_v39 = vpop.eup %11598  ;;  %v6426_v29 = vpop.xlane.xlu1 %6425 }
 0x577   : > { %19806 = vst [vmem:[#allocation48_spill] sm:$0xff] %v17125_v39  ;;  %v6682_v59 = vsub.f32 %v19632_v32, %v6426_v29  ;;  %v6683_v58 = vsub.f32 %v19633_v22, %v6426_v29  ;;  %v7570_v34 = vadd.f32 %v17125_v39, %v17123_v19  ;;  %v19814_v39 = vld [vmem:[#allocation104_spill] sm:$0xff] }
 0x578   : > { %v17127_v47 = vpop.eup %11600  ;;  %8690 = vmatmul.mubr.bf16.vlgmr.msra.gmra.mrb[8].mxu0 %v8062_v50 }
 0x579   : > { %v17138_v63 = vpop.eup %11602  ;;  %v6429_v37 = vpop.xlane.xlu0 %6428  ;;  %v7190_v38 = vmul.f32 1.442695, %v6682_v59  ;;  %v7192_v43 = vmul.f32 1.442695, %v6683_v58  ;;  %7571 = vadd.xlane.f32.xlu1 %v7570_v34  ;;  %v19811_v58 = vld [vmem:[#allocation177_spill] sm:$0xff] }
 0x57a   : > { %19807 = vst [vmem:[#allocation168_spill] sm:$0xff] %v17138_v63  ;;  %v11605_v4 = vpop.eup %11604  ;;  %v6684_v32 = vsub.f32 %v19637_v10, %v6429_v37  ;;  %v6685_v22 = vsub.f32 %v19638_v40, %v6429_v37  ;;  %v7506_v61 = vpop.xlane.xlu1 %7505  ;;  %v7573_v31 = vadd.f32 %v17138_v63, %v17127_v47  ;;  %v19810_v40 = vld [vmem:[#allocation185_spill] sm:$0xff] }
 0x57b   : > { %v11607_v3 = vpop.eup %11606  ;;  %v7906_v57 = vmul.f32 %v11605_v4, %v19808_v15  ;;  %v7907_v49 = vmul.f32 %v11605_v4, %v19809_v9  ;;  %11616 = vpow2.f32 %v7190_v38  ;;  %v19812_v37 = vld [vmem:[#allocation173_spill] sm:$0xff]  ;;  %v19813_v9 = vld [vmem:[#allocation106_spill] sm:$0xff] }
 0x57c   : > { %v11609_v26 = vpop.eup %11608  ;;  %v7908_v27 = vmul.f32 %v11607_v3, %v16622_v28  ;;  %v7194_v20 = vmul.f32 1.442695, %v6684_v32  ;;  %v7196_v50 = vmul.f32 1.442695, %v6685_v22  ;;  %11618 = vpow2.f32 %v7192_v43  ;;  %7574 = vadd.xlane.f32.xlu0 %v7573_v31 }
 0x57d   : > { %v11611_v10 = vpop.eup %11610  ;;  %v7909_v29 = vmul.f32 %v11607_v3, %v19810_v40  ;;  %v7509_v59 = vpop.xlane.xlu0 %7508  ;;  %v7883_v34 = vmul.f32 %v11609_v26, %v19811_v58  ;;  %v7882_v15 = vmul.f32 %v11609_v26, %v19812_v37  ;;  %v19815_v58 = vld [vmem:[#allocation138_spill] sm:$0xff]  ;;  %v19817_v37 = vld [vmem:[#allocation207_spill] sm:$0xff] }
 0x57e   : > { %v11613_v48 = vpop.eup %11612  ;;  %v8064_v4 = vpack.c.bf16 %v7908_v27, %v7906_v57  ;;  %11620 = vpow2.f32 %v7194_v20  ;;  %v7885_v63 = vmul.f32 %v11611_v10, %v19813_v9  ;;  %v7884_v28 = vmul.f32 %v11611_v10, %v19814_v39  ;;  %v7464_v32 = vpop.xlane.xlu1 %7463  ;;  %v19816_v27 = vld [vmem:[#allocation210_spill] sm:$0xff]  ;;  %v19818_v10 = vld [vmem:[#allocation137_spill] sm:$0xff] }
 0x57f   : > { %11622 = vpow2.f32 %v7196_v50  ;;  %v8065_v38 = vpack.c.bf16 %v7909_v29, %v7907_v49  ;;  %v17153_v43 = vpop.f32.mrb[112].mxu1  ;;  %v7911_v57 = vmul.f32 %v11613_v48, %v19815_v58  ;;  %v7910_v29 = vmul.f32 %v11613_v48, %v19818_v10 }
 0x580   : > { %v11615_v22 = vpop.eup %11614  ;;  %11624 = vrcp.f32 %v7506_v61  ;;  %v8053_v3 = vpack.c.bf16 %v7885_v63, %v7883_v34  ;;  %v8052_v31 = vpack.c.bf16 %v7884_v28, %v7882_v15  ;;  %v8198_v40 = vpop.f32.mrb[113].mxu1 }
 0x581   : > { %8697 = vmatprep.mubr.bf16.mxu0 %v8065_v38  ;;  %11626 = vrcp.f32 %v7509_v59  ;;  %v7467_v26 = vpop.xlane.xlu0 %7466  ;;  %v7913_v20 = vmul.f32 %v11615_v22, %v19816_v27  ;;  %v7912_v9 = vmul.f32 %v11615_v22, %v19817_v37  ;;  %v17158_v39 = vpop.f32.mrb[114].mxu1 }
 0x582   : > { %8698 = vmatmul.mubr.bf16.gmra.mrb[12].mxu0 %v8064_v4  ;;  %11628 = vrcp.f32 %v7464_v32  ;;  %8596 = vmatprep.mubr.bf16.mxu1 %v8053_v3  ;;  %v8831_v61 = vpack.c.bf16 %v17158_v39, %v17153_v43  ;;  %v8201_v63 = vpop.f32.mrb[115].mxu1  ;;  %v7512_v49 = vpop.xlane.xlu1 %7511 }
 0x583   : > { %11630 = vrcp.f32 %v7467_v26  ;;  %8597 = vmatmul.mubr.bf16.gmra.mrb[196].mxu1 %v8052_v31  ;;  %v8067_v50 = vpack.c.bf16 %v7913_v20, %v7911_v57  ;;  %v8066_v15 = vpack.c.bf16 %v7912_v9, %v7910_v29 }
 0x584   : > { %11632 = vrcp.f32 %v7512_v49 }
 0x585   : > { %8705 = vmatprep.mubr.bf16.mxu0 %v8067_v50  ;;  %v7515_v59 = vpop.xlane.xlu0 %7514  ;;  %v17163_v34 = vpop.eup %11616 }
 0x586   : > { %11634 = vrcp.f32 %v7515_v59  ;;  %v17165_v4 = vpop.eup %11618  ;;  %v7470_v28 = vpop.xlane.xlu1 %7469  ;;  %v19819_v59 = vld [vmem:[#allocation171_spill] sm:$0xff] }
 0x587   : > { %11636 = vrcp.f32 %v7470_v28  ;;  %v7576_v32 = vadd.f32 %v17165_v4, %v17163_v34  ;;  %v19820_v28 = vld [vmem:[#allocation134_spill] sm:$0xff] }
 0x588   : > { %v17167_v38 = vpop.eup %11620 }
 0x589   : > { %v17171_v22 = vpop.eup %11622  ;;  %v7473_v3 = vpop.xlane.xlu0 %7472  ;;  %7577 = vadd.xlane.f32.xlu1 %v7576_v32 }
 0x58a   : > { %v11625_v48 = vpop.eup %11624  ;;  %8706 = vmatmul.mubr.bf16.gmra.mrb[16].mxu0 %v8066_v15  ;;  %11638 = vrcp.f32 %v7473_v3  ;;  %v7579_v31 = vadd.f32 %v17171_v22, %v17167_v38  ;;  %v7518_v58 = vpop.xlane.xlu1 %7517 }
 0x58b   : > { %v11627_v40 = vpop.eup %11626  ;;  %v7914_v26 = vmul.f32 %v11625_v48, %v16712_v1  ;;  %11640 = vrcp.f32 %v7518_v58  ;;  %v7915_v20 = vmul.f32 %v11625_v48, %v16717_v21 }
 0x58c   : > { %v11629_v57 = vpop.eup %11628  ;;  %v7916_v27 = vmul.f32 %v11627_v40, %v16727_v52  ;;  %7580 = vadd.xlane.f32.xlu0 %v7579_v31  ;;  %v7917_v37 = vmul.f32 %v11627_v40, %v16733_v41  ;;  %v19821_v52 = vld [vmem:[#allocation118_spill] sm:$0xff]  ;;  %v17183_v58 = vpop.f32.mrb[116].mxu1 }
 0x58d   : > { %v11631_v9 = vpop.eup %11630  ;;  %v7521_v63 = vpop.xlane.xlu0 %7520  ;;  %v7887_v49 = vmul.f32 %v11629_v57, %v16409_v30  ;;  %v7886_v32 = vmul.f32 %v11629_v57, %v19820_v28  ;;  %v19824_v28 = vld [vmem:[#allocation193_spill] sm:$0xff] }
 0x58e   : > { %v11633_v50 = vpop.eup %11632  ;;  %v8068_v10 = vpack.c.bf16 %v7916_v27, %v7914_v26  ;;  %v8069_v29 = vpack.c.bf16 %v7917_v37, %v7915_v20  ;;  %11642 = vrcp.f32 %v7521_v63  ;;  %v7889_v1 = vmul.f32 %v11631_v9, %v19819_v59  ;;  %v7476_v15 = vpop.xlane.xlu1 %7475 }
 0x58f   : > { %v7888_v3 = vmul.f32 %v11631_v9, %v19821_v52  ;;  %11644 = vrcp.f32 %v7476_v15  ;;  %v8206_v41 = vpop.f32.mrb[117].mxu1  ;;  %v7919_v40 = vmul.f32 %v11633_v50, %v16758_v8  ;;  %v7918_v8 = vmul.f32 %v11633_v50, %v16751_v16 }
 0x590   : > { %v11635_v31 = vpop.eup %11634  ;;  %8713 = vmatprep.mubr.bf16.mxu0 %v8069_v29  ;;  %v8055_v21 = vpack.c.bf16 %v7889_v1, %v7887_v49  ;;  %v17188_v57 = vpop.f32.mrb[118].mxu1  ;;  %v19823_v1 = vld [vmem:[#allocation189_spill] sm:$0xff] }
 0x591   : > { %v7479_v48 = vpop.xlane.xlu0 %7478  ;;  %v8054_v30 = vpack.c.bf16 %v7888_v3, %v7886_v32  ;;  %v7921_v26 = vmul.f32 %v11635_v31, %v16768_v5  ;;  %v11637_v27 = vpop.eup %11636  ;;  %v7920_v20 = vmul.f32 %v11635_v31, %v16762_v13  ;;  %v8832_v37 = vpack.c.bf16 %v17188_v57, %v17183_v58 }
 0x592   : > { %8714 = vmatmul.mubr.bf16.gmra.mrb[20].mxu0 %v8068_v10  ;;  %8604 = vmatprep.mubr.bf16.mxu1 %v8055_v21  ;;  %11646 = vrcp.f32 %v7479_v48  ;;  %v8209_v9 = vpop.f32.mrb[119].mxu1  ;;  %v7524_v63 = vpop.xlane.xlu1 %7523  ;;  %v7891_v13 = vmul.f32 %v11637_v27, %v16464_v14  ;;  %v19822_v10 = vld [vmem:[#allocation139_spill] sm:$0xff]  ;;  %v7890_v15 = vmul.f32 %v11637_v27, %v19823_v1 }
 0x593   : > { %8605 = vmatmul.mubr.bf16.gmra.mrb[200].mxu1 %v8054_v30  ;;  %v8071_v49 = vpack.c.bf16 %v7921_v26, %v7919_v40  ;;  %11648 = vrcp.f32 %v7524_v63  ;;  %v8070_v3 = vpack.c.bf16 %v7920_v20, %v7918_v8  ;;  %v19825_v40 = vld [vmem:[#allocation56_spill] sm:$0xff]  ;;  %v19826_v63 = vld [vmem:[#allocation18_spill] sm:$0xff] }
 0x594   : > { %v11639_v29 = vpop.eup %11638 }
 0x595   : > { %8721 = vmatprep.mubr.bf16.mxu0 %v8071_v49  ;;  %v7527_v5 = vpop.xlane.xlu0 %7526  ;;  %v7893_v59 = vmul.f32 %v11639_v29, %v19822_v10  ;;  %v7892_v32 = vmul.f32 %v11639_v29, %v19824_v28  ;;  %v11641_v52 = vpop.eup %11640  ;;  %v19828_v10 = vld [vmem:[#allocation124_spill] sm:$0xff] }
 0x596   : > { %11650 = vrcp.f32 %v7527_v5  ;;  %v7482_v31 = vpop.xlane.xlu1 %7481  ;;  %v7923_v50 = vmul.f32 %v11641_v52, %v16803_v24  ;;  %v7922_v49 = vmul.f32 %v11641_v52, %v19826_v63  ;;  %v19827_v24 = vld [vmem:[#allocation142_spill] sm:$0xff] }
 0x597   : > { %v8057_v21 = vpack.c.bf16 %v7893_v59, %v7891_v13  ;;  %v8056_v41 = vpack.c.bf16 %v7892_v32, %v7890_v15  ;;  %11652 = vrcp.f32 %v7482_v31 }
 0x598   : > { %v11643_v48 = vpop.eup %11642  ;;  %v17201_v29 = vpop.f32.mrb[120].mxu1 }
 0x599   : > { %8612 = vmatprep.mubr.bf16.mxu1 %v8057_v21  ;;  %v7485_v16 = vpop.xlane.xlu0 %7484  ;;  %v7925_v14 = vmul.f32 %v11643_v48, %v16816_v46  ;;  %v11645_v30 = vpop.eup %11644  ;;  %v7924_v26 = vmul.f32 %v11643_v48, %v19825_v40 }
 0x59a   : > { %8722 = vmatmul.mubr.bf16.gmra.mrb[24].mxu0 %v8070_v3  ;;  %11654 = vrcp.f32 %v7485_v16  ;;  %v7530_v27 = vpop.xlane.xlu1 %7529  ;;  %v8214_v8 = vpop.f32.mrb[121].mxu1  ;;  %v7895_v13 = vmul.f32 %v11645_v30, %v19827_v24  ;;  %v7894_v59 = vmul.f32 %v11645_v30, %v19828_v10 }
 0x59b   : > { %8613 = vmatmul.mubr.bf16.gmra.mrb[204].mxu1 %v8056_v41  ;;  %v8073_v20 = vpack.c.bf16 %v7925_v14, %v7923_v50  ;;  %11656 = vrcp.f32 %v7530_v27  ;;  %v8072_v28 = vpack.c.bf16 %v7924_v26, %v7922_v49  ;;  %v17207_v32 = vpop.f32.mrb[122].mxu1  ;;  %v19829_v27 = vld [vmem:[#allocation183_spill] sm:$0xff] }
 0x59c   : > { %v11647_v9 = vpop.eup %11646  ;;  %v8833_v52 = vpack.c.bf16 %v17207_v32, %v17201_v29  ;;  %v8217_v3 = vpop.f32.mrb[123].mxu1 }
 0x59d   : > { %8729 = vmatprep.mubr.bf16.mxu0 %v8073_v20  ;;  %v7533_v5 = vpop.xlane.xlu0 %7532  ;;  %v7897_v46 = vmul.f32 %v11647_v9, %v16542_v53  ;;  %v7896_v1 = vmul.f32 %v11647_v9, %v16538_v62  ;;  %v11649_v15 = vpop.eup %11648  ;;  %v19830_v9 = vld [vmem:[#allocation209_spill] sm:$0xff]  ;;  %v19835_v3 = vld [vmem:[#allocation151_spill] sm:$0xff] }
 0x59e   : > { %11658 = vrcp.f32 %v7533_v5  ;;  %v7927_v48 = vmul.f32 %v11649_v15, %v16833_v0  ;;  %v7926_v40 = vmul.f32 %v11649_v15, %v16821_v17  ;;  %v19831_v0 = vld [vmem:[#allocation135_spill] sm:$0xff]  ;;  %v19834_v15 = vld [vmem:[#allocation146_spill] sm:$0xff] }
 0x59f   : > { %v8059_v31 = vpack.c.bf16 %v7897_v46, %v7895_v13  ;;  %v8058_v21 = vpack.c.bf16 %v7896_v1, %v7894_v59  ;;  %v7536_v50 = vpop.xlane.xlu1 %7535  ;;  %v19833_v59 = vld [vmem:[#allocation44_spill] sm:$0xff] }
 0x5a0   : > { %v11651_v41 = vpop.eup %11650  ;;  %11660 = vrcp.f32 %v7536_v50  ;;  %v19837_v50 = vpack.c.bf16 %v16976_v18, %v16970_v11  ;;  %v10919_v11 = vld [vmem:[%s17700_s4 + $0x18] sm:$0xff]  }
 0x5a1   : > { %8620 = vmatprep.mubr.bf16.mxu1 %v8059_v31  ;;  %v7929_v53 = vmul.f32 %v11651_v41, %v16844_v33  ;;  %v11653_v16 = vpop.eup %11652  ;;  %v7928_v62 = vmul.f32 %v11651_v41, %v16838_v36  ;;  %v19832_v33 = vld [vmem:[#allocation205_spill] sm:$0xff] }
 0x5a2   : > { %8730 = vmatmul.mubr.bf16.gmra.mrb[28].mxu0 %v8072_v28  ;;  %v7539_v26 = vpop.xlane.xlu0 %7538  ;;  %v7899_v20 = vmul.f32 %v11653_v16, %v19829_v27  ;;  %v7898_v49 = vmul.f32 %v11653_v16, %v19831_v0  ;;  %v19836_v16 = vld [vmem:[#allocation45_spill] sm:$0xff] }
 0x5a3   : > { %8621 = vmatmul.mubr.bf16.gmra.mrb[208].mxu1 %v8058_v21  ;;  %v8075_v14 = vpack.c.bf16 %v7929_v53, %v7927_v48  ;;  %v8074_v36 = vpack.c.bf16 %v7928_v62, %v7926_v40  ;;  %11662 = vrcp.f32 %v7539_v26 }
 0x5a4   : > { %v11655_v30 = vpop.eup %11654 }
 0x5a5   : > { %8737 = vmatprep.mubr.bf16.mxu0 %v8075_v14  ;;  %v7901_v63 = vmul.f32 %v11655_v30, %v19830_v9  ;;  %v7900_v8 = vmul.f32 %v11655_v30, %v19832_v33  ;;  %v11657_v5 = vpop.eup %11656  ;;  %v17219_v10 = vpop.f32.mrb[124].mxu1 }
 0x5a6   : > { %v8222_v17 = vpop.f32.mrb[125].mxu1  ;;  %v7931_v1 = vmul.f32 %v11657_v5, %v19833_v59  ;;  %v7930_v62 = vmul.f32 %v11657_v5, %v19836_v16  ;;  %v19842_v59 = vpack.c.bf16 %v17039_v7, %v17033_v45 }
 0x5a7   : > { %v8061_v24 = vpack.c.bf16 %v7901_v63, %v7899_v20  ;;  %v8060_v13 = vpack.c.bf16 %v7900_v8, %v7898_v49  ;;  %v17224_v21 = vpop.f32.mrb[126].mxu1  ;;  %v19838_v63 = vld [vmem:[#allocation148_spill] sm:$0xff]  ;;  %v19839_v49 = vld [vmem:[#allocation150_spill] sm:$0xff] }
 0x5a8   : > { %v11659_v46 = vpop.eup %11658  ;;  %v8834_v41 = vpack.c.bf16 %v17224_v21, %v17219_v10  ;;  %v8225_v48 = vpop.f32.mrb[127].mxu1 }
 0x5a9   : > { %8628 = vmatprep.mubr.bf16.mxu1 %v8061_v24  ;;  %v7933_v28 = vmul.f32 %v11659_v46, %v19834_v15  ;;  %v7932_v31 = vmul.f32 %v11659_v46, %v19835_v3  ;;  %v19843_v15 = vld [vmem:[#allocation166_spill] sm:$0xff] }
 0x5aa   : > { %8738 = vmatmul.mubr.bf16.gmra.mrb[32].mxu0 %v8074_v36  ;;  %v11661_v14 = vpop.eup %11660  ;;  %v19840_v36 = vpack.c.bf16 %v17010_v44, %v17005_v42 }
 0x5ab   : > { %8629 = vmatmul.mubr.bf16.gmra.mrb[212].mxu1 %v8060_v13  ;;  %v8077_v53 = vpack.c.bf16 %v7933_v28, %v7931_v1  ;;  %v8076_v30 = vpack.c.bf16 %v7932_v31, %v7930_v62  ;;  %v7542_v40 = vpop.xlane.xlu1 %7541  ;;  %v7935_v0 = vmul.f32 %v11661_v14, %v19838_v63  ;;  %v19841_v13 = vld [vmem:[#allocation149_spill] sm:$0xff]  ;;  %v7934_v28 = vmul.f32 %v11661_v14, %v19843_v15 }
 0x5ac   : > { %10509 = vmatprep.mubr.msk.bf16.mxu1 %vm5021_vm0, %v19837_v50  ;;  %11664 = vrcp.f32 %v7542_v40  ;;  %v19844_v62 = vpack.c.bf16 %v17063_v2, %v17055_v60  ;;  %v19845_v14 = vpack.c.bf16 %v17087_v6, %v17083_v55 }
 0x5ad   : > { %8745 = vmatprep.mubr.bf16.mxu0 %v8077_v53  ;;  %v11663_v26 = vpop.eup %11662  ;;  %v17233_v27 = vpop.f32.mrb[128].mxu1 }
 0x5ae   : > { %v8230_v20 = vpop.f32.mrb[129].mxu1  ;;  %v7545_v9 = vpop.xlane.xlu0 %7544  ;;  %v7937_v33 = vmul.f32 %v11663_v26, %v19839_v49  ;;  %v7936_v46 = vmul.f32 %v11663_v26, %v19841_v13  ;;  %v19847_v26 = vld [vmem:[#allocation31_spill] sm:$0xff] }
 0x5af   : > { %v17240_v18 = vpop.f32.mrb[130].mxu1  ;;  %11666 = vrcp.f32 %v7545_v9  ;;  %v19848_v9 = vld [vmem:[#allocation10_spill] sm:$0xff] }
 0x5b0   : > { %v8835_v8 = vpack.c.bf16 %v17240_v18, %v17233_v27  ;;  %v8233_v5 = vpop.f32.mrb[131].mxu1  ;;  %v8079_v24 = vpack.c.bf16 %v7937_v33, %v7935_v0  ;;  %v17249_v17 = vpop.f32.mrb[200].mxu0  ;;  %v8078_v31 = vpack.c.bf16 %v7936_v46, %v7934_v28  ;;  %v19849_v0 = vld [vmem:[#allocation38_spill] sm:$0xff] }
 0x5b1   : > { %v8331_v1 = vpop.f32.mrb[201].mxu0 }
 0x5b2   : > { %8746 = vmatmul.mubr.bf16.gmra.mrb[36].mxu0 %v8076_v30  ;;  %v17257_v42 = vpop.f32.mrb[202].mxu0  ;;  %v19846_v30 = vld [vmem:[#allocation65_spill] sm:$0xff]  ;;  %v19850_v1 = vpack.c.bf16 %v17118_v12, %v17113_v51 }
 0x5b3   : > { %10510 = vmatmul.mubr.msk.bf16.vlgmr.msra.gmra.mrb[216].mxu1 %vm5021_vm0, %v19840_v36  ;;  %8753 = vmatprep.mubr.bf16.mxu0 %v8079_v24  ;;  %v9098_v44 = vpack.c.bf16 %v17257_v42, %v17249_v17  ;;  %v8334_v3 = vpop.f32.mrb[203].mxu0 }
 0x5b4   : > { %10513 = vmatprep.mubr.msk.bf16.mxu1 %vm5021_vm0, %v19842_v59  ;;  %10542 = vmatpush3.bf16.msra.mxu1 %v17136_v35 }
 0x5b5   : > { %10543 = vmatprep.subr.bf16.mxu1 %v10919_v11 }
 0x5b6   : > { %v17261_v48 = vpop.f32.mrb[132].mxu1  ;;  %v11665_v7 = vpop.eup %11664 }
 0x5b7   : > { %v8238_v45 = vpop.f32.mrb[133].mxu1  ;;  %v7938_v40 = vmul.f32 %v11665_v7, %v19846_v30  ;;  %v7939_v63 = vmul.f32 %v11665_v7, %v19848_v9  ;;  %v17299_v7 = vld [vmem:[%s17700_s4 + $0x20] sm:$0xff]  }
 0x5b8   : > { %10544 = vmatpush3.bf16.msra.mxu1 %v10919_v11  ;;  %v17263_v53 = vpop.f32.mrb[134].mxu1 }
 0x5b9   : > { %v8836_v35 = vpack.c.bf16 %v17263_v53, %v17261_v48  ;;  %v8241_v16 = vpop.f32.mrb[135].mxu1  ;;  %v11667_v50 = vpop.eup %11666  ;;  %10577 = vmatprep.subr.bf16.mxu1 %v17299_v7 }
 0x5ba   : > { %8754 = vmatmul.mubr.bf16.gmra.mrb[40].mxu0 %v8078_v31  ;;  %v7940_v20 = vmul.f32 %v11667_v50, %v19847_v26  ;;  %v7941_v49 = vmul.f32 %v11667_v50, %v19849_v0  ;;  %v19851_v26 = vld [vmem:[#allocation14_spill] sm:$0xff] }
 0x5bb   : > { %10514 = vmatmul.mubr.msk.bf16.gmra.mrb[220].mxu1 %vm5021_vm0, %v19844_v62 }
 0x5bc   : > { %10517 = vmatprep.mubr.msk.bf16.mxu1 %vm5021_vm0, %v19845_v14  ;;  %v8080_v33 = vpack.c.bf16 %v7940_v20, %v7938_v40  ;;  %v8081_v11 = vpack.c.bf16 %v7941_v49, %v7939_v63 }
 0x5be   : > { %v17279_v5 = vpop.f32.mrb[136].mxu1  ;;  %v17281_v60 = vpop.f32.mrb[204].mxu0  ;;  %8761 = vmatprep.mubr.bf16.mxu0 %v8081_v11 }
 0x5bf   : > { %v8246_v2 = vpop.f32.mrb[137].mxu1  ;;  %v8339_v36 = vpop.f32.mrb[205].mxu0 }
 0x5c0   : > { %v8247_v55 = vpop.f32.mrb[138].mxu1  ;;  %v17283_v6 = vpop.f32.mrb[206].mxu0 }
 0x5c1   : > { %v8837_v24 = vpack.c.bf16 %v8247_v55, %v17279_v5  ;;  %v9099_v13 = vpack.c.bf16 %v17283_v6, %v17281_v60  ;;  %v8249_v46 = vpop.f32.mrb[139].mxu1  ;;  %v8342_v59 = vpop.f32.mrb[207].mxu0 }
 0x5c2   : > { %8762 = vmatmul.mubr.bf16.gmra.mrb[44].mxu0 %v8080_v33 }
 0x5c3   : > { %10518 = vmatmul.mubr.msk.bf16.gmra.mrb[224].mxu1 %vm5021_vm0, %v19850_v1 }
 0x5c4   : > { %10521 = vmatprep.mubr.msk.bf16.mxu1 %vm5021_vm0, %v8831_v61 }
 0x5c5   : > { %v7548_v15 = vpop.xlane.xlu1 %7547 }
 0x5c6   : > { %v8252_v28 = vpop.f32.mrb[140].mxu1  ;;  %11668 = vrcp.f32 %v7548_v15 }
 0x5c7   : > { %v8254_v3 = vpop.f32.mrb[141].mxu1 }
 0x5c8   : > { %v8255_v31 = vpop.f32.mrb[142].mxu1  ;;  %v7551_v45 = vpop.xlane.xlu0 %7550 }
 0x5c9   : > { %v8838_v16 = vpack.c.bf16 %v8255_v31, %v8252_v28  ;;  %v8257_v51 = vpop.f32.mrb[143].mxu1  ;;  %11670 = vrcp.f32 %v7551_v45  ;;  %v19852_v28 = vld [vmem:[#allocation29_spill] sm:$0xff]  ;;  %v19853_v31 = vld [vmem:[#allocation176_spill] sm:$0xff] }
 0x5ca   : > { %v17305_v12 = vpop.f32.mrb[208].mxu0 }
 0x5cb   : > { %10522 = vmatmul.mubr.msk.bf16.gmra.mrb[228].mxu1 %vm5021_vm0, %v8832_v37  ;;  %v8347_v43 = vpop.f32.mrb[209].mxu0 }
 0x5cc   : > { %10525 = vmatprep.mubr.msk.bf16.mxu1 %vm5021_vm0, %v8833_v52  ;;  %v17312_v39 = vpop.f32.mrb[210].mxu0  ;;  %v19854_v43 = vld [vmem:[#allocation155_spill] sm:$0xff] }
 0x5cd   : > { %v9100_v61 = vpack.c.bf16 %v17312_v39, %v17305_v12  ;;  %v8350_v62 = vpop.f32.mrb[211].mxu0 }
 0x5ce   : > { %v8260_v50 = vpop.f32.mrb[144].mxu1  ;;  %v19855_v62 = vld [vmem:[#allocation27_spill] sm:$0xff] }
 0x5cf   : > { %v8262_v58 = vpop.f32.mrb[145].mxu1 }
 0x5d0   : > { %v8263_v57 = vpop.f32.mrb[146].mxu1  ;;  %v11669_v37 = vpop.eup %11668 }
 0x5d1   : > { %v8839_v14 = vpack.c.bf16 %v8263_v57, %v8260_v50  ;;  %v8265_v30 = vpop.f32.mrb[147].mxu1  ;;  %v7942_v32 = vmul.f32 %v11669_v37, %v16972_v23  ;;  %v7943_v40 = vmul.f32 %v11669_v37, %v16974_v56 }
 0x5d3   : > { %10526 = vmatmul.mubr.msk.bf16.gmra.mrb[232].mxu1 %vm5021_vm0, %v8834_v41  ;;  %v11671_v29 = vpop.eup %11670 }
 0x5d4   : > { %10529 = vmatprep.mubr.msk.bf16.mxu1 %vm5021_vm0, %v8835_v8  ;;  %v7944_v52 = vmul.f32 %v11671_v29, %v16979_v25  ;;  %v7945_v20 = vmul.f32 %v11671_v29, %v19851_v26 }
 0x5d5   : > { %v7554_v9 = vpop.xlane.xlu1 %7553 }
 0x5d6   : > { %v8082_v63 = vpack.c.bf16 %v7944_v52, %v7942_v32  ;;  %v8268_v0 = vpop.f32.mrb[148].mxu1  ;;  %v17328_v10 = vpop.f32.mrb[212].mxu0  ;;  %v8083_v21 = vpack.c.bf16 %v7945_v20, %v7943_v40  ;;  %11672 = vrcp.f32 %v7554_v9  ;;  %v10921_v9 = vld [vmem:[%s17700_s4 + $0x28] sm:$0xff]  }
 0x5d7   : > { %v8270_v41 = vpop.f32.mrb[149].mxu1  ;;  %v8355_v49 = vpop.f32.mrb[213].mxu0 }
 0x5d8   : > { %v8271_v27 = vpop.f32.mrb[150].mxu1  ;;  %v17330_v18 = vpop.f32.mrb[214].mxu0  ;;  %8769 = vmatprep.mubr.bf16.mxu0 %v8083_v21 }
 0x5d9   : > { %v8840_v23 = vpack.c.bf16 %v8271_v27, %v8268_v0  ;;  %v9101_v25 = vpack.c.bf16 %v17330_v18, %v17328_v10  ;;  %v8273_v56 = vpop.f32.mrb[151].mxu1  ;;  %v8358_v8 = vpop.f32.mrb[215].mxu0  ;;  %8770 = vmatmul.mubr.bf16.gmra.mrb[48].mxu0 %v8082_v63  ;;  %v19856_v27 = vld [vmem:[#allocation156_spill] sm:$0xff] }
 0x5da   : > { %v7557_v33 = vpop.xlane.xlu0 %7556  ;;  %v19857_v56 = vld [vmem:[#allocation160_spill] sm:$0xff] }
 0x5db   : > { %10530 = vmatmul.mubr.msk.bf16.gmra.mrb[236].mxu1 %vm5021_vm0, %v8836_v35  ;;  %11674 = vrcp.f32 %v7557_v33  ;;  %v19858_v33 = vld [vmem:[#allocation158_spill] sm:$0xff] }
 0x5dc   : > { %10533 = vmatprep.mubr.msk.bf16.mxu1 %vm5021_vm0, %v8837_v24 }
 0x5de   : > { %v17339_v11 = vpop.f32.mrb[152].mxu1 }
 0x5df   : > { %v8512_v5 = vpop.f32.mrb[153].mxu1 }
 0x5e0   : > { %v17341_v2 = vpop.f32.mrb[154].mxu1  ;;  %v11673_v48 = vpop.eup %11672 }
 0x5e1   : > { %v9372_v36 = vpack.c.bf16 %v17341_v2, %v17339_v11  ;;  %v8515_v55 = vpop.f32.mrb[155].mxu1  ;;  %v7946_v3 = vmul.f32 %v11673_v48, %v19852_v28 }
 0x5e2   : > { %v17346_v46 = vpop.f32.mrb[216].mxu0  ;;  %v19859_v55 = vld [vmem:[#allocation167_spill] sm:$0xff] }
 0x5e3   : > { %10534 = vmatmul.mubr.msk.bf16.gmra.mrb[240].mxu1 %vm5021_vm0, %v8838_v16  ;;  %v8363_v53 = vpop.f32.mrb[217].mxu0  ;;  %v7947_v16 = vmul.f32 %v11673_v48, %v19854_v43 }
 0x5e4   : > { %10537 = vmatprep.mubr.msk.bf16.mxu1 %vm5021_vm0, %v8839_v14  ;;  %v8364_v35 = vpop.f32.mrb[218].mxu0 }
 0x5e5   : > { %v11675_v24 = vpop.eup %11674  ;;  %v9102_v59 = vpack.c.bf16 %v8364_v35, %v17346_v46  ;;  %v8366_v1 = vpop.f32.mrb[219].mxu0 }
 0x5e6   : > { %v7560_v15 = vpop.xlane.xlu1 %7559  ;;  %v7948_v45 = vmul.f32 %v11675_v24, %v19853_v31  ;;  %v17352_v51 = vpop.f32.mrb[156].mxu1  ;;  %v7949_v50 = vmul.f32 %v11675_v24, %v19855_v62 }
 0x5e7   : > { %11676 = vrcp.f32 %v7560_v15  ;;  %v8520_v58 = vpop.f32.mrb[157].mxu1 }
 0x5e8   : > { %v8084_v57 = vpack.c.bf16 %v7948_v45, %v7946_v3  ;;  %v17356_v37 = vpop.f32.mrb[158].mxu1  ;;  %v8085_v14 = vpack.c.bf16 %v7949_v50, %v7947_v16  ;;  %v7563_v30 = vpop.xlane.xlu0 %7562  ;;  %v19860_v50 = vld [vmem:[#allocation216_spill] sm:$0xff] }
 0x5e9   : > { %v9373_v29 = vpack.c.bf16 %v17356_v37, %v17352_v51  ;;  %v8523_v32 = vpop.f32.mrb[159].mxu1  ;;  %11678 = vrcp.f32 %v7563_v30 }
 0x5ea   : > { %8777 = vmatprep.mubr.bf16.mxu0 %v8085_v14  ;;  %v19861_v14 = vld [vmem:[#allocation215_spill] sm:$0xff]  ;;  %v19862_v32 = vld [vmem:[#allocation214_spill] sm:$0xff] }
 0x5eb   : > { %10538 = vmatmul.mubr.msk.bf16.gmra.mrb[244].mxu1 %vm5021_vm0, %v8840_v23  ;;  %8778 = vmatmul.mubr.bf16.gmra.mrb[52].mxu0 %v8084_v57 }
 0x5ec   : > { %10545 = vmatprep.mubr.msk.bf16.mxu1 %vm5021_vm0, %v9098_v44 }
 0x5ed   : > { %v8369_v52 = vpop.f32.mrb[220].mxu0 }
 0x5ee   : > { %v17365_v40 = vpop.f32.mrb[160].mxu1  ;;  %v8371_v26 = vpop.f32.mrb[221].mxu0 }
 0x5ef   : > { %v8528_v20 = vpop.f32.mrb[161].mxu1  ;;  %v8372_v63 = vpop.f32.mrb[222].mxu0 }
 0x5f0   : > { %v17370_v0 = vpop.f32.mrb[162].mxu1  ;;  %v9103_v41 = vpack.c.bf16 %v8372_v63, %v8369_v52  ;;  %v8374_v42 = vpop.f32.mrb[223].mxu0 }
 0x5f1   : > { %v11677_v21 = vpop.eup %11676  ;;  %v9374_v17 = vpack.c.bf16 %v17370_v0, %v17365_v40  ;;  %v8531_v44 = vpop.f32.mrb[163].mxu1 }
 0x5f2   : > { %v7950_v23 = vmul.f32 %v11677_v21, %v19856_v27  ;;  %v7951_v5 = vmul.f32 %v11677_v21, %v19858_v33 }
 0x5f3   : > { %10546 = vmatmul.mubr.msk.bf16.vlgmr.msra.gmra.mrb[216].mxu1 %vm5021_vm0, %v9099_v13  ;;  %v11679_v49 = vpop.eup %11678 }
 0x5f4   : > { %10549 = vmatprep.mubr.msk.bf16.mxu1 %vm5021_vm0, %v9100_v61  ;;  %10578 = vmatpush3.bf16.msra.mxu1 %v17299_v7  ;;  %v7952_v8 = vmul.f32 %v11679_v49, %v19857_v56  ;;  %v7953_v46 = vmul.f32 %v11679_v49, %v19859_v55  ;;  %v17417_v49 = vld [vmem:[%s17700_s4 + $0x30] sm:$0xff]  }
 0x5f5   : > { %10579 = vmatprep.subr.bf16.mxu1 %v10921_v9  ;;  %v7566_v60 = vpop.xlane.xlu1 %7565 }
 0x5f6   : > { %v8086_v6 = vpack.c.bf16 %v7952_v8, %v7950_v23  ;;  %v17387_v13 = vpop.f32.mrb[164].mxu1  ;;  %v8087_v48 = vpack.c.bf16 %v7953_v46, %v7951_v5  ;;  %11680 = vrcp.f32 %v7566_v60 }
 0x5f7   : > { %v8536_v12 = vpop.f32.mrb[165].mxu1  ;;  %v7569_v7 = vpop.xlane.xlu0 %7568 }
 0x5f8   : > { %10580 = vmatpush3.bf16.msra.mxu1 %v10921_v9  ;;  %v17389_v39 = vpop.f32.mrb[166].mxu1  ;;  %8785 = vmatprep.mubr.bf16.mxu0 %v8087_v48  ;;  %11682 = vrcp.f32 %v7569_v7 }
 0x5f9   : > { %v9375_v61 = vpack.c.bf16 %v17389_v39, %v17387_v13  ;;  %v8539_v53 = vpop.f32.mrb[167].mxu1  ;;  %8786 = vmatmul.mubr.bf16.gmra.mrb[56].mxu0 %v8086_v6  ;;  %v8377_v35 = vpop.f32.mrb[224].mxu0  ;;  %10613 = vmatprep.subr.bf16.mxu1 %v17417_v49 }
 0x5fa   : > { %v8379_v24 = vpop.f32.mrb[225].mxu0 }
 0x5fb   : > { %10550 = vmatmul.mubr.msk.bf16.gmra.mrb[220].mxu1 %vm5021_vm0, %v9101_v25  ;;  %v8380_v1 = vpop.f32.mrb[226].mxu0 }
 0x5fc   : > { %10553 = vmatprep.mubr.msk.bf16.mxu1 %vm5021_vm0, %v9102_v59  ;;  %v9104_v15 = vpack.c.bf16 %v8380_v1, %v8377_v35  ;;  %v8382_v28 = vpop.f32.mrb[227].mxu0 }
 0x5fe   : > { %v17398_v3 = vpop.f32.mrb[168].mxu1 }
 0x5ff   : > { %v8544_v31 = vpop.f32.mrb[169].mxu1 }
 0x600   : > { %v17400_v45 = vpop.f32.mrb[170].mxu1  ;;  %v11681_v43 = vpop.eup %11680  ;;  %v19863_v31 = vld [vmem:[#allocation48_spill] sm:$0xff] }
 0x601   : > { %v9376_v16 = vpack.c.bf16 %v17400_v45, %v17398_v3  ;;  %v8547_v62 = vpop.f32.mrb[171].mxu1  ;;  %v8385_v10 = vpop.f32.mrb[228].mxu0  ;;  %v7954_v59 = vmul.f32 %v11681_v43, %v17085_v54  ;;  %v7955_v30 = vmul.f32 %v11681_v43, %v19861_v14 }
 0x602   : > { %v11683_v18 = vpop.eup %11682  ;;  %v8387_v25 = vpop.f32.mrb[229].mxu0  ;;  %v19864_v62 = vld [vmem:[#allocation168_spill] sm:$0xff] }
 0x603   : > { %10554 = vmatmul.mubr.msk.bf16.gmra.mrb[224].mxu1 %vm5021_vm0, %v9103_v41  ;;  %v7956_v58 = vmul.f32 %v11683_v18, %v19860_v50  ;;  %v8388_v57 = vpop.f32.mrb[230].mxu0  ;;  %v7957_v52 = vmul.f32 %v11683_v18, %v19862_v32 }
 0x604   : > { %10557 = vmatprep.mubr.msk.bf16.mxu1 %vm5021_vm0, %v9104_v15  ;;  %v9105_v26 = vpack.c.bf16 %v8388_v57, %v8385_v10  ;;  %v8390_v20 = vpop.f32.mrb[231].mxu0 }
 0x605   : > { %v8088_v63 = vpack.c.bf16 %v7956_v58, %v7954_v59  ;;  %v8089_v41 = vpack.c.bf16 %v7957_v52, %v7955_v30 }
 0x606   : > { %v7572_v9 = vpop.xlane.xlu1 %7571  ;;  %v17410_v21 = vpop.f32.mrb[172].mxu1 }
 0x607   : > { %11684 = vrcp.f32 %v7572_v9  ;;  %v8552_v42 = vpop.f32.mrb[173].mxu1  ;;  %8793 = vmatprep.mubr.bf16.mxu0 %v8089_v41 }
 0x608   : > { %v17412_v44 = vpop.f32.mrb[174].mxu1  ;;  %8794 = vmatmul.mubr.bf16.gmra.mrb[60].mxu0 %v8088_v63 }
 0x609   : > { %v7575_v54 = vpop.xlane.xlu0 %7574  ;;  %v9377_v27 = vpack.c.bf16 %v17412_v44, %v17410_v21  ;;  %v8555_v23 = vpop.f32.mrb[175].mxu1 }
 0x60a   : > { %11686 = vrcp.f32 %v7575_v54  ;;  %v8393_v56 = vpop.f32.mrb[232].mxu0 }
 0x60b   : > { %10558 = vmatmul.mubr.msk.bf16.gmra.mrb[228].mxu1 %vm5021_vm0, %v9105_v26  ;;  %v8395_v8 = vpop.f32.mrb[233].mxu0 }
 0x60c   : > { %v8396_v33 = vpop.f32.mrb[234].mxu0 }
 0x60d   : > { %v9106_v5 = vpack.c.bf16 %v8396_v33, %v8393_v56  ;;  %v8398_v55 = vpop.f32.mrb[235].mxu0 }
 0x60e   : > { %v17423_v46 = vpop.f32.mrb[176].mxu1 }
 0x60f   : > { %v8560_v60 = vpop.f32.mrb[177].mxu1  ;;  %10561 = vmatprep.mubr.msk.bf16.mxu1 %vm5021_vm0, %v9106_v5 }
 0x610   : > { %v17426_v6 = vpop.f32.mrb[178].mxu1 }
 0x611   : > { %v11685_v48 = vpop.eup %11684  ;;  %v9378_v12 = vpack.c.bf16 %v17426_v6, %v17423_v46  ;;  %v8563_v7 = vpop.f32.mrb[179].mxu1 }
 0x612   : > { %v8401_v53 = vpop.f32.mrb[236].mxu0  ;;  %v7958_v1 = vmul.f32 %v11685_v48, %v17123_v19  ;;  %v7959_v43 = vmul.f32 %v11685_v48, %v19863_v31 }
 0x613   : > { %v8403_v24 = vpop.f32.mrb[237].mxu0 }
 0x614   : > { %v11687_v35 = vpop.eup %11686  ;;  %v8404_v28 = vpop.f32.mrb[238].mxu0 }
 0x615   : > { %v7960_v15 = vmul.f32 %v11687_v35, %v17127_v47  ;;  %v7961_v10 = vmul.f32 %v11687_v35, %v19864_v62  ;;  %v9107_v18 = vpack.c.bf16 %v8404_v28, %v8401_v53  ;;  %v8406_v25 = vpop.f32.mrb[239].mxu0 }
 0x616   : > { %v7578_v59 = vpop.xlane.xlu1 %7577  ;;  %v17434_v58 = vpop.f32.mrb[180].mxu1 }
 0x617   : > { %v8090_v50 = vpack.c.bf16 %v7960_v15, %v7958_v1  ;;  %11688 = vrcp.f32 %v7578_v59  ;;  %v8091_v57 = vpack.c.bf16 %v7961_v10, %v7959_v43  ;;  %v8568_v14 = vpop.f32.mrb[181].mxu1  ;;  %10562 = vmatmul.mubr.msk.bf16.gmra.mrb[232].mxu1 %vm5021_vm0, %v9107_v18 }
 0x618   : > { %v17437_v19 = vpop.f32.mrb[182].mxu1 }
 0x619   : > { %v7581_v30 = vpop.xlane.xlu0 %7580  ;;  %8801 = vmatprep.mubr.bf16.mxu0 %v8091_v57  ;;  %v9379_v47 = vpack.c.bf16 %v17437_v19, %v17434_v58  ;;  %v8571_v32 = vpop.f32.mrb[183].mxu1 }
 0x61a   : > { %11690 = vrcp.f32 %v7581_v30  ;;  %8802 = vmatmul.mubr.bf16.gmra.mrb[64].mxu0 %v8090_v50  ;;  %v8409_v52 = vpop.f32.mrb[240].mxu0 }
 0x61b   : > { %v8411_v26 = vpop.f32.mrb[241].mxu0 }
 0x61c   : > { %v8412_v20 = vpop.f32.mrb[242].mxu0 }
 0x61d   : > { %v9108_v9 = vpack.c.bf16 %v8412_v20, %v8409_v52  ;;  %v8414_v63 = vpop.f32.mrb[243].mxu0 }
 0x61f   : > { %10565 = vmatprep.mubr.msk.bf16.mxu1 %vm5021_vm0, %v9108_v9 }
 0x621   : > { %v11689_v41 = vpop.eup %11688 }
 0x622   : > { %v8417_v54 = vpop.f32.mrb[244].mxu0  ;;  %v7962_v23 = vmul.f32 %v11689_v41, %v17163_v34  ;;  %v7963_v33 = vmul.f32 %v11689_v41, %v17165_v4 }
 0x623   : > { %v8419_v8 = vpop.f32.mrb[245].mxu0 }
 0x624   : > { %v11691_v42 = vpop.eup %11690  ;;  %v8420_v55 = vpop.f32.mrb[246].mxu0 }
 0x625   : > { %v7964_v56 = vmul.f32 %v11691_v42, %v17167_v38  ;;  %v7965_v5 = vmul.f32 %v11691_v42, %v17171_v22  ;;  %v17446_v60 = vpop.f32.mrb[184].mxu1  ;;  %v9109_v7 = vpack.c.bf16 %v8420_v55, %v8417_v54  ;;  %v8422_v53 = vpop.f32.mrb[247].mxu0 }
 0x626   : > { %v8576_v35 = vpop.f32.mrb[185].mxu1 }
 0x627   : > { %v8092_v48 = vpack.c.bf16 %v7964_v56, %v7962_v23  ;;  %v8093_v24 = vpack.c.bf16 %v7965_v5, %v7963_v33  ;;  %v17448_v1 = vpop.f32.mrb[186].mxu1  ;;  %10566 = vmatmul.mubr.msk.bf16.gmra.mrb[236].mxu1 %vm5021_vm0, %v9109_v7 }
 0x628   : > { %v9380_v34 = vpack.c.bf16 %v17448_v1, %v17446_v60  ;;  %v8579_v38 = vpop.f32.mrb[187].mxu1 }
 0x629   : > { %8809 = vmatprep.mubr.bf16.mxu0 %v8093_v24  ;;  %v10923_v38 = vld [vmem:[%s17700_s4 + $0x38] sm:$0xff]  }
 0x62a   : > { %8810 = vmatmul.mubr.bf16.gmra.mrb[68].mxu0 %v8092_v48  ;;  %v8425_v4 = vpop.f32.mrb[248].mxu0 }
 0x62b   : > { %v8427_v22 = vpop.f32.mrb[249].mxu0 }
 0x62c   : > { %v8428_v15 = vpop.f32.mrb[250].mxu0 }
 0x62d   : > { %v9110_v28 = vpack.c.bf16 %v8428_v15, %v8425_v4  ;;  %v8430_v31 = vpop.f32.mrb[251].mxu0 }
 0x62f   : > { %10569 = vmatprep.mubr.msk.bf16.mxu1 %vm5021_vm0, %v9110_v28 }
 0x633   : > { %v8433_v43 = vpop.f32.mrb[252].mxu0 }
 0x634   : > { %v8435_v62 = vpop.f32.mrb[253].mxu0  ;;  %v17454_v18 = vpop.f32.mrb[188].mxu1 }
 0x635   : > { %v8436_v10 = vpop.f32.mrb[254].mxu0  ;;  %v8584_v50 = vpop.f32.mrb[189].mxu1 }
 0x636   : > { %v9111_v25 = vpack.c.bf16 %v8436_v10, %v8433_v43  ;;  %v8438_v59 = vpop.f32.mrb[255].mxu0  ;;  %v17456_v57 = vpop.f32.mrb[190].mxu1 }
 0x637   : > { %v9381_v14 = vpack.c.bf16 %v17456_v57, %v17454_v18  ;;  %v8587_v30 = vpop.f32.mrb[191].mxu1 }
 0x638   : > { %10570 = vmatmul.mubr.msk.bf16.gmra.mrb[240].mxu1 %vm5021_vm0, %v9111_v25 }
 0x63b   : > { %v8441_v32 = vpop.f32.mrb[0].mxu0 }
 0x63c   : > { %v8443_v52 = vpop.f32.mrb[1].mxu0 }
 0x63d   : > { %v8444_v26 = vpop.f32.mrb[2].mxu0 }
 0x63e   : > { %v9112_v20 = vpack.c.bf16 %v8444_v26, %v8441_v32  ;;  %v8446_v9 = vpop.f32.mrb[3].mxu0 }
 0x640   : > { %10573 = vmatprep.mubr.msk.bf16.mxu1 %vm5021_vm0, %v9112_v20 }
 0x643   : > { %v8449_v63 = vpop.f32.mrb[4].mxu0 }
 0x644   : > { %v8451_v41 = vpop.f32.mrb[5].mxu0 }
 0x645   : > { %v17462_v42 = vpop.f32.mrb[192].mxu1  ;;  %v8452_v54 = vpop.f32.mrb[6].mxu0 }
 0x646   : > { %v8592_v23 = vpop.f32.mrb[193].mxu1  ;;  %v9113_v56 = vpack.c.bf16 %v8452_v54, %v8449_v63  ;;  %v8454_v8 = vpop.f32.mrb[7].mxu0 }
 0x647   : > { %v8593_v33 = vpop.f32.mrb[194].mxu1 }
 0x648   : > { %v9382_v5 = vpack.c.bf16 %v8593_v33, %v17462_v42  ;;  %v8595_v55 = vpop.f32.mrb[195].mxu1  ;;  %10574 = vmatmul.mubr.msk.bf16.gmra.mrb[244].mxu1 %vm5021_vm0, %v9113_v56 }
 0x649   : > { %10581 = vmatprep.mubr.msk.bf16.mxu1 %vm5021_vm0, %v9372_v36 }
 0x64b   : > { %v17470_v48 = vpop.f32.mrb[8].mxu0 }
 0x64c   : > { %v8693_v7 = vpop.f32.mrb[9].mxu0 }
 0x64d   : > { %v17472_v53 = vpop.f32.mrb[10].mxu0 }
 0x64e   : > { %v9646_v35 = vpack.c.bf16 %v17472_v53, %v17470_v48  ;;  %v8696_v24 = vpop.f32.mrb[11].mxu0 }
 0x650   : > { %10582 = vmatmul.mubr.msk.bf16.vlgmr.msra.gmra.mrb[216].mxu1 %vm5021_vm0, %v9373_v29 }
 0x651   : > { %10585 = vmatprep.mubr.msk.bf16.mxu1 %vm5021_vm0, %v9374_v17  ;;  %10614 = vmatpush3.bf16.msra.mxu1 %v17417_v49 }
 0x652   : > { %10615 = vmatprep.subr.bf16.mxu1 %v10923_v38 }
 0x655   : > { %v17488_v11 = vpop.f32.mrb[12].mxu0  ;;  %10616 = vmatpush3.bf16.msra.mxu1 %v10923_v38 }
 0x656   : > { %v8701_v2 = vpop.f32.mrb[13].mxu0  ;;  %v8598_v36 = vpop.f32.mrb[196].mxu1 }
 0x657   : > { %v17490_v4 = vpop.f32.mrb[14].mxu0  ;;  %v8600_v22 = vpop.f32.mrb[197].mxu1 }
 0x658   : > { %v9647_v51 = vpack.c.bf16 %v17490_v4, %v17488_v11  ;;  %v8704_v37 = vpop.f32.mrb[15].mxu0  ;;  %v8601_v29 = vpop.f32.mrb[198].mxu1  ;;  %10586 = vmatmul.mubr.msk.bf16.gmra.mrb[220].mxu1 %vm5021_vm0, %v9375_v61 }
 0x659   : > { %v9383_v15 = vpack.c.bf16 %v8601_v29, %v8598_v36  ;;  %v8603_v40 = vpop.f32.mrb[199].mxu1  ;;  %10589 = vmatprep.mubr.msk.bf16.mxu1 %vm5021_vm0, %v9376_v16 }
 0x65d   : > { %v17502_v0 = vpop.f32.mrb[16].mxu0 }
 0x65e   : > { %v8709_v17 = vpop.f32.mrb[17].mxu0 }
 0x65f   : > { %v17504_v49 = vpop.f32.mrb[18].mxu0 }
 0x660   : > { %v9648_v28 = vpack.c.bf16 %v17504_v49, %v17502_v0  ;;  %v8712_v31 = vpop.f32.mrb[19].mxu0  ;;  %10590 = vmatmul.mubr.msk.bf16.gmra.mrb[224].mxu1 %vm5021_vm0, %v9377_v27 }
 0x661   : > { %10593 = vmatprep.mubr.msk.bf16.mxu1 %vm5021_vm0, %v9378_v12 }
 0x665   : > { %v17516_v13 = vpop.f32.mrb[20].mxu0 }
 0x666   : > { %v8717_v39 = vpop.f32.mrb[21].mxu0  ;;  %v8606_v61 = vpop.f32.mrb[200].mxu1 }
 0x667   : > { %v17518_v3 = vpop.f32.mrb[22].mxu0  ;;  %v8608_v45 = vpop.f32.mrb[201].mxu1 }
 0x668   : > { %v9649_v16 = vpack.c.bf16 %v17518_v3, %v17516_v13  ;;  %v8720_v43 = vpop.f32.mrb[23].mxu0  ;;  %v8609_v62 = vpop.f32.mrb[202].mxu1  ;;  %10594 = vmatmul.mubr.msk.bf16.gmra.mrb[228].mxu1 %vm5021_vm0, %v9379_v47 }
 0x669   : > { %v9384_v21 = vpack.c.bf16 %v8609_v62, %v8606_v61  ;;  %v8611_v44 = vpop.f32.mrb[203].mxu1  ;;  %10597 = vmatprep.mubr.msk.bf16.mxu1 %vm5021_vm0, %v9380_v34 }
 0x66d   : > { %v8723_v27 = vpop.f32.mrb[24].mxu0 }
 0x66e   : > { %v8725_v46 = vpop.f32.mrb[25].mxu0  ;;  %v8614_v6 = vpop.f32.mrb[204].mxu1 }
 0x66f   : > { %v8726_v12 = vpop.f32.mrb[26].mxu0  ;;  %v8616_v10 = vpop.f32.mrb[205].mxu1 }
 0x670   : > { %v9650_v25 = vpack.c.bf16 %v8726_v12, %v8723_v27  ;;  %v8728_v59 = vpop.f32.mrb[27].mxu0  ;;  %v8617_v50 = vpop.f32.mrb[206].mxu1  ;;  %10598 = vmatmul.mubr.msk.bf16.gmra.mrb[232].mxu1 %vm5021_vm0, %v9381_v14 }
 0x671   : > { %v9385_v30 = vpack.c.bf16 %v8617_v50, %v8614_v6  ;;  %v8619_v32 = vpop.f32.mrb[207].mxu1  ;;  %10601 = vmatprep.mubr.msk.bf16.mxu1 %vm5021_vm0, %v9382_v5 }
 0x675   : > { %v8731_v58 = vpop.f32.mrb[28].mxu0 }
 0x676   : > { %v8733_v19 = vpop.f32.mrb[29].mxu0  ;;  %v8622_v47 = vpop.f32.mrb[208].mxu1 }
 0x677   : > { %v8734_v60 = vpop.f32.mrb[30].mxu0  ;;  %v8624_v1 = vpop.f32.mrb[209].mxu1  ;;  %v17571_v19 = vld [vmem:[%s17701_s5] ss:$0 sm:$0xff] }
 0x678   : > { %v9651_v34 = vpack.c.bf16 %v8734_v60, %v8731_v58  ;;  %v8736_v52 = vpop.f32.mrb[31].mxu0  ;;  %v8625_v26 = vpop.f32.mrb[210].mxu1  ;;  %10602 = vmatmul.mubr.msk.bf16.gmra.mrb[236].mxu1 %vm5021_vm0, %v9383_v15 }
 0x679   : > { %v9386_v20 = vpack.c.bf16 %v8625_v26, %v8622_v47  ;;  %v8627_v9 = vpop.f32.mrb[211].mxu1  ;;  %10605 = vmatprep.mubr.msk.bf16.mxu1 %vm5021_vm0, %v9384_v21 }
 0x67d   : > { %v8739_v63 = vpop.f32.mrb[32].mxu0 }
 0x67e   : > { %v8741_v18 = vpop.f32.mrb[33].mxu0  ;;  %v8630_v57 = vpop.f32.mrb[212].mxu1 }
 0x67f   : > { %v8742_v14 = vpop.f32.mrb[34].mxu0  ;;  %v8632_v41 = vpop.f32.mrb[213].mxu1 }
 0x680   : > { %v9652_v42 = vpack.c.bf16 %v8742_v14, %v8739_v63  ;;  %v8744_v54 = vpop.f32.mrb[35].mxu0  ;;  %v8633_v23 = vpop.f32.mrb[214].mxu1  ;;  %10606 = vmatmul.mubr.msk.bf16.gmra.mrb[240].mxu1 %vm5021_vm0, %v9385_v30 }
 0x681   : > { %v9387_v56 = vpack.c.bf16 %v8633_v23, %v8630_v57  ;;  %v8635_v8 = vpop.f32.mrb[215].mxu1  ;;  %10609 = vmatprep.mubr.msk.bf16.mxu1 %vm5021_vm0, %v9386_v20 }
 0x685   : > { %v8747_v33 = vpop.f32.mrb[36].mxu0 }
 0x686   : > { %v8749_v5 = vpop.f32.mrb[37].mxu0 }
 0x687   : > { %v8750_v55 = vpop.f32.mrb[38].mxu0 }
 0x688   : > { %v9653_v7 = vpack.c.bf16 %v8750_v55, %v8747_v33  ;;  %v8752_v24 = vpop.f32.mrb[39].mxu0  ;;  %10610 = vmatmul.mubr.msk.bf16.gmra.mrb[244].mxu1 %vm5021_vm0, %v9387_v56 }
 0x689   : > { %10617 = vmatprep.mubr.msk.bf16.mxu1 %vm5021_vm0, %v9646_v35 }
 0x68d   : > { %v8755_v38 = vpop.f32.mrb[40].mxu0 }
 0x68e   : > { %v8757_v2 = vpop.f32.mrb[41].mxu0 }
 0x68f   : > { %v8758_v36 = vpop.f32.mrb[42].mxu0 }
 0x690   : > { %v9654_v22 = vpack.c.bf16 %v8758_v36, %v8755_v38  ;;  %v8760_v37 = vpop.f32.mrb[43].mxu0  ;;  %10618 = vmatmul.mubr.msk.bf16.vlgmr.msra.gmra.mrb[216].mxu1 %vm5021_vm0, %v9647_v51 }
 0x691   : > { %10621 = vmatprep.mubr.msk.bf16.mxu1 %vm5021_vm0, %v9648_v28 }
 0x695   : > { %v8763_v29 = vpop.f32.mrb[44].mxu0 }
 0x696   : > { %v8765_v15 = vpop.f32.mrb[45].mxu0 }
 0x697   : > { %v8766_v48 = vpop.f32.mrb[46].mxu0 }
 0x698   : > { %v9655_v53 = vpack.c.bf16 %v8766_v48, %v8763_v29  ;;  %v8768_v35 = vpop.f32.mrb[47].mxu0  ;;  %10622 = vmatmul.mubr.msk.bf16.gmra.mrb[220].mxu1 %vm5021_vm0, %v9649_v16 }
 0x699   : > { %10625 = vmatprep.mubr.msk.bf16.mxu1 %vm5021_vm0, %v9650_v25 }
 0x6a0   : > { %10626 = vmatmul.mubr.msk.bf16.gmra.mrb[224].mxu1 %vm5021_vm0, %v9651_v34 }
 0x6a1   : > { %10629 = vmatprep.mubr.msk.bf16.mxu1 %vm5021_vm0, %v9652_v42 }
 0x6a8   : > { %10630 = vmatmul.mubr.msk.bf16.gmra.mrb[228].mxu1 %vm5021_vm0, %v9653_v7 }
 0x6a9   : > { %10633 = vmatprep.mubr.msk.bf16.mxu1 %vm5021_vm0, %v9654_v22 }
 0x6ac   : > { %v8771_v11 = vpop.f32.mrb[48].mxu0 }
 0x6ad   : > { %v8773_v4 = vpop.f32.mrb[49].mxu0 }
 0x6ae   : > { %v8774_v51 = vpop.f32.mrb[50].mxu0 }
 0x6af   : > { %v9656_v40 = vpack.c.bf16 %v8774_v51, %v8771_v11  ;;  %v8776_v0 = vpop.f32.mrb[51].mxu0 }
 0x6b0   : > { %10634 = vmatmul.mubr.msk.bf16.gmra.mrb[232].mxu1 %vm5021_vm0, %v9655_v53 }
 0x6b1   : > { %10637 = vmatprep.mubr.msk.bf16.mxu1 %vm5021_vm0, %v9656_v40 }
 0x6be   : > { %v8779_v17 = vpop.f32.mrb[52].mxu0 }
 0x6bf   : > { %v8781_v49 = vpop.f32.mrb[53].mxu0 }
 0x6c0   : > { %v8782_v28 = vpop.f32.mrb[54].mxu0 }
 0x6c1   : > { %v9657_v31 = vpack.c.bf16 %v8782_v28, %v8779_v17  ;;  %v8784_v13 = vpop.f32.mrb[55].mxu0 }
 0x6c3   : > { %10638 = vmatmul.mubr.msk.bf16.gmra.mrb[236].mxu1 %vm5021_vm0, %v9657_v31 }
 0x6cc   : > { %v8787_v39 = vpop.f32.mrb[56].mxu0 }
 0x6cd   : > { %v8789_v61 = vpop.f32.mrb[57].mxu0 }
 0x6ce   : > { %v8790_v3 = vpop.f32.mrb[58].mxu0 }
 0x6cf   : > { %v9658_v45 = vpack.c.bf16 %v8790_v3, %v8787_v39  ;;  %v8792_v16 = vpop.f32.mrb[59].mxu0 }
 0x6d1   : > { %10641 = vmatprep.mubr.msk.bf16.mxu1 %vm5021_vm0, %v9658_v45 }
 0x6db   : > { %v8795_v43 = vpop.f32.mrb[60].mxu0 }
 0x6dc   : > { %v8797_v62 = vpop.f32.mrb[61].mxu0 }
 0x6dd   : > { %v8798_v21 = vpop.f32.mrb[62].mxu0 }
 0x6de   : > { %v9659_v44 = vpack.c.bf16 %v8798_v21, %v8795_v43  ;;  %v8800_v27 = vpop.f32.mrb[63].mxu0 }
 0x6e0   : > { %10642 = vmatmul.mubr.msk.bf16.gmra.mrb[240].mxu1 %vm5021_vm0, %v9659_v44 }
 0x6ed   : > { %v8803_v46 = vpop.f32.mrb[64].mxu0 }
 0x6ee   : > { %v8805_v6 = vpop.f32.mrb[65].mxu0 }
 0x6ef   : > { %v8806_v12 = vpop.f32.mrb[66].mxu0 }
 0x6f0   : > { %v9660_v10 = vpack.c.bf16 %v8806_v12, %v8803_v46  ;;  %v8808_v25 = vpop.f32.mrb[67].mxu0 }
 0x6f2   : > { %10645 = vmatprep.mubr.msk.bf16.mxu1 %vm5021_vm0, %v9660_v10 }
 0x6fd   : > { %v8811_v59 = vpop.f32.mrb[68].mxu0 }
 0x6fe   : > { %v8813_v50 = vpop.f32.mrb[69].mxu0 }
 0x6ff   : > { %v8814_v30 = vpop.f32.mrb[70].mxu0 }
 0x700   : > { %v9661_v32 = vpack.c.bf16 %v8814_v30, %v8811_v59  ;;  %v8816_v58 = vpop.f32.mrb[71].mxu0 }
 0x702   : > { %10646 = vmatmul.mubr.msk.bf16.gmra.mrb[244].mxu1 %vm5021_vm0, %v9661_v32 }
 0x763   : > { %v10619_v47 = vpop.f32.mrb[216].mxu1 }
 0x764   : > { %v10653_v60 = vadd.f32 %v10619_v47, %v17571_v19  ;;  %v9761_v1 = vpop.f32.mrb[217].mxu1 }
 0x765   : > { %v10654_v34 = vadd.f32 %v17571_v19, %v9761_v1  ;;  %v10620_v52 = vpop.f32.mrb[218].mxu1 }
 0x766   : > { %9922 = vst [vmem:[%s17575_s20 + $0x10] sm:$0xff] %v10653_v60  ;;  %v10655_v26 = vadd.f32 %v10620_v52, %v17571_v19  ;;  %v9764_v20 = vpop.f32.mrb[219].mxu1 }
 0x767   : > { %9920 = vst [vmem:[%s17575_s20] sm:$0xff] %v10654_v34  ;;  %v10656_v9 = vadd.f32 %v17571_v19, %v9764_v20 }
 0x768   : > { %9923 = vst [vmem:[%s17575_s20 + $0x18] sm:$0xff] %v10655_v26 }
 0x769   : > { %9921 = vst [vmem:[%s17575_s20 + $0x8] sm:$0xff] %v10656_v9 }
 0x76b   : > { %v10623_v63 = vpop.f32.mrb[220].mxu1 }
 0x76c   : > { %v10657_v18 = vadd.f32 %v10623_v63, %v17571_v19  ;;  %v9777_v57 = vpop.f32.mrb[221].mxu1 }
 0x76d   : > { %v10658_v14 = vadd.f32 %v17571_v19, %v9777_v57  ;;  %v10624_v41 = vpop.f32.mrb[222].mxu1 }
 0x76e   : > { %9926 = vst [vmem:[%s17575_s20 + $0x30] sm:$0xff] %v10657_v18  ;;  %v10659_v42 = vadd.f32 %v10624_v41, %v17571_v19  ;;  %v9780_v54 = vpop.f32.mrb[223].mxu1 }
 0x76f   : > { %9924 = vst [vmem:[%s17575_s20 + $0x20] sm:$0xff] %v10658_v14  ;;  %v10660_v23 = vadd.f32 %v17571_v19, %v9780_v54 }
 0x770   : > { %9927 = vst [vmem:[%s17575_s20 + $0x38] sm:$0xff] %v10659_v42 }
 0x771   : > { %9925 = vst [vmem:[%s17575_s20 + $0x28] sm:$0xff] %v10660_v23 }
 0x773   : > { %v10627_v56 = vpop.f32.mrb[224].mxu1 }
 0x774   : > { %v10661_v8 = vadd.f32 %v10627_v56, %v17571_v19  ;;  %v9793_v33 = vpop.f32.mrb[225].mxu1 }
 0x775   : > { %v10662_v5 = vadd.f32 %v17571_v19, %v9793_v33  ;;  %v10628_v55 = vpop.f32.mrb[226].mxu1 }
 0x776   : > { %9930 = vst [vmem:[%s17575_s20 + $0x50] sm:$0xff] %v10661_v8  ;;  %v10663_v7 = vadd.f32 %v10628_v55, %v17571_v19  ;;  %v9796_v24 = vpop.f32.mrb[227].mxu1 }
 0x777   : > { %9928 = vst [vmem:[%s17575_s20 + $0x40] sm:$0xff] %v10662_v5  ;;  %v10664_v38 = vadd.f32 %v17571_v19, %v9796_v24 }
 0x778   : > { %9931 = vst [vmem:[%s17575_s20 + $0x58] sm:$0xff] %v10663_v7 }
 0x779   : > { %9929 = vst [vmem:[%s17575_s20 + $0x48] sm:$0xff] %v10664_v38 }
 0x77b   : > { %v10631_v2 = vpop.f32.mrb[228].mxu1 }
 0x77c   : > { %v10665_v36 = vadd.f32 %v10631_v2, %v17571_v19  ;;  %v9809_v22 = vpop.f32.mrb[229].mxu1 }
 0x77d   : > { %v10666_v37 = vadd.f32 %v17571_v19, %v9809_v22  ;;  %v10632_v29 = vpop.f32.mrb[230].mxu1 }
 0x77e   : > { %9934 = vst [vmem:[%s17575_s20 + $0x70] sm:$0xff] %v10665_v36  ;;  %v10667_v15 = vadd.f32 %v10632_v29, %v17571_v19  ;;  %v9812_v48 = vpop.f32.mrb[231].mxu1 }
 0x77f   : > { %9932 = vst [vmem:[%s17575_s20 + $0x60] sm:$0xff] %v10666_v37  ;;  %v10668_v53 = vadd.f32 %v17571_v19, %v9812_v48 }
 0x780   : > { %9935 = vst [vmem:[%s17575_s20 + $0x78] sm:$0xff] %v10667_v15 }
 0x781   : > { %9933 = vst [vmem:[%s17575_s20 + $0x68] sm:$0xff] %v10668_v53 }
 0x783   : > { %v10635_v35 = vpop.f32.mrb[232].mxu1 }
 0x784   : > { %v10669_v11 = vadd.f32 %v10635_v35, %v17571_v19  ;;  %v9825_v4 = vpop.f32.mrb[233].mxu1 }
 0x785   : > { %v10670_v51 = vadd.f32 %v17571_v19, %v9825_v4  ;;  %v10636_v40 = vpop.f32.mrb[234].mxu1 }
 0x786   : > { %9938 = vst [vmem:[%s17575_s20 + $0x90] sm:$0xff] %v10669_v11  ;;  %v10671_v0 = vadd.f32 %v10636_v40, %v17571_v19  ;;  %v9828_v17 = vpop.f32.mrb[235].mxu1 }
 0x787   : > { %9936 = vst [vmem:[%s17575_s20 + $0x80] sm:$0xff] %v10670_v51  ;;  %v10672_v49 = vadd.f32 %v17571_v19, %v9828_v17 }
 0x788   : > { %9939 = vst [vmem:[%s17575_s20 + $0x98] sm:$0xff] %v10671_v0 }
 0x789   : > { %9937 = vst [vmem:[%s17575_s20 + $0x88] sm:$0xff] %v10672_v49 }
 0x796   : > { %v10639_v28 = vpop.f32.mrb[236].mxu1 }
 0x797   : > { %v10673_v31 = vadd.f32 %v10639_v28, %v17571_v19  ;;  %v9841_v13 = vpop.f32.mrb[237].mxu1 }
 0x798   : > { %v10674_v39 = vadd.f32 %v17571_v19, %v9841_v13  ;;  %v10640_v61 = vpop.f32.mrb[238].mxu1 }
 0x799   : > { %9942 = vst [vmem:[%s17575_s20 + $0xb0] sm:$0xff] %v10673_v31  ;;  %v10675_v3 = vadd.f32 %v10640_v61, %v17571_v19  ;;  %v9844_v45 = vpop.f32.mrb[239].mxu1 }
 0x79a   : > { %9940 = vst [vmem:[%s17575_s20 + $0xa0] sm:$0xff] %v10674_v39  ;;  %v10676_v16 = vadd.f32 %v17571_v19, %v9844_v45 }
 0x79b   : > { %9943 = vst [vmem:[%s17575_s20 + $0xb8] sm:$0xff] %v10675_v3 }
 0x79c   : > { %9941 = vst [vmem:[%s17575_s20 + $0xa8] sm:$0xff] %v10676_v16 }
 0x7b3   : > { %v10643_v43 = vpop.f32.mrb[240].mxu1 }
 0x7b4   : > { %v10677_v62 = vadd.f32 %v10643_v43, %v17571_v19  ;;  %v9857_v21 = vpop.f32.mrb[241].mxu1 }
 0x7b5   : > { %v10678_v44 = vadd.f32 %v17571_v19, %v9857_v21  ;;  %v10644_v27 = vpop.f32.mrb[242].mxu1 }
 0x7b6   : > { %9946 = vst [vmem:[%s17575_s20 + $0xd0] sm:$0xff] %v10677_v62  ;;  %v10679_v46 = vadd.f32 %v10644_v27, %v17571_v19  ;;  %v9860_v6 = vpop.f32.mrb[243].mxu1 }
 0x7b7   : > { %9944 = vst [vmem:[%s17575_s20 + $0xc0] sm:$0xff] %v10678_v44  ;;  %v10680_v12 = vadd.f32 %v17571_v19, %v9860_v6 }
 0x7b8   : > { %9947 = vst [vmem:[%s17575_s20 + $0xd8] sm:$0xff] %v10679_v46 }
 0x7b9   : > { %9945 = vst [vmem:[%s17575_s20 + $0xc8] sm:$0xff] %v10680_v12 }
 0x7d5   : > { %v10647_v10 = vpop.f32.mrb[244].mxu1 }
 0x7d6   : > { %v10681_v25 = vadd.f32 %v10647_v10, %v17571_v19  ;;  %v9873_v59 = vpop.f32.mrb[245].mxu1 }
 0x7d7   : > { %v10682_v50 = vadd.f32 %v17571_v19, %v9873_v59  ;;  %v10648_v30 = vpop.f32.mrb[246].mxu1 }
 0x7d8   : > { %9950 = vst [vmem:[%s17575_s20 + $0xf0] sm:$0xff] %v10681_v25  ;;  %v10683_v32 = vadd.f32 %v10648_v30, %v17571_v19  ;;  %v9876_v58 = vpop.f32.mrb[247].mxu1 }
 0x7d9   : > { %9948 = vst [vmem:[%s17575_s20 + $0xe0] sm:$0xff] %v10682_v50  ;;  %v10684_v47 = vadd.f32 %v17571_v19, %v9876_v58 }
 0x7da   : > { %9951 = vst [vmem:[%s17575_s20 + $0xf8] sm:$0xff] %v10683_v32 }
 0x7db   : > { %9949 = vst [vmem:[%s17575_s20 + $0xe8] sm:$0xff] %v10684_v47 }
 0x7dc   : > { %11705 = shalt.err (!%p11702_p5)
}
 0x7dd   : > { %s11706_s15 = scalar_lea.hbm %s17640_s11, 4096  ;;  %s11710_s19 = scalar_lea.hbm %s17702_s6, 8192 }
 0x7de   : > { %p11707_p6 = scmp.ne.s32.totalorder %s17640_s11, %s11706_s15  ;;  %p11711_p10 = scmp.lt.u32.totalorder %s17640_s11, %s17702_s6 }
 0x7df   : > { %p11712_p11 = scmp.lt.u32.totalorder %s11710_s19, %s11706_s15  ;;  %p11714_p13 = scmp.lt.u32.totalorder %s11706_s15, %s17640_s11 }
 0x7e0   : > { %p11708_p7 = pnand %p11707_p6, %p11856_p4 }
 0x7e1   : > { %p11713_p12 = por %p11712_p11, %p11711_p10 }
 0x7e2   : > { %p11709_p9 = pneg %p11708_p7 }
 0x7e3   : > { %p11715_p0 = por %p11714_p13, %p11713_p12 }
 0x7e5   : > { %p11716_p1 = pnand %p11715_p0, %p11709_p9 }
 0x7e7   : > { %11719 = shalt.err (!%p11716_p1)
}
 0x7e8   : > { %s11779_s30 = smov 128   ;;  %s11780_s8 = smov 8  }
 0x7e9   : > { %10781 = dma.vmem_to_hbm [thread:$0]  (%p11856_p4), %s17642_s27, 4096, %s17640_s11, %s17650_s24, %s11779_s30, %s11779_s30, %s11780_s8  }
 0x7ea PF: > { %p10787_p2 = scmp.ge.s32.totalorder %s11770_s26, 2  ;;  %s9983_s12 = sand.u32 1, %s11750_s21  }
 0x7eb   : > { %s9984_s13 = scalar_lea.sflag [#allocation3], %s9983_s12 }
 0x7ec   : > { %p10784_p3 = pnand %p10787_p2, %p11863_p8 }
 0x7ee   : > { %11745 = dma.done.wait (!%p10784_p3), %s9984_s13, 4096  }
 0x7ef   : > { %11747 = vsyncadd (!%p10784_p3), %s9984_s13, 4294963200  ;;  %s19_s26 = sadd.s32 1, %s11770_s26   ;;  %s19865_s21 = smov %s11754_s22 }
 0x7f0   : > { %p16_p5 = scmp.ge.s32.totalorder %s19_s26, 4   ;;  %s19866_s22 = smov %s11758_s23 }
 0x7f1   : > { %s19867_s23 = smov %s11869_s10  ;;  %s19868_s24 = smov %s11766_s25 }
 0x7f2   : > { %s19869_s25 = smov %s19871_s29  ;;  %18 = sbr.rel (!%p16_p5) target bundleno = 4 (0x4), region = 88 }
 0x7f9   :  { %9989 = vsyncpa [#allocation3], 1 }
 0x7fa   :  { %9991 = vsyncpa [#allocation3 + $0x1], 1 }

</bundles_post_ra>
